<compile_context>
chip_gen: v7x
topology: tpu7x:2x2x1
jax: 0.10.0
libtpu: 0.0.40
codegen_flags: <defaults>
</compile_context>

<pallas_src>
import jax
import jax.numpy as jnp
from jax import lax
from jax.experimental import pallas as pl
from jax.experimental.pallas import tpu as pltpu

NCLASSES = 500
MXU_DTYPE = jnp.bfloat16      # MXU operand dtype (accumulation & epilogue stay f32)
LANE = 128
VMEM_LIMIT = 32 * 1024 * 1024


def _round_up(x, m):
    return (x + m - 1) // m * m


# ------------------------- Pallas kernels -------------------------

def _conv_pool_relu_kernel(cols_ref, w_ref, b_ref, o_ref):
    """Fused conv (as matmul) + 2x2 maxpool + bias + relu.

    cols_ref: (4, tm, K)  bf16  -- im2col patches, grouped by 2x2 pool-window member
    w_ref:    (K, Npad)   bf16
    b_ref:    (1, Npad)   f32
    o_ref:    (tm, Npad)  f32   -- lane-dense (Npad % 128 == 0)
    """
    w = w_ref[...]
    a0 = jnp.dot(cols_ref[0], w, preferred_element_type=jnp.float32)
    a1 = jnp.dot(cols_ref[1], w, preferred_element_type=jnp.float32)
    a2 = jnp.dot(cols_ref[2], w, preferred_element_type=jnp.float32)
    a3 = jnp.dot(cols_ref[3], w, preferred_element_type=jnp.float32)
    # elementwise max over the 4 pool-window members -> stays on the VPU (no XLU reduction)
    m = jnp.maximum(jnp.maximum(a0, a1), jnp.maximum(a2, a3))
    o_ref[...] = jnp.maximum(m + b_ref[...], 0.0)


def _mlp_kernel(x_ref, w1_ref, b1_ref, w2_ref, b2_ref, o_ref):
    """Fused fc1 (relu) -> fc2; the (M, 128) hidden never leaves the kernel."""
    h = jnp.dot(x_ref[...], w1_ref[...], preferred_element_type=jnp.float32)
    h = jnp.maximum(h + b1_ref[...], 0.0)
    y = jnp.dot(h.astype(w2_ref.dtype), w2_ref[...], preferred_element_type=jnp.float32)
    o_ref[...] = y + b2_ref[...]


# ------------------------- fused conv layer (im2col + matmul + pool + relu) -------------------------

def conv_pool_relu(x_nhwc, w_oihw, b):
    """relu(max_pool2d(conv2d(x, w) + b, 2)) on NHWC input, as a single Pallas kernel."""
    cout, cin, kh, kw = w_oihw.shape
    B, H, W, C = x_nhwc.shape
    assert C == cin
    OH, OW = H - kh + 1, W - kw + 1
    OH2, OW2 = OH // 2, OW // 2
    K = kh * kw * cin
    M = B * OH2 * OW2                       # pooled output pixels

    # --- layout glue (XLA): im2col, grouped by pool-window member (gi, gj) ---
    patches = [x_nhwc[:, di:di + OH, dj:dj + OW, :] for di in range(kh) for dj in range(kw)]
    p = jnp.concatenate(patches, axis=-1)                       # (B, OH, OW, K), order (di, dj, cin)
    p = p.reshape(B, OH2, 2, OW2, 2, K).transpose(2, 4, 0, 1, 3, 5)
    cols4 = p.reshape(4, M, K)                                  # group g = gi*2 + gj

    # --- padding / tiling ---
    Npad = _round_up(cout, LANE)
    nblk = 2 if M >= 64 else 1                                  # >=2 parallel steps for megacore
    tm = _round_up(-(-M // nblk), 8)
    Mpad = tm * nblk
    cols4 = jnp.pad(cols4, ((0, 0), (0, Mpad - M), (0, 0))).astype(MXU_DTYPE)

    w2 = w_oihw.transpose(2, 3, 1, 0).reshape(K, cout)          # (di, dj, cin) x cout
    w2 = jnp.pad(w2, ((0, 0), (0, Npad - cout))).astype(MXU_DTYPE)
    b2 = jnp.pad(b.astype(jnp.float32), (0, Npad - cout)).reshape(1, Npad)

    out = pl.pallas_call(
        _conv_pool_relu_kernel,
        out_shape=jax.ShapeDtypeStruct((Mpad, Npad), jnp.float32),
        grid=(nblk,),
        in_specs=[
            pl.BlockSpec((4, tm, K), lambda i: (0, i, 0)),
            pl.BlockSpec((K, Npad), lambda i: (0, 0)),
            pl.BlockSpec((1, Npad), lambda i: (0, 0)),
        ],
        out_specs=pl.BlockSpec((tm, Npad), lambda i: (i, 0)),
        compiler_params=pltpu.CompilerParams(
            dimension_semantics=("parallel",),
            vmem_limit_bytes=VMEM_LIMIT,
        ),
    )(cols4, w2, b2)

    out = out[:M].reshape(B, OH2, OW2, Npad)
    return out[..., :cout]                                      # drop padded channels


# ------------------------- fused fc head -------------------------

def mlp_head(x, w1, b1, w2, b2):
    """fc2(relu(fc1(x))) with torch-layout weights (out_features, in_features)."""
    M, K = x.shape
    Hd = w1.shape[0]
    N = w2.shape[0]
    Hpad = _round_up(Hd, LANE)
    Npad = _round_up(N, LANE)
    Mpad = _round_up(M, 8)

    xp = jnp.pad(x, ((0, Mpad - M), (0, 0))).astype(MXU_DTYPE)
    w1p = jnp.pad(w1.T, ((0, 0), (0, Hpad - Hd))).astype(MXU_DTYPE)          # (K, Hpad)
    b1p = jnp.pad(b1.astype(jnp.float32), (0, Hpad - Hd)).reshape(1, Hpad)
    w2p = jnp.pad(w2.T, ((0, Hpad - Hd), (0, Npad - N))).astype(MXU_DTYPE)   # (Hpad, Npad)
    b2p = jnp.pad(b2.astype(jnp.float32), (0, Npad - N)).reshape(1, Npad)

    out = pl.pallas_call(
        _mlp_kernel,
        out_shape=jax.ShapeDtypeStruct((Mpad, Npad), jnp.float32),
        compiler_params=pltpu.CompilerParams(vmem_limit_bytes=VMEM_LIMIT),
    )(xp, w1p, b1p, w2p, b2p)
    return out[:M, :N]


# ------------------------- full forward pass -------------------------

def net_forward(params, x_nchw):
    x = jnp.transpose(x_nchw, (0, 2, 3, 1)).astype(jnp.float32)     # -> NHWC
    x = conv_pool_relu(x, params["conv1_w"], params["conv1_b"])
    x = conv_pool_relu(x, params["conv2_w"], params["conv2_b"])
    x = conv_pool_relu(x, params["conv3_w"], params["conv3_b"])
    # torch: x.view(-1, 320) on NCHW -> flatten in (C, H, W) order
    x = jnp.transpose(x, (0, 3, 1, 2)).reshape(x.shape[0], -1)
    return mlp_head(x, params["fc1_w"], params["fc1_b"], params["fc2_w"], params["fc2_b"])


# ------------------------- pure-JAX reference (for correctness check) -------------------------

def net_reference(params, x_nchw, *, match_mxu_precision=True):
    # With match_mxu_precision: matmul/conv operands are rounded through bf16 (values are then
    # exactly representable, products exact, accumulation f32) -> mathematically identical to the
    # kernel's bf16-operand / f32-accumulate MXU path up to accumulation order.
    if match_mxu_precision:
        q = lambda a: a.astype(MXU_DTYPE).astype(jnp.float32)
    else:
        q = lambda a: a.astype(jnp.float32)

    def conv(x, w, b):
        y = lax.conv_general_dilated(q(x), q(w), (1, 1), "VALID",
                                     dimension_numbers=("NCHW", "OIHW", "NCHW"),
                                     precision=lax.Precision.HIGHEST)
        return y + b.reshape(1, -1, 1, 1)

    def pool_relu(x):
        y = lax.reduce_window(x, -jnp.inf, lax.max, (1, 1, 2, 2), (1, 1, 2, 2), "VALID")
        return jnp.maximum(y, 0.0)

    x = x_nchw.astype(jnp.float32)
    x = pool_relu(conv(x, params["conv1_w"], params["conv1_b"]))
    x = pool_relu(conv(x, params["conv2_w"], params["conv2_b"]))
    x = pool_relu(conv(x, params["conv3_w"], params["conv3_b"]))
    x = x.reshape(-1, 320)
    h = jnp.dot(q(x), q(params["fc1_w"].T), precision=lax.Precision.HIGHEST) + params["fc1_b"]
    h = jnp.maximum(h, 0.0)
    return jnp.dot(q(h), q(params["fc2_w"].T), precision=lax.Precision.HIGHEST) + params["fc2_b"]


def init_params(key):
    ks = jax.random.split(key, 10)
    s = 0.05
    return {
        "conv1_w": jax.random.normal(ks[0], (10, 3, 5, 5), jnp.float32) * s,
        "conv1_b": jax.random.normal(ks[1], (10,), jnp.float32) * s,
        "conv2_w": jax.random.normal(ks[2], (20, 10, 5, 5), jnp.float32) * s,
        "conv2_b": jax.random.normal(ks[3], (20,), jnp.float32) * s,
        "conv3_w": jax.random.normal(ks[4], (20, 20, 5, 5), jnp.float32) * s,
        "conv3_b": jax.random.normal(ks[5], (20,), jnp.float32) * s,
        "fc1_w": jax.random.normal(ks[6], (50, 320), jnp.float32) * s,
        "fc1_b": jax.random.normal(ks[7], (50,), jnp.float32) * s,
        "fc2_w": jax.random.normal(ks[8], (NCLASSES, 50), jnp.float32) * s,
        "fc2_b": jax.random.normal(ks[9], (NCLASSES,), jnp.float32) * s,
    }


if __name__ == "__main__":
    key = jax.random.PRNGKey(0)
    k_in, k_par = jax.random.split(key)
    # 60x60 input -> after 3x (conv5 + pool2): 20 x 4 x 4 = 320 features, as required by fc1.
    x = jax.random.normal(k_in, (2, 3, 60, 60), jnp.float32)
    params = init_params(k_par)

    out = jax.block_until_ready(jax.jit(net_forward)(params, x))
    assert out.shape == (2, NCLASSES), out.shape

    # Matched-precision reference (same bf16-operand / f32-accumulate math): tight tolerance.
    ref = jax.block_until_ready(jax.jit(net_reference)(params, x))
    assert jnp.allclose(out, ref, rtol=1e-3, atol=1e-3), float(jnp.max(jnp.abs(out - ref)))

    # Full-f32 reference: loose sanity check on the bf16-operand approximation.
    ref32 = jax.block_until_ready(
        jax.jit(lambda p, xx: net_reference(p, xx, match_mxu_precision=False))(params, x))
    assert jnp.allclose(out, ref32, rtol=5e-2, atol=5e-2), float(jnp.max(jnp.abs(out - ref32)))

    print("KERNEL_OK")
</pallas_src>

<mosaic_0001>
module attributes {stable_mosaic.version = 11 : i64} {
  func.func @_conv_pool_relu_kernel(%arg0: i32, %arg1: memref<4x784x75xbf16, #tpu.memory_space<vmem>>, %arg2: memref<75x128xbf16, #tpu.memory_space<vmem>>, %arg3: memref<1x128xf32, #tpu.memory_space<vmem>>, %arg4: memref<784x128xf32, #tpu.memory_space<vmem>>) attributes {dimension_semantics = [#tpu.dimension_semantics<parallel>], iteration_bounds = array<i64: 2>, scalar_prefetch = 0 : i64, scratch_operands = 0 : i64, tpu.core_type = #tpu.core_type<tc>, window_params = [{transform_indices = @transform_0, window_bounds = array<i64: 4, 784, 75>}, {pipeline_mode = #tpu.pipeline_mode<synchronous>, transform_indices = @transform_1, window_bounds = array<i64: 75, 128>}, {pipeline_mode = #tpu.pipeline_mode<synchronous>, transform_indices = @transform_2, window_bounds = array<i64: 1, 128>}, {transform_indices = @transform_3, window_bounds = array<i64: 784, 128>}]} {
    %c0 = arith.constant 0 : index
    %c0_0 = arith.constant 0 : index
    %0 = vector.load %arg2[%c0, %c0_0] : memref<75x128xbf16, #tpu.memory_space<vmem>>, vector<75x128xbf16>
    %c0_1 = arith.constant 0 : index
    %c0_2 = arith.constant 0 : index
    %c0_3 = arith.constant 0 : index
    %1 = vector.load %arg1[%c0_1, %c0_2, %c0_3] : memref<4x784x75xbf16, #tpu.memory_space<vmem>>, vector<1x784x75xbf16>
    %2 = vector.shape_cast %1 : vector<1x784x75xbf16> to vector<784x75xbf16>
    %cst = arith.constant dense<0.000000e+00> : vector<784x128xf32>
    %3 = tpu.matmul %2, %0, %cst {dimension_numbers = #tpu.dot_dimension_numbers<[1], [0], [0], [1], [0, 0, 1, 1], [], []>} : vector<784x75xbf16>, vector<75x128xbf16>, vector<784x128xf32> -> vector<784x128xf32>
    %c1 = arith.constant 1 : index
    %c0_4 = arith.constant 0 : index
    %c0_5 = arith.constant 0 : index
    %4 = vector.load %arg1[%c1, %c0_4, %c0_5] : memref<4x784x75xbf16, #tpu.memory_space<vmem>>, vector<1x784x75xbf16>
    %5 = vector.shape_cast %4 : vector<1x784x75xbf16> to vector<784x75xbf16>
    %cst_6 = arith.constant dense<0.000000e+00> : vector<784x128xf32>
    %6 = tpu.matmul %5, %0, %cst_6 {dimension_numbers = #tpu.dot_dimension_numbers<[1], [0], [0], [1], [0, 0, 1, 1], [], []>} : vector<784x75xbf16>, vector<75x128xbf16>, vector<784x128xf32> -> vector<784x128xf32>
    %c2 = arith.constant 2 : index
    %c0_7 = arith.constant 0 : index
    %c0_8 = arith.constant 0 : index
    %7 = vector.load %arg1[%c2, %c0_7, %c0_8] : memref<4x784x75xbf16, #tpu.memory_space<vmem>>, vector<1x784x75xbf16>
    %8 = vector.shape_cast %7 : vector<1x784x75xbf16> to vector<784x75xbf16>
    %cst_9 = arith.constant dense<0.000000e+00> : vector<784x128xf32>
    %9 = tpu.matmul %8, %0, %cst_9 {dimension_numbers = #tpu.dot_dimension_numbers<[1], [0], [0], [1], [0, 0, 1, 1], [], []>} : vector<784x75xbf16>, vector<75x128xbf16>, vector<784x128xf32> -> vector<784x128xf32>
    %c3 = arith.constant 3 : index
    %c0_10 = arith.constant 0 : index
    %c0_11 = arith.constant 0 : index
    %10 = vector.load %arg1[%c3, %c0_10, %c0_11] : memref<4x784x75xbf16, #tpu.memory_space<vmem>>, vector<1x784x75xbf16>
    %11 = vector.shape_cast %10 : vector<1x784x75xbf16> to vector<784x75xbf16>
    %cst_12 = arith.constant dense<0.000000e+00> : vector<784x128xf32>
    %12 = tpu.matmul %11, %0, %cst_12 {dimension_numbers = #tpu.dot_dimension_numbers<[1], [0], [0], [1], [0, 0, 1, 1], [], []>} : vector<784x75xbf16>, vector<75x128xbf16>, vector<784x128xf32> -> vector<784x128xf32>
    %13 = arith.maximumf %3, %6 : vector<784x128xf32>
    %14 = arith.maximumf %9, %12 : vector<784x128xf32>
    %15 = arith.maximumf %13, %14 : vector<784x128xf32>
    %c0_13 = arith.constant 0 : index
    %c0_14 = arith.constant 0 : index
    %16 = vector.load %arg3[%c0_13, %c0_14] : memref<1x128xf32, #tpu.memory_space<vmem>>, vector<1x128xf32>
    %17 = vector.broadcast %16 : vector<1x128xf32> to vector<784x128xf32>
    %18 = arith.addf %15, %17 : vector<784x128xf32>
    %cst_15 = arith.constant 0.000000e+00 : f32
    %19 = vector.broadcast %cst_15 : f32 to vector<784x128xf32>
    %20 = arith.maximumf %18, %19 : vector<784x128xf32>
    %c0_16 = arith.constant 0 : index
    %c0_17 = arith.constant 0 : index
    %21 = vector.load %arg4[%c0_16, %c0_17] : memref<784x128xf32, #tpu.memory_space<vmem>>, vector<784x128xf32>
    tpu.vector_store %arg4[%c0_16, %c0_17], %20 {strides = array<i32>} : memref<784x128xf32, #tpu.memory_space<vmem>>, vector<784x128xf32>,
    return
  }
  func.func @transform_0(%arg0: i32) -> (i32, i32, i32) {
    %c0_i32 = arith.constant 0 : i32
    %c0_i32_0 = arith.constant 0 : i32
    %c0_i32_1 = arith.constant 0 : i32
    return %c0_i32, %arg0, %c0_i32_0 : i32, i32, i32
  }
  func.func @transform_1(%arg0: i32) -> (i32, i32) {
    %c0_i32 = arith.constant 0 : i32
    %c0_i32_0 = arith.constant 0 : i32
    %c0_i32_1 = arith.constant 0 : i32
    return %c0_i32, %c0_i32_0 : i32, i32
  }
  func.func @transform_2(%arg0: i32) -> (i32, i32) {
    %c0_i32 = arith.constant 0 : i32
    %c0_i32_0 = arith.constant 0 : i32
    %c0_i32_1 = arith.constant 0 : i32
    return %c0_i32, %c0_i32_0 : i32, i32
  }
  func.func @transform_3(%arg0: i32) -> (i32, i32) {
    %c0_i32 = arith.constant 0 : i32
    %c0_i32_0 = arith.constant 0 : i32
    return %arg0, %c0_i32 : i32, i32
  }
}

module attributes {stable_mosaic.version = 11 : i64} {
  func.func @_conv_pool_relu_kernel(%arg0: i32, %arg1: memref<4x144x250xbf16, #tpu.memory_space<vmem>>, %arg2: memref<250x128xbf16, #tpu.memory_space<vmem>>, %arg3: memref<1x128xf32, #tpu.memory_space<vmem>>, %arg4: memref<144x128xf32, #tpu.memory_space<vmem>>) attributes {dimension_semantics = [#tpu.dimension_semantics<parallel>], iteration_bounds = array<i64: 2>, scalar_prefetch = 0 : i64, scratch_operands = 0 : i64, tpu.core_type = #tpu.core_type<tc>, window_params = [{transform_indices = @transform_0, window_bounds = array<i64: 4, 144, 250>}, {pipeline_mode = #tpu.pipeline_mode<synchronous>, transform_indices = @transform_1, window_bounds = array<i64: 250, 128>}, {pipeline_mode = #tpu.pipeline_mode<synchronous>, transform_indices = @transform_2, window_bounds = array<i64: 1, 128>}, {transform_indices = @transform_3, window_bounds = array<i64: 144, 128>}]} {
    %c0 = arith.constant 0 : index
    %c0_0 = arith.constant 0 : index
    %0 = vector.load %arg2[%c0, %c0_0] : memref<250x128xbf16, #tpu.memory_space<vmem>>, vector<250x128xbf16>
    %c0_1 = arith.constant 0 : index
    %c0_2 = arith.constant 0 : index
    %c0_3 = arith.constant 0 : index
    %1 = vector.load %arg1[%c0_1, %c0_2, %c0_3] : memref<4x144x250xbf16, #tpu.memory_space<vmem>>, vector<1x144x250xbf16>
    %2 = vector.shape_cast %1 : vector<1x144x250xbf16> to vector<144x250xbf16>
    %cst = arith.constant dense<0.000000e+00> : vector<144x128xf32>
    %3 = tpu.matmul %2, %0, %cst {dimension_numbers = #tpu.dot_dimension_numbers<[1], [0], [0], [1], [0, 0, 1, 1], [], []>} : vector<144x250xbf16>, vector<250x128xbf16>, vector<144x128xf32> -> vector<144x128xf32>
    %c1 = arith.constant 1 : index
    %c0_4 = arith.constant 0 : index
    %c0_5 = arith.constant 0 : index
    %4 = vector.load %arg1[%c1, %c0_4, %c0_5] : memref<4x144x250xbf16, #tpu.memory_space<vmem>>, vector<1x144x250xbf16>
    %5 = vector.shape_cast %4 : vector<1x144x250xbf16> to vector<144x250xbf16>
    %cst_6 = arith.constant dense<0.000000e+00> : vector<144x128xf32>
    %6 = tpu.matmul %5, %0, %cst_6 {dimension_numbers = #tpu.dot_dimension_numbers<[1], [0], [0], [1], [0, 0, 1, 1], [], []>} : vector<144x250xbf16>, vector<250x128xbf16>, vector<144x128xf32> -> vector<144x128xf32>
    %c2 = arith.constant 2 : index
    %c0_7 = arith.constant 0 : index
    %c0_8 = arith.constant 0 : index
    %7 = vector.load %arg1[%c2, %c0_7, %c0_8] : memref<4x144x250xbf16, #tpu.memory_space<vmem>>, vector<1x144x250xbf16>
    %8 = vector.shape_cast %7 : vector<1x144x250xbf16> to vector<144x250xbf16>
    %cst_9 = arith.constant dense<0.000000e+00> : vector<144x128xf32>
    %9 = tpu.matmul %8, %0, %cst_9 {dimension_numbers = #tpu.dot_dimension_numbers<[1], [0], [0], [1], [0, 0, 1, 1], [], []>} : vector<144x250xbf16>, vector<250x128xbf16>, vector<144x128xf32> -> vector<144x128xf32>
    %c3 = arith.constant 3 : index
    %c0_10 = arith.constant 0 : index
    %c0_11 = arith.constant 0 : index
    %10 = vector.load %arg1[%c3, %c0_10, %c0_11] : memref<4x144x250xbf16, #tpu.memory_space<vmem>>, vector<1x144x250xbf16>
    %11 = vector.shape_cast %10 : vector<1x144x250xbf16> to vector<144x250xbf16>
    %cst_12 = arith.constant dense<0.000000e+00> : vector<144x128xf32>
    %12 = tpu.matmul %11, %0, %cst_12 {dimension_numbers = #tpu.dot_dimension_numbers<[1], [0], [0], [1], [0, 0, 1, 1], [], []>} : vector<144x250xbf16>, vector<250x128xbf16>, vector<144x128xf32> -> vector<144x128xf32>
    %13 = arith.maximumf %3, %6 : vector<144x128xf32>
    %14 = arith.maximumf %9, %12 : vector<144x128xf32>
    %15 = arith.maximumf %13, %14 : vector<144x128xf32>
    %c0_13 = arith.constant 0 : index
    %c0_14 = arith.constant 0 : index
    %16 = vector.load %arg3[%c0_13, %c0_14] : memref<1x128xf32, #tpu.memory_space<vmem>>, vector<1x128xf32>
    %17 = vector.broadcast %16 : vector<1x128xf32> to vector<144x128xf32>
    %18 = arith.addf %15, %17 : vector<144x128xf32>
    %cst_15 = arith.constant 0.000000e+00 : f32
    %19 = vector.broadcast %cst_15 : f32 to vector<144x128xf32>
    %20 = arith.maximumf %18, %19 : vector<144x128xf32>
    %c0_16 = arith.constant 0 : index
    %c0_17 = arith.constant 0 : index
    %21 = vector.load %arg4[%c0_16, %c0_17] : memref<144x128xf32, #tpu.memory_space<vmem>>, vector<144x128xf32>
    tpu.vector_store %arg4[%c0_16, %c0_17], %20 {strides = array<i32>} : memref<144x128xf32, #tpu.memory_space<vmem>>, vector<144x128xf32>,
    return
  }
  func.func @transform_0(%arg0: i32) -> (i32, i32, i32) {
    %c0_i32 = arith.constant 0 : i32
    %c0_i32_0 = arith.constant 0 : i32
    %c0_i32_1 = arith.constant 0 : i32
    return %c0_i32, %arg0, %c0_i32_0 : i32, i32, i32
  }
  func.func @transform_1(%arg0: i32) -> (i32, i32) {
    %c0_i32 = arith.constant 0 : i32
    %c0_i32_0 = arith.constant 0 : i32
    %c0_i32_1 = arith.constant 0 : i32
    return %c0_i32, %c0_i32_0 : i32, i32
  }
  func.func @transform_2(%arg0: i32) -> (i32, i32) {
    %c0_i32 = arith.constant 0 : i32
    %c0_i32_0 = arith.constant 0 : i32
    %c0_i32_1 = arith.constant 0 : i32
    return %c0_i32, %c0_i32_0 : i32, i32
  }
  func.func @transform_3(%arg0: i32) -> (i32, i32) {
    %c0_i32 = arith.constant 0 : i32
    %c0_i32_0 = arith.constant 0 : i32
    return %arg0, %c0_i32 : i32, i32
  }
}

module attributes {stable_mosaic.version = 11 : i64} {
  func.func @_conv_pool_relu_kernel(%arg0: i32, %arg1: memref<4x32x500xbf16, #tpu.memory_space<vmem>>, %arg2: memref<500x128xbf16, #tpu.memory_space<vmem>>, %arg3: memref<1x128xf32, #tpu.memory_space<vmem>>, %arg4: memref<32x128xf32, #tpu.memory_space<vmem>>) attributes {dimension_semantics = [#tpu.dimension_semantics<parallel>], iteration_bounds = array<i64: 1>, scalar_prefetch = 0 : i64, scratch_operands = 0 : i64, tpu.core_type = #tpu.core_type<tc>, window_params = [{transform_indices = @transform_0, window_bounds = array<i64: 4, 32, 500>}, {pipeline_mode = #tpu.pipeline_mode<synchronous>, transform_indices = @transform_1, window_bounds = array<i64: 500, 128>}, {pipeline_mode = #tpu.pipeline_mode<synchronous>, transform_indices = @transform_2, window_bounds = array<i64: 1, 128>}, {transform_indices = @transform_3, window_bounds = array<i64: 32, 128>}]} {
    %c0 = arith.constant 0 : index
    %c0_0 = arith.constant 0 : index
    %0 = vector.load %arg2[%c0, %c0_0] : memref<500x128xbf16, #tpu.memory_space<vmem>>, vector<500x128xbf16>
    %c0_1 = arith.constant 0 : index
    %c0_2 = arith.constant 0 : index
    %c0_3 = arith.constant 0 : index
    %1 = vector.load %arg1[%c0_1, %c0_2, %c0_3] : memref<4x32x500xbf16, #tpu.memory_space<vmem>>, vector<1x32x500xbf16>
    %2 = vector.shape_cast %1 : vector<1x32x500xbf16> to vector<32x500xbf16>
    %cst = arith.constant dense<0.000000e+00> : vector<32x128xf32>
    %3 = tpu.matmul %2, %0, %cst {dimension_numbers = #tpu.dot_dimension_numbers<[1], [0], [0], [1], [0, 0, 1, 1], [], []>} : vector<32x500xbf16>, vector<500x128xbf16>, vector<32x128xf32> -> vector<32x128xf32>
    %c1 = arith.constant 1 : index
    %c0_4 = arith.constant 0 : index
    %c0_5 = arith.constant 0 : index
    %4 = vector.load %arg1[%c1, %c0_4, %c0_5] : memref<4x32x500xbf16, #tpu.memory_space<vmem>>, vector<1x32x500xbf16>
    %5 = vector.shape_cast %4 : vector<1x32x500xbf16> to vector<32x500xbf16>
    %cst_6 = arith.constant dense<0.000000e+00> : vector<32x128xf32>
    %6 = tpu.matmul %5, %0, %cst_6 {dimension_numbers = #tpu.dot_dimension_numbers<[1], [0], [0], [1], [0, 0, 1, 1], [], []>} : vector<32x500xbf16>, vector<500x128xbf16>, vector<32x128xf32> -> vector<32x128xf32>
    %c2 = arith.constant 2 : index
    %c0_7 = arith.constant 0 : index
    %c0_8 = arith.constant 0 : index
    %7 = vector.load %arg1[%c2, %c0_7, %c0_8] : memref<4x32x500xbf16, #tpu.memory_space<vmem>>, vector<1x32x500xbf16>
    %8 = vector.shape_cast %7 : vector<1x32x500xbf16> to vector<32x500xbf16>
    %cst_9 = arith.constant dense<0.000000e+00> : vector<32x128xf32>
    %9 = tpu.matmul %8, %0, %cst_9 {dimension_numbers = #tpu.dot_dimension_numbers<[1], [0], [0], [1], [0, 0, 1, 1], [], []>} : vector<32x500xbf16>, vector<500x128xbf16>, vector<32x128xf32> -> vector<32x128xf32>
    %c3 = arith.constant 3 : index
    %c0_10 = arith.constant 0 : index
    %c0_11 = arith.constant 0 : index
    %10 = vector.load %arg1[%c3, %c0_10, %c0_11] : memref<4x32x500xbf16, #tpu.memory_space<vmem>>, vector<1x32x500xbf16>
    %11 = vector.shape_cast %10 : vector<1x32x500xbf16> to vector<32x500xbf16>
    %cst_12 = arith.constant dense<0.000000e+00> : vector<32x128xf32>
    %12 = tpu.matmul %11, %0, %cst_12 {dimension_numbers = #tpu.dot_dimension_numbers<[1], [0], [0], [1], [0, 0, 1, 1], [], []>} : vector<32x500xbf16>, vector<500x128xbf16>, vector<32x128xf32> -> vector<32x128xf32>
    %13 = arith.maximumf %3, %6 : vector<32x128xf32>
    %14 = arith.maximumf %9, %12 : vector<32x128xf32>
    %15 = arith.maximumf %13, %14 : vector<32x128xf32>
    %c0_13 = arith.constant 0 : index
    %c0_14 = arith.constant 0 : index
    %16 = vector.load %arg3[%c0_13, %c0_14] : memref<1x128xf32, #tpu.memory_space<vmem>>, vector<1x128xf32>
    %17 = vector.broadcast %16 : vector<1x128xf32> to vector<32x128xf32>
    %18 = arith.addf %15, %17 : vector<32x128xf32>
    %cst_15 = arith.constant 0.000000e+00 : f32
    %19 = vector.broadcast %cst_15 : f32 to vector<32x128xf32>
    %20 = arith.maximumf %18, %19 : vector<32x128xf32>
    %c0_16 = arith.constant 0 : index
    %c0_17 = arith.constant 0 : index
    %21 = vector.load %arg4[%c0_16, %c0_17] : memref<32x128xf32, #tpu.memory_space<vmem>>, vector<32x128xf32>
    tpu.vector_store %arg4[%c0_16, %c0_17], %20 {strides = array<i32>} : memref<32x128xf32, #tpu.memory_space<vmem>>, vector<32x128xf32>,
    return
  }
  func.func @transform_0(%arg0: i32) -> (i32, i32, i32) {
    %c0_i32 = arith.constant 0 : i32
    %c0_i32_0 = arith.constant 0 : i32
    %c0_i32_1 = arith.constant 0 : i32
    return %c0_i32, %arg0, %c0_i32_0 : i32, i32, i32
  }
  func.func @transform_1(%arg0: i32) -> (i32, i32) {
    %c0_i32 = arith.constant 0 : i32
    %c0_i32_0 = arith.constant 0 : i32
    %c0_i32_1 = arith.constant 0 : i32
    return %c0_i32, %c0_i32_0 : i32, i32
  }
  func.func @transform_2(%arg0: i32) -> (i32, i32) {
    %c0_i32 = arith.constant 0 : i32
    %c0_i32_0 = arith.constant 0 : i32
    %c0_i32_1 = arith.constant 0 : i32
    return %c0_i32, %c0_i32_0 : i32, i32
  }
  func.func @transform_3(%arg0: i32) -> (i32, i32) {
    %c0_i32 = arith.constant 0 : i32
    %c0_i32_0 = arith.constant 0 : i32
    return %arg0, %c0_i32 : i32, i32
  }
}

module attributes {stable_mosaic.version = 11 : i64} {
  func.func @_mlp_kernel(%arg0: memref<8x320xbf16, #tpu.memory_space<vmem>>, %arg1: memref<320x128xbf16, #tpu.memory_space<vmem>>, %arg2: memref<1x128xf32, #tpu.memory_space<vmem>>, %arg3: memref<128x512xbf16, #tpu.memory_space<vmem>>, %arg4: memref<1x512xf32, #tpu.memory_space<vmem>>, %arg5: memref<8x512xf32, #tpu.memory_space<vmem>>) attributes {dimension_semantics = [], scalar_prefetch = 0 : i64, scratch_operands = 0 : i64, tpu.core_type = #tpu.core_type<tc>} {
    %c0 = arith.constant 0 : index
    %c0_0 = arith.constant 0 : index
    %0 = vector.load %arg0[%c0, %c0_0] : memref<8x320xbf16, #tpu.memory_space<vmem>>, vector<8x320xbf16>
    %c0_1 = arith.constant 0 : index
    %c0_2 = arith.constant 0 : index
    %1 = vector.load %arg1[%c0_1, %c0_2] : memref<320x128xbf16, #tpu.memory_space<vmem>>, vector<320x128xbf16>
    %cst = arith.constant dense<0.000000e+00> : vector<8x128xf32>
    %2 = tpu.matmul %0, %1, %cst {dimension_numbers = #tpu.dot_dimension_numbers<[1], [0], [0], [1], [0, 0, 1, 1], [], []>} : vector<8x320xbf16>, vector<320x128xbf16>, vector<8x128xf32> -> vector<8x128xf32>
    %c0_3 = arith.constant 0 : index
    %c0_4 = arith.constant 0 : index
    %3 = vector.load %arg2[%c0_3, %c0_4] : memref<1x128xf32, #tpu.memory_space<vmem>>, vector<1x128xf32>
    %4 = vector.broadcast %3 : vector<1x128xf32> to vector<8x128xf32>
    %5 = arith.addf %2, %4 : vector<8x128xf32>
    %cst_5 = arith.constant 0.000000e+00 : f32
    %6 = vector.broadcast %cst_5 : f32 to vector<8x128xf32>
    %7 = arith.maximumf %5, %6 : vector<8x128xf32>
    %8 = arith.truncf %7 : vector<8x128xf32> to vector<8x128xbf16>
    %c0_6 = arith.constant 0 : index
    %c0_7 = arith.constant 0 : index
    %9 = vector.load %arg3[%c0_6, %c0_7] : memref<128x512xbf16, #tpu.memory_space<vmem>>, vector<128x512xbf16>
    %cst_8 = arith.constant dense<0.000000e+00> : vector<8x512xf32>
    %10 = tpu.matmul %8, %9, %cst_8 {dimension_numbers = #tpu.dot_dimension_numbers<[1], [0], [0], [1], [0, 0, 1, 1], [], []>} : vector<8x128xbf16>, vector<128x512xbf16>, vector<8x512xf32> -> vector<8x512xf32>
    %c0_9 = arith.constant 0 : index
    %c0_10 = arith.constant 0 : index
    %11 = vector.load %arg4[%c0_9, %c0_10] : memref<1x512xf32, #tpu.memory_space<vmem>>, vector<1x512xf32>
    %12 = vector.broadcast %11 : vector<1x512xf32> to vector<8x512xf32>
    %13 = arith.addf %10, %12 : vector<8x512xf32>
    %c0_11 = arith.constant 0 : index
    %c0_12 = arith.constant 0 : index
    %14 = vector.load %arg5[%c0_11, %c0_12] : memref<8x512xf32, #tpu.memory_space<vmem>>, vector<8x512xf32>
    tpu.vector_store %arg5[%c0_11, %c0_12], %13 {strides = array<i32>} : memref<8x512xf32, #tpu.memory_space<vmem>>, vector<8x512xf32>,
    return
  }
}

</mosaic_0001>

<bundles_post_ra>
// kernel: net_forward.4
= control target key start
LH: loop header
LB: loop body
LE: loop exit
PB: predicated region body
PF: predicated region fallthrough
CT: control target
= control target key end

     0   :  { %s8167_s12 = smov 0   ;;  %s8169_s13 = smov 0   ;;  %s10526_s0 = inlined_call_operand.vmem [shape: bf16[4,1568,75], index: 0, kind: input, shape index: {}]   ;;  %s10527_s1 = inlined_call_operand.vmem [shape: bf16[75,128], index: 1, kind: input, shape index: {}]   ;;  %s10528_s2 = inlined_call_operand.vmem [shape: f32[1,128], index: 2, kind: input, shape index: {}]   ;;  %s10529_s3 = inlined_call_operand.vmem [shape: f32[1568,128], index: 3, kind: output, shape index: {}]  }
   0x1   :  { %s8171_s14 = smov 0  }
   0x2 LB: > { %s6147_s15 = sadd.s32 4294967295, %s8142_s14   ;;  %s8184_s16 = sadd.s32 1, %s8142_s14   ;;  %s8142_s14 = sphi %s8171_s14, %s11077_s14   ;;  %s8138_s13 = sphi %s8169_s13, %s11076_s13   ;;  %s8134_s12 = sphi %s8167_s12, %s11075_s12  }
   0x3   : > { %s17_s17 = ssub.s32 %s8142_s14, %s8184_s16  ;;  %s20_s18 = sadd.s32 1, %s8138_s13 }
   0x4   : > { %p18_p0 = scmp.eq.s32.totalorder %s17_s17, 0  ;;  %p27_p1 = scmp.ne.s32.totalorder %s8138_s13, %s8134_s12 }
   0x5   : > { %p28_p2 = scmp.eq.s32.totalorder %s8142_s14, 0  ;;  %p6150_p4 = scmp.ge.s32.totalorder %s8142_s14, 2 }
   0x6   : > { %s8193_s19 = scalar_select %p18_p0, %s8138_s13, %s20_s18  }
   0x7   : > { %p29_p3 = por %p28_p2, %p27_p1  ;;  %127 = sbr.rel (%p6150_p4) target bundleno = 117 (0x75), region = 24 }
   0xe   : > { %130 = sbr.rel (!%p29_p3) target bundleno = 117 (0x75), region = 28  ;;  %s132_s20 = sand.u32 (%p29_p3), 1, %s8138_s13  }
   0xf   : > { %s6848_s21 = smul.u32 (%p29_p3), 392, %s8142_s14 }
  0x10   : > { %s7889_s22 = smul.u32 (%p29_p3), 1568, %s132_s20 }
  0x11   : > { %s8201_s25 = scalar_lea.vmem (%p29_p3), %s10526_s0, %s6848_s21 }
  0x12   : > { %v153_v0 = vld [vmem:[%s8201_s25] sm:$0xff] (%p29_p3)   ;;  %v157_v1 = vld [vmem:[%s8201_s25 + $0x8] sm:$0xff] (%p29_p3)   ;;  %v161_v2 = vld [vmem:[%s8201_s25 + $0x10] sm:$0xff] (%p29_p3)   ;;  %s8206_s26 = scalar_lea.vmem (%p29_p3), [#allocation2], %s7889_s22 }
  0x13   : > { %154 = vst [vmem:[%s8206_s26] sm:$0xff] (%p29_p3), %v153_v0   ;;  %158 = vst [vmem:[%s8206_s26 + $0x8] sm:$0xff] (%p29_p3), %v157_v1   ;;  %v165_v3 = vld [vmem:[%s8201_s25 + $0x18] sm:$0xff] (%p29_p3)   ;;  %v169_v4 = vld [vmem:[%s8201_s25 + $0x20] sm:$0xff] (%p29_p3)  }
  0x14   : > { %162 = vst [vmem:[%s8206_s26 + $0x10] sm:$0xff] (%p29_p3), %v161_v2   ;;  %v173_v5 = vld [vmem:[%s8201_s25 + $0x28] sm:$0xff] (%p29_p3)   ;;  %166 = vst [vmem:[%s8206_s26 + $0x18] sm:$0xff] (%p29_p3), %v165_v3   ;;  %v177_v6 = vld [vmem:[%s8201_s25 + $0x30] sm:$0xff] (%p29_p3)  }
  0x15   : > { %170 = vst [vmem:[%s8206_s26 + $0x20] sm:$0xff] %v169_v4   ;;  %174 = vst [vmem:[%s8206_s26 + $0x28] sm:$0xff] %v173_v5   ;;  %v181_v7 = vld [vmem:[%s8201_s25 + $0x38] sm:$0xff]   ;;  %v185_v8 = vld [vmem:[%s8201_s25 + $0x40] sm:$0xff]  }
  0x16   : > { %178 = vst [vmem:[%s8206_s26 + $0x30] sm:$0xff] %v177_v6   ;;  %182 = vst [vmem:[%s8206_s26 + $0x38] sm:$0xff] %v181_v7   ;;  %v189_v9 = vld [vmem:[%s8201_s25 + $0x48] sm:$0xff]   ;;  %v193_v10 = vld [vmem:[%s8201_s25 + $0x50] sm:$0xff]  }
  0x17   : > { %186 = vst [vmem:[%s8206_s26 + $0x40] sm:$0xff] %v185_v8   ;;  %v197_v11 = vld [vmem:[%s8201_s25 + $0x58] sm:$0xff]   ;;  %190 = vst [vmem:[%s8206_s26 + $0x48] sm:$0xff] %v189_v9   ;;  %v201_v12 = vld [vmem:[%s8201_s25 + $0x60] sm:$0xff]  }
  0x18   : > { %194 = vst [vmem:[%s8206_s26 + $0x50] sm:$0xff] %v193_v10   ;;  %198 = vst [vmem:[%s8206_s26 + $0x58] sm:$0xff] %v197_v11   ;;  %v205_v13 = vld [vmem:[%s8201_s25 + $0x68] sm:$0xff]   ;;  %v209_v14 = vld [vmem:[%s8201_s25 + $0x70] sm:$0xff]  }
  0x19   : > { %202 = vst [vmem:[%s8206_s26 + $0x60] sm:$0xff] %v201_v12   ;;  %206 = vst [vmem:[%s8206_s26 + $0x68] sm:$0xff] %v205_v13   ;;  %v213_v15 = vld [vmem:[%s8201_s25 + $0x78] sm:$0xff]   ;;  %v217_v16 = vld [vmem:[%s8201_s25 + $0x80] sm:$0xff]  }
  0x1a   : > { %210 = vst [vmem:[%s8206_s26 + $0x70] sm:$0xff] %v209_v14   ;;  %v221_v17 = vld [vmem:[%s8201_s25 + $0x88] sm:$0xff]   ;;  %214 = vst [vmem:[%s8206_s26 + $0x78] sm:$0xff] %v213_v15   ;;  %v225_v18 = vld [vmem:[%s8201_s25 + $0x90] sm:$0xff]  }
  0x1b   : > { %218 = vst [vmem:[%s8206_s26 + $0x80] sm:$0xff] %v217_v16   ;;  %222 = vst [vmem:[%s8206_s26 + $0x88] sm:$0xff] %v221_v17   ;;  %v229_v19 = vld [vmem:[%s8201_s25 + $0x98] sm:$0xff]   ;;  %v233_v20 = vld [vmem:[%s8201_s25 + $0xa0] sm:$0xff]  }
  0x1c   : > { %226 = vst [vmem:[%s8206_s26 + $0x90] sm:$0xff] %v225_v18   ;;  %230 = vst [vmem:[%s8206_s26 + $0x98] sm:$0xff] %v229_v19   ;;  %v237_v21 = vld [vmem:[%s8201_s25 + $0xa8] sm:$0xff]   ;;  %v241_v22 = vld [vmem:[%s8201_s25 + $0xb0] sm:$0xff]  }
  0x1d   : > { %234 = vst [vmem:[%s8206_s26 + $0xa0] sm:$0xff] %v233_v20   ;;  %v245_v23 = vld [vmem:[%s8201_s25 + $0xb8] sm:$0xff]   ;;  %238 = vst [vmem:[%s8206_s26 + $0xa8] sm:$0xff] %v237_v21   ;;  %v249_v24 = vld [vmem:[%s8201_s25 + $0xc0] sm:$0xff]  }
  0x1e   : > { %242 = vst [vmem:[%s8206_s26 + $0xb0] sm:$0xff] %v241_v22   ;;  %246 = vst [vmem:[%s8206_s26 + $0xb8] sm:$0xff] %v245_v23   ;;  %v253_v25 = vld [vmem:[%s8201_s25 + $0xc8] sm:$0xff]   ;;  %v257_v26 = vld [vmem:[%s8201_s25 + $0xd0] sm:$0xff]  }
  0x1f   : > { %250 = vst [vmem:[%s8206_s26 + $0xc0] sm:$0xff] %v249_v24   ;;  %254 = vst [vmem:[%s8206_s26 + $0xc8] sm:$0xff] %v253_v25   ;;  %v261_v27 = vld [vmem:[%s8201_s25 + $0xd8] sm:$0xff]   ;;  %v265_v28 = vld [vmem:[%s8201_s25 + $0xe0] sm:$0xff]  }
  0x20   : > { %258 = vst [vmem:[%s8206_s26 + $0xd0] sm:$0xff] %v257_v26   ;;  %v269_v29 = vld [vmem:[%s8201_s25 + $0xe8] sm:$0xff]   ;;  %262 = vst [vmem:[%s8206_s26 + $0xd8] sm:$0xff] %v261_v27   ;;  %v273_v30 = vld [vmem:[%s8201_s25 + $0xf0] sm:$0xff]  }
  0x21   : > { %266 = vst [vmem:[%s8206_s26 + $0xe0] sm:$0xff] %v265_v28   ;;  %270 = vst [vmem:[%s8206_s26 + $0xe8] sm:$0xff] %v269_v29   ;;  %v277_v31 = vld [vmem:[%s8201_s25 + $0xf8] sm:$0xff]   ;;  %v281_v32 = vld [vmem:[%s8201_s25 + $0x100] sm:$0xff]  }
  0x22   : > { %274 = vst [vmem:[%s8206_s26 + $0xf0] sm:$0xff] %v273_v30   ;;  %278 = vst [vmem:[%s8206_s26 + $0xf8] sm:$0xff] %v277_v31   ;;  %v285_v33 = vld [vmem:[%s8201_s25 + $0x108] sm:$0xff]   ;;  %v289_v34 = vld [vmem:[%s8201_s25 + $0x110] sm:$0xff]  }
  0x23   : > { %282 = vst [vmem:[%s8206_s26 + $0x100] sm:$0xff] %v281_v32   ;;  %v293_v35 = vld [vmem:[%s8201_s25 + $0x118] sm:$0xff]   ;;  %286 = vst [vmem:[%s8206_s26 + $0x108] sm:$0xff] %v285_v33   ;;  %v297_v36 = vld [vmem:[%s8201_s25 + $0x120] sm:$0xff]  }
  0x24   : > { %290 = vst [vmem:[%s8206_s26 + $0x110] sm:$0xff] %v289_v34   ;;  %294 = vst [vmem:[%s8206_s26 + $0x118] sm:$0xff] %v293_v35   ;;  %v301_v37 = vld [vmem:[%s8201_s25 + $0x128] sm:$0xff]   ;;  %v305_v38 = vld [vmem:[%s8201_s25 + $0x130] sm:$0xff]  }
  0x25   : > { %298 = vst [vmem:[%s8206_s26 + $0x120] sm:$0xff] %v297_v36   ;;  %302 = vst [vmem:[%s8206_s26 + $0x128] sm:$0xff] %v301_v37   ;;  %v309_v39 = vld [vmem:[%s8201_s25 + $0x138] sm:$0xff]   ;;  %v313_v40 = vld [vmem:[%s8201_s25 + $0x140] sm:$0xff]  }
  0x26   : > { %306 = vst [vmem:[%s8206_s26 + $0x130] sm:$0xff] %v305_v38   ;;  %v317_v41 = vld [vmem:[%s8201_s25 + $0x148] sm:$0xff]   ;;  %310 = vst [vmem:[%s8206_s26 + $0x138] sm:$0xff] %v309_v39   ;;  %v321_v42 = vld [vmem:[%s8201_s25 + $0x150] sm:$0xff]  }
  0x27   : > { %314 = vst [vmem:[%s8206_s26 + $0x140] sm:$0xff] %v313_v40   ;;  %318 = vst [vmem:[%s8206_s26 + $0x148] sm:$0xff] %v317_v41   ;;  %v325_v43 = vld [vmem:[%s8201_s25 + $0x158] sm:$0xff]   ;;  %v329_v44 = vld [vmem:[%s8201_s25 + $0x160] sm:$0xff]  }
  0x28   : > { %322 = vst [vmem:[%s8206_s26 + $0x150] sm:$0xff] %v321_v42   ;;  %326 = vst [vmem:[%s8206_s26 + $0x158] sm:$0xff] %v325_v43   ;;  %v333_v45 = vld [vmem:[%s8201_s25 + $0x168] sm:$0xff]   ;;  %v337_v46 = vld [vmem:[%s8201_s25 + $0x170] sm:$0xff]  }
  0x29   : > { %330 = vst [vmem:[%s8206_s26 + $0x160] sm:$0xff] %v329_v44   ;;  %v341_v47 = vld [vmem:[%s8201_s25 + $0x178] sm:$0xff]   ;;  %334 = vst [vmem:[%s8206_s26 + $0x168] sm:$0xff] %v333_v45   ;;  %v345_v48 = vld [vmem:[%s8201_s25 + $0x180] sm:$0xff]  }
  0x2a   : > { %338 = vst [vmem:[%s8206_s26 + $0x170] sm:$0xff] %v337_v46   ;;  %342 = vst [vmem:[%s8206_s26 + $0x178] sm:$0xff] %v341_v47   ;;  %v349_v49 = vld [vmem:[%s8201_s25 + $0x310] sm:$0xff]   ;;  %v353_v50 = vld [vmem:[%s8201_s25 + $0x318] sm:$0xff]  }
  0x2b   : > { %346 = vst [vmem:[%s8206_s26 + $0x180] sm:$0xff] %v345_v48   ;;  %350 = vst [vmem:[%s8206_s26 + $0x188] sm:$0xff] %v349_v49   ;;  %v357_v51 = vld [vmem:[%s8201_s25 + $0x320] sm:$0xff]   ;;  %v361_v52 = vld [vmem:[%s8201_s25 + $0x328] sm:$0xff]  }
  0x2c   : > { %354 = vst [vmem:[%s8206_s26 + $0x190] sm:$0xff] %v353_v50   ;;  %v365_v53 = vld [vmem:[%s8201_s25 + $0x330] sm:$0xff]   ;;  %358 = vst [vmem:[%s8206_s26 + $0x198] sm:$0xff] %v357_v51   ;;  %v369_v54 = vld [vmem:[%s8201_s25 + $0x338] sm:$0xff]  }
  0x2d   : > { %362 = vst [vmem:[%s8206_s26 + $0x1a0] sm:$0xff] %v361_v52   ;;  %366 = vst [vmem:[%s8206_s26 + $0x1a8] sm:$0xff] %v365_v53   ;;  %v373_v55 = vld [vmem:[%s8201_s25 + $0x340] sm:$0xff]   ;;  %v377_v56 = vld [vmem:[%s8201_s25 + $0x348] sm:$0xff]  }
  0x2e   : > { %370 = vst [vmem:[%s8206_s26 + $0x1b0] sm:$0xff] %v369_v54   ;;  %374 = vst [vmem:[%s8206_s26 + $0x1b8] sm:$0xff] %v373_v55   ;;  %v381_v57 = vld [vmem:[%s8201_s25 + $0x350] sm:$0xff]   ;;  %v385_v58 = vld [vmem:[%s8201_s25 + $0x358] sm:$0xff]  }
  0x2f   : > { %378 = vst [vmem:[%s8206_s26 + $0x1c0] sm:$0xff] %v377_v56   ;;  %v389_v59 = vld [vmem:[%s8201_s25 + $0x360] sm:$0xff]   ;;  %382 = vst [vmem:[%s8206_s26 + $0x1c8] sm:$0xff] %v381_v57   ;;  %v393_v60 = vld [vmem:[%s8201_s25 + $0x368] sm:$0xff]  }
  0x30   : > { %386 = vst [vmem:[%s8206_s26 + $0x1d0] sm:$0xff] %v385_v58   ;;  %390 = vst [vmem:[%s8206_s26 + $0x1d8] sm:$0xff] %v389_v59   ;;  %v397_v61 = vld [vmem:[%s8201_s25 + $0x370] sm:$0xff]   ;;  %v401_v62 = vld [vmem:[%s8201_s25 + $0x378] sm:$0xff]  }
  0x31   : > { %394 = vst [vmem:[%s8206_s26 + $0x1e0] sm:$0xff] %v393_v60   ;;  %398 = vst [vmem:[%s8206_s26 + $0x1e8] sm:$0xff] %v397_v61   ;;  %v405_v63 = vld [vmem:[%s8201_s25 + $0x380] sm:$0xff]   ;;  %v409_v0 = vld [vmem:[%s8201_s25 + $0x388] sm:$0xff]  }
  0x32   : > { %402 = vst [vmem:[%s8206_s26 + $0x1f0] sm:$0xff] %v401_v62   ;;  %v413_v1 = vld [vmem:[%s8201_s25 + $0x390] sm:$0xff]   ;;  %406 = vst [vmem:[%s8206_s26 + $0x1f8] sm:$0xff] %v405_v63   ;;  %v417_v2 = vld [vmem:[%s8201_s25 + $0x398] sm:$0xff]  }
  0x33   : > { %410 = vst [vmem:[%s8206_s26 + $0x200] sm:$0xff] %v409_v0   ;;  %414 = vst [vmem:[%s8206_s26 + $0x208] sm:$0xff] %v413_v1   ;;  %v421_v3 = vld [vmem:[%s8201_s25 + $0x3a0] sm:$0xff]   ;;  %v425_v4 = vld [vmem:[%s8201_s25 + $0x3a8] sm:$0xff]  }
  0x34   : > { %418 = vst [vmem:[%s8206_s26 + $0x210] sm:$0xff] %v417_v2   ;;  %422 = vst [vmem:[%s8206_s26 + $0x218] sm:$0xff] %v421_v3   ;;  %v429_v5 = vld [vmem:[%s8201_s25 + $0x3b0] sm:$0xff]   ;;  %v433_v6 = vld [vmem:[%s8201_s25 + $0x3b8] sm:$0xff]  }
  0x35   : > { %426 = vst [vmem:[%s8206_s26 + $0x220] sm:$0xff] %v425_v4   ;;  %v437_v7 = vld [vmem:[%s8201_s25 + $0x3c0] sm:$0xff]   ;;  %430 = vst [vmem:[%s8206_s26 + $0x228] sm:$0xff] %v429_v5   ;;  %v441_v8 = vld [vmem:[%s8201_s25 + $0x3c8] sm:$0xff]  }
  0x36   : > { %434 = vst [vmem:[%s8206_s26 + $0x230] sm:$0xff] %v433_v6   ;;  %438 = vst [vmem:[%s8206_s26 + $0x238] sm:$0xff] %v437_v7   ;;  %v445_v9 = vld [vmem:[%s8201_s25 + $0x3d0] sm:$0xff]   ;;  %v449_v10 = vld [vmem:[%s8201_s25 + $0x3d8] sm:$0xff]  }
  0x37   : > { %442 = vst [vmem:[%s8206_s26 + $0x240] sm:$0xff] %v441_v8   ;;  %446 = vst [vmem:[%s8206_s26 + $0x248] sm:$0xff] %v445_v9   ;;  %v453_v11 = vld [vmem:[%s8201_s25 + $0x3e0] sm:$0xff]   ;;  %v457_v12 = vld [vmem:[%s8201_s25 + $0x3e8] sm:$0xff]  }
  0x38   : > { %450 = vst [vmem:[%s8206_s26 + $0x250] sm:$0xff] %v449_v10   ;;  %v461_v13 = vld [vmem:[%s8201_s25 + $0x3f0] sm:$0xff]   ;;  %454 = vst [vmem:[%s8206_s26 + $0x258] sm:$0xff] %v453_v11   ;;  %v465_v14 = vld [vmem:[%s8201_s25 + $0x3f8] sm:$0xff]  }
  0x39   : > { %458 = vst [vmem:[%s8206_s26 + $0x260] sm:$0xff] %v457_v12   ;;  %462 = vst [vmem:[%s8206_s26 + $0x268] sm:$0xff] %v461_v13   ;;  %v469_v15 = vld [vmem:[%s8201_s25 + $0x400] sm:$0xff]   ;;  %v473_v16 = vld [vmem:[%s8201_s25 + $0x408] sm:$0xff]  }
  0x3a   : > { %466 = vst [vmem:[%s8206_s26 + $0x270] sm:$0xff] %v465_v14   ;;  %470 = vst [vmem:[%s8206_s26 + $0x278] sm:$0xff] %v469_v15   ;;  %v477_v17 = vld [vmem:[%s8201_s25 + $0x410] sm:$0xff]   ;;  %v481_v18 = vld [vmem:[%s8201_s25 + $0x418] sm:$0xff]  }
  0x3b   : > { %474 = vst [vmem:[%s8206_s26 + $0x280] sm:$0xff] %v473_v16   ;;  %v485_v19 = vld [vmem:[%s8201_s25 + $0x420] sm:$0xff]   ;;  %478 = vst [vmem:[%s8206_s26 + $0x288] sm:$0xff] %v477_v17   ;;  %v489_v20 = vld [vmem:[%s8201_s25 + $0x428] sm:$0xff]  }
  0x3c   : > { %482 = vst [vmem:[%s8206_s26 + $0x290] sm:$0xff] %v481_v18   ;;  %486 = vst [vmem:[%s8206_s26 + $0x298] sm:$0xff] %v485_v19   ;;  %v493_v21 = vld [vmem:[%s8201_s25 + $0x430] sm:$0xff]   ;;  %v497_v22 = vld [vmem:[%s8201_s25 + $0x438] sm:$0xff]  }
  0x3d   : > { %490 = vst [vmem:[%s8206_s26 + $0x2a0] sm:$0xff] %v489_v20   ;;  %494 = vst [vmem:[%s8206_s26 + $0x2a8] sm:$0xff] %v493_v21   ;;  %v501_v23 = vld [vmem:[%s8201_s25 + $0x440] sm:$0xff]   ;;  %v505_v24 = vld [vmem:[%s8201_s25 + $0x448] sm:$0xff]  }
  0x3e   : > { %498 = vst [vmem:[%s8206_s26 + $0x2b0] sm:$0xff] %v497_v22   ;;  %v509_v25 = vld [vmem:[%s8201_s25 + $0x450] sm:$0xff]   ;;  %502 = vst [vmem:[%s8206_s26 + $0x2b8] sm:$0xff] %v501_v23   ;;  %v513_v26 = vld [vmem:[%s8201_s25 + $0x458] sm:$0xff]  }
  0x3f   : > { %506 = vst [vmem:[%s8206_s26 + $0x2c0] sm:$0xff] %v505_v24   ;;  %510 = vst [vmem:[%s8206_s26 + $0x2c8] sm:$0xff] %v509_v25   ;;  %v517_v27 = vld [vmem:[%s8201_s25 + $0x460] sm:$0xff]   ;;  %v521_v28 = vld [vmem:[%s8201_s25 + $0x468] sm:$0xff]  }
  0x40   : > { %514 = vst [vmem:[%s8206_s26 + $0x2d0] sm:$0xff] %v513_v26   ;;  %518 = vst [vmem:[%s8206_s26 + $0x2d8] sm:$0xff] %v517_v27   ;;  %v525_v29 = vld [vmem:[%s8201_s25 + $0x470] sm:$0xff]   ;;  %v529_v30 = vld [vmem:[%s8201_s25 + $0x478] sm:$0xff]  }
  0x41   : > { %522 = vst [vmem:[%s8206_s26 + $0x2e0] sm:$0xff] %v521_v28   ;;  %v533_v31 = vld [vmem:[%s8201_s25 + $0x480] sm:$0xff]   ;;  %526 = vst [vmem:[%s8206_s26 + $0x2e8] sm:$0xff] %v525_v29   ;;  %v537_v32 = vld [vmem:[%s8201_s25 + $0x488] sm:$0xff]  }
  0x42   : > { %530 = vst [vmem:[%s8206_s26 + $0x2f0] sm:$0xff] %v529_v30   ;;  %534 = vst [vmem:[%s8206_s26 + $0x2f8] sm:$0xff] %v533_v31   ;;  %v541_v33 = vld [vmem:[%s8201_s25 + $0x490] sm:$0xff]   ;;  %v545_v34 = vld [vmem:[%s8201_s25 + $0x620] sm:$0xff]  }
  0x43   : > { %538 = vst [vmem:[%s8206_s26 + $0x300] sm:$0xff] %v537_v32   ;;  %542 = vst [vmem:[%s8206_s26 + $0x308] sm:$0xff] %v541_v33   ;;  %v549_v35 = vld [vmem:[%s8201_s25 + $0x628] sm:$0xff]   ;;  %v553_v36 = vld [vmem:[%s8201_s25 + $0x630] sm:$0xff]  }
  0x44   : > { %546 = vst [vmem:[%s8206_s26 + $0x310] sm:$0xff] %v545_v34   ;;  %v557_v37 = vld [vmem:[%s8201_s25 + $0x638] sm:$0xff]   ;;  %550 = vst [vmem:[%s8206_s26 + $0x318] sm:$0xff] %v549_v35   ;;  %v561_v38 = vld [vmem:[%s8201_s25 + $0x640] sm:$0xff]  }
  0x45   : > { %554 = vst [vmem:[%s8206_s26 + $0x320] sm:$0xff] %v553_v36   ;;  %558 = vst [vmem:[%s8206_s26 + $0x328] sm:$0xff] %v557_v37   ;;  %v565_v39 = vld [vmem:[%s8201_s25 + $0x648] sm:$0xff]   ;;  %v569_v40 = vld [vmem:[%s8201_s25 + $0x650] sm:$0xff]  }
  0x46   : > { %562 = vst [vmem:[%s8206_s26 + $0x330] sm:$0xff] %v561_v38   ;;  %566 = vst [vmem:[%s8206_s26 + $0x338] sm:$0xff] %v565_v39   ;;  %v573_v41 = vld [vmem:[%s8201_s25 + $0x658] sm:$0xff]   ;;  %v577_v42 = vld [vmem:[%s8201_s25 + $0x660] sm:$0xff]  }
  0x47   : > { %570 = vst [vmem:[%s8206_s26 + $0x340] sm:$0xff] %v569_v40   ;;  %v581_v43 = vld [vmem:[%s8201_s25 + $0x668] sm:$0xff]   ;;  %574 = vst [vmem:[%s8206_s26 + $0x348] sm:$0xff] %v573_v41   ;;  %v585_v44 = vld [vmem:[%s8201_s25 + $0x670] sm:$0xff]  }
  0x48   : > { %578 = vst [vmem:[%s8206_s26 + $0x350] sm:$0xff] %v577_v42   ;;  %582 = vst [vmem:[%s8206_s26 + $0x358] sm:$0xff] %v581_v43   ;;  %v589_v45 = vld [vmem:[%s8201_s25 + $0x678] sm:$0xff]   ;;  %v593_v46 = vld [vmem:[%s8201_s25 + $0x680] sm:$0xff]  }
  0x49   : > { %586 = vst [vmem:[%s8206_s26 + $0x360] sm:$0xff] %v585_v44   ;;  %590 = vst [vmem:[%s8206_s26 + $0x368] sm:$0xff] %v589_v45   ;;  %v597_v47 = vld [vmem:[%s8201_s25 + $0x688] sm:$0xff]   ;;  %v601_v48 = vld [vmem:[%s8201_s25 + $0x690] sm:$0xff]  }
  0x4a   : > { %594 = vst [vmem:[%s8206_s26 + $0x370] sm:$0xff] %v593_v46   ;;  %v605_v49 = vld [vmem:[%s8201_s25 + $0x698] sm:$0xff]   ;;  %598 = vst [vmem:[%s8206_s26 + $0x378] sm:$0xff] %v597_v47   ;;  %v609_v50 = vld [vmem:[%s8201_s25 + $0x6a0] sm:$0xff]  }
  0x4b   : > { %602 = vst [vmem:[%s8206_s26 + $0x380] sm:$0xff] %v601_v48   ;;  %606 = vst [vmem:[%s8206_s26 + $0x388] sm:$0xff] %v605_v49   ;;  %v613_v51 = vld [vmem:[%s8201_s25 + $0x6a8] sm:$0xff]   ;;  %v617_v52 = vld [vmem:[%s8201_s25 + $0x6b0] sm:$0xff]  }
  0x4c   : > { %610 = vst [vmem:[%s8206_s26 + $0x390] sm:$0xff] %v609_v50   ;;  %614 = vst [vmem:[%s8206_s26 + $0x398] sm:$0xff] %v613_v51   ;;  %v621_v53 = vld [vmem:[%s8201_s25 + $0x6b8] sm:$0xff]   ;;  %v625_v54 = vld [vmem:[%s8201_s25 + $0x6c0] sm:$0xff]  }
  0x4d   : > { %618 = vst [vmem:[%s8206_s26 + $0x3a0] sm:$0xff] %v617_v52   ;;  %v629_v55 = vld [vmem:[%s8201_s25 + $0x6c8] sm:$0xff]   ;;  %622 = vst [vmem:[%s8206_s26 + $0x3a8] sm:$0xff] %v621_v53   ;;  %v633_v56 = vld [vmem:[%s8201_s25 + $0x6d0] sm:$0xff]  }
  0x4e   : > { %626 = vst [vmem:[%s8206_s26 + $0x3b0] sm:$0xff] %v625_v54   ;;  %630 = vst [vmem:[%s8206_s26 + $0x3b8] sm:$0xff] %v629_v55   ;;  %v637_v57 = vld [vmem:[%s8201_s25 + $0x6d8] sm:$0xff]   ;;  %v641_v58 = vld [vmem:[%s8201_s25 + $0x6e0] sm:$0xff]  }
  0x4f   : > { %634 = vst [vmem:[%s8206_s26 + $0x3c0] sm:$0xff] %v633_v56   ;;  %638 = vst [vmem:[%s8206_s26 + $0x3c8] sm:$0xff] %v637_v57   ;;  %v645_v59 = vld [vmem:[%s8201_s25 + $0x6e8] sm:$0xff]   ;;  %v649_v60 = vld [vmem:[%s8201_s25 + $0x6f0] sm:$0xff]  }
  0x50   : > { %642 = vst [vmem:[%s8206_s26 + $0x3d0] sm:$0xff] %v641_v58   ;;  %v653_v61 = vld [vmem:[%s8201_s25 + $0x6f8] sm:$0xff]   ;;  %646 = vst [vmem:[%s8206_s26 + $0x3d8] sm:$0xff] %v645_v59   ;;  %v657_v62 = vld [vmem:[%s8201_s25 + $0x700] sm:$0xff]  }
  0x51   : > { %650 = vst [vmem:[%s8206_s26 + $0x3e0] sm:$0xff] %v649_v60   ;;  %654 = vst [vmem:[%s8206_s26 + $0x3e8] sm:$0xff] %v653_v61   ;;  %v661_v63 = vld [vmem:[%s8201_s25 + $0x708] sm:$0xff]   ;;  %v665_v0 = vld [vmem:[%s8201_s25 + $0x710] sm:$0xff]  }
  0x52   : > { %658 = vst [vmem:[%s8206_s26 + $0x3f0] sm:$0xff] %v657_v62   ;;  %662 = vst [vmem:[%s8206_s26 + $0x3f8] sm:$0xff] %v661_v63   ;;  %v669_v1 = vld [vmem:[%s8201_s25 + $0x718] sm:$0xff]   ;;  %v673_v2 = vld [vmem:[%s8201_s25 + $0x720] sm:$0xff]  }
  0x53   : > { %666 = vst [vmem:[%s8206_s26 + $0x400] sm:$0xff] %v665_v0   ;;  %v677_v3 = vld [vmem:[%s8201_s25 + $0x728] sm:$0xff]   ;;  %670 = vst [vmem:[%s8206_s26 + $0x408] sm:$0xff] %v669_v1   ;;  %v681_v4 = vld [vmem:[%s8201_s25 + $0x730] sm:$0xff]  }
  0x54   : > { %674 = vst [vmem:[%s8206_s26 + $0x410] sm:$0xff] %v673_v2   ;;  %678 = vst [vmem:[%s8206_s26 + $0x418] sm:$0xff] %v677_v3   ;;  %v685_v5 = vld [vmem:[%s8201_s25 + $0x738] sm:$0xff]   ;;  %v689_v6 = vld [vmem:[%s8201_s25 + $0x740] sm:$0xff]  }
  0x55   : > { %682 = vst [vmem:[%s8206_s26 + $0x420] sm:$0xff] %v681_v4   ;;  %686 = vst [vmem:[%s8206_s26 + $0x428] sm:$0xff] %v685_v5   ;;  %v693_v7 = vld [vmem:[%s8201_s25 + $0x748] sm:$0xff]   ;;  %v697_v8 = vld [vmem:[%s8201_s25 + $0x750] sm:$0xff]  }
  0x56   : > { %690 = vst [vmem:[%s8206_s26 + $0x430] sm:$0xff] %v689_v6   ;;  %v701_v9 = vld [vmem:[%s8201_s25 + $0x758] sm:$0xff]   ;;  %694 = vst [vmem:[%s8206_s26 + $0x438] sm:$0xff] %v693_v7   ;;  %v705_v10 = vld [vmem:[%s8201_s25 + $0x760] sm:$0xff]  }
  0x57   : > { %698 = vst [vmem:[%s8206_s26 + $0x440] sm:$0xff] %v697_v8   ;;  %702 = vst [vmem:[%s8206_s26 + $0x448] sm:$0xff] %v701_v9   ;;  %v709_v11 = vld [vmem:[%s8201_s25 + $0x768] sm:$0xff]   ;;  %v713_v12 = vld [vmem:[%s8201_s25 + $0x770] sm:$0xff]  }
  0x58   : > { %706 = vst [vmem:[%s8206_s26 + $0x450] sm:$0xff] %v705_v10   ;;  %710 = vst [vmem:[%s8206_s26 + $0x458] sm:$0xff] %v709_v11   ;;  %v717_v13 = vld [vmem:[%s8201_s25 + $0x778] sm:$0xff]   ;;  %v721_v14 = vld [vmem:[%s8201_s25 + $0x780] sm:$0xff]  }
  0x59   : > { %714 = vst [vmem:[%s8206_s26 + $0x460] sm:$0xff] %v713_v12   ;;  %v725_v15 = vld [vmem:[%s8201_s25 + $0x788] sm:$0xff]   ;;  %718 = vst [vmem:[%s8206_s26 + $0x468] sm:$0xff] %v717_v13   ;;  %v729_v16 = vld [vmem:[%s8201_s25 + $0x790] sm:$0xff]  }
  0x5a   : > { %722 = vst [vmem:[%s8206_s26 + $0x470] sm:$0xff] %v721_v14   ;;  %726 = vst [vmem:[%s8206_s26 + $0x478] sm:$0xff] %v725_v15   ;;  %v733_v17 = vld [vmem:[%s8201_s25 + $0x798] sm:$0xff]   ;;  %v737_v18 = vld [vmem:[%s8201_s25 + $0x7a0] sm:$0xff]  }
  0x5b   : > { %730 = vst [vmem:[%s8206_s26 + $0x480] sm:$0xff] %v729_v16   ;;  %734 = vst [vmem:[%s8206_s26 + $0x488] sm:$0xff] %v733_v17   ;;  %v741_v19 = vld [vmem:[%s8201_s25 + $0x930] sm:$0xff]   ;;  %v745_v20 = vld [vmem:[%s8201_s25 + $0x938] sm:$0xff]  }
  0x5c   : > { %738 = vst [vmem:[%s8206_s26 + $0x490] sm:$0xff] %v737_v18   ;;  %v749_v21 = vld [vmem:[%s8201_s25 + $0x940] sm:$0xff]   ;;  %742 = vst [vmem:[%s8206_s26 + $0x498] sm:$0xff] %v741_v19   ;;  %v753_v22 = vld [vmem:[%s8201_s25 + $0x948] sm:$0xff]  }
  0x5d   : > { %746 = vst [vmem:[%s8206_s26 + $0x4a0] sm:$0xff] %v745_v20   ;;  %750 = vst [vmem:[%s8206_s26 + $0x4a8] sm:$0xff] %v749_v21   ;;  %v757_v23 = vld [vmem:[%s8201_s25 + $0x950] sm:$0xff]   ;;  %v761_v24 = vld [vmem:[%s8201_s25 + $0x958] sm:$0xff]  }
  0x5e   : > { %754 = vst [vmem:[%s8206_s26 + $0x4b0] sm:$0xff] %v753_v22   ;;  %758 = vst [vmem:[%s8206_s26 + $0x4b8] sm:$0xff] %v757_v23   ;;  %v765_v25 = vld [vmem:[%s8201_s25 + $0x960] sm:$0xff]   ;;  %v769_v26 = vld [vmem:[%s8201_s25 + $0x968] sm:$0xff]  }
  0x5f   : > { %762 = vst [vmem:[%s8206_s26 + $0x4c0] sm:$0xff] %v761_v24   ;;  %v773_v27 = vld [vmem:[%s8201_s25 + $0x970] sm:$0xff]   ;;  %766 = vst [vmem:[%s8206_s26 + $0x4c8] sm:$0xff] %v765_v25   ;;  %v777_v28 = vld [vmem:[%s8201_s25 + $0x978] sm:$0xff]  }
  0x60   : > { %770 = vst [vmem:[%s8206_s26 + $0x4d0] sm:$0xff] %v769_v26   ;;  %774 = vst [vmem:[%s8206_s26 + $0x4d8] sm:$0xff] %v773_v27   ;;  %v781_v29 = vld [vmem:[%s8201_s25 + $0x980] sm:$0xff]   ;;  %v785_v30 = vld [vmem:[%s8201_s25 + $0x988] sm:$0xff]  }
  0x61   : > { %778 = vst [vmem:[%s8206_s26 + $0x4e0] sm:$0xff] %v777_v28   ;;  %782 = vst [vmem:[%s8206_s26 + $0x4e8] sm:$0xff] %v781_v29   ;;  %v789_v31 = vld [vmem:[%s8201_s25 + $0x990] sm:$0xff]   ;;  %v793_v32 = vld [vmem:[%s8201_s25 + $0x998] sm:$0xff]  }
  0x62   : > { %786 = vst [vmem:[%s8206_s26 + $0x4f0] sm:$0xff] %v785_v30   ;;  %v797_v33 = vld [vmem:[%s8201_s25 + $0x9a0] sm:$0xff]   ;;  %790 = vst [vmem:[%s8206_s26 + $0x4f8] sm:$0xff] %v789_v31   ;;  %v801_v34 = vld [vmem:[%s8201_s25 + $0x9a8] sm:$0xff]  }
  0x63   : > { %794 = vst [vmem:[%s8206_s26 + $0x500] sm:$0xff] %v793_v32   ;;  %798 = vst [vmem:[%s8206_s26 + $0x508] sm:$0xff] %v797_v33   ;;  %v805_v35 = vld [vmem:[%s8201_s25 + $0x9b0] sm:$0xff]   ;;  %v809_v36 = vld [vmem:[%s8201_s25 + $0x9b8] sm:$0xff]  }
  0x64   : > { %802 = vst [vmem:[%s8206_s26 + $0x510] sm:$0xff] %v801_v34   ;;  %806 = vst [vmem:[%s8206_s26 + $0x518] sm:$0xff] %v805_v35   ;;  %v813_v37 = vld [vmem:[%s8201_s25 + $0x9c0] sm:$0xff]   ;;  %v817_v38 = vld [vmem:[%s8201_s25 + $0x9c8] sm:$0xff]  }
  0x65   : > { %810 = vst [vmem:[%s8206_s26 + $0x520] sm:$0xff] %v809_v36   ;;  %v821_v39 = vld [vmem:[%s8201_s25 + $0x9d0] sm:$0xff]   ;;  %814 = vst [vmem:[%s8206_s26 + $0x528] sm:$0xff] %v813_v37   ;;  %v825_v40 = vld [vmem:[%s8201_s25 + $0x9d8] sm:$0xff]  }
  0x66   : > { %818 = vst [vmem:[%s8206_s26 + $0x530] sm:$0xff] %v817_v38   ;;  %822 = vst [vmem:[%s8206_s26 + $0x538] sm:$0xff] %v821_v39   ;;  %v829_v41 = vld [vmem:[%s8201_s25 + $0x9e0] sm:$0xff]   ;;  %v833_v42 = vld [vmem:[%s8201_s25 + $0x9e8] sm:$0xff]  }
  0x67   : > { %826 = vst [vmem:[%s8206_s26 + $0x540] sm:$0xff] %v825_v40   ;;  %830 = vst [vmem:[%s8206_s26 + $0x548] sm:$0xff] %v829_v41   ;;  %v837_v43 = vld [vmem:[%s8201_s25 + $0x9f0] sm:$0xff]   ;;  %v841_v44 = vld [vmem:[%s8201_s25 + $0x9f8] sm:$0xff]  }
  0x68   : > { %834 = vst [vmem:[%s8206_s26 + $0x550] sm:$0xff] %v833_v42   ;;  %v845_v45 = vld [vmem:[%s8201_s25 + $0xa00] sm:$0xff]   ;;  %838 = vst [vmem:[%s8206_s26 + $0x558] sm:$0xff] %v837_v43   ;;  %v849_v46 = vld [vmem:[%s8201_s25 + $0xa08] sm:$0xff]  }
  0x69   : > { %842 = vst [vmem:[%s8206_s26 + $0x560] sm:$0xff] %v841_v44   ;;  %846 = vst [vmem:[%s8206_s26 + $0x568] sm:$0xff] %v845_v45   ;;  %v853_v47 = vld [vmem:[%s8201_s25 + $0xa10] sm:$0xff]   ;;  %v857_v48 = vld [vmem:[%s8201_s25 + $0xa18] sm:$0xff]  }
  0x6a   : > { %850 = vst [vmem:[%s8206_s26 + $0x570] sm:$0xff] %v849_v46   ;;  %854 = vst [vmem:[%s8206_s26 + $0x578] sm:$0xff] %v853_v47   ;;  %v861_v49 = vld [vmem:[%s8201_s25 + $0xa20] sm:$0xff]   ;;  %v865_v50 = vld [vmem:[%s8201_s25 + $0xa28] sm:$0xff]  }
  0x6b   : > { %858 = vst [vmem:[%s8206_s26 + $0x580] sm:$0xff] %v857_v48   ;;  %v869_v51 = vld [vmem:[%s8201_s25 + $0xa30] sm:$0xff]   ;;  %862 = vst [vmem:[%s8206_s26 + $0x588] sm:$0xff] %v861_v49   ;;  %v873_v52 = vld [vmem:[%s8201_s25 + $0xa38] sm:$0xff]  }
  0x6c   : > { %866 = vst [vmem:[%s8206_s26 + $0x590] sm:$0xff] %v865_v50   ;;  %870 = vst [vmem:[%s8206_s26 + $0x598] sm:$0xff] %v869_v51   ;;  %v877_v53 = vld [vmem:[%s8201_s25 + $0xa40] sm:$0xff]   ;;  %v881_v54 = vld [vmem:[%s8201_s25 + $0xa48] sm:$0xff]  }
  0x6d   : > { %874 = vst [vmem:[%s8206_s26 + $0x5a0] sm:$0xff] %v873_v52   ;;  %878 = vst [vmem:[%s8206_s26 + $0x5a8] sm:$0xff] %v877_v53   ;;  %v885_v55 = vld [vmem:[%s8201_s25 + $0xa50] sm:$0xff]   ;;  %v889_v56 = vld [vmem:[%s8201_s25 + $0xa58] sm:$0xff]  }
  0x6e   : > { %882 = vst [vmem:[%s8206_s26 + $0x5b0] sm:$0xff] %v881_v54   ;;  %v893_v57 = vld [vmem:[%s8201_s25 + $0xa60] sm:$0xff]   ;;  %886 = vst [vmem:[%s8206_s26 + $0x5b8] sm:$0xff] %v885_v55   ;;  %v897_v58 = vld [vmem:[%s8201_s25 + $0xa68] sm:$0xff]  }
  0x6f   : > { %890 = vst [vmem:[%s8206_s26 + $0x5c0] sm:$0xff] %v889_v56   ;;  %894 = vst [vmem:[%s8206_s26 + $0x5c8] sm:$0xff] %v893_v57   ;;  %v901_v59 = vld [vmem:[%s8201_s25 + $0xa70] sm:$0xff]   ;;  %v905_v60 = vld [vmem:[%s8201_s25 + $0xa78] sm:$0xff]  }
  0x70   : > { %898 = vst [vmem:[%s8206_s26 + $0x5d0] sm:$0xff] %v897_v58   ;;  %902 = vst [vmem:[%s8206_s26 + $0x5d8] sm:$0xff] %v901_v59   ;;  %v909_v61 = vld [vmem:[%s8201_s25 + $0xa80] sm:$0xff]   ;;  %v913_v62 = vld [vmem:[%s8201_s25 + $0xa88] sm:$0xff]  }
  0x71   : > { %906 = vst [vmem:[%s8206_s26 + $0x5e0] sm:$0xff] %v905_v60   ;;  %v917_v63 = vld [vmem:[%s8201_s25 + $0xa90] sm:$0xff]   ;;  %910 = vst [vmem:[%s8206_s26 + $0x5e8] sm:$0xff] %v909_v61   ;;  %v921_v0 = vld [vmem:[%s8201_s25 + $0xa98] sm:$0xff]  }
  0x72   : > { %914 = vst [vmem:[%s8206_s26 + $0x5f0] sm:$0xff] %v913_v62   ;;  %918 = vst [vmem:[%s8206_s26 + $0x5f8] sm:$0xff] %v917_v63   ;;  %v925_v1 = vld [vmem:[%s8201_s25 + $0xaa0] sm:$0xff]   ;;  %v929_v2 = vld [vmem:[%s8201_s25 + $0xaa8] sm:$0xff]  }
  0x73   : > { %922 = vst [vmem:[%s8206_s26 + $0x600] sm:$0xff] %v921_v0   ;;  %926 = vst [vmem:[%s8206_s26 + $0x608] sm:$0xff] %v925_v1   ;;  %v933_v3 = vld [vmem:[%s8201_s25 + $0xab0] sm:$0xff]  }
  0x74   : > { %930 = vst [vmem:[%s8206_s26 + $0x610] sm:$0xff] %v929_v2   ;;  %934 = vst [vmem:[%s8206_s26 + $0x618] sm:$0xff] %v933_v3  }
  0x75 PF: > { %p6152_p5 = scmp.ge.s32.totalorder %s8142_s14, 1  ;;  %p1742_p6 = scmp.lt.s32.totalorder %s8142_s14, 3 }
  0x77   : > { %p1743_p7 = pnand %p6152_p5, %p1742_p6 }
  0x79   : > { %1746 = sbr.rel (%p1743_p7) target bundleno = 1148 (0x47c), region = 69 }
  0x80   : > { %v7918_v4 = vld [vmem:[%s10527_s1] sm:$0xff]   ;;  %v10530_v5 = vmov 0.0   ;;  %v7919_v6 = vld [vmem:[%s10527_s1 + $0x8] sm:$0xff]   ;;  %vm2310_vm0 = vcmask 1044480   ;;  %s1749_s4 = sand.u32 1, %s8134_s12   ;;  %v7920_v7 = vld [vmem:[%s10527_s1 + $0x10] sm:$0xff]  }
  0x81   : > { %7065 = vmatprep.subr.bf16.mxu0 %v10530_v5  ;;  %7271 = vmatprep.subr.bf16.mxu1 %v10530_v5  ;;  %s7890_s7 = smul.u32 1568, %s1749_s4  ;;  %vm2311_vm1 = vcmask 1045504   ;;  %v8145_v8 = vmov 65535   ;;  %vm8146_vm2 = vmmov 0   ;;  %v7921_v10 = vld [vmem:[%s10527_s1 + $0x18] sm:$0xff]   ;;  %vm2162_vm3 = vcmask 613376  }
  0x82   : > { %7066 = vmatpush3.bf16.msra.mxu0 %v7918_v4  ;;  %7272 = vmatpush3.bf16.msra.mxu1 %v7918_v4  ;;  %v2312_v9 = vsel %vm2310_vm0, 4294967295, %v8145_v8  ;;  %v7922_v11 = vld [vmem:[%s10527_s1 + $0x20] sm:$0x3f]   ;;  %s1773_s17 = smul.u32 98, %s6147_s15 }
  0x83   : > { %7067 = vmatprep.subr.bf16.mxu0 %v10530_v5  ;;  %7273 = vmatprep.subr.bf16.mxu1 %v10530_v5  ;;  %s8622_s10 = scalar_lea.vmem [#allocation2], %s7890_s7  ;;  %v2313_v12 = vsel %vm2311_vm1, %v2312_v9, 0 }
  0x84   : > { %7075 = vmatprep.mubr.msk.bf16.mxu0 %vm8146_vm2, %v10530_v5  ;;  %7281 = vmatprep.mubr.msk.bf16.mxu1 %vm8146_vm2, %v10530_v5  ;;  %v2315_v13 = vand.u32 %v7922_v11, %v2313_v12  ;;  %v7923_v14 = vld [vmem:[%s8622_s10] sm:$0xff]   ;;  %v7924_v15 = vld [vmem:[%s8622_s10 + $0x188] sm:$0xff]   ;;  %v7926_v17 = vld [vmem:[%s8622_s10 + $0x190] sm:$0xff]   ;;  %p1774_p8 = scmp.lt.s32.totalorder %s1773_s17, 195 }
  0x85   : > { %v7925_v16 = vld [vmem:[%s8622_s10 + $0x8] sm:$0xff]   ;;  %v7927_v18 = vld [vmem:[%s8622_s10 + $0x10] sm:$0xff]   ;;  %v7928_v19 = vld [vmem:[%s8622_s10 + $0x198] sm:$0xff]  }
  0x86   : > { %7068 = vmatpush3.bf16.msra.mxu0 %v7919_v6  ;;  %7274 = vmatpush3.bf16.msra.mxu1 %v7919_v6  ;;  %v7929_v20 = vld [vmem:[%s8622_s10 + $0x18] sm:$0xff]   ;;  %v7930_v21 = vld [vmem:[%s8622_s10 + $0x1a0] sm:$0xff]   ;;  %v7932_v23 = vld [vmem:[%s8622_s10 + $0x1a8] sm:$0xff]   ;;  %s11079_s17 = smov (!%p1774_p8, %s1773_s17), 195 }
  0x87   : > { %7069 = vmatprep.subr.bf16.mxu0 %v10530_v5  ;;  %7275 = vmatprep.subr.bf16.mxu1 %v10530_v5  ;;  %v7931_v22 = vld [vmem:[%s8622_s10 + $0x20] sm:$0xff]   ;;  %v7933_v24 = vld [vmem:[%s8622_s10 + $0x28] sm:$0xff]   ;;  %v7934_v25 = vld [vmem:[%s8622_s10 + $0x1b0] sm:$0xff]   ;;  %s6153_s18 = sshll.u32 %s11079_s17, 3 }
  0x88   : > { %v7935_v26 = vld [vmem:[%s8622_s10 + $0x30] sm:$0xff]   ;;  %v7936_v27 = vld [vmem:[%s8622_s10 + $0x1b8] sm:$0xff]   ;;  %v7938_v29 = vld [vmem:[%s8622_s10 + $0x1c0] sm:$0xff]   ;;  %s9858_s22 = scalar_lea.vmem %s10529_s3, %s6153_s18 }
  0x89   : > { %v7937_v28 = vld [vmem:[%s8622_s10 + $0x38] sm:$0xff]   ;;  %v7939_v30 = vld [vmem:[%s8622_s10 + $0x40] sm:$0xff]   ;;  %v7940_v31 = vld [vmem:[%s8622_s10 + $0x1c8] sm:$0xff]  }
  0x8a   : > { %7070 = vmatpush3.bf16.msra.mxu0 %v7920_v7  ;;  %7276 = vmatpush3.bf16.msra.mxu1 %v7920_v7  ;;  %v7941_v32 = vld [vmem:[%s8622_s10 + $0x48] sm:$0xff]   ;;  %v7942_v33 = vld [vmem:[%s8622_s10 + $0x1d0] sm:$0xff]   ;;  %v7944_v35 = vld [vmem:[%s8622_s10 + $0x1d8] sm:$0xff]  }
  0x8b   : > { %7071 = vmatprep.subr.bf16.mxu0 %v10530_v5  ;;  %7277 = vmatprep.subr.bf16.mxu1 %v10530_v5  ;;  %v7943_v34 = vld [vmem:[%s8622_s10 + $0x50] sm:$0xff]   ;;  %v7945_v36 = vld [vmem:[%s8622_s10 + $0x58] sm:$0xff]   ;;  %v7946_v37 = vld [vmem:[%s8622_s10 + $0x1e0] sm:$0xff]  }
  0x8c   : > { %v7947_v38 = vld [vmem:[%s8622_s10 + $0x60] sm:$0xff]   ;;  %v7948_v39 = vld [vmem:[%s8622_s10 + $0x1e8] sm:$0xff]   ;;  %v7950_v41 = vld [vmem:[%s8622_s10 + $0x1f0] sm:$0xff]  }
  0x8d   : > { %v7949_v40 = vld [vmem:[%s8622_s10 + $0x68] sm:$0xff]   ;;  %v7951_v42 = vld [vmem:[%s8622_s10 + $0x70] sm:$0xff]   ;;  %v7952_v43 = vld [vmem:[%s8622_s10 + $0x1f8] sm:$0xff]  }
  0x8e   : > { %7072 = vmatpush3.bf16.msra.mxu0 %v7921_v10  ;;  %7278 = vmatpush3.bf16.msra.mxu1 %v7921_v10  ;;  %v7953_v44 = vld [vmem:[%s8622_s10 + $0x78] sm:$0xff]   ;;  %v7954_v45 = vld [vmem:[%s8622_s10 + $0x200] sm:$0xff]   ;;  %v7956_v47 = vld [vmem:[%s8622_s10 + $0x208] sm:$0xff]  }
  0x8f   : > { %7073 = vmatprep.subr.bf16.mxu0 %v10530_v5  ;;  %7279 = vmatprep.subr.bf16.mxu1 %v10530_v5  ;;  %v7955_v46 = vld [vmem:[%s8622_s10 + $0x80] sm:$0xff]   ;;  %v7957_v48 = vld [vmem:[%s8622_s10 + $0x88] sm:$0xff]   ;;  %v7958_v49 = vld [vmem:[%s8622_s10 + $0x210] sm:$0xff]  }
  0x90   : > { %v7959_v50 = vld [vmem:[%s8622_s10 + $0x90] sm:$0xff]   ;;  %v7960_v51 = vld [vmem:[%s8622_s10 + $0x218] sm:$0xff]   ;;  %v7962_v53 = vld [vmem:[%s8622_s10 + $0x220] sm:$0xff]  }
  0x91   : > { %v7961_v52 = vld [vmem:[%s8622_s10 + $0x98] sm:$0xff]   ;;  %v7963_v54 = vld [vmem:[%s8622_s10 + $0xa0] sm:$0xff]   ;;  %v7964_v55 = vld [vmem:[%s8622_s10 + $0x228] sm:$0xff]  }
  0x92   : > { %7074 = vmatpush3.bf16.msra.mxu0 %v2315_v13  ;;  %7280 = vmatpush3.bf16.msra.mxu1 %v2315_v13  ;;  %v7965_v56 = vld [vmem:[%s8622_s10 + $0xa8] sm:$0xff]   ;;  %v7966_v57 = vld [vmem:[%s8622_s10 + $0x230] sm:$0xff]   ;;  %v7968_v59 = vld [vmem:[%s8622_s10 + $0x238] sm:$0xff]  }
  0x93   : > { %7477 = vmatprep.subr.bf16.mxu0 %v10530_v5  ;;  %7683 = vmatprep.subr.bf16.mxu1 %v10530_v5  ;;  %v7967_v58 = vld [vmem:[%s8622_s10 + $0xb0] sm:$0xff]   ;;  %v7969_v60 = vld [vmem:[%s8622_s10 + $0xb8] sm:$0xff]   ;;  %v7970_v61 = vld [vmem:[%s8622_s10 + $0x240] sm:$0xff]  }
  0x94   : > { %v7971_v62 = vld [vmem:[%s8622_s10 + $0xc0] sm:$0xff]   ;;  %v7972_v63 = vld [vmem:[%s8622_s10 + $0x248] sm:$0xff]   ;;  %v7974_v1 = vld [vmem:[%s8622_s10 + $0x250] sm:$0xff]  }
  0x95   : > { %7076 = vmatmul.mubr.msk.bf16.vlgmr.msra.gmra.mrb[0].mxu0 %vm2162_vm3, %v7923_v14  ;;  %7282 = vmatmul.mubr.msk.bf16.vlgmr.msra.gmra.mrb[0].mxu1 %vm2162_vm3, %v7924_v15  ;;  %v7973_v0 = vld [vmem:[%s8622_s10 + $0xc8] sm:$0xff]   ;;  %v7975_v2 = vld [vmem:[%s8622_s10 + $0xd0] sm:$0xff]   ;;  %v7976_v3 = vld [vmem:[%s8622_s10 + $0x258] sm:$0xff]  }
  0x96   : > { %7478 = vmatpush3.bf16.msra.mxu0 %v7918_v4  ;;  %7684 = vmatpush3.bf16.msra.mxu1 %v7918_v4  ;;  %v7978_v11 = vld [vmem:[%s8622_s10 + $0x260] sm:$0xff]  }
  0x97   : > { %7079 = vmatprep.mubr.msk.bf16.mxu0 %vm8146_vm2, %v10530_v5  ;;  %7285 = vmatprep.mubr.msk.bf16.mxu1 %vm8146_vm2, %v10530_v5 }
  0x98   : > { %7479 = vmatprep.subr.bf16.mxu0 %v10530_v5  ;;  %7685 = vmatprep.subr.bf16.mxu1 %v10530_v5 }
  0x9a   : > { %7480 = vmatpush3.bf16.msra.mxu0 %v7919_v6  ;;  %7686 = vmatpush3.bf16.msra.mxu1 %v7919_v6 }
  0x9b   : > { %7481 = vmatprep.subr.bf16.mxu0 %v10530_v5  ;;  %7687 = vmatprep.subr.bf16.mxu1 %v10530_v5 }
  0x9d   : > { %7080 = vmatmul.mubr.msk.bf16.gmra.mrb[4].mxu0 %vm2162_vm3, %v7925_v16  ;;  %7286 = vmatmul.mubr.msk.bf16.gmra.mrb[4].mxu1 %vm2162_vm3, %v7926_v17 }
  0x9e   : > { %7083 = vmatprep.mubr.msk.bf16.mxu0 %vm8146_vm2, %v10530_v5  ;;  %7289 = vmatprep.mubr.msk.bf16.mxu1 %vm8146_vm2, %v10530_v5 }
  0x9f   : > { %7482 = vmatpush3.bf16.msra.mxu0 %v7920_v7  ;;  %7688 = vmatpush3.bf16.msra.mxu1 %v7920_v7 }
  0xa0   : > { %7483 = vmatprep.subr.bf16.mxu0 %v10530_v5  ;;  %7689 = vmatprep.subr.bf16.mxu1 %v10530_v5 }
  0xa3   : > { %7484 = vmatpush3.bf16.msra.mxu0 %v7921_v10  ;;  %7690 = vmatpush3.bf16.msra.mxu1 %v7921_v10  ;;  %v7977_v10 = vld [vmem:[%s8622_s10 + $0xd8] sm:$0xff]  }
  0xa4   : > { %7485 = vmatprep.subr.bf16.mxu0 %v10530_v5  ;;  %7691 = vmatprep.subr.bf16.mxu1 %v10530_v5 }
  0xa5   : > { %7084 = vmatmul.mubr.msk.bf16.gmra.mrb[8].mxu0 %vm2162_vm3, %v7927_v18  ;;  %7290 = vmatmul.mubr.msk.bf16.gmra.mrb[8].mxu1 %vm2162_vm3, %v7928_v19 }
  0xa6   : > { %7087 = vmatprep.mubr.msk.bf16.mxu0 %vm8146_vm2, %v10530_v5  ;;  %7293 = vmatprep.mubr.msk.bf16.mxu1 %vm8146_vm2, %v10530_v5 }
  0xa7   : > { %7486 = vmatpush3.bf16.msra.mxu0 %v2315_v13  ;;  %7692 = vmatpush3.bf16.msra.mxu1 %v2315_v13 }
  0xad   : > { %7088 = vmatmul.mubr.msk.bf16.gmra.mrb[12].mxu0 %vm2162_vm3, %v7929_v20  ;;  %7294 = vmatmul.mubr.msk.bf16.gmra.mrb[12].mxu1 %vm2162_vm3, %v7930_v21 }
  0xae   : > { %7091 = vmatprep.mubr.msk.bf16.mxu0 %vm8146_vm2, %v10530_v5  ;;  %7297 = vmatprep.mubr.msk.bf16.mxu1 %vm8146_vm2, %v10530_v5 }
  0xb5   : > { %7092 = vmatmul.mubr.msk.bf16.gmra.mrb[16].mxu0 %vm2162_vm3, %v7931_v22  ;;  %7298 = vmatmul.mubr.msk.bf16.gmra.mrb[16].mxu1 %vm2162_vm3, %v7932_v23  ;;  %v7979_v22 = vld [vmem:[%s8622_s10 + $0xe0] sm:$0xff]   ;;  %v7980_v23 = vld [vmem:[%s8622_s10 + $0x268] sm:$0xff]  }
  0xb6   : > { %7095 = vmatprep.mubr.msk.bf16.mxu0 %vm8146_vm2, %v10530_v5  ;;  %7301 = vmatprep.mubr.msk.bf16.mxu1 %vm8146_vm2, %v10530_v5 }
  0xbd   : > { %7096 = vmatmul.mubr.msk.bf16.gmra.mrb[20].mxu0 %vm2162_vm3, %v7933_v24  ;;  %7302 = vmatmul.mubr.msk.bf16.gmra.mrb[20].mxu1 %vm2162_vm3, %v7934_v25 }
  0xbe   : > { %7099 = vmatprep.mubr.msk.bf16.mxu0 %vm8146_vm2, %v10530_v5  ;;  %7305 = vmatprep.mubr.msk.bf16.mxu1 %vm8146_vm2, %v10530_v5 }
  0xc5   : > { %7100 = vmatmul.mubr.msk.bf16.gmra.mrb[24].mxu0 %vm2162_vm3, %v7935_v26  ;;  %7306 = vmatmul.mubr.msk.bf16.gmra.mrb[24].mxu1 %vm2162_vm3, %v7936_v27 }
  0xc6   : > { %7103 = vmatprep.mubr.msk.bf16.mxu0 %vm8146_vm2, %v10530_v5  ;;  %7309 = vmatprep.mubr.msk.bf16.mxu1 %vm8146_vm2, %v10530_v5 }
  0xcd   : > { %7104 = vmatmul.mubr.msk.bf16.gmra.mrb[28].mxu0 %vm2162_vm3, %v7937_v28  ;;  %7310 = vmatmul.mubr.msk.bf16.gmra.mrb[28].mxu1 %vm2162_vm3, %v7938_v29 }
  0xce   : > { %7107 = vmatprep.mubr.msk.bf16.mxu0 %vm8146_vm2, %v10530_v5  ;;  %7313 = vmatprep.mubr.msk.bf16.mxu1 %vm8146_vm2, %v10530_v5 }
  0xd5   : > { %7108 = vmatmul.mubr.msk.bf16.gmra.mrb[32].mxu0 %vm2162_vm3, %v7939_v30  ;;  %7314 = vmatmul.mubr.msk.bf16.gmra.mrb[32].mxu1 %vm2162_vm3, %v7940_v31 }
  0xd6   : > { %7111 = vmatprep.mubr.msk.bf16.mxu0 %vm8146_vm2, %v10530_v5  ;;  %7317 = vmatprep.mubr.msk.bf16.mxu1 %vm8146_vm2, %v10530_v5 }
  0xdd   : > { %7112 = vmatmul.mubr.msk.bf16.gmra.mrb[36].mxu0 %vm2162_vm3, %v7941_v32  ;;  %7318 = vmatmul.mubr.msk.bf16.gmra.mrb[36].mxu1 %vm2162_vm3, %v7942_v33 }
  0xde   : > { %7115 = vmatprep.mubr.msk.bf16.mxu0 %vm8146_vm2, %v10530_v5  ;;  %7321 = vmatprep.mubr.msk.bf16.mxu1 %vm8146_vm2, %v10530_v5 }
  0xe5   : > { %7116 = vmatmul.mubr.msk.bf16.gmra.mrb[40].mxu0 %vm2162_vm3, %v7943_v34  ;;  %7322 = vmatmul.mubr.msk.bf16.gmra.mrb[40].mxu1 %vm2162_vm3, %v7944_v35  ;;  %v7981_v34 = vld [vmem:[%s8622_s10 + $0xe8] sm:$0xff]   ;;  %v7982_v35 = vld [vmem:[%s8622_s10 + $0x270] sm:$0xff]  }
  0xe6   : > { %7119 = vmatprep.mubr.msk.bf16.mxu0 %vm8146_vm2, %v10530_v5  ;;  %7325 = vmatprep.mubr.msk.bf16.mxu1 %vm8146_vm2, %v10530_v5 }
  0xed   : > { %7120 = vmatmul.mubr.msk.bf16.gmra.mrb[44].mxu0 %vm2162_vm3, %v7945_v36  ;;  %7326 = vmatmul.mubr.msk.bf16.gmra.mrb[44].mxu1 %vm2162_vm3, %v7946_v37 }
  0xee   : > { %7123 = vmatprep.mubr.msk.bf16.mxu0 %vm8146_vm2, %v10530_v5  ;;  %7329 = vmatprep.mubr.msk.bf16.mxu1 %vm8146_vm2, %v10530_v5 }
  0xf5   : > { %7124 = vmatmul.mubr.msk.bf16.gmra.mrb[48].mxu0 %vm2162_vm3, %v7947_v38  ;;  %7330 = vmatmul.mubr.msk.bf16.gmra.mrb[48].mxu1 %vm2162_vm3, %v7948_v39 }
  0xf6   : > { %7127 = vmatprep.mubr.msk.bf16.mxu0 %vm8146_vm2, %v10530_v5  ;;  %7333 = vmatprep.mubr.msk.bf16.mxu1 %vm8146_vm2, %v10530_v5 }
  0xfd   : > { %7128 = vmatmul.mubr.msk.bf16.gmra.mrb[52].mxu0 %vm2162_vm3, %v7949_v40  ;;  %7334 = vmatmul.mubr.msk.bf16.gmra.mrb[52].mxu1 %vm2162_vm3, %v7950_v41 }
  0xfe   : > { %7131 = vmatprep.mubr.msk.bf16.mxu0 %vm8146_vm2, %v10530_v5  ;;  %7337 = vmatprep.mubr.msk.bf16.mxu1 %vm8146_vm2, %v10530_v5 }
 0x105   : > { %7132 = vmatmul.mubr.msk.bf16.gmra.mrb[56].mxu0 %vm2162_vm3, %v7951_v42  ;;  %7338 = vmatmul.mubr.msk.bf16.gmra.mrb[56].mxu1 %vm2162_vm3, %v7952_v43 }
 0x106   : > { %7135 = vmatprep.mubr.msk.bf16.mxu0 %vm8146_vm2, %v10530_v5  ;;  %7341 = vmatprep.mubr.msk.bf16.mxu1 %vm8146_vm2, %v10530_v5 }
 0x10d   : > { %7136 = vmatmul.mubr.msk.bf16.gmra.mrb[60].mxu0 %vm2162_vm3, %v7953_v44  ;;  %7342 = vmatmul.mubr.msk.bf16.gmra.mrb[60].mxu1 %vm2162_vm3, %v7954_v45 }
 0x10e   : > { %7139 = vmatprep.mubr.msk.bf16.mxu0 %vm8146_vm2, %v10530_v5  ;;  %7345 = vmatprep.mubr.msk.bf16.mxu1 %vm8146_vm2, %v10530_v5 }
 0x115   : > { %7140 = vmatmul.mubr.msk.bf16.gmra.mrb[64].mxu0 %vm2162_vm3, %v7955_v46  ;;  %7346 = vmatmul.mubr.msk.bf16.gmra.mrb[64].mxu1 %vm2162_vm3, %v7956_v47  ;;  %v7983_v46 = vld [vmem:[%s8622_s10 + $0xf0] sm:$0xff]   ;;  %v7984_v47 = vld [vmem:[%s8622_s10 + $0x278] sm:$0xff]  }
 0x116   : > { %7143 = vmatprep.mubr.msk.bf16.mxu0 %vm8146_vm2, %v10530_v5  ;;  %7349 = vmatprep.mubr.msk.bf16.mxu1 %vm8146_vm2, %v10530_v5 }
 0x11d   : > { %7144 = vmatmul.mubr.msk.bf16.gmra.mrb[68].mxu0 %vm2162_vm3, %v7957_v48  ;;  %7350 = vmatmul.mubr.msk.bf16.gmra.mrb[68].mxu1 %vm2162_vm3, %v7958_v49 }
 0x11e   : > { %7147 = vmatprep.mubr.msk.bf16.mxu0 %vm8146_vm2, %v10530_v5  ;;  %7353 = vmatprep.mubr.msk.bf16.mxu1 %vm8146_vm2, %v10530_v5 }
 0x125   : > { %7148 = vmatmul.mubr.msk.bf16.gmra.mrb[72].mxu0 %vm2162_vm3, %v7959_v50  ;;  %7354 = vmatmul.mubr.msk.bf16.gmra.mrb[72].mxu1 %vm2162_vm3, %v7960_v51 }
 0x126   : > { %7151 = vmatprep.mubr.msk.bf16.mxu0 %vm8146_vm2, %v10530_v5  ;;  %7357 = vmatprep.mubr.msk.bf16.mxu1 %vm8146_vm2, %v10530_v5 }
 0x12d   : > { %7152 = vmatmul.mubr.msk.bf16.gmra.mrb[76].mxu0 %vm2162_vm3, %v7961_v52  ;;  %7358 = vmatmul.mubr.msk.bf16.gmra.mrb[76].mxu1 %vm2162_vm3, %v7962_v53 }
 0x12e   : > { %7155 = vmatprep.mubr.msk.bf16.mxu0 %vm8146_vm2, %v10530_v5  ;;  %7361 = vmatprep.mubr.msk.bf16.mxu1 %vm8146_vm2, %v10530_v5 }
 0x135   : > { %7156 = vmatmul.mubr.msk.bf16.gmra.mrb[80].mxu0 %vm2162_vm3, %v7963_v54  ;;  %7362 = vmatmul.mubr.msk.bf16.gmra.mrb[80].mxu1 %vm2162_vm3, %v7964_v55 }
 0x136   : > { %7159 = vmatprep.mubr.msk.bf16.mxu0 %vm8146_vm2, %v10530_v5  ;;  %7365 = vmatprep.mubr.msk.bf16.mxu1 %vm8146_vm2, %v10530_v5 }
 0x13d   : > { %7160 = vmatmul.mubr.msk.bf16.gmra.mrb[84].mxu0 %vm2162_vm3, %v7965_v56  ;;  %7366 = vmatmul.mubr.msk.bf16.gmra.mrb[84].mxu1 %vm2162_vm3, %v7966_v57 }
 0x13e   : > { %7163 = vmatprep.mubr.msk.bf16.mxu0 %vm8146_vm2, %v10530_v5  ;;  %7369 = vmatprep.mubr.msk.bf16.mxu1 %vm8146_vm2, %v10530_v5 }
 0x145   : > { %7164 = vmatmul.mubr.msk.bf16.gmra.mrb[88].mxu0 %vm2162_vm3, %v7967_v58  ;;  %7370 = vmatmul.mubr.msk.bf16.gmra.mrb[88].mxu1 %vm2162_vm3, %v7968_v59  ;;  %v7985_v58 = vld [vmem:[%s8622_s10 + $0xf8] sm:$0xff]   ;;  %v7986_v59 = vld [vmem:[%s8622_s10 + $0x280] sm:$0xff]  }
 0x146   : > { %7167 = vmatprep.mubr.msk.bf16.mxu0 %vm8146_vm2, %v10530_v5  ;;  %7373 = vmatprep.mubr.msk.bf16.mxu1 %vm8146_vm2, %v10530_v5 }
 0x14d   : > { %7168 = vmatmul.mubr.msk.bf16.gmra.mrb[92].mxu0 %vm2162_vm3, %v7969_v60  ;;  %7374 = vmatmul.mubr.msk.bf16.gmra.mrb[92].mxu1 %vm2162_vm3, %v7970_v61 }
 0x14e   : > { %7171 = vmatprep.mubr.msk.bf16.mxu0 %vm8146_vm2, %v10530_v5  ;;  %7377 = vmatprep.mubr.msk.bf16.mxu1 %vm8146_vm2, %v10530_v5 }
 0x155   : > { %7172 = vmatmul.mubr.msk.bf16.gmra.mrb[96].mxu0 %vm2162_vm3, %v7971_v62  ;;  %7378 = vmatmul.mubr.msk.bf16.gmra.mrb[96].mxu1 %vm2162_vm3, %v7972_v63 }
 0x156   : > { %7175 = vmatprep.mubr.msk.bf16.mxu0 %vm8146_vm2, %v10530_v5  ;;  %7381 = vmatprep.mubr.msk.bf16.mxu1 %vm8146_vm2, %v10530_v5 }
 0x15d   : > { %7176 = vmatmul.mubr.msk.bf16.gmra.mrb[100].mxu0 %vm2162_vm3, %v7973_v0  ;;  %7382 = vmatmul.mubr.msk.bf16.gmra.mrb[100].mxu1 %vm2162_vm3, %v7974_v1 }
 0x15e   : > { %7179 = vmatprep.mubr.msk.bf16.mxu0 %vm8146_vm2, %v10530_v5  ;;  %7385 = vmatprep.mubr.msk.bf16.mxu1 %vm8146_vm2, %v10530_v5 }
 0x165   : > { %7180 = vmatmul.mubr.msk.bf16.gmra.mrb[104].mxu0 %vm2162_vm3, %v7975_v2  ;;  %7386 = vmatmul.mubr.msk.bf16.gmra.mrb[104].mxu1 %vm2162_vm3, %v7976_v3 }
 0x166   : > { %7183 = vmatprep.mubr.msk.bf16.mxu0 %vm8146_vm2, %v10530_v5  ;;  %7389 = vmatprep.mubr.msk.bf16.mxu1 %vm8146_vm2, %v10530_v5 }
 0x168   : > { %v8857_v4 = vpop.f32.mrb[0].mxu0  ;;  %v8859_v6 = vpop.f32.mrb[0].mxu1 }
 0x169   : > { %v7077_v8 = vpop.f32.mrb[1].mxu0  ;;  %v7283_v9 = vpop.f32.mrb[1].mxu1 }
 0x16a   : > { %v8865_v12 = vpop.f32.mrb[2].mxu0  ;;  %v8867_v13 = vpop.f32.mrb[2].mxu1 }
 0x16b   : > { %v7078_v15 = vpop.f32.mrb[3].mxu0  ;;  %v7284_v16 = vpop.f32.mrb[3].mxu1 }
 0x16d   : > { %7184 = vmatmul.mubr.msk.bf16.gmra.mrb[108].mxu0 %vm2162_vm3, %v7977_v10  ;;  %7390 = vmatmul.mubr.msk.bf16.gmra.mrb[108].mxu1 %vm2162_vm3, %v7978_v11  ;;  %v7987_v10 = vld [vmem:[%s8622_s10 + $0x100] sm:$0xff]   ;;  %v7988_v11 = vld [vmem:[%s8622_s10 + $0x288] sm:$0xff]  }
 0x16e   : > { %7187 = vmatprep.mubr.msk.bf16.mxu0 %vm8146_vm2, %v10530_v5  ;;  %7393 = vmatprep.mubr.msk.bf16.mxu1 %vm8146_vm2, %v10530_v5 }
 0x170   : > { %v8877_v17 = vpop.f32.mrb[4].mxu0  ;;  %v8879_v18 = vpop.f32.mrb[4].mxu1 }
 0x171   : > { %v7081_v20 = vpop.f32.mrb[5].mxu0  ;;  %v7287_v21 = vpop.f32.mrb[5].mxu1 }
 0x172   : > { %v8885_v24 = vpop.f32.mrb[6].mxu0  ;;  %v8887_v25 = vpop.f32.mrb[6].mxu1 }
 0x173   : > { %v7082_v27 = vpop.f32.mrb[7].mxu0  ;;  %v7288_v28 = vpop.f32.mrb[7].mxu1 }
 0x175   : > { %7188 = vmatmul.mubr.msk.bf16.gmra.mrb[112].mxu0 %vm2162_vm3, %v7979_v22  ;;  %7394 = vmatmul.mubr.msk.bf16.gmra.mrb[112].mxu1 %vm2162_vm3, %v7980_v23 }
 0x176   : > { %7191 = vmatprep.mubr.msk.bf16.mxu0 %vm8146_vm2, %v10530_v5  ;;  %7397 = vmatprep.mubr.msk.bf16.mxu1 %vm8146_vm2, %v10530_v5 }
 0x178   : > { %v8897_v29 = vpop.f32.mrb[8].mxu0  ;;  %v8899_v30 = vpop.f32.mrb[8].mxu1 }
 0x179   : > { %v7085_v32 = vpop.f32.mrb[9].mxu0  ;;  %v7291_v33 = vpop.f32.mrb[9].mxu1 }
 0x17a   : > { %v8905_v36 = vpop.f32.mrb[10].mxu0  ;;  %v8907_v37 = vpop.f32.mrb[10].mxu1 }
 0x17b   : > { %v7086_v39 = vpop.f32.mrb[11].mxu0  ;;  %v7292_v40 = vpop.f32.mrb[11].mxu1 }
 0x17d   : > { %7192 = vmatmul.mubr.msk.bf16.gmra.mrb[116].mxu0 %vm2162_vm3, %v7981_v34  ;;  %7398 = vmatmul.mubr.msk.bf16.gmra.mrb[116].mxu1 %vm2162_vm3, %v7982_v35  ;;  %v7989_v34 = vld [vmem:[%s8622_s10 + $0x108] sm:$0xff]   ;;  %v7990_v35 = vld [vmem:[%s8622_s10 + $0x290] sm:$0xff]  }
 0x17e   : > { %7195 = vmatprep.mubr.msk.bf16.mxu0 %vm8146_vm2, %v10530_v5  ;;  %7401 = vmatprep.mubr.msk.bf16.mxu1 %vm8146_vm2, %v10530_v5 }
 0x180   : > { %v8917_v41 = vpop.f32.mrb[12].mxu0  ;;  %v8919_v42 = vpop.f32.mrb[12].mxu1 }
 0x181   : > { %v7089_v44 = vpop.f32.mrb[13].mxu0  ;;  %v7295_v45 = vpop.f32.mrb[13].mxu1 }
 0x182   : > { %v8925_v48 = vpop.f32.mrb[14].mxu0  ;;  %v8927_v49 = vpop.f32.mrb[14].mxu1 }
 0x183   : > { %v7090_v51 = vpop.f32.mrb[15].mxu0  ;;  %v7296_v52 = vpop.f32.mrb[15].mxu1 }
 0x185   : > { %7196 = vmatmul.mubr.msk.bf16.gmra.mrb[120].mxu0 %vm2162_vm3, %v7983_v46  ;;  %7402 = vmatmul.mubr.msk.bf16.gmra.mrb[120].mxu1 %vm2162_vm3, %v7984_v47 }
 0x186   : > { %7199 = vmatprep.mubr.msk.bf16.mxu0 %vm8146_vm2, %v10530_v5  ;;  %7405 = vmatprep.mubr.msk.bf16.mxu1 %vm8146_vm2, %v10530_v5 }
 0x188   : > { %v8937_v53 = vpop.f32.mrb[16].mxu0  ;;  %v8939_v54 = vpop.f32.mrb[16].mxu1 }
 0x189   : > { %v7093_v56 = vpop.f32.mrb[17].mxu0  ;;  %v7299_v57 = vpop.f32.mrb[17].mxu1 }
 0x18a   : > { %v8945_v60 = vpop.f32.mrb[18].mxu0  ;;  %v8947_v61 = vpop.f32.mrb[18].mxu1 }
 0x18b   : > { %v7094_v63 = vpop.f32.mrb[19].mxu0  ;;  %v7300_v0 = vpop.f32.mrb[19].mxu1 }
 0x18d   : > { %7200 = vmatmul.mubr.msk.bf16.gmra.mrb[124].mxu0 %vm2162_vm3, %v7985_v58  ;;  %7406 = vmatmul.mubr.msk.bf16.gmra.mrb[124].mxu1 %vm2162_vm3, %v7986_v59  ;;  %v7991_v58 = vld [vmem:[%s8622_s10 + $0x110] sm:$0xff]   ;;  %v7992_v59 = vld [vmem:[%s8622_s10 + $0x298] sm:$0xff]  }
 0x18e   : > { %7203 = vmatprep.mubr.msk.bf16.mxu0 %vm8146_vm2, %v10530_v5  ;;  %7409 = vmatprep.mubr.msk.bf16.mxu1 %vm8146_vm2, %v10530_v5 }
 0x190   : > { %v8957_v1 = vpop.f32.mrb[20].mxu0  ;;  %v8959_v2 = vpop.f32.mrb[20].mxu1 }
 0x191   : > { %v7097_v8 = vpop.f32.mrb[21].mxu0  ;;  %v7303_v9 = vpop.f32.mrb[21].mxu1 }
 0x192   : > { %v8965_v15 = vpop.f32.mrb[22].mxu0  ;;  %v8967_v16 = vpop.f32.mrb[22].mxu1 }
 0x193   : > { %v7098_v21 = vpop.f32.mrb[23].mxu0  ;;  %v7304_v22 = vpop.f32.mrb[23].mxu1 }
 0x195   : > { %7204 = vmatmul.mubr.msk.bf16.gmra.mrb[128].mxu0 %vm2162_vm3, %v7987_v10  ;;  %7410 = vmatmul.mubr.msk.bf16.gmra.mrb[128].mxu1 %vm2162_vm3, %v7988_v11 }
 0x196   : > { %7207 = vmatprep.mubr.msk.bf16.mxu0 %vm8146_vm2, %v10530_v5  ;;  %7413 = vmatprep.mubr.msk.bf16.mxu1 %vm8146_vm2, %v10530_v5 }
 0x198   : > { %v8977_v23 = vpop.f32.mrb[24].mxu0  ;;  %v8979_v27 = vpop.f32.mrb[24].mxu1 }
 0x199   : > { %v7101_v32 = vpop.f32.mrb[25].mxu0  ;;  %v7307_v33 = vpop.f32.mrb[25].mxu1 }
 0x19a   : > { %v8985_v39 = vpop.f32.mrb[26].mxu0  ;;  %v8987_v40 = vpop.f32.mrb[26].mxu1 }
 0x19b   : > { %v7102_v45 = vpop.f32.mrb[27].mxu0  ;;  %v7308_v46 = vpop.f32.mrb[27].mxu1 }
 0x19d   : > { %7208 = vmatmul.mubr.msk.bf16.gmra.mrb[132].mxu0 %vm2162_vm3, %v7989_v34  ;;  %7414 = vmatmul.mubr.msk.bf16.gmra.mrb[132].mxu1 %vm2162_vm3, %v7990_v35  ;;  %v7993_v34 = vld [vmem:[%s8622_s10 + $0x118] sm:$0xff]   ;;  %v7994_v35 = vld [vmem:[%s8622_s10 + $0x2a0] sm:$0xff]  }
 0x19e   : > { %7211 = vmatprep.mubr.msk.bf16.mxu0 %vm8146_vm2, %v10530_v5  ;;  %7417 = vmatprep.mubr.msk.bf16.mxu1 %vm8146_vm2, %v10530_v5 }
 0x1a0   : > { %v8997_v47 = vpop.f32.mrb[28].mxu0  ;;  %v8999_v51 = vpop.f32.mrb[28].mxu1 }
 0x1a1   : > { %v7105_v56 = vpop.f32.mrb[29].mxu0  ;;  %v7311_v57 = vpop.f32.mrb[29].mxu1 }
 0x1a2   : > { %v9005_v63 = vpop.f32.mrb[30].mxu0  ;;  %v9007_v0 = vpop.f32.mrb[30].mxu1 }
 0x1a3   : > { %v7106_v9 = vpop.f32.mrb[31].mxu0  ;;  %v7312_v10 = vpop.f32.mrb[31].mxu1 }
 0x1a4   : > { %v10688_v10 = vmov 0.0  }
 0x1a5   : > { %7212 = vmatmul.mubr.msk.bf16.gmra.mrb[136].mxu0 %vm2162_vm3, %v7991_v58  ;;  %7418 = vmatmul.mubr.msk.bf16.gmra.mrb[136].mxu1 %vm2162_vm3, %v7992_v59 }
 0x1a6   : > { %7215 = vmatprep.mubr.msk.bf16.mxu0 %vm8146_vm2, %v10530_v5  ;;  %7421 = vmatprep.mubr.msk.bf16.mxu1 %vm8146_vm2, %v10530_v5 }
 0x1a8   : > { %v9017_v11 = vpop.f32.mrb[32].mxu0  ;;  %v9019_v21 = vpop.f32.mrb[32].mxu1 }
 0x1a9   : > { %v7109_v32 = vpop.f32.mrb[33].mxu0  ;;  %v7315_v33 = vpop.f32.mrb[33].mxu1 }
 0x1aa   : > { %v9025_v45 = vpop.f32.mrb[34].mxu0  ;;  %v9027_v46 = vpop.f32.mrb[34].mxu1 }
 0x1ab   : > { %v7110_v57 = vpop.f32.mrb[35].mxu0  ;;  %v7316_v58 = vpop.f32.mrb[35].mxu1 }
 0x1ac   : > { %v7995_v57 = vld [vmem:[%s8622_s10 + $0x120] sm:$0xff]  }
 0x1ad   : > { %7216 = vmatmul.mubr.msk.bf16.gmra.mrb[140].mxu0 %vm2162_vm3, %v7993_v34  ;;  %7422 = vmatmul.mubr.msk.bf16.gmra.mrb[140].mxu1 %vm2162_vm3, %v7994_v35  ;;  %v7996_v34 = vld [vmem:[%s8622_s10 + $0x2a8] sm:$0xff]  }
 0x1ae   : > { %7219 = vmatprep.mubr.msk.bf16.mxu0 %vm8146_vm2, %v10530_v5  ;;  %7425 = vmatprep.mubr.msk.bf16.mxu1 %vm8146_vm2, %v10530_v5 }
 0x1b0   : > { %v9037_v59 = vpop.f32.mrb[36].mxu0  ;;  %v9039_v9 = vpop.f32.mrb[36].mxu1 }
 0x1b1   : > { %v7113_v32 = vpop.f32.mrb[37].mxu0  ;;  %v7319_v33 = vpop.f32.mrb[37].mxu1 }
 0x1b2   : > { %v9045_v35 = vpop.f32.mrb[38].mxu0  ;;  %v9047_v58 = vpop.f32.mrb[38].mxu1 }
 0x1b3   : > { %v7114_v22 = vpop.f32.mrb[39].mxu0  ;;  %v7320_v8 = vpop.f32.mrb[39].mxu1 }
 0x1b4   : > { %v7997_v8 = vld [vmem:[%s8622_s10 + $0x128] sm:$0xff]  }
 0x1b5   : > { %7220 = vmatmul.mubr.msk.bf16.gmra.mrb[144].mxu0 %vm2162_vm3, %v7995_v57  ;;  %7426 = vmatmul.mubr.msk.bf16.gmra.mrb[144].mxu1 %vm2162_vm3, %v7996_v34  ;;  %v7998_v57 = vld [vmem:[%s8622_s10 + $0x2b0] sm:$0xff]  }
 0x1b6   : > { %7223 = vmatprep.mubr.msk.bf16.mxu0 %vm8146_vm2, %v10530_v5  ;;  %7429 = vmatprep.mubr.msk.bf16.mxu1 %vm8146_vm2, %v10530_v5 }
 0x1b8   : > { %v9057_v32 = vpop.f32.mrb[40].mxu0  ;;  %v9059_v33 = vpop.f32.mrb[40].mxu1 }
 0x1b9   : > { %v7117_v56 = vpop.f32.mrb[41].mxu0  ;;  %v7323_v22 = vpop.f32.mrb[41].mxu1 }
 0x1ba   : > { %v9065_v34 = vpop.f32.mrb[42].mxu0  ;;  %v9067_v52 = vpop.f32.mrb[42].mxu1 }
 0x1bb   : > { %v7118_v28 = vpop.f32.mrb[43].mxu0  ;;  %v7324_v20 = vpop.f32.mrb[43].mxu1 }
 0x1bc   : > { %v7999_v20 = vld [vmem:[%s8622_s10 + $0x130] sm:$0xff]  }
 0x1bd   : > { %7224 = vmatmul.mubr.msk.bf16.gmra.mrb[148].mxu0 %vm2162_vm3, %v7997_v8  ;;  %7430 = vmatmul.mubr.msk.bf16.gmra.mrb[148].mxu1 %vm2162_vm3, %v7998_v57  ;;  %v8000_v8 = vld [vmem:[%s8622_s10 + $0x2b8] sm:$0xff]  }
 0x1be   : > { %7227 = vmatprep.mubr.msk.bf16.mxu0 %vm8146_vm2, %v10530_v5  ;;  %7433 = vmatprep.mubr.msk.bf16.mxu1 %vm8146_vm2, %v10530_v5 }
 0x1c0   : > { %v9077_v56 = vpop.f32.mrb[44].mxu0  ;;  %v9079_v22 = vpop.f32.mrb[44].mxu1 }
 0x1c1   : > { %v7121_v44 = vpop.f32.mrb[45].mxu0  ;;  %v7327_v28 = vpop.f32.mrb[45].mxu1 }
 0x1c2   : > { %v9085_v57 = vpop.f32.mrb[46].mxu0  ;;  %v9087_v3 = vpop.f32.mrb[46].mxu1 }
 0x1c3   : > { %v7122_v55 = vpop.f32.mrb[47].mxu0  ;;  %v7328_v50 = vpop.f32.mrb[47].mxu1 }
 0x1c4   : > { %v8001_v50 = vld [vmem:[%s8622_s10 + $0x138] sm:$0xff]  }
 0x1c5   : > { %7228 = vmatmul.mubr.msk.bf16.gmra.mrb[152].mxu0 %vm2162_vm3, %v7999_v20  ;;  %7434 = vmatmul.mubr.msk.bf16.gmra.mrb[152].mxu1 %vm2162_vm3, %v8000_v8  ;;  %v8002_v20 = vld [vmem:[%s8622_s10 + $0x2c0] sm:$0xff]  }
 0x1c6   : > { %7231 = vmatprep.mubr.msk.bf16.mxu0 %vm8146_vm2, %v10530_v5  ;;  %7437 = vmatprep.mubr.msk.bf16.mxu1 %vm8146_vm2, %v10530_v5 }
 0x1c8   : > { %v9097_v44 = vpop.f32.mrb[48].mxu0  ;;  %v9099_v28 = vpop.f32.mrb[48].mxu1 }
 0x1c9   : > { %10680 = vst [vmem:[#allocation3_spill] sm:$0xff] %v9097_v44  ;;  %10681 = vst [vmem:[#allocation4_spill] sm:$0xff] %v9099_v28  ;;  %v7125_v62 = vpop.f32.mrb[49].mxu0  ;;  %v7331_v55 = vpop.f32.mrb[49].mxu1 }
 0x1ca   : > { %v9105_v8 = vpop.f32.mrb[50].mxu0  ;;  %v9107_v43 = vpop.f32.mrb[50].mxu1 }
 0x1cb   : > { %10682 = vst [vmem:[#allocation5_spill] sm:$0xff] %v9105_v8  ;;  %10683 = vst [vmem:[#allocation6_spill] sm:$0xff] %v9107_v43  ;;  %v7126_v31 = vpop.f32.mrb[51].mxu0  ;;  %v7332_v26 = vpop.f32.mrb[51].mxu1 }
 0x1cc   : > { %v8003_v26 = vld [vmem:[%s8622_s10 + $0x140] sm:$0xff]  }
 0x1cd   : > { %7232 = vmatmul.mubr.msk.bf16.gmra.mrb[156].mxu0 %vm2162_vm3, %v8001_v50  ;;  %7438 = vmatmul.mubr.msk.bf16.gmra.mrb[156].mxu1 %vm2162_vm3, %v8002_v20  ;;  %v8004_v50 = vld [vmem:[%s8622_s10 + $0x2c8] sm:$0xff]  }
 0x1ce   : > { %7235 = vmatprep.mubr.msk.bf16.mxu0 %vm8146_vm2, %v10530_v5  ;;  %7441 = vmatprep.mubr.msk.bf16.mxu1 %vm8146_vm2, %v10530_v5 }
 0x1d0   : > { %v9117_v62 = vpop.f32.mrb[52].mxu0  ;;  %v9119_v55 = vpop.f32.mrb[52].mxu1 }
 0x1d1   : > { %10684 = vst [vmem:[#allocation7_spill] sm:$0xff] %v9117_v62  ;;  %10685 = vst [vmem:[#allocation8_spill] sm:$0xff] %v9119_v55  ;;  %v7129_v38 = vpop.f32.mrb[53].mxu0  ;;  %v7335_v31 = vpop.f32.mrb[53].mxu1  ;;  %v8071_v55 = vld [vmem:[%s8622_s10 + $0x3d8] sm:$0xff]  }
 0x1d2   : > { %v9125_v20 = vpop.f32.mrb[54].mxu0  ;;  %v9127_v19 = vpop.f32.mrb[54].mxu1 }
 0x1d3   : > { %10686 = vst [vmem:[#allocation9_spill] sm:$0xff] %v9125_v20  ;;  %10687 = vst [vmem:[#allocation10_spill] sm:$0xff] %v9127_v19  ;;  %v7130_v7 = vpop.f32.mrb[55].mxu0  ;;  %v7336_v5 = vpop.f32.mrb[55].mxu1 }
 0x1d4   : > { %v8005_v5 = vld [vmem:[%s8622_s10 + $0x148] sm:$0xff]  }
 0x1d5   : > { %7236 = vmatmul.mubr.msk.bf16.gmra.mrb[160].mxu0 %vm2162_vm3, %v8003_v26  ;;  %7442 = vmatmul.mubr.msk.bf16.gmra.mrb[160].mxu1 %vm2162_vm3, %v8004_v50  ;;  %v8006_v26 = vld [vmem:[%s8622_s10 + $0x2d0] sm:$0xff]  }
 0x1d6   : > { %7239 = vmatprep.mubr.msk.bf16.mxu0 %vm8146_vm2, %v10688_v10  ;;  %7445 = vmatprep.mubr.msk.bf16.mxu1 %vm8146_vm2, %v10688_v10 }
 0x1d8   : > { %v9137_v38 = vpop.f32.mrb[56].mxu0  ;;  %v9139_v31 = vpop.f32.mrb[56].mxu1 }
 0x1d9   : > { %10689 = vst [vmem:[#allocation11_spill] sm:$0xff] %v9137_v38  ;;  %10690 = vst [vmem:[#allocation12_spill] sm:$0xff] %v9139_v31  ;;  %v7133_v14 = vpop.f32.mrb[57].mxu0  ;;  %v7339_v7 = vpop.f32.mrb[57].mxu1 }
 0x1da   : > { %v9145_v50 = vpop.f32.mrb[58].mxu0  ;;  %v9147_v19 = vpop.f32.mrb[58].mxu1 }
 0x1db   : > { %10691 = vst [vmem:[#allocation13_spill] sm:$0xff] %v9145_v50  ;;  %10692 = vst [vmem:[#allocation14_spill] sm:$0xff] %v9147_v19  ;;  %v7134_v62 = vpop.f32.mrb[59].mxu0  ;;  %v7340_v43 = vpop.f32.mrb[59].mxu1 }
 0x1dc   : > { %v8007_v43 = vld [vmem:[%s8622_s10 + $0x150] sm:$0xff]  }
 0x1dd   : > { %7240 = vmatmul.mubr.msk.bf16.gmra.mrb[164].mxu0 %vm2162_vm3, %v8005_v5  ;;  %7446 = vmatmul.mubr.msk.bf16.gmra.mrb[164].mxu1 %vm2162_vm3, %v8006_v26  ;;  %v8008_v5 = vld [vmem:[%s8622_s10 + $0x2d8] sm:$0xff]  }
 0x1de   : > { %7243 = vmatprep.mubr.msk.bf16.mxu0 %vm8146_vm2, %v10688_v10  ;;  %7449 = vmatprep.mubr.msk.bf16.mxu1 %vm8146_vm2, %v10688_v10 }
 0x1e0   : > { %v9157_v14 = vpop.f32.mrb[60].mxu0  ;;  %v9159_v7 = vpop.f32.mrb[60].mxu1 }
 0x1e1   : > { %10693 = vst [vmem:[#allocation15_spill] sm:$0xff] %v9157_v14  ;;  %10694 = vst [vmem:[#allocation16_spill] sm:$0xff] %v9159_v7  ;;  %v7137_v20 = vpop.f32.mrb[61].mxu0  ;;  %v7343_v62 = vpop.f32.mrb[61].mxu1 }
 0x1e2   : > { %v9165_v26 = vpop.f32.mrb[62].mxu0  ;;  %v9167_v19 = vpop.f32.mrb[62].mxu1 }
 0x1e3   : > { %10695 = vst [vmem:[#allocation17_spill] sm:$0xff] %v9165_v26  ;;  %10696 = vst [vmem:[#allocation18_spill] sm:$0xff] %v9167_v19  ;;  %v7138_v31 = vpop.f32.mrb[63].mxu0  ;;  %v7344_v38 = vpop.f32.mrb[63].mxu1 }
 0x1e4   : > { %v8009_v38 = vld [vmem:[%s8622_s10 + $0x158] sm:$0xff]  }
 0x1e5   : > { %7244 = vmatmul.mubr.msk.bf16.gmra.mrb[168].mxu0 %vm2162_vm3, %v8007_v43  ;;  %7450 = vmatmul.mubr.msk.bf16.gmra.mrb[168].mxu1 %vm2162_vm3, %v8008_v5  ;;  %v8010_v43 = vld [vmem:[%s8622_s10 + $0x2e0] sm:$0xff]  }
 0x1e6   : > { %7247 = vmatprep.mubr.msk.bf16.mxu0 %vm8146_vm2, %v10688_v10  ;;  %7453 = vmatprep.mubr.msk.bf16.mxu1 %vm8146_vm2, %v10688_v10 }
 0x1e8   : > { %v9177_v20 = vpop.f32.mrb[64].mxu0  ;;  %v9179_v62 = vpop.f32.mrb[64].mxu1 }
 0x1e9   : > { %10697 = vst [vmem:[#allocation19_spill] sm:$0xff] %v9177_v20  ;;  %10698 = vst [vmem:[#allocation20_spill] sm:$0xff] %v9179_v62  ;;  %v7141_v50 = vpop.f32.mrb[65].mxu0  ;;  %v7347_v31 = vpop.f32.mrb[65].mxu1 }
 0x1ea   : > { %v9185_v5 = vpop.f32.mrb[66].mxu0  ;;  %v9187_v19 = vpop.f32.mrb[66].mxu1 }
 0x1eb   : > { %10699 = vst [vmem:[#allocation21_spill] sm:$0xff] %v9185_v5  ;;  %10700 = vst [vmem:[#allocation22_spill] sm:$0xff] %v9187_v19  ;;  %v7142_v7 = vpop.f32.mrb[67].mxu0  ;;  %v7348_v14 = vpop.f32.mrb[67].mxu1 }
 0x1ec   : > { %v8011_v14 = vld [vmem:[%s8622_s10 + $0x160] sm:$0xff]  }
 0x1ed   : > { %7248 = vmatmul.mubr.msk.bf16.gmra.mrb[172].mxu0 %vm2162_vm3, %v8009_v38  ;;  %7454 = vmatmul.mubr.msk.bf16.gmra.mrb[172].mxu1 %vm2162_vm3, %v8010_v43  ;;  %v8012_v38 = vld [vmem:[%s8622_s10 + $0x2e8] sm:$0xff]  }
 0x1ee   : > { %7251 = vmatprep.mubr.msk.bf16.mxu0 %vm8146_vm2, %v10688_v10  ;;  %7457 = vmatprep.mubr.msk.bf16.mxu1 %vm8146_vm2, %v10688_v10 }
 0x1f0   : > { %v9197_v50 = vpop.f32.mrb[68].mxu0  ;;  %v9199_v31 = vpop.f32.mrb[68].mxu1 }
 0x1f1   : > { %10701 = vst [vmem:[#allocation23_spill] sm:$0xff] %v9197_v50  ;;  %10702 = vst [vmem:[#allocation24_spill] sm:$0xff] %v9199_v31  ;;  %v7145_v26 = vpop.f32.mrb[69].mxu0  ;;  %v7351_v7 = vpop.f32.mrb[69].mxu1 }
 0x1f2   : > { %v9205_v43 = vpop.f32.mrb[70].mxu0  ;;  %v9207_v19 = vpop.f32.mrb[70].mxu1 }
 0x1f3   : > { %10703 = vst [vmem:[#allocation25_spill] sm:$0xff] %v9205_v43  ;;  %10704 = vst [vmem:[#allocation26_spill] sm:$0xff] %v9207_v19  ;;  %v7146_v62 = vpop.f32.mrb[71].mxu0  ;;  %v7352_v20 = vpop.f32.mrb[71].mxu1 }
 0x1f4   : > { %v8013_v20 = vld [vmem:[%s8622_s10 + $0x168] sm:$0xff]  }
 0x1f5   : > { %7252 = vmatmul.mubr.msk.bf16.gmra.mrb[176].mxu0 %vm2162_vm3, %v8011_v14  ;;  %7458 = vmatmul.mubr.msk.bf16.gmra.mrb[176].mxu1 %vm2162_vm3, %v8012_v38  ;;  %v8014_v14 = vld [vmem:[%s8622_s10 + $0x2f0] sm:$0xff]  }
 0x1f6   : > { %7255 = vmatprep.mubr.msk.bf16.mxu0 %vm8146_vm2, %v10688_v10  ;;  %7461 = vmatprep.mubr.msk.bf16.mxu1 %vm8146_vm2, %v10688_v10 }
 0x1f8   : > { %v9217_v26 = vpop.f32.mrb[72].mxu0  ;;  %v9219_v7 = vpop.f32.mrb[72].mxu1 }
 0x1f9   : > { %10705 = vst [vmem:[#allocation27_spill] sm:$0xff] %v9217_v26  ;;  %10706 = vst [vmem:[#allocation28_spill] sm:$0xff] %v9219_v7  ;;  %v7149_v5 = vpop.f32.mrb[73].mxu0  ;;  %v7355_v62 = vpop.f32.mrb[73].mxu1 }
 0x1fa   : > { %v9225_v38 = vpop.f32.mrb[74].mxu0  ;;  %v9227_v19 = vpop.f32.mrb[74].mxu1 }
 0x1fb   : > { %10707 = vst [vmem:[#allocation29_spill] sm:$0xff] %v9225_v38  ;;  %10708 = vst [vmem:[#allocation30_spill] sm:$0xff] %v9227_v19  ;;  %v7150_v31 = vpop.f32.mrb[75].mxu0  ;;  %v7356_v50 = vpop.f32.mrb[75].mxu1 }
 0x1fc   : > { %v8015_v50 = vld [vmem:[%s8622_s10 + $0x170] sm:$0xff]  }
 0x1fd   : > { %7256 = vmatmul.mubr.msk.bf16.gmra.mrb[180].mxu0 %vm2162_vm3, %v8013_v20  ;;  %7462 = vmatmul.mubr.msk.bf16.gmra.mrb[180].mxu1 %vm2162_vm3, %v8014_v14  ;;  %v8016_v20 = vld [vmem:[%s8622_s10 + $0x2f8] sm:$0xff]  }
 0x1fe   : > { %7259 = vmatprep.mubr.msk.bf16.mxu0 %vm8146_vm2, %v10688_v10  ;;  %7465 = vmatprep.mubr.msk.bf16.mxu1 %vm8146_vm2, %v10688_v10 }
 0x200   : > { %v9237_v5 = vpop.f32.mrb[76].mxu0  ;;  %v9239_v62 = vpop.f32.mrb[76].mxu1 }
 0x201   : > { %10709 = vst [vmem:[#allocation31_spill] sm:$0xff] %v9237_v5  ;;  %10710 = vst [vmem:[#allocation32_spill] sm:$0xff] %v9239_v62  ;;  %v7153_v43 = vpop.f32.mrb[77].mxu0  ;;  %v7359_v31 = vpop.f32.mrb[77].mxu1 }
 0x202   : > { %v9245_v14 = vpop.f32.mrb[78].mxu0  ;;  %v9247_v19 = vpop.f32.mrb[78].mxu1 }
 0x203   : > { %10711 = vst [vmem:[#allocation33_spill] sm:$0xff] %v9245_v14  ;;  %10712 = vst [vmem:[#allocation34_spill] sm:$0xff] %v9247_v19  ;;  %v7154_v7 = vpop.f32.mrb[79].mxu0  ;;  %v7360_v26 = vpop.f32.mrb[79].mxu1 }
 0x204   : > { %v8017_v26 = vld [vmem:[%s8622_s10 + $0x178] sm:$0xff]  }
 0x205   : > { %7260 = vmatmul.mubr.msk.bf16.gmra.mrb[184].mxu0 %vm2162_vm3, %v8015_v50  ;;  %7466 = vmatmul.mubr.msk.bf16.gmra.mrb[184].mxu1 %vm2162_vm3, %v8016_v20  ;;  %v8018_v50 = vld [vmem:[%s8622_s10 + $0x300] sm:$0xff]  }
 0x206   : > { %7263 = vmatprep.mubr.msk.bf16.mxu0 %vm8146_vm2, %v10688_v10  ;;  %7469 = vmatprep.mubr.msk.bf16.mxu1 %vm8146_vm2, %v10688_v10 }
 0x208   : > { %v9257_v43 = vpop.f32.mrb[80].mxu0  ;;  %v9259_v31 = vpop.f32.mrb[80].mxu1 }
 0x209   : > { %10713 = vst [vmem:[#allocation35_spill] sm:$0xff] %v9257_v43  ;;  %10714 = vst [vmem:[#allocation36_spill] sm:$0xff] %v9259_v31  ;;  %v7157_v38 = vpop.f32.mrb[81].mxu0  ;;  %v7363_v7 = vpop.f32.mrb[81].mxu1 }
 0x20a   : > { %v9265_v20 = vpop.f32.mrb[82].mxu0  ;;  %v9267_v19 = vpop.f32.mrb[82].mxu1 }
 0x20b   : > { %10715 = vst [vmem:[#allocation37_spill] sm:$0xff] %v9265_v20  ;;  %10716 = vst [vmem:[#allocation38_spill] sm:$0xff] %v9267_v19  ;;  %v7158_v62 = vpop.f32.mrb[83].mxu0  ;;  %v7364_v5 = vpop.f32.mrb[83].mxu1 }
 0x20c   : > { %v8019_v5 = vld [vmem:[%s8622_s10 + $0x180] sm:$0xff]  }
 0x20d   : > { %7264 = vmatmul.mubr.msk.bf16.gmra.mrb[188].mxu0 %vm2162_vm3, %v8017_v26  ;;  %7470 = vmatmul.mubr.msk.bf16.gmra.mrb[188].mxu1 %vm2162_vm3, %v8018_v50  ;;  %v8020_v26 = vld [vmem:[%s8622_s10 + $0x308] sm:$0xff]  }
 0x20e   : > { %7267 = vmatprep.mubr.msk.bf16.mxu0 %vm8146_vm2, %v10688_v10  ;;  %7473 = vmatprep.mubr.msk.bf16.mxu1 %vm8146_vm2, %v10688_v10 }
 0x210   : > { %v9277_v38 = vpop.f32.mrb[84].mxu0  ;;  %v9279_v7 = vpop.f32.mrb[84].mxu1 }
 0x211   : > { %10717 = vst [vmem:[#allocation39_spill] sm:$0xff] %v9277_v38  ;;  %10718 = vst [vmem:[#allocation40_spill] sm:$0xff] %v9279_v7  ;;  %v7161_v14 = vpop.f32.mrb[85].mxu0  ;;  %v7367_v62 = vpop.f32.mrb[85].mxu1 }
 0x212   : > { %v9285_v50 = vpop.f32.mrb[86].mxu0  ;;  %v9287_v19 = vpop.f32.mrb[86].mxu1 }
 0x213   : > { %10719 = vst [vmem:[#allocation41_spill] sm:$0xff] %v9285_v50  ;;  %10720 = vst [vmem:[#allocation42_spill] sm:$0xff] %v9287_v19  ;;  %v7162_v31 = vpop.f32.mrb[87].mxu0  ;;  %v7368_v43 = vpop.f32.mrb[87].mxu1 }
 0x214   : > { %v8021_v43 = vld [vmem:[%s8622_s10 + $0x310] sm:$0xff]  }
 0x215   : > { %7268 = vmatmul.mubr.msk.bf16.gmra.mrb[192].mxu0 %vm2162_vm3, %v8019_v5  ;;  %7474 = vmatmul.mubr.msk.bf16.gmra.mrb[192].mxu1 %vm2162_vm3, %v8020_v26  ;;  %v8022_v5 = vld [vmem:[%s8622_s10 + $0x498] sm:$0xff]  }
 0x216   : > { %7487 = vmatprep.mubr.msk.bf16.mxu0 %vm8146_vm2, %v10688_v10  ;;  %7693 = vmatprep.mubr.msk.bf16.mxu1 %vm8146_vm2, %v10688_v10 }
 0x218   : > { %v9297_v14 = vpop.f32.mrb[88].mxu0  ;;  %v9299_v62 = vpop.f32.mrb[88].mxu1 }
 0x219   : > { %10721 = vst [vmem:[#allocation43_spill] sm:$0xff] %v9297_v14  ;;  %10722 = vst [vmem:[#allocation44_spill] sm:$0xff] %v9299_v62  ;;  %v7165_v20 = vpop.f32.mrb[89].mxu0  ;;  %v7371_v31 = vpop.f32.mrb[89].mxu1 }
 0x21a   : > { %v9305_v26 = vpop.f32.mrb[90].mxu0  ;;  %v9307_v19 = vpop.f32.mrb[90].mxu1 }
 0x21b   : > { %10723 = vst [vmem:[#allocation45_spill] sm:$0xff] %v9305_v26  ;;  %10724 = vst [vmem:[#allocation46_spill] sm:$0xff] %v9307_v19  ;;  %v7166_v7 = vpop.f32.mrb[91].mxu0  ;;  %v7372_v38 = vpop.f32.mrb[91].mxu1 }
 0x21c   : > { %v8023_v38 = vld [vmem:[%s8622_s10 + $0x318] sm:$0xff]  }
 0x21d   : > { %7488 = vmatmul.mubr.msk.bf16.vlgmr.msra.gmra.mrb[196].mxu0 %vm2162_vm3, %v8021_v43  ;;  %7694 = vmatmul.mubr.msk.bf16.vlgmr.msra.gmra.mrb[196].mxu1 %vm2162_vm3, %v8022_v5  ;;  %v8024_v43 = vld [vmem:[%s8622_s10 + $0x4a0] sm:$0xff]  }
 0x21e   : > { %7491 = vmatprep.mubr.msk.bf16.mxu0 %vm8146_vm2, %v10688_v10  ;;  %7697 = vmatprep.mubr.msk.bf16.mxu1 %vm8146_vm2, %v10688_v10 }
 0x220   : > { %v9317_v20 = vpop.f32.mrb[92].mxu0  ;;  %v9319_v31 = vpop.f32.mrb[92].mxu1 }
 0x221   : > { %10725 = vst [vmem:[#allocation47_spill] sm:$0xff] %v9317_v20  ;;  %10726 = vst [vmem:[#allocation48_spill] sm:$0xff] %v9319_v31  ;;  %v7169_v50 = vpop.f32.mrb[93].mxu0  ;;  %v7375_v7 = vpop.f32.mrb[93].mxu1 }
 0x222   : > { %v9325_v5 = vpop.f32.mrb[94].mxu0  ;;  %v9327_v19 = vpop.f32.mrb[94].mxu1 }
 0x223   : > { %10727 = vst [vmem:[#allocation49_spill] sm:$0xff] %v9325_v5  ;;  %10728 = vst [vmem:[#allocation50_spill] sm:$0xff] %v9327_v19  ;;  %v7170_v62 = vpop.f32.mrb[95].mxu0  ;;  %v7376_v14 = vpop.f32.mrb[95].mxu1 }
 0x224   : > { %v8025_v14 = vld [vmem:[%s8622_s10 + $0x320] sm:$0xff]  }
 0x225   : > { %7492 = vmatmul.mubr.msk.bf16.gmra.mrb[200].mxu0 %vm2162_vm3, %v8023_v38  ;;  %7698 = vmatmul.mubr.msk.bf16.gmra.mrb[200].mxu1 %vm2162_vm3, %v8024_v43  ;;  %v8026_v38 = vld [vmem:[%s8622_s10 + $0x4a8] sm:$0xff]  }
 0x226   : > { %7495 = vmatprep.mubr.msk.bf16.mxu0 %vm8146_vm2, %v10688_v10  ;;  %7701 = vmatprep.mubr.msk.bf16.mxu1 %vm8146_vm2, %v10688_v10 }
 0x228   : > { %v9337_v50 = vpop.f32.mrb[96].mxu0  ;;  %v9339_v7 = vpop.f32.mrb[96].mxu1 }
 0x229   : > { %10729 = vst [vmem:[#allocation51_spill] sm:$0xff] %v9337_v50  ;;  %10730 = vst [vmem:[#allocation52_spill] sm:$0xff] %v9339_v7  ;;  %v7173_v26 = vpop.f32.mrb[97].mxu0  ;;  %v7379_v62 = vpop.f32.mrb[97].mxu1 }
 0x22a   : > { %v9345_v43 = vpop.f32.mrb[98].mxu0  ;;  %v9347_v19 = vpop.f32.mrb[98].mxu1 }
 0x22b   : > { %10731 = vst [vmem:[#allocation53_spill] sm:$0xff] %v9345_v43  ;;  %10732 = vst [vmem:[#allocation54_spill] sm:$0xff] %v9347_v19  ;;  %v7174_v31 = vpop.f32.mrb[99].mxu0  ;;  %v7380_v20 = vpop.f32.mrb[99].mxu1 }
 0x22c   : > { %v8027_v20 = vld [vmem:[%s8622_s10 + $0x328] sm:$0xff]  }
 0x22d   : > { %7496 = vmatmul.mubr.msk.bf16.gmra.mrb[204].mxu0 %vm2162_vm3, %v8025_v14  ;;  %7702 = vmatmul.mubr.msk.bf16.gmra.mrb[204].mxu1 %vm2162_vm3, %v8026_v38  ;;  %v8028_v14 = vld [vmem:[%s8622_s10 + $0x4b0] sm:$0xff]  }
 0x22e   : > { %7499 = vmatprep.mubr.msk.bf16.mxu0 %vm8146_vm2, %v10688_v10  ;;  %7705 = vmatprep.mubr.msk.bf16.mxu1 %vm8146_vm2, %v10688_v10 }
 0x230   : > { %v9357_v26 = vpop.f32.mrb[100].mxu0  ;;  %v9359_v62 = vpop.f32.mrb[100].mxu1 }
 0x231   : > { %10733 = vst [vmem:[#allocation55_spill] sm:$0xff] %v9357_v26  ;;  %10734 = vst [vmem:[#allocation56_spill] sm:$0xff] %v9359_v62  ;;  %v7177_v5 = vpop.f32.mrb[101].mxu0  ;;  %v7383_v31 = vpop.f32.mrb[101].mxu1 }
 0x232   : > { %v9365_v38 = vpop.f32.mrb[102].mxu0  ;;  %v9367_v19 = vpop.f32.mrb[102].mxu1 }
 0x233   : > { %10735 = vst [vmem:[#allocation57_spill] sm:$0xff] %v9365_v38  ;;  %10736 = vst [vmem:[#allocation58_spill] sm:$0xff] %v9367_v19  ;;  %v7178_v7 = vpop.f32.mrb[103].mxu0  ;;  %v7384_v50 = vpop.f32.mrb[103].mxu1 }
 0x234   : > { %v8029_v50 = vld [vmem:[%s8622_s10 + $0x330] sm:$0xff]  }
 0x235   : > { %7500 = vmatmul.mubr.msk.bf16.gmra.mrb[208].mxu0 %vm2162_vm3, %v8027_v20  ;;  %7706 = vmatmul.mubr.msk.bf16.gmra.mrb[208].mxu1 %vm2162_vm3, %v8028_v14  ;;  %v8030_v20 = vld [vmem:[%s8622_s10 + $0x4b8] sm:$0xff]  }
 0x236   : > { %7503 = vmatprep.mubr.msk.bf16.mxu0 %vm8146_vm2, %v10688_v10  ;;  %7709 = vmatprep.mubr.msk.bf16.mxu1 %vm8146_vm2, %v10688_v10 }
 0x238   : > { %v9377_v5 = vpop.f32.mrb[104].mxu0  ;;  %v9379_v31 = vpop.f32.mrb[104].mxu1 }
 0x239   : > { %10737 = vst [vmem:[#allocation59_spill] sm:$0xff] %v9377_v5  ;;  %10738 = vst [vmem:[#allocation60_spill] sm:$0xff] %v9379_v31  ;;  %v7181_v43 = vpop.f32.mrb[105].mxu0  ;;  %v7387_v7 = vpop.f32.mrb[105].mxu1 }
 0x23a   : > { %v9385_v14 = vpop.f32.mrb[106].mxu0  ;;  %v9387_v19 = vpop.f32.mrb[106].mxu1 }
 0x23b   : > { %10739 = vst [vmem:[#allocation61_spill] sm:$0xff] %v9385_v14  ;;  %10740 = vst [vmem:[#allocation62_spill] sm:$0xff] %v9387_v19  ;;  %v7182_v62 = vpop.f32.mrb[107].mxu0  ;;  %v7388_v26 = vpop.f32.mrb[107].mxu1 }
 0x23c   : > { %v8031_v26 = vld [vmem:[%s8622_s10 + $0x338] sm:$0xff]  }
 0x23d   : > { %7504 = vmatmul.mubr.msk.bf16.gmra.mrb[212].mxu0 %vm2162_vm3, %v8029_v50  ;;  %7710 = vmatmul.mubr.msk.bf16.gmra.mrb[212].mxu1 %vm2162_vm3, %v8030_v20  ;;  %v8032_v50 = vld [vmem:[%s8622_s10 + $0x4c0] sm:$0xff]  }
 0x23e   : > { %7507 = vmatprep.mubr.msk.bf16.mxu0 %vm8146_vm2, %v10688_v10  ;;  %7713 = vmatprep.mubr.msk.bf16.mxu1 %vm8146_vm2, %v10688_v10 }
 0x240   : > { %v9397_v43 = vpop.f32.mrb[108].mxu0  ;;  %v9399_v7 = vpop.f32.mrb[108].mxu1 }
 0x241   : > { %10741 = vst [vmem:[#allocation63_spill] sm:$0xff] %v9397_v43  ;;  %10742 = vst [vmem:[#allocation64_spill] sm:$0xff] %v9399_v7  ;;  %v7185_v38 = vpop.f32.mrb[109].mxu0  ;;  %v7391_v62 = vpop.f32.mrb[109].mxu1 }
 0x242   : > { %v9405_v20 = vpop.f32.mrb[110].mxu0  ;;  %v9407_v19 = vpop.f32.mrb[110].mxu1 }
 0x243   : > { %10743 = vst [vmem:[#allocation65_spill] sm:$0xff] %v9405_v20  ;;  %10744 = vst [vmem:[#allocation66_spill] sm:$0xff] %v9407_v19  ;;  %v7186_v31 = vpop.f32.mrb[111].mxu0  ;;  %v7392_v5 = vpop.f32.mrb[111].mxu1 }
 0x244   : > { %v8033_v5 = vld [vmem:[%s8622_s10 + $0x340] sm:$0xff]  }
 0x245   : > { %7508 = vmatmul.mubr.msk.bf16.gmra.mrb[216].mxu0 %vm2162_vm3, %v8031_v26  ;;  %7714 = vmatmul.mubr.msk.bf16.gmra.mrb[216].mxu1 %vm2162_vm3, %v8032_v50  ;;  %v8034_v26 = vld [vmem:[%s8622_s10 + $0x4c8] sm:$0xff]  }
 0x246   : > { %7511 = vmatprep.mubr.msk.bf16.mxu0 %vm8146_vm2, %v10688_v10  ;;  %7717 = vmatprep.mubr.msk.bf16.mxu1 %vm8146_vm2, %v10688_v10 }
 0x248   : > { %v9417_v38 = vpop.f32.mrb[112].mxu0  ;;  %v9419_v62 = vpop.f32.mrb[112].mxu1 }
 0x249   : > { %10745 = vst [vmem:[#allocation67_spill] sm:$0xff] %v9417_v38  ;;  %10746 = vst [vmem:[#allocation68_spill] sm:$0xff] %v9419_v62  ;;  %v7189_v14 = vpop.f32.mrb[113].mxu0  ;;  %v7395_v31 = vpop.f32.mrb[113].mxu1 }
 0x24a   : > { %v9425_v50 = vpop.f32.mrb[114].mxu0  ;;  %v9427_v19 = vpop.f32.mrb[114].mxu1 }
 0x24b   : > { %10747 = vst [vmem:[#allocation69_spill] sm:$0xff] %v9425_v50  ;;  %10748 = vst [vmem:[#allocation70_spill] sm:$0xff] %v9427_v19  ;;  %v7190_v7 = vpop.f32.mrb[115].mxu0  ;;  %v7396_v43 = vpop.f32.mrb[115].mxu1 }
 0x24c   : > { %v8035_v43 = vld [vmem:[%s8622_s10 + $0x348] sm:$0xff]  }
 0x24d   : > { %7512 = vmatmul.mubr.msk.bf16.gmra.mrb[220].mxu0 %vm2162_vm3, %v8033_v5  ;;  %7718 = vmatmul.mubr.msk.bf16.gmra.mrb[220].mxu1 %vm2162_vm3, %v8034_v26  ;;  %v8036_v5 = vld [vmem:[%s8622_s10 + $0x4d0] sm:$0xff]  }
 0x24e   : > { %7515 = vmatprep.mubr.msk.bf16.mxu0 %vm8146_vm2, %v10688_v10  ;;  %7721 = vmatprep.mubr.msk.bf16.mxu1 %vm8146_vm2, %v10688_v10 }
 0x250   : > { %v9437_v14 = vpop.f32.mrb[116].mxu0  ;;  %v9439_v31 = vpop.f32.mrb[116].mxu1 }
 0x251   : > { %10749 = vst [vmem:[#allocation71_spill] sm:$0xff] %v9437_v14  ;;  %10750 = vst [vmem:[#allocation72_spill] sm:$0xff] %v9439_v31  ;;  %v7193_v20 = vpop.f32.mrb[117].mxu0  ;;  %v7399_v7 = vpop.f32.mrb[117].mxu1 }
 0x252   : > { %v9445_v26 = vpop.f32.mrb[118].mxu0  ;;  %v9447_v19 = vpop.f32.mrb[118].mxu1 }
 0x253   : > { %10751 = vst [vmem:[#allocation73_spill] sm:$0xff] %v9445_v26  ;;  %10752 = vst [vmem:[#allocation74_spill] sm:$0xff] %v9447_v19  ;;  %v7194_v62 = vpop.f32.mrb[119].mxu0  ;;  %v7400_v38 = vpop.f32.mrb[119].mxu1 }
 0x254   : > { %v8037_v38 = vld [vmem:[%s8622_s10 + $0x350] sm:$0xff]  }
 0x255   : > { %7516 = vmatmul.mubr.msk.bf16.gmra.mrb[224].mxu0 %vm2162_vm3, %v8035_v43  ;;  %7722 = vmatmul.mubr.msk.bf16.gmra.mrb[224].mxu1 %vm2162_vm3, %v8036_v5  ;;  %v8038_v43 = vld [vmem:[%s8622_s10 + $0x4d8] sm:$0xff]  }
 0x256   : > { %7519 = vmatprep.mubr.msk.bf16.mxu0 %vm8146_vm2, %v10688_v10  ;;  %7725 = vmatprep.mubr.msk.bf16.mxu1 %vm8146_vm2, %v10688_v10 }
 0x258   : > { %v9457_v20 = vpop.f32.mrb[120].mxu0  ;;  %v9459_v7 = vpop.f32.mrb[120].mxu1 }
 0x259   : > { %10753 = vst [vmem:[#allocation75_spill] sm:$0xff] %v9457_v20  ;;  %10754 = vst [vmem:[#allocation76_spill] sm:$0xff] %v9459_v7  ;;  %v7197_v50 = vpop.f32.mrb[121].mxu0  ;;  %v7403_v62 = vpop.f32.mrb[121].mxu1 }
 0x25a   : > { %v9465_v5 = vpop.f32.mrb[122].mxu0  ;;  %v9467_v19 = vpop.f32.mrb[122].mxu1 }
 0x25b   : > { %10755 = vst [vmem:[#allocation77_spill] sm:$0xff] %v9465_v5  ;;  %10756 = vst [vmem:[#allocation78_spill] sm:$0xff] %v9467_v19  ;;  %v7198_v31 = vpop.f32.mrb[123].mxu0  ;;  %v7404_v14 = vpop.f32.mrb[123].mxu1 }
 0x25c   : > { %v8039_v14 = vld [vmem:[%s8622_s10 + $0x358] sm:$0xff]  }
 0x25d   : > { %7520 = vmatmul.mubr.msk.bf16.gmra.mrb[228].mxu0 %vm2162_vm3, %v8037_v38  ;;  %7726 = vmatmul.mubr.msk.bf16.gmra.mrb[228].mxu1 %vm2162_vm3, %v8038_v43  ;;  %v8040_v38 = vld [vmem:[%s8622_s10 + $0x4e0] sm:$0xff]  }
 0x25e   : > { %7523 = vmatprep.mubr.msk.bf16.mxu0 %vm8146_vm2, %v10688_v10  ;;  %7729 = vmatprep.mubr.msk.bf16.mxu1 %vm8146_vm2, %v10688_v10 }
 0x260   : > { %v9477_v50 = vpop.f32.mrb[124].mxu0  ;;  %v9479_v62 = vpop.f32.mrb[124].mxu1 }
 0x261   : > { %10757 = vst [vmem:[#allocation79_spill] sm:$0xff] %v9477_v50  ;;  %10758 = vst [vmem:[#allocation80_spill] sm:$0xff] %v9479_v62  ;;  %v7201_v26 = vpop.f32.mrb[125].mxu0  ;;  %v7407_v31 = vpop.f32.mrb[125].mxu1 }
 0x262   : > { %v9485_v43 = vpop.f32.mrb[126].mxu0  ;;  %v9487_v19 = vpop.f32.mrb[126].mxu1 }
 0x263   : > { %10759 = vst [vmem:[#allocation81_spill] sm:$0xff] %v9485_v43  ;;  %10760 = vst [vmem:[#allocation82_spill] sm:$0xff] %v9487_v19  ;;  %v7202_v7 = vpop.f32.mrb[127].mxu0  ;;  %v7408_v20 = vpop.f32.mrb[127].mxu1 }
 0x264   : > { %v8041_v20 = vld [vmem:[%s8622_s10 + $0x360] sm:$0xff]  }
 0x265   : > { %7524 = vmatmul.mubr.msk.bf16.gmra.mrb[232].mxu0 %vm2162_vm3, %v8039_v14  ;;  %7730 = vmatmul.mubr.msk.bf16.gmra.mrb[232].mxu1 %vm2162_vm3, %v8040_v38  ;;  %v8042_v14 = vld [vmem:[%s8622_s10 + $0x4e8] sm:$0xff]  }
 0x266   : > { %7527 = vmatprep.mubr.msk.bf16.mxu0 %vm8146_vm2, %v10688_v10  ;;  %7733 = vmatprep.mubr.msk.bf16.mxu1 %vm8146_vm2, %v10688_v10 }
 0x268   : > { %v9497_v26 = vpop.f32.mrb[128].mxu0  ;;  %v9499_v31 = vpop.f32.mrb[128].mxu1 }
 0x269   : > { %10761 = vst [vmem:[#allocation83_spill] sm:$0xff] %v9497_v26  ;;  %10762 = vst [vmem:[#allocation84_spill] sm:$0xff] %v9499_v31  ;;  %v7205_v5 = vpop.f32.mrb[129].mxu0  ;;  %v7411_v7 = vpop.f32.mrb[129].mxu1 }
 0x26a   : > { %v9505_v38 = vpop.f32.mrb[130].mxu0  ;;  %v9507_v19 = vpop.f32.mrb[130].mxu1 }
 0x26b   : > { %10763 = vst [vmem:[#allocation85_spill] sm:$0xff] %v9505_v38  ;;  %10764 = vst [vmem:[#allocation86_spill] sm:$0xff] %v9507_v19  ;;  %v7206_v62 = vpop.f32.mrb[131].mxu0  ;;  %v7412_v50 = vpop.f32.mrb[131].mxu1 }
 0x26c   : > { %v8043_v50 = vld [vmem:[%s8622_s10 + $0x368] sm:$0xff]  }
 0x26d   : > { %7528 = vmatmul.mubr.msk.bf16.gmra.mrb[236].mxu0 %vm2162_vm3, %v8041_v20  ;;  %7734 = vmatmul.mubr.msk.bf16.gmra.mrb[236].mxu1 %vm2162_vm3, %v8042_v14  ;;  %v8044_v20 = vld [vmem:[%s8622_s10 + $0x4f0] sm:$0xff]  }
 0x26e   : > { %7531 = vmatprep.mubr.msk.bf16.mxu0 %vm8146_vm2, %v10688_v10  ;;  %7737 = vmatprep.mubr.msk.bf16.mxu1 %vm8146_vm2, %v10688_v10 }
 0x270   : > { %v9517_v5 = vpop.f32.mrb[132].mxu0  ;;  %v9519_v7 = vpop.f32.mrb[132].mxu1 }
 0x271   : > { %10765 = vst [vmem:[#allocation87_spill] sm:$0xff] %v9517_v5  ;;  %10766 = vst [vmem:[#allocation88_spill] sm:$0xff] %v9519_v7  ;;  %v7209_v43 = vpop.f32.mrb[133].mxu0  ;;  %v7415_v62 = vpop.f32.mrb[133].mxu1 }
 0x272   : > { %v9525_v14 = vpop.f32.mrb[134].mxu0  ;;  %v9527_v19 = vpop.f32.mrb[134].mxu1 }
 0x273   : > { %10767 = vst [vmem:[#allocation89_spill] sm:$0xff] %v9525_v14  ;;  %10768 = vst [vmem:[#allocation90_spill] sm:$0xff] %v9527_v19  ;;  %v7210_v31 = vpop.f32.mrb[135].mxu0  ;;  %v7416_v26 = vpop.f32.mrb[135].mxu1 }
 0x274   : > { %v8045_v26 = vld [vmem:[%s8622_s10 + $0x370] sm:$0xff]  }
 0x275   : > { %7532 = vmatmul.mubr.msk.bf16.gmra.mrb[240].mxu0 %vm2162_vm3, %v8043_v50  ;;  %7738 = vmatmul.mubr.msk.bf16.gmra.mrb[240].mxu1 %vm2162_vm3, %v8044_v20  ;;  %v8046_v50 = vld [vmem:[%s8622_s10 + $0x4f8] sm:$0xff]  }
 0x276   : > { %7535 = vmatprep.mubr.msk.bf16.mxu0 %vm8146_vm2, %v10688_v10  ;;  %7741 = vmatprep.mubr.msk.bf16.mxu1 %vm8146_vm2, %v10688_v10 }
 0x278   : > { %v9537_v43 = vpop.f32.mrb[136].mxu0  ;;  %v9539_v62 = vpop.f32.mrb[136].mxu1 }
 0x279   : > { %10769 = vst [vmem:[#allocation91_spill] sm:$0xff] %v9537_v43  ;;  %10770 = vst [vmem:[#allocation92_spill] sm:$0xff] %v9539_v62  ;;  %v7213_v38 = vpop.f32.mrb[137].mxu0  ;;  %v7419_v31 = vpop.f32.mrb[137].mxu1 }
 0x27a   : > { %v9545_v20 = vpop.f32.mrb[138].mxu0  ;;  %v9547_v19 = vpop.f32.mrb[138].mxu1 }
 0x27b   : > { %10771 = vst [vmem:[#allocation93_spill] sm:$0xff] %v9545_v20  ;;  %10772 = vst [vmem:[#allocation94_spill] sm:$0xff] %v9547_v19  ;;  %v7214_v7 = vpop.f32.mrb[139].mxu0  ;;  %v7420_v5 = vpop.f32.mrb[139].mxu1 }
 0x27c   : > { %v8047_v5 = vld [vmem:[%s8622_s10 + $0x378] sm:$0xff]  }
 0x27d   : > { %7536 = vmatmul.mubr.msk.bf16.gmra.mrb[244].mxu0 %vm2162_vm3, %v8045_v26  ;;  %7742 = vmatmul.mubr.msk.bf16.gmra.mrb[244].mxu1 %vm2162_vm3, %v8046_v50  ;;  %v8048_v26 = vld [vmem:[%s8622_s10 + $0x500] sm:$0xff]  }
 0x27e   : > { %7539 = vmatprep.mubr.msk.bf16.mxu0 %vm8146_vm2, %v10688_v10  ;;  %7745 = vmatprep.mubr.msk.bf16.mxu1 %vm8146_vm2, %v10688_v10 }
 0x280   : > { %v9557_v38 = vpop.f32.mrb[140].mxu0  ;;  %v9559_v31 = vpop.f32.mrb[140].mxu1 }
 0x281   : > { %10773 = vst [vmem:[#allocation95_spill] sm:$0xff] %v9557_v38  ;;  %10774 = vst [vmem:[#allocation96_spill] sm:$0xff] %v9559_v31  ;;  %v7217_v14 = vpop.f32.mrb[141].mxu0  ;;  %v7423_v7 = vpop.f32.mrb[141].mxu1 }
 0x282   : > { %v9565_v50 = vpop.f32.mrb[142].mxu0  ;;  %v9567_v19 = vpop.f32.mrb[142].mxu1 }
 0x283   : > { %10775 = vst [vmem:[#allocation97_spill] sm:$0xff] %v9565_v50  ;;  %10776 = vst [vmem:[#allocation98_spill] sm:$0xff] %v9567_v19  ;;  %v7218_v62 = vpop.f32.mrb[143].mxu0  ;;  %v7424_v43 = vpop.f32.mrb[143].mxu1 }
 0x284   : > { %v8049_v43 = vld [vmem:[%s8622_s10 + $0x380] sm:$0xff]  }
 0x285   : > { %7540 = vmatmul.mubr.msk.bf16.gmra.mrb[248].mxu0 %vm2162_vm3, %v8047_v5  ;;  %7746 = vmatmul.mubr.msk.bf16.gmra.mrb[248].mxu1 %vm2162_vm3, %v8048_v26  ;;  %v8050_v5 = vld [vmem:[%s8622_s10 + $0x508] sm:$0xff]  }
 0x286   : > { %7543 = vmatprep.mubr.msk.bf16.mxu0 %vm8146_vm2, %v10688_v10  ;;  %7749 = vmatprep.mubr.msk.bf16.mxu1 %vm8146_vm2, %v10688_v10 }
 0x288   : > { %v9577_v14 = vpop.f32.mrb[144].mxu0  ;;  %v9579_v7 = vpop.f32.mrb[144].mxu1 }
 0x289   : > { %10777 = vst [vmem:[#allocation99_spill] sm:$0xff] %v9577_v14  ;;  %10778 = vst [vmem:[#allocation100_spill] sm:$0xff] %v9579_v7  ;;  %v7221_v20 = vpop.f32.mrb[145].mxu0  ;;  %v7427_v62 = vpop.f32.mrb[145].mxu1 }
 0x28a   : > { %v9585_v26 = vpop.f32.mrb[146].mxu0  ;;  %v9587_v19 = vpop.f32.mrb[146].mxu1 }
 0x28b   : > { %10779 = vst [vmem:[#allocation101_spill] sm:$0xff] %v9585_v26  ;;  %10780 = vst [vmem:[#allocation102_spill] sm:$0xff] %v9587_v19  ;;  %v7222_v31 = vpop.f32.mrb[147].mxu0  ;;  %v7428_v38 = vpop.f32.mrb[147].mxu1 }
 0x28c   : > { %v8051_v38 = vld [vmem:[%s8622_s10 + $0x388] sm:$0xff]  }
 0x28d   : > { %7544 = vmatmul.mubr.msk.bf16.gmra.mrb[252].mxu0 %vm2162_vm3, %v8049_v43  ;;  %7750 = vmatmul.mubr.msk.bf16.gmra.mrb[252].mxu1 %vm2162_vm3, %v8050_v5  ;;  %v8052_v43 = vld [vmem:[%s8622_s10 + $0x510] sm:$0xff]  }
 0x28e   : > { %7547 = vmatprep.mubr.msk.bf16.mxu0 %vm8146_vm2, %v10688_v10  ;;  %7753 = vmatprep.mubr.msk.bf16.mxu1 %vm8146_vm2, %v10688_v10 }
 0x290   : > { %v9597_v20 = vpop.f32.mrb[148].mxu0  ;;  %v9599_v62 = vpop.f32.mrb[148].mxu1 }
 0x291   : > { %10781 = vst [vmem:[#allocation103_spill] sm:$0xff] %v9597_v20  ;;  %10782 = vst [vmem:[#allocation104_spill] sm:$0xff] %v9599_v62  ;;  %v7225_v50 = vpop.f32.mrb[149].mxu0  ;;  %v7431_v31 = vpop.f32.mrb[149].mxu1 }
 0x292   : > { %v9605_v5 = vpop.f32.mrb[150].mxu0  ;;  %v9607_v19 = vpop.f32.mrb[150].mxu1 }
 0x293   : > { %10783 = vst [vmem:[#allocation105_spill] sm:$0xff] %v9605_v5  ;;  %10784 = vst [vmem:[#allocation106_spill] sm:$0xff] %v9607_v19  ;;  %v7226_v7 = vpop.f32.mrb[151].mxu0  ;;  %v7432_v14 = vpop.f32.mrb[151].mxu1 }
 0x294   : > { %v8053_v14 = vld [vmem:[%s8622_s10 + $0x390] sm:$0xff]  }
 0x295   : > { %7548 = vmatmul.mubr.msk.bf16.gmra.mrb[0].mxu0 %vm2162_vm3, %v8051_v38  ;;  %7754 = vmatmul.mubr.msk.bf16.gmra.mrb[0].mxu1 %vm2162_vm3, %v8052_v43  ;;  %v8054_v38 = vld [vmem:[%s8622_s10 + $0x518] sm:$0xff]  }
 0x296   : > { %7551 = vmatprep.mubr.msk.bf16.mxu0 %vm8146_vm2, %v10688_v10  ;;  %7757 = vmatprep.mubr.msk.bf16.mxu1 %vm8146_vm2, %v10688_v10 }
 0x298   : > { %v9617_v50 = vpop.f32.mrb[152].mxu0  ;;  %v9619_v31 = vpop.f32.mrb[152].mxu1 }
 0x299   : > { %10785 = vst [vmem:[#allocation107_spill] sm:$0xff] %v9617_v50  ;;  %10786 = vst [vmem:[#allocation108_spill] sm:$0xff] %v9619_v31  ;;  %v7229_v26 = vpop.f32.mrb[153].mxu0  ;;  %v7435_v7 = vpop.f32.mrb[153].mxu1 }
 0x29a   : > { %v9625_v43 = vpop.f32.mrb[154].mxu0  ;;  %v9627_v19 = vpop.f32.mrb[154].mxu1 }
 0x29b   : > { %10787 = vst [vmem:[#allocation109_spill] sm:$0xff] %v9625_v43  ;;  %10788 = vst [vmem:[#allocation110_spill] sm:$0xff] %v9627_v19  ;;  %v7230_v62 = vpop.f32.mrb[155].mxu0  ;;  %v7436_v20 = vpop.f32.mrb[155].mxu1 }
 0x29c   : > { %v8055_v20 = vld [vmem:[%s8622_s10 + $0x398] sm:$0xff]  }
 0x29d   : > { %7552 = vmatmul.mubr.msk.bf16.gmra.mrb[4].mxu0 %vm2162_vm3, %v8053_v14  ;;  %7758 = vmatmul.mubr.msk.bf16.gmra.mrb[4].mxu1 %vm2162_vm3, %v8054_v38  ;;  %v8056_v14 = vld [vmem:[%s8622_s10 + $0x520] sm:$0xff]  }
 0x29e   : > { %7555 = vmatprep.mubr.msk.bf16.mxu0 %vm8146_vm2, %v10688_v10  ;;  %7761 = vmatprep.mubr.msk.bf16.mxu1 %vm8146_vm2, %v10688_v10 }
 0x2a0   : > { %v9637_v26 = vpop.f32.mrb[156].mxu0  ;;  %v9639_v7 = vpop.f32.mrb[156].mxu1 }
 0x2a1   : > { %10789 = vst [vmem:[#allocation111_spill] sm:$0xff] %v9637_v26  ;;  %10790 = vst [vmem:[#allocation112_spill] sm:$0xff] %v9639_v7  ;;  %v7233_v5 = vpop.f32.mrb[157].mxu0  ;;  %v7439_v62 = vpop.f32.mrb[157].mxu1 }
 0x2a2   : > { %v9645_v38 = vpop.f32.mrb[158].mxu0  ;;  %v9647_v19 = vpop.f32.mrb[158].mxu1 }
 0x2a3   : > { %10791 = vst [vmem:[#allocation113_spill] sm:$0xff] %v9645_v38  ;;  %10792 = vst [vmem:[#allocation114_spill] sm:$0xff] %v9647_v19  ;;  %v7234_v31 = vpop.f32.mrb[159].mxu0  ;;  %v7440_v50 = vpop.f32.mrb[159].mxu1 }
 0x2a4   : > { %v8057_v50 = vld [vmem:[%s8622_s10 + $0x3a0] sm:$0xff]  }
 0x2a5   : > { %7556 = vmatmul.mubr.msk.bf16.gmra.mrb[8].mxu0 %vm2162_vm3, %v8055_v20  ;;  %7762 = vmatmul.mubr.msk.bf16.gmra.mrb[8].mxu1 %vm2162_vm3, %v8056_v14  ;;  %v8058_v20 = vld [vmem:[%s8622_s10 + $0x528] sm:$0xff]  }
 0x2a6   : > { %7559 = vmatprep.mubr.msk.bf16.mxu0 %vm8146_vm2, %v10688_v10  ;;  %7765 = vmatprep.mubr.msk.bf16.mxu1 %vm8146_vm2, %v10688_v10 }
 0x2a8   : > { %v9657_v5 = vpop.f32.mrb[160].mxu0  ;;  %v9659_v62 = vpop.f32.mrb[160].mxu1 }
 0x2a9   : > { %10793 = vst [vmem:[#allocation115_spill] sm:$0xff] %v9657_v5  ;;  %10794 = vst [vmem:[#allocation116_spill] sm:$0xff] %v9659_v62  ;;  %v7237_v43 = vpop.f32.mrb[161].mxu0  ;;  %v7443_v31 = vpop.f32.mrb[161].mxu1 }
 0x2aa   : > { %v9665_v14 = vpop.f32.mrb[162].mxu0  ;;  %v9667_v19 = vpop.f32.mrb[162].mxu1 }
 0x2ab   : > { %10795 = vst [vmem:[#allocation117_spill] sm:$0xff] %v9665_v14  ;;  %10796 = vst [vmem:[#allocation118_spill] sm:$0xff] %v9667_v19  ;;  %v7238_v7 = vpop.f32.mrb[163].mxu0  ;;  %v7444_v26 = vpop.f32.mrb[163].mxu1 }
 0x2ac   : > { %v8059_v26 = vld [vmem:[%s8622_s10 + $0x3a8] sm:$0xff]  }
 0x2ad   : > { %7560 = vmatmul.mubr.msk.bf16.gmra.mrb[12].mxu0 %vm2162_vm3, %v8057_v50  ;;  %7766 = vmatmul.mubr.msk.bf16.gmra.mrb[12].mxu1 %vm2162_vm3, %v8058_v20  ;;  %v8060_v50 = vld [vmem:[%s8622_s10 + $0x530] sm:$0xff]  }
 0x2ae   : > { %7563 = vmatprep.mubr.msk.bf16.mxu0 %vm8146_vm2, %v10688_v10  ;;  %7769 = vmatprep.mubr.msk.bf16.mxu1 %vm8146_vm2, %v10688_v10 }
 0x2b0   : > { %v9677_v43 = vpop.f32.mrb[164].mxu0  ;;  %v9679_v31 = vpop.f32.mrb[164].mxu1 }
 0x2b1   : > { %10797 = vst [vmem:[#allocation119_spill] sm:$0xff] %v9677_v43  ;;  %10798 = vst [vmem:[#allocation120_spill] sm:$0xff] %v9679_v31  ;;  %v7241_v38 = vpop.f32.mrb[165].mxu0  ;;  %v7447_v7 = vpop.f32.mrb[165].mxu1 }
 0x2b2   : > { %v9685_v20 = vpop.f32.mrb[166].mxu0  ;;  %v9687_v19 = vpop.f32.mrb[166].mxu1 }
 0x2b3   : > { %10799 = vst [vmem:[#allocation121_spill] sm:$0xff] %v9685_v20  ;;  %10800 = vst [vmem:[#allocation122_spill] sm:$0xff] %v9687_v19  ;;  %v7242_v62 = vpop.f32.mrb[167].mxu0  ;;  %v7448_v5 = vpop.f32.mrb[167].mxu1 }
 0x2b4   : > { %v8061_v5 = vld [vmem:[%s8622_s10 + $0x3b0] sm:$0xff]  }
 0x2b5   : > { %7564 = vmatmul.mubr.msk.bf16.gmra.mrb[16].mxu0 %vm2162_vm3, %v8059_v26  ;;  %7770 = vmatmul.mubr.msk.bf16.gmra.mrb[16].mxu1 %vm2162_vm3, %v8060_v50  ;;  %v8062_v26 = vld [vmem:[%s8622_s10 + $0x538] sm:$0xff]  }
 0x2b6   : > { %7567 = vmatprep.mubr.msk.bf16.mxu0 %vm8146_vm2, %v10688_v10  ;;  %7773 = vmatprep.mubr.msk.bf16.mxu1 %vm8146_vm2, %v10688_v10 }
 0x2b8   : > { %v9697_v38 = vpop.f32.mrb[168].mxu0  ;;  %v9699_v7 = vpop.f32.mrb[168].mxu1 }
 0x2b9   : > { %10801 = vst [vmem:[#allocation123_spill] sm:$0xff] %v9697_v38  ;;  %10802 = vst [vmem:[#allocation124_spill] sm:$0xff] %v9699_v7  ;;  %v7245_v14 = vpop.f32.mrb[169].mxu0  ;;  %v7451_v62 = vpop.f32.mrb[169].mxu1 }
 0x2ba   : > { %v9705_v50 = vpop.f32.mrb[170].mxu0  ;;  %v9707_v19 = vpop.f32.mrb[170].mxu1 }
 0x2bb   : > { %10803 = vst [vmem:[#allocation125_spill] sm:$0xff] %v9705_v50  ;;  %10804 = vst [vmem:[#allocation126_spill] sm:$0xff] %v9707_v19  ;;  %v7246_v31 = vpop.f32.mrb[171].mxu0  ;;  %v7452_v43 = vpop.f32.mrb[171].mxu1 }
 0x2bc   : > { %v8063_v43 = vld [vmem:[%s8622_s10 + $0x3b8] sm:$0xff]  }
 0x2bd   : > { %7568 = vmatmul.mubr.msk.bf16.gmra.mrb[20].mxu0 %vm2162_vm3, %v8061_v5  ;;  %7774 = vmatmul.mubr.msk.bf16.gmra.mrb[20].mxu1 %vm2162_vm3, %v8062_v26  ;;  %v8064_v5 = vld [vmem:[%s8622_s10 + $0x540] sm:$0xff]  }
 0x2be   : > { %7571 = vmatprep.mubr.msk.bf16.mxu0 %vm8146_vm2, %v10688_v10  ;;  %7777 = vmatprep.mubr.msk.bf16.mxu1 %vm8146_vm2, %v10688_v10 }
 0x2c0   : > { %v9717_v14 = vpop.f32.mrb[172].mxu0  ;;  %v9719_v62 = vpop.f32.mrb[172].mxu1 }
 0x2c1   : > { %10805 = vst [vmem:[#allocation127_spill] sm:$0xff] %v9717_v14  ;;  %10806 = vst [vmem:[#allocation128_spill] sm:$0xff] %v9719_v62  ;;  %v7249_v20 = vpop.f32.mrb[173].mxu0  ;;  %v7455_v31 = vpop.f32.mrb[173].mxu1 }
 0x2c2   : > { %v9725_v26 = vpop.f32.mrb[174].mxu0  ;;  %v9727_v19 = vpop.f32.mrb[174].mxu1 }
 0x2c3   : > { %10807 = vst [vmem:[#allocation129_spill] sm:$0xff] %v9725_v26  ;;  %10808 = vst [vmem:[#allocation130_spill] sm:$0xff] %v9727_v19  ;;  %v7250_v7 = vpop.f32.mrb[175].mxu0  ;;  %v7456_v38 = vpop.f32.mrb[175].mxu1 }
 0x2c4   : > { %v8065_v38 = vld [vmem:[%s8622_s10 + $0x3c0] sm:$0xff]  }
 0x2c5   : > { %7572 = vmatmul.mubr.msk.bf16.gmra.mrb[24].mxu0 %vm2162_vm3, %v8063_v43  ;;  %7778 = vmatmul.mubr.msk.bf16.gmra.mrb[24].mxu1 %vm2162_vm3, %v8064_v5  ;;  %v8066_v43 = vld [vmem:[%s8622_s10 + $0x548] sm:$0xff]  }
 0x2c6   : > { %7575 = vmatprep.mubr.msk.bf16.mxu0 %vm8146_vm2, %v10688_v10  ;;  %7781 = vmatprep.mubr.msk.bf16.mxu1 %vm8146_vm2, %v10688_v10 }
 0x2c8   : > { %v9737_v20 = vpop.f32.mrb[176].mxu0  ;;  %v9739_v31 = vpop.f32.mrb[176].mxu1 }
 0x2c9   : > { %10809 = vst [vmem:[#allocation131_spill] sm:$0xff] %v9737_v20  ;;  %10810 = vst [vmem:[#allocation132_spill] sm:$0xff] %v9739_v31  ;;  %v7253_v50 = vpop.f32.mrb[177].mxu0  ;;  %v7459_v7 = vpop.f32.mrb[177].mxu1 }
 0x2ca   : > { %v9745_v5 = vpop.f32.mrb[178].mxu0  ;;  %v9747_v19 = vpop.f32.mrb[178].mxu1 }
 0x2cb   : > { %10811 = vst [vmem:[#allocation133_spill] sm:$0xff] %v9745_v5  ;;  %10812 = vst [vmem:[#allocation134_spill] sm:$0xff] %v9747_v19  ;;  %v7254_v62 = vpop.f32.mrb[179].mxu0  ;;  %v7460_v14 = vpop.f32.mrb[179].mxu1 }
 0x2cc   : > { %v8067_v14 = vld [vmem:[%s8622_s10 + $0x3c8] sm:$0xff]  }
 0x2cd   : > { %7576 = vmatmul.mubr.msk.bf16.gmra.mrb[28].mxu0 %vm2162_vm3, %v8065_v38  ;;  %7782 = vmatmul.mubr.msk.bf16.gmra.mrb[28].mxu1 %vm2162_vm3, %v8066_v43  ;;  %v8068_v38 = vld [vmem:[%s8622_s10 + $0x550] sm:$0xff]  }
 0x2ce   : > { %7579 = vmatprep.mubr.msk.bf16.mxu0 %vm8146_vm2, %v10688_v10  ;;  %7785 = vmatprep.mubr.msk.bf16.mxu1 %vm8146_vm2, %v10688_v10 }
 0x2d0   : > { %v9757_v50 = vpop.f32.mrb[180].mxu0  ;;  %v9759_v7 = vpop.f32.mrb[180].mxu1 }
 0x2d1   : > { %10813 = vst [vmem:[#allocation135_spill] sm:$0xff] %v9757_v50  ;;  %10814 = vst [vmem:[#allocation136_spill] sm:$0xff] %v9759_v7  ;;  %v7257_v26 = vpop.f32.mrb[181].mxu0  ;;  %v7463_v62 = vpop.f32.mrb[181].mxu1 }
 0x2d2   : > { %v9765_v43 = vpop.f32.mrb[182].mxu0  ;;  %v9767_v19 = vpop.f32.mrb[182].mxu1 }
 0x2d3   : > { %10815 = vst [vmem:[#allocation137_spill] sm:$0xff] %v9765_v43  ;;  %10816 = vst [vmem:[#allocation138_spill] sm:$0xff] %v9767_v19  ;;  %v7258_v31 = vpop.f32.mrb[183].mxu0  ;;  %v7464_v20 = vpop.f32.mrb[183].mxu1  ;;  %v8074_v43 = vld [vmem:[%s8622_s10 + $0x568] sm:$0xff]  }
 0x2d4   : > { %v8069_v20 = vld [vmem:[%s8622_s10 + $0x3d0] sm:$0xff]  }
 0x2d5   : > { %7580 = vmatmul.mubr.msk.bf16.gmra.mrb[32].mxu0 %vm2162_vm3, %v8067_v14  ;;  %7786 = vmatmul.mubr.msk.bf16.gmra.mrb[32].mxu1 %vm2162_vm3, %v8068_v38  ;;  %v8070_v14 = vld [vmem:[%s8622_s10 + $0x558] sm:$0xff]  }
 0x2d6   : > { %7583 = vmatprep.mubr.msk.bf16.mxu0 %vm8146_vm2, %v10688_v10  ;;  %7789 = vmatprep.mubr.msk.bf16.mxu1 %vm8146_vm2, %v10688_v10 }
 0x2d8   : > { %v9777_v26 = vpop.f32.mrb[184].mxu0  ;;  %v9779_v62 = vpop.f32.mrb[184].mxu1 }
 0x2d9   : > { %10817 = vst [vmem:[#allocation139_spill] sm:$0xff] %v9777_v26  ;;  %10818 = vst [vmem:[#allocation140_spill] sm:$0xff] %v9779_v62  ;;  %v7261_v5 = vpop.f32.mrb[185].mxu0  ;;  %v7467_v31 = vpop.f32.mrb[185].mxu1 }
 0x2da   : > { %v9785_v38 = vpop.f32.mrb[186].mxu0  ;;  %v9787_v19 = vpop.f32.mrb[186].mxu1 }
 0x2db   : > { %10819 = vst [vmem:[#allocation141_spill] sm:$0xff] %v9785_v38  ;;  %10820 = vst [vmem:[#allocation142_spill] sm:$0xff] %v9787_v19  ;;  %v7262_v7 = vpop.f32.mrb[187].mxu0  ;;  %v7468_v50 = vpop.f32.mrb[187].mxu1 }
 0x2dd   : > { %7584 = vmatmul.mubr.msk.bf16.gmra.mrb[36].mxu0 %vm2162_vm3, %v8069_v20  ;;  %7790 = vmatmul.mubr.msk.bf16.gmra.mrb[36].mxu1 %vm2162_vm3, %v8070_v14  ;;  %v8072_v20 = vld [vmem:[%s8622_s10 + $0x560] sm:$0xff]  }
 0x2de   : > { %7587 = vmatprep.mubr.msk.bf16.mxu0 %vm8146_vm2, %v10688_v10  ;;  %7793 = vmatprep.mubr.msk.bf16.mxu1 %vm8146_vm2, %v10688_v10 }
 0x2e0   : > { %v9797_v5 = vpop.f32.mrb[188].mxu0  ;;  %v9799_v31 = vpop.f32.mrb[188].mxu1 }
 0x2e1   : > { %10821 = vst [vmem:[#allocation143_spill] sm:$0xff] %v9797_v5  ;;  %10822 = vst [vmem:[#allocation144_spill] sm:$0xff] %v9799_v31  ;;  %v7265_v7 = vpop.f32.mrb[189].mxu0  ;;  %v7471_v50 = vpop.f32.mrb[189].mxu1 }
 0x2e2   : > { %v9805_v14 = vpop.f32.mrb[190].mxu0  ;;  %v9807_v19 = vpop.f32.mrb[190].mxu1 }
 0x2e3   : > { %10823 = vst [vmem:[#allocation145_spill] sm:$0xff] %v9805_v14  ;;  %10824 = vst [vmem:[#allocation146_spill] sm:$0xff] %v9807_v19  ;;  %v7266_v62 = vpop.f32.mrb[191].mxu0  ;;  %v7472_v26 = vpop.f32.mrb[191].mxu1  ;;  %v8075_v14 = vld [vmem:[%s8622_s10 + $0x3e8] sm:$0xff]  }
 0x2e5   : > { %7588 = vmatmul.mubr.msk.bf16.gmra.mrb[40].mxu0 %vm2162_vm3, %v8071_v55  ;;  %7794 = vmatmul.mubr.msk.bf16.gmra.mrb[40].mxu1 %vm2162_vm3, %v8072_v20  ;;  %v8073_v55 = vld [vmem:[%s8622_s10 + $0x3e0] sm:$0xff]  }
 0x2e6   : > { %7591 = vmatprep.mubr.msk.bf16.mxu0 %vm8146_vm2, %v10688_v10  ;;  %7797 = vmatprep.mubr.msk.bf16.mxu1 %vm8146_vm2, %v10688_v10 }
 0x2e8   : > { %v9819_v7 = vpop.f32.mrb[192].mxu0  ;;  %v9821_v50 = vpop.f32.mrb[192].mxu1 }
 0x2e9   : > { %10825 = vst [vmem:[#allocation147_spill] sm:$0xff] %v9819_v7  ;;  %10826 = vst [vmem:[#allocation148_spill] sm:$0xff] %v9821_v50  ;;  %v7269_v26 = vpop.f32.mrb[193].mxu0  ;;  %v7475_v38 = vpop.f32.mrb[193].mxu1 }
 0x2ea   : > { %v9827_v20 = vpop.f32.mrb[194].mxu0  ;;  %v9829_v19 = vpop.f32.mrb[194].mxu1 }
 0x2eb   : > { %10827 = vst [vmem:[#allocation149_spill] sm:$0xff] %v9827_v20  ;;  %10828 = vst [vmem:[#allocation150_spill] sm:$0xff] %v9829_v19  ;;  %v7270_v31 = vpop.f32.mrb[195].mxu0  ;;  %v7476_v5 = vpop.f32.mrb[195].mxu1  ;;  %v10829_v19 = vmax.f32 %v8857_v4, %v8859_v6 }
 0x2ec   : > { %v8076_v31 = vld [vmem:[%s8622_s10 + $0x570] sm:$0xff]   ;;  %v9844_v5 = vld [vmem:[%s10528_s2] ss:$0 sm:$0xff] }
 0x2ed   : > { %7592 = vmatmul.mubr.msk.bf16.gmra.mrb[44].mxu0 %vm2162_vm3, %v8073_v55  ;;  %7798 = vmatmul.mubr.msk.bf16.gmra.mrb[44].mxu1 %vm2162_vm3, %v8074_v43 }
 0x2ee   : > { %7595 = vmatprep.mubr.msk.bf16.mxu0 %vm8146_vm2, %v10688_v10  ;;  %7801 = vmatprep.mubr.msk.bf16.mxu1 %vm8146_vm2, %v10688_v10 }
 0x2f0   : > { %v4183_v38 = vpop.f32.mrb[196].mxu0  ;;  %v5099_v26 = vpop.f32.mrb[196].mxu1 }
 0x2f1   : > { %v5588_v62 = vmax.f32 %v4183_v38, %v5099_v26  ;;  %v7489_v50 = vpop.f32.mrb[197].mxu0  ;;  %v7695_v7 = vpop.f32.mrb[197].mxu1 }
 0x2f2   : > { %v4186_v43 = vpop.f32.mrb[198].mxu0  ;;  %v5102_v55 = vpop.f32.mrb[198].mxu1  ;;  %v10830_v7 = vmax.f32 %v8865_v12, %v8867_v13 }
 0x2f3   : > { %v5686_v20 = vmax.f32 %v10829_v19, %v5588_v62  ;;  %v5589_v8 = vmax.f32 %v4186_v43, %v5102_v55  ;;  %v7490_v28 = vpop.f32.mrb[199].mxu0  ;;  %v7696_v44 = vpop.f32.mrb[199].mxu1  ;;  %v8078_v62 = vld [vmem:[%s8622_s10 + $0x578] sm:$0xff]  }
 0x2f5   : > { %v5791_v50 = vadd.f32 %v9844_v5, %v5686_v20  ;;  %v5687_v38 = vmax.f32 %v10830_v7, %v5589_v8  ;;  %7596 = vmatmul.mubr.msk.bf16.gmra.mrb[48].mxu0 %vm2162_vm3, %v8075_v14  ;;  %7802 = vmatmul.mubr.msk.bf16.gmra.mrb[48].mxu1 %vm2162_vm3, %v8076_v31  ;;  %v8077_v14 = vld [vmem:[%s8622_s10 + $0x3f0] sm:$0xff]   ;;  %v10831_v31 = vmax.f32 %v8877_v17, %v8879_v18 }
 0x2f6   : > { %7599 = vmatprep.mubr.msk.bf16.mxu0 %vm8146_vm2, %v10688_v10  ;;  %7805 = vmatprep.mubr.msk.bf16.mxu1 %vm8146_vm2, %v10688_v10 }
 0x2f7   : > { %v5889_v4 = vmax.f32 %v5791_v50, 0.0  ;;  %v5792_v6 = vadd.f32 %v9844_v5, %v5687_v38 }
 0x2f8   : > { %v4191_v12 = vpop.f32.mrb[200].mxu0  ;;  %v5107_v13 = vpop.f32.mrb[200].mxu1 }
 0x2f9   : > { %5987 = vst [vmem:[%s9858_s22] sm:$0xff] %v5889_v4  ;;  %v5890_v19 = vmax.f32 %v5792_v6, 0.0  ;;  %v5590_v44 = vmax.f32 %v4191_v12, %v5107_v13  ;;  %v7493_v28 = vpop.f32.mrb[201].mxu0  ;;  %v7699_v8 = vpop.f32.mrb[201].mxu1  ;;  %v10832_v4 = vmax.f32 %v8885_v24, %v8887_v25 }
 0x2fa   : > { %v4194_v20 = vpop.f32.mrb[202].mxu0  ;;  %v5110_v26 = vpop.f32.mrb[202].mxu1  ;;  %v8079_v28 = vld [vmem:[%s8622_s10 + $0x3f8] sm:$0xff]   ;;  %v8080_v8 = vld [vmem:[%s8622_s10 + $0x580] sm:$0xff]  }
 0x2fb   : > { %5988 = vst [vmem:[%s9858_s22 + $0x8] sm:$0xff] %v5890_v19  ;;  %v5688_v43 = vmax.f32 %v10831_v31, %v5590_v44  ;;  %v5591_v55 = vmax.f32 %v4194_v20, %v5110_v26  ;;  %v7494_v50 = vpop.f32.mrb[203].mxu0  ;;  %v7700_v7 = vpop.f32.mrb[203].mxu1  ;;  %v10833_v20 = vmax.f32 %v8897_v29, %v8899_v30 }
 0x2fc   : > { %v10834_v7 = vmax.f32 %v8905_v36, %v8907_v37 }
 0x2fd   : > { %v5793_v38 = vadd.f32 %v9844_v5, %v5688_v43  ;;  %v5689_v6 = vmax.f32 %v10832_v4, %v5591_v55  ;;  %7600 = vmatmul.mubr.msk.bf16.gmra.mrb[52].mxu0 %vm2162_vm3, %v8077_v14  ;;  %7806 = vmatmul.mubr.msk.bf16.gmra.mrb[52].mxu1 %vm2162_vm3, %v8078_v62 }
 0x2fe   : > { %7603 = vmatprep.mubr.msk.bf16.mxu0 %vm8146_vm2, %v10688_v10  ;;  %7809 = vmatprep.mubr.msk.bf16.mxu1 %vm8146_vm2, %v10688_v10 }
 0x2ff   : > { %v5891_v17 = vmax.f32 %v5793_v38, 0.0  ;;  %v5794_v18 = vadd.f32 %v9844_v5, %v5689_v6 }
 0x300   : > { %v4199_v12 = vpop.f32.mrb[204].mxu0  ;;  %v5115_v13 = vpop.f32.mrb[204].mxu1 }
 0x301   : > { %5989 = vst [vmem:[%s9858_s22 + $0x10] sm:$0xff] %v5891_v17  ;;  %v5892_v24 = vmax.f32 %v5794_v18, 0.0  ;;  %v5592_v25 = vmax.f32 %v4199_v12, %v5115_v13  ;;  %v7497_v19 = vpop.f32.mrb[205].mxu0  ;;  %v7703_v44 = vpop.f32.mrb[205].mxu1  ;;  %v8081_v12 = vld [vmem:[%s8622_s10 + $0x400] sm:$0xff]   ;;  %v8082_v13 = vld [vmem:[%s8622_s10 + $0x588] sm:$0xff]  }
 0x302   : > { %v4202_v14 = vpop.f32.mrb[206].mxu0  ;;  %v5118_v62 = vpop.f32.mrb[206].mxu1  ;;  %v10835_v19 = vmax.f32 %v8917_v41, %v8919_v42 }
 0x303   : > { %5990 = vst [vmem:[%s9858_s22 + $0x18] sm:$0xff] %v5892_v24  ;;  %v5690_v26 = vmax.f32 %v10833_v20, %v5592_v25  ;;  %v5593_v31 = vmax.f32 %v4202_v14, %v5118_v62  ;;  %v7498_v43 = vpop.f32.mrb[207].mxu0  ;;  %v7704_v55 = vpop.f32.mrb[207].mxu1  ;;  %v10836_v20 = vmax.f32 %v8925_v48, %v8927_v49 }
 0x305   : > { %v5795_v50 = vadd.f32 %v9844_v5, %v5690_v26  ;;  %v5691_v38 = vmax.f32 %v10834_v7, %v5593_v31  ;;  %7604 = vmatmul.mubr.msk.bf16.gmra.mrb[56].mxu0 %vm2162_vm3, %v8079_v28  ;;  %7810 = vmatmul.mubr.msk.bf16.gmra.mrb[56].mxu1 %vm2162_vm3, %v8080_v8  ;;  %v8083_v7 = vld [vmem:[%s8622_s10 + $0x408] sm:$0xff]  }
 0x306   : > { %7607 = vmatprep.mubr.msk.bf16.mxu0 %vm8146_vm2, %v10688_v10  ;;  %7813 = vmatprep.mubr.msk.bf16.mxu1 %vm8146_vm2, %v10688_v10 }
 0x307   : > { %v5893_v29 = vmax.f32 %v5795_v50, 0.0  ;;  %v5796_v30 = vadd.f32 %v9844_v5, %v5691_v38  ;;  %v8084_v38 = vld [vmem:[%s8622_s10 + $0x590] sm:$0xff]  }
 0x308   : > { %v4207_v4 = vpop.f32.mrb[208].mxu0  ;;  %v5123_v6 = vpop.f32.mrb[208].mxu1 }
 0x309   : > { %5991 = vst [vmem:[%s9858_s22 + $0x20] sm:$0xff] %v5893_v29  ;;  %v5894_v36 = vmax.f32 %v5796_v30, 0.0  ;;  %v5594_v37 = vmax.f32 %v4207_v4, %v5123_v6  ;;  %v7501_v17 = vpop.f32.mrb[209].mxu0  ;;  %v7707_v18 = vpop.f32.mrb[209].mxu1  ;;  %v10837_v4 = vmax.f32 %v8937_v53, %v8939_v54 }
 0x30a   : > { %v4210_v24 = vpop.f32.mrb[210].mxu0  ;;  %v5126_v25 = vpop.f32.mrb[210].mxu1 }
 0x30b   : > { %5992 = vst [vmem:[%s9858_s22 + $0x28] sm:$0xff] %v5894_v36  ;;  %v5692_v44 = vmax.f32 %v10835_v19, %v5594_v37  ;;  %v5595_v28 = vmax.f32 %v4210_v24, %v5126_v25  ;;  %v7502_v8 = vpop.f32.mrb[211].mxu0  ;;  %v7708_v14 = vpop.f32.mrb[211].mxu1 }
 0x30c   : > { %v8086_v8 = vld [vmem:[%s8622_s10 + $0x598] sm:$0xff]  }
 0x30d   : > { %v5797_v62 = vadd.f32 %v9844_v5, %v5692_v44  ;;  %v5693_v26 = vmax.f32 %v10836_v20, %v5595_v28  ;;  %7608 = vmatmul.mubr.msk.bf16.gmra.mrb[60].mxu0 %vm2162_vm3, %v8081_v12  ;;  %7814 = vmatmul.mubr.msk.bf16.gmra.mrb[60].mxu1 %vm2162_vm3, %v8082_v13  ;;  %v10838_v12 = vmax.f32 %v8945_v60, %v8947_v61  ;;  %v8085_v28 = vld [vmem:[%s8622_s10 + $0x410] sm:$0xff]  }
 0x30e   : > { %7611 = vmatprep.mubr.msk.bf16.mxu0 %vm8146_vm2, %v10688_v10  ;;  %7817 = vmatprep.mubr.msk.bf16.mxu1 %vm8146_vm2, %v10688_v10  ;;  %v10839_v20 = vmax.f32 %v8957_v1, %v8959_v2 }
 0x30f   : > { %v5895_v41 = vmax.f32 %v5797_v62, 0.0  ;;  %v5798_v42 = vadd.f32 %v9844_v5, %v5693_v26 }
 0x310   : > { %v4215_v31 = vpop.f32.mrb[212].mxu0  ;;  %v5131_v43 = vpop.f32.mrb[212].mxu1 }
 0x311   : > { %5993 = vst [vmem:[%s9858_s22 + $0x30] sm:$0xff] %v5895_v41  ;;  %v5896_v48 = vmax.f32 %v5798_v42, 0.0  ;;  %v5596_v49 = vmax.f32 %v4215_v31, %v5131_v43  ;;  %v7505_v55 = vpop.f32.mrb[213].mxu0  ;;  %v7711_v50 = vpop.f32.mrb[213].mxu1 }
 0x312   : > { %v4218_v29 = vpop.f32.mrb[214].mxu0  ;;  %v5134_v30 = vpop.f32.mrb[214].mxu1 }
 0x313   : > { %5994 = vst [vmem:[%s9858_s22 + $0x38] sm:$0xff] %v5896_v48  ;;  %v5694_v6 = vmax.f32 %v10837_v4, %v5596_v49  ;;  %v5597_v36 = vmax.f32 %v4218_v29, %v5134_v30  ;;  %v7506_v37 = vpop.f32.mrb[215].mxu0  ;;  %v7712_v17 = vpop.f32.mrb[215].mxu1  ;;  %v10840_v48 = vmax.f32 %v8965_v15, %v8967_v16  ;;  %v8087_v29 = vld [vmem:[%s8622_s10 + $0x418] sm:$0xff]   ;;  %v8088_v30 = vld [vmem:[%s8622_s10 + $0x5a0] sm:$0xff]  }
 0x315   : > { %v5799_v18 = vadd.f32 %v9844_v5, %v5694_v6  ;;  %v5695_v13 = vmax.f32 %v10838_v12, %v5597_v36  ;;  %7612 = vmatmul.mubr.msk.bf16.gmra.mrb[64].mxu0 %vm2162_vm3, %v8083_v7  ;;  %7818 = vmatmul.mubr.msk.bf16.gmra.mrb[64].mxu1 %vm2162_vm3, %v8084_v38  ;;  %v10841_v36 = vmax.f32 %v8977_v23, %v8979_v27 }
 0x316   : > { %7615 = vmatprep.mubr.msk.bf16.mxu0 %vm8146_vm2, %v10688_v10  ;;  %7821 = vmatprep.mubr.msk.bf16.mxu1 %vm8146_vm2, %v10688_v10 }
 0x317   : > { %v5897_v53 = vmax.f32 %v5799_v18, 0.0  ;;  %v5800_v54 = vadd.f32 %v9844_v5, %v5695_v13 }
 0x318   : > { %v4223_v24 = vpop.f32.mrb[216].mxu0  ;;  %v5139_v25 = vpop.f32.mrb[216].mxu1 }
 0x319   : > { %5995 = vst [vmem:[%s9858_s22 + $0x40] sm:$0xff] %v5897_v53  ;;  %v5898_v60 = vmax.f32 %v5800_v54, 0.0  ;;  %v5598_v61 = vmax.f32 %v4223_v24, %v5139_v25  ;;  %v7509_v19 = vpop.f32.mrb[217].mxu0  ;;  %v7715_v44 = vpop.f32.mrb[217].mxu1  ;;  %v10842_v53 = vmax.f32 %v8985_v39, %v8987_v40 }
 0x31a   : > { %v4226_v14 = vpop.f32.mrb[218].mxu0  ;;  %v5142_v62 = vpop.f32.mrb[218].mxu1  ;;  %v8089_v19 = vld [vmem:[%s8622_s10 + $0x420] sm:$0xff]   ;;  %v8090_v44 = vld [vmem:[%s8622_s10 + $0x5a8] sm:$0xff]  }
 0x31b   : > { %5996 = vst [vmem:[%s9858_s22 + $0x48] sm:$0xff] %v5898_v60  ;;  %v5696_v26 = vmax.f32 %v10839_v20, %v5598_v61  ;;  %v5599_v41 = vmax.f32 %v4226_v14, %v5142_v62  ;;  %v7510_v42 = vpop.f32.mrb[219].mxu0  ;;  %v7716_v31 = vpop.f32.mrb[219].mxu1  ;;  %v10843_v14 = vmax.f32 %v8997_v47, %v8999_v51 }
 0x31c   : > { %v10844_v31 = vmax.f32 %v9005_v63, %v9007_v0 }
 0x31d   : > { %v5801_v43 = vadd.f32 %v9844_v5, %v5696_v26  ;;  %v5697_v49 = vmax.f32 %v10840_v48, %v5599_v41  ;;  %7616 = vmatmul.mubr.msk.bf16.gmra.mrb[68].mxu0 %vm2162_vm3, %v8085_v28  ;;  %7822 = vmatmul.mubr.msk.bf16.gmra.mrb[68].mxu1 %vm2162_vm3, %v8086_v8 }
 0x31e   : > { %7619 = vmatprep.mubr.msk.bf16.mxu0 %vm8146_vm2, %v10688_v10  ;;  %7825 = vmatprep.mubr.msk.bf16.mxu1 %vm8146_vm2, %v10688_v10 }
 0x31f   : > { %v5899_v1 = vmax.f32 %v5801_v43, 0.0  ;;  %v5802_v2 = vadd.f32 %v9844_v5, %v5697_v49 }
 0x320   : > { %v4231_v55 = vpop.f32.mrb[220].mxu0  ;;  %v5147_v50 = vpop.f32.mrb[220].mxu1 }
 0x321   : > { %5997 = vst [vmem:[%s9858_s22 + $0x50] sm:$0xff] %v5899_v1  ;;  %v5900_v15 = vmax.f32 %v5802_v2, 0.0  ;;  %v5600_v16 = vmax.f32 %v4231_v55, %v5147_v50  ;;  %v7513_v7 = vpop.f32.mrb[221].mxu0  ;;  %v7719_v38 = vpop.f32.mrb[221].mxu1  ;;  %v8091_v55 = vld [vmem:[%s8622_s10 + $0x428] sm:$0xff]   ;;  %v8092_v50 = vld [vmem:[%s8622_s10 + $0x5b0] sm:$0xff]  }
 0x322   : > { %v4234_v4 = vpop.f32.mrb[222].mxu0  ;;  %v5150_v6 = vpop.f32.mrb[222].mxu1  ;;  %v10845_v7 = vmax.f32 %v9017_v11, %v9019_v21 }
 0x323   : > { %5998 = vst [vmem:[%s9858_s22 + $0x58] sm:$0xff] %v5900_v15  ;;  %v5698_v37 = vmax.f32 %v10841_v36, %v5600_v16  ;;  %v5601_v17 = vmax.f32 %v4234_v4, %v5150_v6  ;;  %v7514_v18 = vpop.f32.mrb[223].mxu0  ;;  %v7720_v12 = vpop.f32.mrb[223].mxu1  ;;  %v10846_v36 = vmax.f32 %v9025_v45, %v9027_v46 }
 0x325   : > { %v5803_v13 = vadd.f32 %v9844_v5, %v5698_v37  ;;  %v5699_v54 = vmax.f32 %v10842_v53, %v5601_v17  ;;  %7620 = vmatmul.mubr.msk.bf16.gmra.mrb[72].mxu0 %vm2162_vm3, %v8087_v29  ;;  %7826 = vmatmul.mubr.msk.bf16.gmra.mrb[72].mxu1 %vm2162_vm3, %v8088_v30  ;;  %v8093_v53 = vld [vmem:[%s8622_s10 + $0x430] sm:$0xff]  }
 0x326   : > { %7623 = vmatprep.mubr.msk.bf16.mxu0 %vm8146_vm2, %v10688_v10  ;;  %7829 = vmatprep.mubr.msk.bf16.mxu1 %vm8146_vm2, %v10688_v10 }
 0x327   : > { %v5901_v23 = vmax.f32 %v5803_v13, 0.0  ;;  %v5804_v27 = vadd.f32 %v9844_v5, %v5699_v54  ;;  %v8094_v54 = vld [vmem:[%s8622_s10 + $0x5b8] sm:$0xff]  }
 0x328   : > { %v4239_v24 = vpop.f32.mrb[224].mxu0  ;;  %v5155_v25 = vpop.f32.mrb[224].mxu1 }
 0x329   : > { %5999 = vst [vmem:[%s9858_s22 + $0x60] sm:$0xff] %v5901_v23  ;;  %v5902_v39 = vmax.f32 %v5804_v27, 0.0  ;;  %v5602_v40 = vmax.f32 %v4239_v24, %v5155_v25  ;;  %v7517_v60 = vpop.f32.mrb[225].mxu0  ;;  %v7723_v61 = vpop.f32.mrb[225].mxu1  ;;  %v10847_v24 = vmax.f32 %v9037_v59, %v9039_v9 }
 0x32a   : > { %v4242_v28 = vpop.f32.mrb[226].mxu0  ;;  %v5158_v8 = vpop.f32.mrb[226].mxu1 }
 0x32b   : > { %6000 = vst [vmem:[%s9858_s22 + $0x68] sm:$0xff] %v5902_v39  ;;  %v5700_v62 = vmax.f32 %v10843_v14, %v5602_v40  ;;  %v5603_v20 = vmax.f32 %v4242_v28, %v5158_v8  ;;  %v7518_v26 = vpop.f32.mrb[227].mxu0  ;;  %v7724_v41 = vpop.f32.mrb[227].mxu1 }
 0x32c   : > { %v8096_v26 = vld [vmem:[%s8622_s10 + $0x5c0] sm:$0xff]  }
 0x32d   : > { %v5805_v42 = vadd.f32 %v9844_v5, %v5700_v62  ;;  %v5701_v43 = vmax.f32 %v10844_v31, %v5603_v20  ;;  %7624 = vmatmul.mubr.msk.bf16.gmra.mrb[76].mxu0 %vm2162_vm3, %v8089_v19  ;;  %7830 = vmatmul.mubr.msk.bf16.gmra.mrb[76].mxu1 %vm2162_vm3, %v8090_v44  ;;  %v10848_v19 = vmax.f32 %v9045_v35, %v9047_v58  ;;  %v8095_v20 = vld [vmem:[%s8622_s10 + $0x438] sm:$0xff]  }
 0x32e   : > { %7627 = vmatprep.mubr.msk.bf16.mxu0 %vm8146_vm2, %v10688_v10  ;;  %7833 = vmatprep.mubr.msk.bf16.mxu1 %vm8146_vm2, %v10688_v10  ;;  %v10849_v31 = vmax.f32 %v9057_v32, %v9059_v33 }
 0x32f   : > { %v5903_v47 = vmax.f32 %v5805_v42, 0.0  ;;  %v5806_v51 = vadd.f32 %v9844_v5, %v5701_v43 }
 0x330   : > { %v4247_v48 = vpop.f32.mrb[228].mxu0  ;;  %v5163_v49 = vpop.f32.mrb[228].mxu1 }
 0x331   : > { %6001 = vst [vmem:[%s9858_s22 + $0x70] sm:$0xff] %v5903_v47  ;;  %v5904_v63 = vmax.f32 %v5806_v51, 0.0  ;;  %v5604_v0 = vmax.f32 %v4247_v48, %v5163_v49  ;;  %v7521_v1 = vpop.f32.mrb[229].mxu0  ;;  %v7727_v2 = vpop.f32.mrb[229].mxu1 }
 0x332   : > { %v4250_v15 = vpop.f32.mrb[230].mxu0  ;;  %v5166_v16 = vpop.f32.mrb[230].mxu1 }
 0x333   : > { %6002 = vst [vmem:[%s9858_s22 + $0x78] sm:$0xff] %v5904_v63  ;;  %v5702_v38 = vmax.f32 %v10845_v7, %v5604_v0  ;;  %v5605_v29 = vmax.f32 %v4250_v15, %v5166_v16  ;;  %v7522_v30 = vpop.f32.mrb[231].mxu0  ;;  %v7728_v4 = vpop.f32.mrb[231].mxu1  ;;  %v10850_v63 = vmax.f32 %v9065_v34, %v9067_v52  ;;  %v8097_v15 = vld [vmem:[%s8622_s10 + $0x440] sm:$0xff]   ;;  %v8098_v16 = vld [vmem:[%s8622_s10 + $0x5c8] sm:$0xff]  }
 0x335   : > { %v5807_v6 = vadd.f32 %v9844_v5, %v5702_v38  ;;  %v5703_v37 = vmax.f32 %v10846_v36, %v5605_v29  ;;  %7628 = vmatmul.mubr.msk.bf16.gmra.mrb[80].mxu0 %vm2162_vm3, %v8091_v55  ;;  %7834 = vmatmul.mubr.msk.bf16.gmra.mrb[80].mxu1 %vm2162_vm3, %v8092_v50  ;;  %v10851_v29 = vmax.f32 %v9077_v56, %v9079_v22 }
 0x336   : > { %7631 = vmatprep.mubr.msk.bf16.mxu0 %vm8146_vm2, %v10688_v10  ;;  %7837 = vmatprep.mubr.msk.bf16.mxu1 %vm8146_vm2, %v10688_v10 }
 0x337   : > { %v5905_v11 = vmax.f32 %v5807_v6, 0.0  ;;  %v5808_v21 = vadd.f32 %v9844_v5, %v5703_v37 }
 0x338   : > { %v4255_v17 = vpop.f32.mrb[232].mxu0  ;;  %v5171_v18 = vpop.f32.mrb[232].mxu1 }
 0x339   : > { %6003 = vst [vmem:[%s9858_s22 + $0x80] sm:$0xff] %v5905_v11  ;;  %v5906_v45 = vmax.f32 %v5808_v21, 0.0  ;;  %v5606_v46 = vmax.f32 %v4255_v17, %v5171_v18  ;;  %v7525_v12 = vpop.f32.mrb[233].mxu0  ;;  %v7731_v13 = vpop.f32.mrb[233].mxu1  ;;  %v10852_v11 = vmax.f32 %v9085_v57, %v9087_v3 }
 0x33a   : > { %v4258_v23 = vpop.f32.mrb[234].mxu0  ;;  %v5174_v27 = vpop.f32.mrb[234].mxu1  ;;  %v8099_v12 = vld [vmem:[%s8622_s10 + $0x448] sm:$0xff]   ;;  %v8100_v13 = vld [vmem:[%s8622_s10 + $0x5d0] sm:$0xff]  }
 0x33b   : > { %6004 = vst [vmem:[%s9858_s22 + $0x88] sm:$0xff] %v5906_v45  ;;  %v5704_v25 = vmax.f32 %v10847_v24, %v5606_v46  ;;  %v5607_v39 = vmax.f32 %v4258_v23, %v5174_v27  ;;  %v7526_v40 = vpop.f32.mrb[235].mxu0  ;;  %v7732_v60 = vpop.f32.mrb[235].mxu1  ;;  %v10853_v23 = vld [vmem:[#allocation3_spill] sm:$0xff]  ;;  %v10854_v27 = vld [vmem:[#allocation4_spill] sm:$0xff] }
 0x33c   : > { %v10855_v24 = vmax.f32 %v10853_v23, %v10854_v27 }
 0x33d   : > { %v5809_v61 = vadd.f32 %v9844_v5, %v5704_v25  ;;  %v5705_v44 = vmax.f32 %v10848_v19, %v5607_v39  ;;  %7632 = vmatmul.mubr.msk.bf16.gmra.mrb[84].mxu0 %vm2162_vm3, %v8093_v53  ;;  %7838 = vmatmul.mubr.msk.bf16.gmra.mrb[84].mxu1 %vm2162_vm3, %v8094_v54  ;;  %v10856_v19 = vld [vmem:[#allocation5_spill] sm:$0xff] }
 0x33e   : > { %7635 = vmatprep.mubr.msk.bf16.mxu0 %vm8146_vm2, %v10688_v10  ;;  %7841 = vmatprep.mubr.msk.bf16.mxu1 %vm8146_vm2, %v10688_v10 }
 0x33f   : > { %v5907_v59 = vmax.f32 %v5809_v61, 0.0  ;;  %v5810_v9 = vadd.f32 %v9844_v5, %v5705_v44  ;;  %v10857_v44 = vld [vmem:[#allocation6_spill] sm:$0xff] }
 0x340   : > { %v4263_v28 = vpop.f32.mrb[236].mxu0  ;;  %v5179_v8 = vpop.f32.mrb[236].mxu1 }
 0x341   : > { %6005 = vst [vmem:[%s9858_s22 + $0x90] sm:$0xff] %v5907_v59  ;;  %v5908_v35 = vmax.f32 %v5810_v9, 0.0  ;;  %v5608_v58 = vmax.f32 %v4263_v28, %v5179_v8  ;;  %v7529_v14 = vpop.f32.mrb[237].mxu0  ;;  %v7735_v62 = vpop.f32.mrb[237].mxu1  ;;  %v10858_v59 = vmax.f32 %v10856_v19, %v10857_v44 }
 0x342   : > { %v4266_v41 = vpop.f32.mrb[238].mxu0  ;;  %v5182_v42 = vpop.f32.mrb[238].mxu1 }
 0x343   : > { %6006 = vst [vmem:[%s9858_s22 + $0x98] sm:$0xff] %v5908_v35  ;;  %v5706_v43 = vmax.f32 %v10849_v31, %v5608_v58  ;;  %v5609_v47 = vmax.f32 %v4266_v41, %v5182_v42  ;;  %v7530_v51 = vpop.f32.mrb[239].mxu0  ;;  %v7736_v48 = vpop.f32.mrb[239].mxu1  ;;  %v8101_v41 = vld [vmem:[%s8622_s10 + $0x450] sm:$0xff]   ;;  %v8102_v42 = vld [vmem:[%s8622_s10 + $0x5d8] sm:$0xff]  }
 0x344   : > { %v10860_v51 = vld [vmem:[#allocation8_spill] sm:$0xff] }
 0x345   : > { %v5811_v49 = vadd.f32 %v9844_v5, %v5706_v43  ;;  %v5707_v0 = vmax.f32 %v10850_v63, %v5609_v47  ;;  %7636 = vmatmul.mubr.msk.bf16.gmra.mrb[88].mxu0 %vm2162_vm3, %v8095_v20  ;;  %7842 = vmatmul.mubr.msk.bf16.gmra.mrb[88].mxu1 %vm2162_vm3, %v8096_v26  ;;  %v10859_v47 = vld [vmem:[#allocation7_spill] sm:$0xff] }
 0x346   : > { %7639 = vmatprep.mubr.msk.bf16.mxu0 %vm8146_vm2, %v10688_v10  ;;  %7845 = vmatprep.mubr.msk.bf16.mxu1 %vm8146_vm2, %v10688_v10  ;;  %v10861_v48 = vmax.f32 %v10859_v47, %v10860_v51 }
 0x347   : > { %v5909_v32 = vmax.f32 %v5811_v49, 0.0  ;;  %v5812_v33 = vadd.f32 %v9844_v5, %v5707_v0 }
 0x348   : > { %v4271_v1 = vpop.f32.mrb[240].mxu0  ;;  %v5187_v2 = vpop.f32.mrb[240].mxu1 }
 0x349   : > { %6007 = vst [vmem:[%s9858_s22 + $0xa0] sm:$0xff] %v5909_v32  ;;  %v5910_v52 = vmax.f32 %v5812_v33, 0.0  ;;  %v5610_v34 = vmax.f32 %v4271_v1, %v5187_v2  ;;  %v7533_v55 = vpop.f32.mrb[241].mxu0  ;;  %v7739_v50 = vpop.f32.mrb[241].mxu1  ;;  %v10862_v1 = vld [vmem:[#allocation9_spill] sm:$0xff]  ;;  %v10863_v2 = vld [vmem:[#allocation10_spill] sm:$0xff] }
 0x34a   : > { %v4274_v7 = vpop.f32.mrb[242].mxu0  ;;  %v5190_v38 = vpop.f32.mrb[242].mxu1 }
 0x34b   : > { %6008 = vst [vmem:[%s9858_s22 + $0xa8] sm:$0xff] %v5910_v52  ;;  %v5708_v30 = vmax.f32 %v10851_v29, %v5610_v34  ;;  %v5611_v4 = vmax.f32 %v4274_v7, %v5190_v38  ;;  %v7534_v6 = vpop.f32.mrb[243].mxu0  ;;  %v7740_v36 = vpop.f32.mrb[243].mxu1  ;;  %v10864_v52 = vmax.f32 %v10862_v1, %v10863_v2 }
 0x34c   : > { %v8104_v6 = vld [vmem:[%s8622_s10 + $0x5e0] sm:$0xff]  }
 0x34d   : > { %v5813_v37 = vadd.f32 %v9844_v5, %v5708_v30  ;;  %v5709_v21 = vmax.f32 %v10852_v11, %v5611_v4  ;;  %7640 = vmatmul.mubr.msk.bf16.gmra.mrb[92].mxu0 %vm2162_vm3, %v8097_v15  ;;  %7846 = vmatmul.mubr.msk.bf16.gmra.mrb[92].mxu1 %vm2162_vm3, %v8098_v16  ;;  %v8103_v4 = vld [vmem:[%s8622_s10 + $0x458] sm:$0xff]   ;;  %v10865_v11 = vld [vmem:[#allocation11_spill] sm:$0xff] }
 0x34e   : > { %7643 = vmatprep.mubr.msk.bf16.mxu0 %vm8146_vm2, %v10688_v10  ;;  %7849 = vmatprep.mubr.msk.bf16.mxu1 %vm8146_vm2, %v10688_v10 }
 0x34f   : > { %v5911_v56 = vmax.f32 %v5813_v37, 0.0  ;;  %v5814_v22 = vadd.f32 %v9844_v5, %v5709_v21  ;;  %v10866_v21 = vld [vmem:[#allocation12_spill] sm:$0xff] }
 0x350   : > { %v4279_v17 = vpop.f32.mrb[244].mxu0  ;;  %v5195_v18 = vpop.f32.mrb[244].mxu1 }
 0x351   : > { %6009 = vst [vmem:[%s9858_s22 + $0xb0] sm:$0xff] %v5911_v56  ;;  %v5912_v3 = vmax.f32 %v5814_v22, 0.0  ;;  %v5612_v57 = vmax.f32 %v4279_v17, %v5195_v18  ;;  %v7537_v45 = vpop.f32.mrb[245].mxu0  ;;  %v7743_v46 = vpop.f32.mrb[245].mxu1  ;;  %v10867_v56 = vmax.f32 %v10865_v11, %v10866_v21 }
 0x352   : > { %v4282_v53 = vpop.f32.mrb[246].mxu0  ;;  %v5198_v54 = vpop.f32.mrb[246].mxu1  ;;  %v10868_v45 = vld [vmem:[#allocation13_spill] sm:$0xff]  ;;  %v10869_v46 = vld [vmem:[#allocation14_spill] sm:$0xff] }
 0x353   : > { %6010 = vst [vmem:[%s9858_s22 + $0xb8] sm:$0xff] %v5912_v3  ;;  %v5710_v25 = vmax.f32 %v10855_v24, %v5612_v57  ;;  %v5613_v39 = vmax.f32 %v4282_v53, %v5198_v54  ;;  %v7538_v40 = vpop.f32.mrb[247].mxu0  ;;  %v7744_v60 = vpop.f32.mrb[247].mxu1 }
 0x354   : > { %v8105_v60 = vld [vmem:[%s8622_s10 + $0x460] sm:$0xff]  }
 0x355   : > { %v5815_v61 = vadd.f32 %v9844_v5, %v5710_v25  ;;  %v5711_v9 = vmax.f32 %v10858_v59, %v5613_v39  ;;  %7644 = vmatmul.mubr.msk.bf16.gmra.mrb[96].mxu0 %vm2162_vm3, %v8099_v12  ;;  %7850 = vmatmul.mubr.msk.bf16.gmra.mrb[96].mxu1 %vm2162_vm3, %v8100_v13  ;;  %v10870_v12 = vmax.f32 %v10868_v45, %v10869_v46  ;;  %v10871_v59 = vld [vmem:[#allocation15_spill] sm:$0xff] }
 0x356   : > { %7647 = vmatprep.mubr.msk.bf16.mxu0 %vm8146_vm2, %v10688_v10  ;;  %7853 = vmatprep.mubr.msk.bf16.mxu1 %vm8146_vm2, %v10688_v10 }
 0x357   : > { %v5913_v28 = vmax.f32 %v5815_v61, 0.0  ;;  %v5816_v8 = vadd.f32 %v9844_v5, %v5711_v9  ;;  %v8106_v61 = vld [vmem:[%s8622_s10 + $0x5e8] sm:$0xff]  }
 0x358   : > { %v4287_v35 = vpop.f32.mrb[248].mxu0  ;;  %v5203_v58 = vpop.f32.mrb[248].mxu1  ;;  %v10872_v9 = vld [vmem:[#allocation16_spill] sm:$0xff] }
 0x359   : > { %6011 = vst [vmem:[%s9858_s22 + $0xc0] sm:$0xff] %v5913_v28  ;;  %v5914_v14 = vmax.f32 %v5816_v8, 0.0  ;;  %v5614_v62 = vmax.f32 %v4287_v35, %v5203_v58  ;;  %v7541_v20 = vpop.f32.mrb[249].mxu0  ;;  %v7747_v26 = vpop.f32.mrb[249].mxu1  ;;  %v10873_v28 = vmax.f32 %v10871_v59, %v10872_v9 }
 0x35a   : > { %v4290_v31 = vpop.f32.mrb[250].mxu0  ;;  %v5206_v43 = vpop.f32.mrb[250].mxu1  ;;  %v10874_v20 = vld [vmem:[#allocation17_spill] sm:$0xff]  ;;  %v10875_v26 = vld [vmem:[#allocation18_spill] sm:$0xff] }
 0x35b   : > { %6012 = vst [vmem:[%s9858_s22 + $0xc8] sm:$0xff] %v5914_v14  ;;  %v5712_v49 = vmax.f32 %v10861_v48, %v5614_v62  ;;  %v5615_v63 = vmax.f32 %v4290_v31, %v5206_v43  ;;  %v7542_v0 = vpop.f32.mrb[251].mxu0  ;;  %v7748_v32 = vpop.f32.mrb[251].mxu1 }
 0x35c   : > { %v8107_v32 = vld [vmem:[%s8622_s10 + $0x468] sm:$0xff]  }
 0x35d   : > { %v5817_v33 = vadd.f32 %v9844_v5, %v5712_v49  ;;  %v5713_v34 = vmax.f32 %v10864_v52, %v5615_v63  ;;  %7648 = vmatmul.mubr.msk.bf16.gmra.mrb[100].mxu0 %vm2162_vm3, %v8101_v41  ;;  %7854 = vmatmul.mubr.msk.bf16.gmra.mrb[100].mxu1 %vm2162_vm3, %v8102_v42  ;;  %v10876_v41 = vmax.f32 %v10874_v20, %v10875_v26  ;;  %v10877_v52 = vld [vmem:[#allocation19_spill] sm:$0xff] }
 0x35e   : > { %7651 = vmatprep.mubr.msk.bf16.mxu0 %vm8146_vm2, %v10688_v10  ;;  %7857 = vmatprep.mubr.msk.bf16.mxu1 %vm8146_vm2, %v10688_v10 }
 0x35f   : > { %v5915_v55 = vmax.f32 %v5817_v33, 0.0  ;;  %v5818_v50 = vadd.f32 %v9844_v5, %v5713_v34  ;;  %v8108_v33 = vld [vmem:[%s8622_s10 + $0x5f0] sm:$0xff]   ;;  %v10878_v34 = vld [vmem:[#allocation20_spill] sm:$0xff] }
 0x360   : > { %v4295_v15 = vpop.f32.mrb[252].mxu0  ;;  %v5211_v16 = vpop.f32.mrb[252].mxu1 }
 0x361   : > { %6013 = vst [vmem:[%s9858_s22 + $0xd0] sm:$0xff] %v5915_v55  ;;  %v5916_v7 = vmax.f32 %v5818_v50, 0.0  ;;  %v5616_v38 = vmax.f32 %v4295_v15, %v5211_v16  ;;  %v7545_v29 = vpop.f32.mrb[253].mxu0  ;;  %v7751_v30 = vpop.f32.mrb[253].mxu1  ;;  %v10879_v55 = vmax.f32 %v10877_v52, %v10878_v34 }
 0x362   : > { %v4298_v36 = vpop.f32.mrb[254].mxu0  ;;  %v5214_v37 = vpop.f32.mrb[254].mxu1  ;;  %v10880_v29 = vld [vmem:[#allocation21_spill] sm:$0xff]  ;;  %v10881_v30 = vld [vmem:[#allocation22_spill] sm:$0xff] }
 0x363   : > { %6014 = vst [vmem:[%s9858_s22 + $0xd8] sm:$0xff] %v5916_v7  ;;  %v5714_v22 = vmax.f32 %v10867_v56, %v5616_v38  ;;  %v5617_v17 = vmax.f32 %v4298_v36, %v5214_v37  ;;  %v7546_v18 = vpop.f32.mrb[255].mxu0  ;;  %v7752_v3 = vpop.f32.mrb[255].mxu1 }
 0x364   : > { %v8109_v3 = vld [vmem:[%s8622_s10 + $0x470] sm:$0xff]  }
 0x365   : > { %v5819_v57 = vadd.f32 %v9844_v5, %v5714_v22  ;;  %v5715_v13 = vmax.f32 %v10870_v12, %v5617_v17  ;;  %7652 = vmatmul.mubr.msk.bf16.gmra.mrb[104].mxu0 %vm2162_vm3, %v8103_v4  ;;  %7858 = vmatmul.mubr.msk.bf16.gmra.mrb[104].mxu1 %vm2162_vm3, %v8104_v6  ;;  %v10882_v4 = vmax.f32 %v10880_v29, %v10881_v30  ;;  %v10883_v12 = vld [vmem:[#allocation23_spill] sm:$0xff] }
 0x366   : > { %7655 = vmatprep.mubr.msk.bf16.mxu0 %vm8146_vm2, %v10688_v10  ;;  %7861 = vmatprep.mubr.msk.bf16.mxu1 %vm8146_vm2, %v10688_v10 }
 0x367   : > { %v5917_v53 = vmax.f32 %v5819_v57, 0.0  ;;  %v5820_v54 = vadd.f32 %v9844_v5, %v5715_v13  ;;  %v8110_v57 = vld [vmem:[%s8622_s10 + $0x5f8] sm:$0xff]   ;;  %v10884_v13 = vld [vmem:[#allocation24_spill] sm:$0xff] }
 0x368   : > { %v4303_v23 = vpop.f32.mrb[0].mxu0  ;;  %v5219_v27 = vpop.f32.mrb[0].mxu1 }
 0x369   : > { %6015 = vst [vmem:[%s9858_s22 + $0xe0] sm:$0xff] %v5917_v53  ;;  %v5918_v24 = vmax.f32 %v5820_v54, 0.0  ;;  %v5618_v25 = vmax.f32 %v4303_v23, %v5219_v27  ;;  %v7549_v39 = vpop.f32.mrb[1].mxu0  ;;  %v7755_v40 = vpop.f32.mrb[1].mxu1  ;;  %v10885_v53 = vmax.f32 %v10883_v12, %v10884_v13 }
 0x36a   : > { %v4306_v19 = vpop.f32.mrb[2].mxu0  ;;  %v5222_v44 = vpop.f32.mrb[2].mxu1  ;;  %v10886_v39 = vld [vmem:[#allocation25_spill] sm:$0xff]  ;;  %v10887_v40 = vld [vmem:[#allocation26_spill] sm:$0xff] }
 0x36b   : > { %6016 = vst [vmem:[%s9858_s22 + $0xe8] sm:$0xff] %v5918_v24  ;;  %v5716_v8 = vmax.f32 %v10873_v28, %v5618_v25  ;;  %v5619_v35 = vmax.f32 %v4306_v19, %v5222_v44  ;;  %v7550_v58 = vpop.f32.mrb[3].mxu0  ;;  %v7756_v14 = vpop.f32.mrb[3].mxu1 }
 0x36c   : > { %v8111_v14 = vld [vmem:[%s8622_s10 + $0x478] sm:$0xff]  }
 0x36d   : > { %v5821_v62 = vadd.f32 %v9844_v5, %v5716_v8  ;;  %v5717_v42 = vmax.f32 %v10876_v41, %v5619_v35  ;;  %7656 = vmatmul.mubr.msk.bf16.gmra.mrb[108].mxu0 %vm2162_vm3, %v8105_v60  ;;  %7862 = vmatmul.mubr.msk.bf16.gmra.mrb[108].mxu1 %vm2162_vm3, %v8106_v61  ;;  %v10888_v60 = vmax.f32 %v10886_v39, %v10887_v40  ;;  %v10889_v41 = vld [vmem:[#allocation27_spill] sm:$0xff] }
 0x36e   : > { %7659 = vmatprep.mubr.msk.bf16.mxu0 %vm8146_vm2, %v10688_v10  ;;  %7865 = vmatprep.mubr.msk.bf16.mxu1 %vm8146_vm2, %v10688_v10 }
 0x36f   : > { %v5919_v31 = vmax.f32 %v5821_v62, 0.0  ;;  %v5822_v43 = vadd.f32 %v9844_v5, %v5717_v42  ;;  %v8112_v62 = vld [vmem:[%s8622_s10 + $0x600] sm:$0xff]   ;;  %v10890_v42 = vld [vmem:[#allocation28_spill] sm:$0xff] }
 0x370   : > { %v4311_v47 = vpop.f32.mrb[4].mxu0  ;;  %v5227_v51 = vpop.f32.mrb[4].mxu1 }
 0x371   : > { %6017 = vst [vmem:[%s9858_s22 + $0xf0] sm:$0xff] %v5919_v31  ;;  %v5920_v48 = vmax.f32 %v5822_v43, 0.0  ;;  %v5620_v49 = vmax.f32 %v4311_v47, %v5227_v51  ;;  %v7553_v63 = vpop.f32.mrb[5].mxu0  ;;  %v7759_v0 = vpop.f32.mrb[5].mxu1  ;;  %v10891_v31 = vmax.f32 %v10889_v41, %v10890_v42 }
 0x372   : > { %v4314_v1 = vpop.f32.mrb[6].mxu0  ;;  %v5230_v2 = vpop.f32.mrb[6].mxu1  ;;  %v10892_v63 = vld [vmem:[#allocation29_spill] sm:$0xff]  ;;  %v10893_v0 = vld [vmem:[#allocation30_spill] sm:$0xff] }
 0x373   : > { %6018 = vst [vmem:[%s9858_s22 + $0xf8] sm:$0xff] %v5920_v48  ;;  %v5718_v50 = vmax.f32 %v10879_v55, %v5620_v49  ;;  %v5621_v15 = vmax.f32 %v4314_v1, %v5230_v2  ;;  %v7554_v16 = vpop.f32.mrb[7].mxu0  ;;  %v7760_v7 = vpop.f32.mrb[7].mxu1 }
 0x374   : > { %v8113_v7 = vld [vmem:[%s8622_s10 + $0x480] sm:$0xff]  }
 0x375   : > { %v5823_v38 = vadd.f32 %v9844_v5, %v5718_v50  ;;  %v5719_v6 = vmax.f32 %v10882_v4, %v5621_v15  ;;  %7660 = vmatmul.mubr.msk.bf16.gmra.mrb[112].mxu0 %vm2162_vm3, %v8107_v32  ;;  %7866 = vmatmul.mubr.msk.bf16.gmra.mrb[112].mxu1 %vm2162_vm3, %v8108_v33  ;;  %v10894_v32 = vmax.f32 %v10892_v63, %v10893_v0  ;;  %v10895_v4 = vld [vmem:[#allocation31_spill] sm:$0xff] }
 0x376   : > { %7663 = vmatprep.mubr.msk.bf16.mxu0 %vm8146_vm2, %v10688_v10  ;;  %7869 = vmatprep.mubr.msk.bf16.mxu1 %vm8146_vm2, %v10688_v10 }
 0x377   : > { %v5921_v36 = vmax.f32 %v5823_v38, 0.0  ;;  %v5824_v37 = vadd.f32 %v9844_v5, %v5719_v6  ;;  %v8114_v38 = vld [vmem:[%s8622_s10 + $0x608] sm:$0xff]  }
 0x378   : > { %v4319_v11 = vpop.f32.mrb[8].mxu0  ;;  %v5235_v21 = vpop.f32.mrb[8].mxu1  ;;  %v10896_v6 = vld [vmem:[#allocation32_spill] sm:$0xff] }
 0x379   : > { %6019 = vst [vmem:[%s9858_s22 + $0x100] sm:$0xff] %v5921_v36  ;;  %v5922_v56 = vmax.f32 %v5824_v37, 0.0  ;;  %v5622_v22 = vmax.f32 %v4319_v11, %v5235_v21  ;;  %v7557_v17 = vpop.f32.mrb[9].mxu0  ;;  %v7763_v18 = vpop.f32.mrb[9].mxu1  ;;  %v10897_v36 = vmax.f32 %v10895_v4, %v10896_v6 }
 0x37a   : > { %v4322_v45 = vpop.f32.mrb[10].mxu0  ;;  %v5238_v46 = vpop.f32.mrb[10].mxu1  ;;  %v10898_v17 = vld [vmem:[#allocation33_spill] sm:$0xff]  ;;  %v10899_v18 = vld [vmem:[#allocation34_spill] sm:$0xff] }
 0x37b   : > { %6020 = vst [vmem:[%s9858_s22 + $0x108] sm:$0xff] %v5922_v56  ;;  %v5720_v54 = vmax.f32 %v10885_v53, %v5622_v22  ;;  %v5623_v23 = vmax.f32 %v4322_v45, %v5238_v46  ;;  %v7558_v27 = vpop.f32.mrb[11].mxu0  ;;  %v7764_v24 = vpop.f32.mrb[11].mxu1 }
 0x37c   : > { %v8115_v24 = vld [vmem:[%s8622_s10 + $0x488] sm:$0xff]  }
 0x37d   : > { %v5825_v25 = vadd.f32 %v9844_v5, %v5720_v54  ;;  %v5721_v61 = vmax.f32 %v10888_v60, %v5623_v23  ;;  %7664 = vmatmul.mubr.msk.bf16.gmra.mrb[116].mxu0 %vm2162_vm3, %v8109_v3  ;;  %7870 = vmatmul.mubr.msk.bf16.gmra.mrb[116].mxu1 %vm2162_vm3, %v8110_v57  ;;  %v10900_v3 = vmax.f32 %v10898_v17, %v10899_v18  ;;  %v10901_v60 = vld [vmem:[#allocation35_spill] sm:$0xff]  ;;  %v10914_v17 = vld [vmem:[#allocation44_spill] sm:$0xff] }
 0x37e   : > { %7667 = vmatprep.mubr.msk.bf16.mxu0 %vm8146_vm2, %v10688_v10  ;;  %7873 = vmatprep.mubr.msk.bf16.mxu1 %vm8146_vm2, %v10688_v10 }
 0x37f   : > { %v5923_v19 = vmax.f32 %v5825_v25, 0.0  ;;  %v5826_v44 = vadd.f32 %v9844_v5, %v5721_v61  ;;  %v8116_v25 = vld [vmem:[%s8622_s10 + $0x610] sm:$0xff]   ;;  %v10902_v61 = vld [vmem:[#allocation36_spill] sm:$0xff] }
 0x380   : > { %v4327_v59 = vpop.f32.mrb[12].mxu0  ;;  %v5243_v9 = vpop.f32.mrb[12].mxu1 }
 0x381   : > { %6021 = vst [vmem:[%s9858_s22 + $0x110] sm:$0xff] %v5923_v19  ;;  %v5924_v28 = vmax.f32 %v5826_v44, 0.0  ;;  %v5624_v8 = vmax.f32 %v4327_v59, %v5243_v9  ;;  %v7561_v35 = vpop.f32.mrb[13].mxu0  ;;  %v7767_v58 = vpop.f32.mrb[13].mxu1  ;;  %v10903_v19 = vmax.f32 %v10901_v60, %v10902_v61 }
 0x382   : > { %v4330_v20 = vpop.f32.mrb[14].mxu0  ;;  %v5246_v26 = vpop.f32.mrb[14].mxu1  ;;  %v10904_v35 = vld [vmem:[#allocation37_spill] sm:$0xff]  ;;  %v10905_v58 = vld [vmem:[#allocation38_spill] sm:$0xff] }
 0x383   : > { %6022 = vst [vmem:[%s9858_s22 + $0x118] sm:$0xff] %v5924_v28  ;;  %v5722_v43 = vmax.f32 %v10891_v31, %v5624_v8  ;;  %v5625_v47 = vmax.f32 %v4330_v20, %v5246_v26  ;;  %v7562_v51 = vpop.f32.mrb[15].mxu0  ;;  %v7768_v48 = vpop.f32.mrb[15].mxu1 }
 0x384   : > { %v8117_v48 = vld [vmem:[%s8622_s10 + $0x490] sm:$0xff]  }
 0x385   : > { %v5827_v49 = vadd.f32 %v9844_v5, %v5722_v43  ;;  %v5723_v33 = vmax.f32 %v10894_v32, %v5625_v47  ;;  %7668 = vmatmul.mubr.msk.bf16.gmra.mrb[120].mxu0 %vm2162_vm3, %v8111_v14  ;;  %7874 = vmatmul.mubr.msk.bf16.gmra.mrb[120].mxu1 %vm2162_vm3, %v8112_v62  ;;  %v10906_v14 = vmax.f32 %v10904_v35, %v10905_v58  ;;  %v10907_v32 = vld [vmem:[#allocation39_spill] sm:$0xff] }
 0x386   : > { %7671 = vmatprep.mubr.msk.bf16.mxu0 %vm8146_vm2, %v10688_v10  ;;  %7877 = vmatprep.mubr.msk.bf16.mxu1 %vm8146_vm2, %v10688_v10 }
 0x387   : > { %v5925_v1 = vmax.f32 %v5827_v49, 0.0  ;;  %v5828_v2 = vadd.f32 %v9844_v5, %v5723_v33  ;;  %v8118_v49 = vld [vmem:[%s8622_s10 + $0x618] sm:$0xff]   ;;  %v10908_v33 = vld [vmem:[#allocation40_spill] sm:$0xff] }
 0x388   : > { %v4335_v52 = vpop.f32.mrb[16].mxu0  ;;  %v5251_v34 = vpop.f32.mrb[16].mxu1 }
 0x389   : > { %6023 = vst [vmem:[%s9858_s22 + $0x120] sm:$0xff] %v5925_v1  ;;  %v5926_v55 = vmax.f32 %v5828_v2, 0.0  ;;  %v5626_v50 = vmax.f32 %v4335_v52, %v5251_v34  ;;  %v7565_v15 = vpop.f32.mrb[17].mxu0  ;;  %v7771_v16 = vpop.f32.mrb[17].mxu1  ;;  %v10909_v1 = vmax.f32 %v10907_v32, %v10908_v33  ;;  %v10235_v34 = vld [vmem:[%s10528_s2] ss:$0 sm:$0xff] }
 0x38a   : > { %v4338_v29 = vpop.f32.mrb[18].mxu0  ;;  %v5254_v30 = vpop.f32.mrb[18].mxu1  ;;  %v10911_v15 = vld [vmem:[#allocation42_spill] sm:$0xff] }
 0x38b   : > { %6024 = vst [vmem:[%s9858_s22 + $0x128] sm:$0xff] %v5926_v55  ;;  %v5724_v37 = vmax.f32 %v10897_v36, %v5626_v50  ;;  %v5627_v11 = vmax.f32 %v4338_v29, %v5254_v30  ;;  %v7566_v21 = vpop.f32.mrb[19].mxu0  ;;  %v7772_v56 = vpop.f32.mrb[19].mxu1  ;;  %v10910_v50 = vld [vmem:[#allocation41_spill] sm:$0xff] }
 0x38c   : > { %v10912_v16 = vmax.f32 %v10910_v50, %v10911_v15 }
 0x38d   : > { %v5829_v22 = vadd.f32 %v9844_v5, %v5724_v37  ;;  %v5725_v57 = vmax.f32 %v10900_v3, %v5627_v11  ;;  %7672 = vmatmul.mubr.msk.bf16.gmra.mrb[124].mxu0 %vm2162_vm3, %v8113_v7  ;;  %7878 = vmatmul.mubr.msk.bf16.gmra.mrb[124].mxu1 %vm2162_vm3, %v8114_v38 }
 0x38e   : > { %7675 = vmatprep.mubr.msk.bf16.mxu0 %vm8146_vm2, %v10688_v10  ;;  %7881 = vmatprep.mubr.msk.bf16.mxu1 %vm8146_vm2, %v10688_v10 }
 0x38f   : > { %v5927_v45 = vmax.f32 %v5829_v22, 0.0  ;;  %v5830_v46 = vadd.f32 %v9844_v5, %v5725_v57  ;;  %v10913_v22 = vld [vmem:[#allocation43_spill] sm:$0xff] }
 0x390   : > { %v4343_v12 = vpop.f32.mrb[20].mxu0  ;;  %v5259_v13 = vpop.f32.mrb[20].mxu1  ;;  %v10915_v18 = vmax.f32 %v10913_v22, %v10914_v17 }
 0x391   : > { %6025 = vst [vmem:[%s9858_s22 + $0x130] sm:$0xff] %v5927_v45  ;;  %v5928_v53 = vmax.f32 %v5830_v46, 0.0  ;;  %v5628_v54 = vmax.f32 %v4343_v12, %v5259_v13  ;;  %v7569_v23 = vpop.f32.mrb[21].mxu0  ;;  %v7775_v27 = vpop.f32.mrb[21].mxu1  ;;  %v10916_v13 = vld [vmem:[#allocation45_spill] sm:$0xff] }
 0x392   : > { %v4346_v39 = vpop.f32.mrb[22].mxu0  ;;  %v5262_v40 = vpop.f32.mrb[22].mxu1 }
 0x393   : > { %6026 = vst [vmem:[%s9858_s22 + $0x138] sm:$0xff] %v5928_v53  ;;  %v5726_v44 = vmax.f32 %v10903_v19, %v5628_v54  ;;  %v5629_v59 = vmax.f32 %v4346_v39, %v5262_v40  ;;  %v7570_v9 = vpop.f32.mrb[23].mxu0  ;;  %v7776_v28 = vpop.f32.mrb[23].mxu1  ;;  %v10917_v53 = vld [vmem:[#allocation46_spill] sm:$0xff] }
 0x394   : > { %v10918_v54 = vmax.f32 %v10916_v13, %v10917_v53  ;;  %v10919_v9 = vld [vmem:[#allocation47_spill] sm:$0xff]  ;;  %v10920_v28 = vld [vmem:[#allocation48_spill] sm:$0xff] }
 0x395   : > { %v5831_v8 = vadd.f32 %v9844_v5, %v5726_v44  ;;  %v5727_v62 = vmax.f32 %v10906_v14, %v5629_v59  ;;  %7676 = vmatmul.mubr.msk.bf16.gmra.mrb[128].mxu0 %vm2162_vm3, %v8115_v24  ;;  %7882 = vmatmul.mubr.msk.bf16.gmra.mrb[128].mxu1 %vm2162_vm3, %v8116_v25 }
 0x396   : > { %7679 = vmatprep.mubr.msk.bf16.mxu0 %vm8146_vm2, %v10688_v10  ;;  %7885 = vmatprep.mubr.msk.bf16.mxu1 %vm8146_vm2, %v10688_v10 }
 0x397   : > { %v5929_v20 = vmax.f32 %v5831_v8, 0.0  ;;  %v5832_v26 = vadd.f32 %v9844_v5, %v5727_v62  ;;  %v10921_v8 = vmax.f32 %v10919_v9, %v10920_v28 }
 0x398   : > { %v4351_v41 = vpop.f32.mrb[24].mxu0  ;;  %v5267_v42 = vpop.f32.mrb[24].mxu1 }
 0x399   : > { %6027 = vst [vmem:[%s9858_s22 + $0x140] sm:$0xff] %v5929_v20  ;;  %v5930_v31 = vmax.f32 %v5832_v26, 0.0  ;;  %v5630_v43 = vmax.f32 %v4351_v41, %v5267_v42  ;;  %v7573_v47 = vpop.f32.mrb[25].mxu0  ;;  %v7779_v51 = vpop.f32.mrb[25].mxu1  ;;  %v10922_v26 = vld [vmem:[#allocation49_spill] sm:$0xff]  ;;  %v10923_v41 = vld [vmem:[#allocation50_spill] sm:$0xff] }
 0x39a   : > { %v4354_v63 = vpop.f32.mrb[26].mxu0  ;;  %v5270_v0 = vpop.f32.mrb[26].mxu1  ;;  %v10924_v42 = vmax.f32 %v10922_v26, %v10923_v41 }
 0x39b   : > { %6028 = vst [vmem:[%s9858_s22 + $0x148] sm:$0xff] %v5930_v31  ;;  %v5728_v10 = vmax.f32 %v10909_v1, %v5630_v43  ;;  %v5631_v2 = vmax.f32 %v4354_v63, %v5270_v0  ;;  %v7574_v52 = vpop.f32.mrb[27].mxu0  ;;  %v7780_v5 = vpop.f32.mrb[27].mxu1 }
 0x39d   : > { %v5833_v55 = vadd.f32 %v10235_v34, %v5728_v10  ;;  %v5729_v7 = vmax.f32 %v10912_v16, %v5631_v2  ;;  %7680 = vmatmul.mubr.msk.bf16.gmra.mrb[132].mxu0 %vm2162_vm3, %v8117_v48  ;;  %7886 = vmatmul.mubr.msk.bf16.gmra.mrb[132].mxu1 %vm2162_vm3, %v8118_v49  ;;  %v10925_v10 = vld [vmem:[#allocation51_spill] sm:$0xff]  ;;  %v10926_v2 = vld [vmem:[#allocation52_spill] sm:$0xff] }
 0x39e   : > { %v10927_v52 = vmax.f32 %v10925_v10, %v10926_v2 }
 0x39f   : > { %v5931_v38 = vmax.f32 %v5833_v55, 0.0  ;;  %v5834_v29 = vadd.f32 %v10235_v34, %v5729_v7  ;;  %v10928_v7 = vld [vmem:[#allocation53_spill] sm:$0xff] }
 0x3a0   : > { %v4359_v30 = vpop.f32.mrb[28].mxu0  ;;  %v5275_v4 = vpop.f32.mrb[28].mxu1 }
 0x3a1   : > { %6029 = vst [vmem:[%s9858_s22 + $0x150] sm:$0xff] %v5931_v38  ;;  %v5932_v6 = vmax.f32 %v5834_v29, 0.0  ;;  %v5632_v36 = vmax.f32 %v4359_v30, %v5275_v4  ;;  %v7577_v37 = vpop.f32.mrb[29].mxu0  ;;  %v7783_v11 = vpop.f32.mrb[29].mxu1  ;;  %v10929_v38 = vld [vmem:[#allocation54_spill] sm:$0xff] }
 0x3a2   : > { %v4362_v21 = vpop.f32.mrb[30].mxu0  ;;  %v5278_v56 = vpop.f32.mrb[30].mxu1  ;;  %v10930_v29 = vmax.f32 %v10928_v7, %v10929_v38 }
 0x3a3   : > { %6030 = vst [vmem:[%s9858_s22 + $0x158] sm:$0xff] %v5932_v6  ;;  %v5730_v3 = vmax.f32 %v10915_v18, %v5632_v36  ;;  %v5633_v57 = vmax.f32 %v4362_v21, %v5278_v56  ;;  %v7578_v45 = vpop.f32.mrb[31].mxu0  ;;  %v7784_v46 = vpop.f32.mrb[31].mxu1 }
 0x3a5   : > { %v5835_v12 = vadd.f32 %v10235_v34, %v5730_v3  ;;  %v5731_v23 = vmax.f32 %v10918_v54, %v5633_v57  ;;  %v10931_v3 = vld [vmem:[#allocation55_spill] sm:$0xff]  ;;  %v10932_v57 = vld [vmem:[#allocation56_spill] sm:$0xff] }
 0x3a6   : > { %v10933_v45 = vmax.f32 %v10931_v3, %v10932_v57 }
 0x3a7   : > { %v5933_v27 = vmax.f32 %v5835_v12, 0.0  ;;  %v5836_v24 = vadd.f32 %v10235_v34, %v5731_v23  ;;  %v10934_v23 = vld [vmem:[#allocation57_spill] sm:$0xff] }
 0x3a8   : > { %v4367_v25 = vpop.f32.mrb[32].mxu0  ;;  %v5283_v39 = vpop.f32.mrb[32].mxu1 }
 0x3a9   : > { %6031 = vst [vmem:[%s9858_s22 + $0x160] sm:$0xff] %v5933_v27  ;;  %v5934_v40 = vmax.f32 %v5836_v24, 0.0  ;;  %v5634_v60 = vmax.f32 %v4367_v25, %v5283_v39  ;;  %v7581_v61 = vpop.f32.mrb[33].mxu0  ;;  %v7787_v19 = vpop.f32.mrb[33].mxu1  ;;  %v10935_v27 = vld [vmem:[#allocation58_spill] sm:$0xff] }
 0x3aa   : > { %v4370_v44 = vpop.f32.mrb[34].mxu0  ;;  %v5286_v59 = vpop.f32.mrb[34].mxu1  ;;  %v10936_v24 = vmax.f32 %v10934_v23, %v10935_v27 }
 0x3ab   : > { %6032 = vst [vmem:[%s9858_s22 + $0x168] sm:$0xff] %v5934_v40  ;;  %v5732_v35 = vmax.f32 %v10921_v8, %v5634_v60  ;;  %v5635_v58 = vmax.f32 %v4370_v44, %v5286_v59  ;;  %v7582_v14 = vpop.f32.mrb[35].mxu0  ;;  %v7788_v62 = vpop.f32.mrb[35].mxu1 }
 0x3ad   : > { %v5837_v20 = vadd.f32 %v10235_v34, %v5732_v35  ;;  %v5733_v31 = vmax.f32 %v10924_v42, %v5635_v58  ;;  %v10937_v35 = vld [vmem:[#allocation59_spill] sm:$0xff]  ;;  %v10938_v58 = vld [vmem:[#allocation60_spill] sm:$0xff] }
 0x3ae   : > { %v10939_v14 = vmax.f32 %v10937_v35, %v10938_v58 }
 0x3af   : > { %v5935_v43 = vmax.f32 %v5837_v20, 0.0  ;;  %v5838_v47 = vadd.f32 %v10235_v34, %v5733_v31  ;;  %v10940_v31 = vld [vmem:[#allocation61_spill] sm:$0xff] }
 0x3b0   : > { %v4375_v51 = vpop.f32.mrb[36].mxu0  ;;  %v5291_v48 = vpop.f32.mrb[36].mxu1 }
 0x3b1   : > { %6033 = vst [vmem:[%s9858_s22 + $0x170] sm:$0xff] %v5935_v43  ;;  %v5936_v49 = vmax.f32 %v5838_v47, 0.0  ;;  %v5636_v63 = vmax.f32 %v4375_v51, %v5291_v48  ;;  %v7585_v0 = vpop.f32.mrb[37].mxu0  ;;  %v7791_v32 = vpop.f32.mrb[37].mxu1  ;;  %v10941_v43 = vld [vmem:[#allocation62_spill] sm:$0xff] }
 0x3b2   : > { %v4378_v33 = vpop.f32.mrb[38].mxu0  ;;  %v5294_v1 = vpop.f32.mrb[38].mxu1  ;;  %v10942_v47 = vmax.f32 %v10940_v31, %v10941_v43 }
 0x3b3   : > { %6034 = vst [vmem:[%s9858_s22 + $0x178] sm:$0xff] %v5936_v49  ;;  %v5734_v5 = vmax.f32 %v10927_v52, %v5636_v63  ;;  %v5637_v55 = vmax.f32 %v4378_v33, %v5294_v1  ;;  %v7586_v50 = vpop.f32.mrb[39].mxu0  ;;  %v7792_v15 = vpop.f32.mrb[39].mxu1 }
 0x3b5   : > { %v5839_v16 = vadd.f32 %v10235_v34, %v5734_v5  ;;  %v5735_v30 = vmax.f32 %v10930_v29, %v5637_v55  ;;  %v10943_v5 = vld [vmem:[#allocation63_spill] sm:$0xff]  ;;  %v10944_v55 = vld [vmem:[#allocation64_spill] sm:$0xff] }
 0x3b6   : > { %v10945_v50 = vmax.f32 %v10943_v5, %v10944_v55 }
 0x3b7   : > { %v5937_v4 = vmax.f32 %v5839_v16, 0.0  ;;  %v5840_v6 = vadd.f32 %v10235_v34, %v5735_v30  ;;  %v10946_v30 = vld [vmem:[#allocation65_spill] sm:$0xff] }
 0x3b8   : > { %v4383_v36 = vpop.f32.mrb[40].mxu0  ;;  %v5299_v37 = vpop.f32.mrb[40].mxu1 }
 0x3b9   : > { %6035 = vst [vmem:[%s9858_s22 + $0x180] sm:$0xff] %v5937_v4  ;;  %v5938_v11 = vmax.f32 %v5840_v6, 0.0  ;;  %v5638_v21 = vmax.f32 %v4383_v36, %v5299_v37  ;;  %v7589_v56 = vpop.f32.mrb[41].mxu0  ;;  %v7795_v22 = vpop.f32.mrb[41].mxu1  ;;  %v10947_v4 = vld [vmem:[#allocation66_spill] sm:$0xff] }
 0x3ba   : > { %v4386_v17 = vpop.f32.mrb[42].mxu0  ;;  %v5302_v18 = vpop.f32.mrb[42].mxu1  ;;  %v10948_v6 = vmax.f32 %v10946_v30, %v10947_v4 }
 0x3bb   : > { %6036 = vst [vmem:[%s9858_s22 + $0x188] sm:$0xff] %v5938_v11  ;;  %v5736_v46 = vmax.f32 %v10933_v45, %v5638_v21  ;;  %v5639_v12 = vmax.f32 %v4386_v17, %v5302_v18  ;;  %v7590_v13 = vpop.f32.mrb[43].mxu0  ;;  %v7796_v53 = vpop.f32.mrb[43].mxu1 }
 0x3bd   : > { %v5841_v54 = vadd.f32 %v10235_v34, %v5736_v46  ;;  %v5737_v25 = vmax.f32 %v10936_v24, %v5639_v12  ;;  %v10949_v46 = vld [vmem:[#allocation67_spill] sm:$0xff]  ;;  %v10950_v12 = vld [vmem:[#allocation68_spill] sm:$0xff] }
 0x3be   : > { %v10951_v13 = vmax.f32 %v10949_v46, %v10950_v12 }
 0x3bf   : > { %v5939_v39 = vmax.f32 %v5841_v54, 0.0  ;;  %v5842_v40 = vadd.f32 %v10235_v34, %v5737_v25  ;;  %v10952_v25 = vld [vmem:[#allocation69_spill] sm:$0xff] }
 0x3c0   : > { %v4391_v60 = vpop.f32.mrb[44].mxu0  ;;  %v5307_v61 = vpop.f32.mrb[44].mxu1 }
 0x3c1   : > { %6037 = vst [vmem:[%s9858_s22 + $0x190] sm:$0xff] %v5939_v39  ;;  %v5940_v19 = vmax.f32 %v5842_v40, 0.0  ;;  %v5640_v44 = vmax.f32 %v4391_v60, %v5307_v61  ;;  %v7593_v59 = vpop.f32.mrb[45].mxu0  ;;  %v7799_v9 = vpop.f32.mrb[45].mxu1  ;;  %v10953_v39 = vld [vmem:[#allocation70_spill] sm:$0xff] }
 0x3c2   : > { %v4394_v28 = vpop.f32.mrb[46].mxu0  ;;  %v5310_v8 = vpop.f32.mrb[46].mxu1  ;;  %v10954_v40 = vmax.f32 %v10952_v25, %v10953_v39 }
 0x3c3   : > { %6038 = vst [vmem:[%s9858_s22 + $0x198] sm:$0xff] %v5940_v19  ;;  %v5738_v62 = vmax.f32 %v10939_v14, %v5640_v44  ;;  %v5641_v20 = vmax.f32 %v4394_v28, %v5310_v8  ;;  %v7594_v26 = vpop.f32.mrb[47].mxu0  ;;  %v7800_v41 = vpop.f32.mrb[47].mxu1 }
 0x3c5   : > { %v5843_v42 = vadd.f32 %v10235_v34, %v5738_v62  ;;  %v5739_v51 = vmax.f32 %v10942_v47, %v5641_v20  ;;  %v10955_v62 = vld [vmem:[#allocation71_spill] sm:$0xff]  ;;  %v10956_v20 = vld [vmem:[#allocation72_spill] sm:$0xff] }
 0x3c6   : > { %v10957_v26 = vmax.f32 %v10955_v62, %v10956_v20 }
 0x3c7   : > { %v5941_v48 = vmax.f32 %v5843_v42, 0.0  ;;  %v5844_v49 = vadd.f32 %v10235_v34, %v5739_v51  ;;  %v10958_v51 = vld [vmem:[#allocation73_spill] sm:$0xff] }
 0x3c8   : > { %v4399_v63 = vpop.f32.mrb[48].mxu0  ;;  %v5315_v0 = vpop.f32.mrb[48].mxu1 }
 0x3c9   : > { %6039 = vst [vmem:[%s9858_s22 + $0x1a0] sm:$0xff] %v5941_v48  ;;  %v5942_v32 = vmax.f32 %v5844_v49, 0.0  ;;  %v5642_v33 = vmax.f32 %v4399_v63, %v5315_v0  ;;  %v7597_v1 = vpop.f32.mrb[49].mxu0  ;;  %v7803_v10 = vpop.f32.mrb[49].mxu1  ;;  %v10959_v48 = vld [vmem:[#allocation74_spill] sm:$0xff] }
 0x3ca   : > { %v4402_v2 = vpop.f32.mrb[50].mxu0  ;;  %v5318_v52 = vpop.f32.mrb[50].mxu1  ;;  %v10960_v49 = vmax.f32 %v10958_v51, %v10959_v48 }
 0x3cb   : > { %6040 = vst [vmem:[%s9858_s22 + $0x1a8] sm:$0xff] %v5942_v32  ;;  %v5740_v15 = vmax.f32 %v10945_v50, %v5642_v33  ;;  %v5643_v16 = vmax.f32 %v4402_v2, %v5318_v52  ;;  %v7598_v7 = vpop.f32.mrb[51].mxu0  ;;  %v7804_v38 = vpop.f32.mrb[51].mxu1 }
 0x3cd   : > { %v5845_v29 = vadd.f32 %v10235_v34, %v5740_v15  ;;  %v5741_v36 = vmax.f32 %v10948_v6, %v5643_v16  ;;  %v10961_v15 = vld [vmem:[#allocation75_spill] sm:$0xff]  ;;  %v10962_v16 = vld [vmem:[#allocation76_spill] sm:$0xff] }
 0x3ce   : > { %v10963_v7 = vmax.f32 %v10961_v15, %v10962_v16 }
 0x3cf   : > { %v5943_v37 = vmax.f32 %v5845_v29, 0.0  ;;  %v5846_v11 = vadd.f32 %v10235_v34, %v5741_v36  ;;  %v10964_v36 = vld [vmem:[#allocation77_spill] sm:$0xff] }
 0x3d0   : > { %v4407_v21 = vpop.f32.mrb[52].mxu0  ;;  %v5323_v56 = vpop.f32.mrb[52].mxu1 }
 0x3d1   : > { %6041 = vst [vmem:[%s9858_s22 + $0x1b0] sm:$0xff] %v5943_v37  ;;  %v5944_v22 = vmax.f32 %v5846_v11, 0.0  ;;  %v5644_v17 = vmax.f32 %v4407_v21, %v5323_v56  ;;  %v7601_v18 = vpop.f32.mrb[53].mxu0  ;;  %v7807_v3 = vpop.f32.mrb[53].mxu1  ;;  %v10965_v37 = vld [vmem:[#allocation78_spill] sm:$0xff] }
 0x3d2   : > { %v4410_v57 = vpop.f32.mrb[54].mxu0  ;;  %v5326_v45 = vpop.f32.mrb[54].mxu1  ;;  %v10966_v11 = vmax.f32 %v10964_v36, %v10965_v37 }
 0x3d3   : > { %6042 = vst [vmem:[%s9858_s22 + $0x1b8] sm:$0xff] %v5944_v22  ;;  %v5742_v53 = vmax.f32 %v10951_v13, %v5644_v17  ;;  %v5645_v54 = vmax.f32 %v4410_v57, %v5326_v45  ;;  %v7602_v23 = vpop.f32.mrb[55].mxu0  ;;  %v7808_v27 = vpop.f32.mrb[55].mxu1 }
 0x3d5   : > { %v5847_v24 = vadd.f32 %v10235_v34, %v5742_v53  ;;  %v5743_v60 = vmax.f32 %v10954_v40, %v5645_v54  ;;  %v10967_v53 = vld [vmem:[#allocation79_spill] sm:$0xff]  ;;  %v10968_v54 = vld [vmem:[#allocation80_spill] sm:$0xff] }
 0x3d6   : > { %v10969_v23 = vmax.f32 %v10967_v53, %v10968_v54 }
 0x3d7   : > { %v5945_v61 = vmax.f32 %v5847_v24, 0.0  ;;  %v5848_v19 = vadd.f32 %v10235_v34, %v5743_v60  ;;  %v10970_v60 = vld [vmem:[#allocation81_spill] sm:$0xff] }
 0x3d8   : > { %v4415_v44 = vpop.f32.mrb[56].mxu0  ;;  %v5331_v59 = vpop.f32.mrb[56].mxu1 }
 0x3d9   : > { %6043 = vst [vmem:[%s9858_s22 + $0x1c0] sm:$0xff] %v5945_v61  ;;  %v5946_v9 = vmax.f32 %v5848_v19, 0.0  ;;  %v5646_v28 = vmax.f32 %v4415_v44, %v5331_v59  ;;  %v7605_v8 = vpop.f32.mrb[57].mxu0  ;;  %v7811_v35 = vpop.f32.mrb[57].mxu1  ;;  %v10971_v61 = vld [vmem:[#allocation82_spill] sm:$0xff] }
 0x3da   : > { %v4418_v58 = vpop.f32.mrb[58].mxu0  ;;  %v5334_v14 = vpop.f32.mrb[58].mxu1  ;;  %v10972_v19 = vmax.f32 %v10970_v60, %v10971_v61 }
 0x3db   : > { %6044 = vst [vmem:[%s9858_s22 + $0x1c8] sm:$0xff] %v5946_v9  ;;  %v5744_v41 = vmax.f32 %v10957_v26, %v5646_v28  ;;  %v5647_v42 = vmax.f32 %v4418_v58, %v5334_v14  ;;  %v7606_v31 = vpop.f32.mrb[59].mxu0  ;;  %v7812_v43 = vpop.f32.mrb[59].mxu1 }
 0x3dd   : > { %v5849_v47 = vadd.f32 %v10235_v34, %v5744_v41  ;;  %v5745_v63 = vmax.f32 %v10960_v49, %v5647_v42  ;;  %v10973_v41 = vld [vmem:[#allocation83_spill] sm:$0xff]  ;;  %v10974_v42 = vld [vmem:[#allocation84_spill] sm:$0xff] }
 0x3de   : > { %v10975_v31 = vmax.f32 %v10973_v41, %v10974_v42 }
 0x3df   : > { %v5947_v0 = vmax.f32 %v5849_v47, 0.0  ;;  %v5850_v32 = vadd.f32 %v10235_v34, %v5745_v63  ;;  %v10976_v63 = vld [vmem:[#allocation85_spill] sm:$0xff] }
 0x3e0   : > { %v4423_v33 = vpop.f32.mrb[60].mxu0  ;;  %v5339_v1 = vpop.f32.mrb[60].mxu1 }
 0x3e1   : > { %6045 = vst [vmem:[%s9858_s22 + $0x1d0] sm:$0xff] %v5947_v0  ;;  %v5948_v10 = vmax.f32 %v5850_v32, 0.0  ;;  %v5648_v2 = vmax.f32 %v4423_v33, %v5339_v1  ;;  %v7609_v52 = vpop.f32.mrb[61].mxu0  ;;  %v7815_v5 = vpop.f32.mrb[61].mxu1  ;;  %v10977_v0 = vld [vmem:[#allocation86_spill] sm:$0xff] }
 0x3e2   : > { %v4426_v55 = vpop.f32.mrb[62].mxu0  ;;  %v5342_v50 = vpop.f32.mrb[62].mxu1  ;;  %v10978_v32 = vmax.f32 %v10976_v63, %v10977_v0 }
 0x3e3   : > { %6046 = vst [vmem:[%s9858_s22 + $0x1d8] sm:$0xff] %v5948_v10  ;;  %v5746_v38 = vmax.f32 %v10963_v7, %v5648_v2  ;;  %v5649_v29 = vmax.f32 %v4426_v55, %v5342_v50  ;;  %v7610_v30 = vpop.f32.mrb[63].mxu0  ;;  %v7816_v4 = vpop.f32.mrb[63].mxu1 }
 0x3e5   : > { %v5851_v6 = vadd.f32 %v10235_v34, %v5746_v38  ;;  %v5747_v21 = vmax.f32 %v10966_v11, %v5649_v29  ;;  %v10979_v38 = vld [vmem:[#allocation87_spill] sm:$0xff]  ;;  %v10980_v29 = vld [vmem:[#allocation88_spill] sm:$0xff] }
 0x3e6   : > { %v10981_v30 = vmax.f32 %v10979_v38, %v10980_v29 }
 0x3e7   : > { %v5949_v56 = vmax.f32 %v5851_v6, 0.0  ;;  %v5852_v22 = vadd.f32 %v10235_v34, %v5747_v21  ;;  %v10982_v21 = vld [vmem:[#allocation89_spill] sm:$0xff] }
 0x3e8   : > { %v4431_v17 = vpop.f32.mrb[64].mxu0  ;;  %v5347_v18 = vpop.f32.mrb[64].mxu1 }
 0x3e9   : > { %6047 = vst [vmem:[%s9858_s22 + $0x1e0] sm:$0xff] %v5949_v56  ;;  %v5950_v3 = vmax.f32 %v5852_v22, 0.0  ;;  %v5650_v57 = vmax.f32 %v4431_v17, %v5347_v18  ;;  %v7613_v45 = vpop.f32.mrb[65].mxu0  ;;  %v7819_v46 = vpop.f32.mrb[65].mxu1  ;;  %v10983_v56 = vld [vmem:[#allocation90_spill] sm:$0xff] }
 0x3ea   : > { %v4434_v12 = vpop.f32.mrb[66].mxu0  ;;  %v5350_v13 = vpop.f32.mrb[66].mxu1  ;;  %v10984_v22 = vmax.f32 %v10982_v21, %v10983_v56 }
 0x3eb   : > { %6048 = vst [vmem:[%s9858_s22 + $0x1e8] sm:$0xff] %v5950_v3  ;;  %v5748_v27 = vmax.f32 %v10969_v23, %v5650_v57  ;;  %v5651_v24 = vmax.f32 %v4434_v12, %v5350_v13  ;;  %v7614_v25 = vpop.f32.mrb[67].mxu0  ;;  %v7820_v39 = vpop.f32.mrb[67].mxu1 }
 0x3ed   : > { %v5853_v40 = vadd.f32 %v10235_v34, %v5748_v27  ;;  %v5749_v44 = vmax.f32 %v10972_v19, %v5651_v24  ;;  %v10985_v27 = vld [vmem:[#allocation91_spill] sm:$0xff]  ;;  %v10986_v24 = vld [vmem:[#allocation92_spill] sm:$0xff] }
 0x3ee   : > { %v10987_v25 = vmax.f32 %v10985_v27, %v10986_v24 }
 0x3ef   : > { %v5951_v59 = vmax.f32 %v5853_v40, 0.0  ;;  %v5854_v9 = vadd.f32 %v10235_v34, %v5749_v44  ;;  %v10988_v44 = vld [vmem:[#allocation93_spill] sm:$0xff] }
 0x3f0   : > { %v4439_v28 = vpop.f32.mrb[68].mxu0  ;;  %v5355_v8 = vpop.f32.mrb[68].mxu1 }
 0x3f1   : > { %6049 = vst [vmem:[%s9858_s22 + $0x1f0] sm:$0xff] %v5951_v59  ;;  %v5952_v35 = vmax.f32 %v5854_v9, 0.0  ;;  %v5652_v58 = vmax.f32 %v4439_v28, %v5355_v8  ;;  %v7617_v14 = vpop.f32.mrb[69].mxu0  ;;  %v7823_v62 = vpop.f32.mrb[69].mxu1  ;;  %v10989_v59 = vld [vmem:[#allocation94_spill] sm:$0xff] }
 0x3f2   : > { %v4442_v20 = vpop.f32.mrb[70].mxu0  ;;  %v5358_v26 = vpop.f32.mrb[70].mxu1  ;;  %v10990_v9 = vmax.f32 %v10988_v44, %v10989_v59 }
 0x3f3   : > { %6050 = vst [vmem:[%s9858_s22 + $0x1f8] sm:$0xff] %v5952_v35  ;;  %v5750_v43 = vmax.f32 %v10975_v31, %v5652_v58  ;;  %v5653_v47 = vmax.f32 %v4442_v20, %v5358_v26  ;;  %v7618_v51 = vpop.f32.mrb[71].mxu0  ;;  %v7824_v48 = vpop.f32.mrb[71].mxu1 }
 0x3f5   : > { %v5855_v49 = vadd.f32 %v10235_v34, %v5750_v43  ;;  %v5751_v33 = vmax.f32 %v10978_v32, %v5653_v47  ;;  %v10991_v43 = vld [vmem:[#allocation95_spill] sm:$0xff]  ;;  %v10992_v47 = vld [vmem:[#allocation96_spill] sm:$0xff] }
 0x3f6   : > { %v10993_v51 = vmax.f32 %v10991_v43, %v10992_v47 }
 0x3f7   : > { %v5953_v1 = vmax.f32 %v5855_v49, 0.0  ;;  %v5856_v10 = vadd.f32 %v10235_v34, %v5751_v33  ;;  %v10994_v33 = vld [vmem:[#allocation97_spill] sm:$0xff] }
 0x3f8   : > { %v4447_v2 = vpop.f32.mrb[72].mxu0  ;;  %v5363_v52 = vpop.f32.mrb[72].mxu1 }
 0x3f9   : > { %6051 = vst [vmem:[%s9858_s22 + $0x200] sm:$0xff] %v5953_v1  ;;  %v5954_v5 = vmax.f32 %v5856_v10, 0.0  ;;  %v5654_v55 = vmax.f32 %v4447_v2, %v5363_v52  ;;  %v7621_v50 = vpop.f32.mrb[73].mxu0  ;;  %v7827_v15 = vpop.f32.mrb[73].mxu1  ;;  %v10995_v1 = vld [vmem:[#allocation98_spill] sm:$0xff] }
 0x3fa   : > { %v4450_v16 = vpop.f32.mrb[74].mxu0  ;;  %v5366_v7 = vpop.f32.mrb[74].mxu1  ;;  %v10996_v10 = vmax.f32 %v10994_v33, %v10995_v1 }
 0x3fb   : > { %6052 = vst [vmem:[%s9858_s22 + $0x208] sm:$0xff] %v5954_v5  ;;  %v5752_v4 = vmax.f32 %v10981_v30, %v5654_v55  ;;  %v5655_v6 = vmax.f32 %v4450_v16, %v5366_v7  ;;  %v7622_v36 = vpop.f32.mrb[75].mxu0  ;;  %v7828_v37 = vpop.f32.mrb[75].mxu1 }
 0x3fd   : > { %v5857_v11 = vadd.f32 %v10235_v34, %v5752_v4  ;;  %v5753_v17 = vmax.f32 %v10984_v22, %v5655_v6  ;;  %v10997_v4 = vld [vmem:[#allocation99_spill] sm:$0xff]  ;;  %v10998_v6 = vld [vmem:[#allocation100_spill] sm:$0xff] }
 0x3fe   : > { %v10999_v36 = vmax.f32 %v10997_v4, %v10998_v6 }
 0x3ff   : > { %v5955_v18 = vmax.f32 %v5857_v11, 0.0  ;;  %v5858_v3 = vadd.f32 %v10235_v34, %v5753_v17  ;;  %v11000_v17 = vld [vmem:[#allocation101_spill] sm:$0xff] }
 0x400   : > { %v4455_v57 = vpop.f32.mrb[76].mxu0  ;;  %v5371_v45 = vpop.f32.mrb[76].mxu1 }
 0x401   : > { %6053 = vst [vmem:[%s9858_s22 + $0x210] sm:$0xff] %v5955_v18  ;;  %v5956_v46 = vmax.f32 %v5858_v3, 0.0  ;;  %v5656_v12 = vmax.f32 %v4455_v57, %v5371_v45  ;;  %v7625_v13 = vpop.f32.mrb[77].mxu0  ;;  %v7831_v53 = vpop.f32.mrb[77].mxu1  ;;  %v11001_v18 = vld [vmem:[#allocation102_spill] sm:$0xff] }
 0x402   : > { %v4458_v54 = vpop.f32.mrb[78].mxu0  ;;  %v5374_v23 = vpop.f32.mrb[78].mxu1  ;;  %v11002_v3 = vmax.f32 %v11000_v17, %v11001_v18 }
 0x403   : > { %6054 = vst [vmem:[%s9858_s22 + $0x218] sm:$0xff] %v5956_v46  ;;  %v5754_v39 = vmax.f32 %v10987_v25, %v5656_v12  ;;  %v5657_v40 = vmax.f32 %v4458_v54, %v5374_v23  ;;  %v7626_v60 = vpop.f32.mrb[79].mxu0  ;;  %v7832_v61 = vpop.f32.mrb[79].mxu1 }
 0x405   : > { %v5859_v19 = vadd.f32 %v10235_v34, %v5754_v39  ;;  %v5755_v28 = vmax.f32 %v10990_v9, %v5657_v40  ;;  %v11003_v39 = vld [vmem:[#allocation103_spill] sm:$0xff]  ;;  %v11004_v40 = vld [vmem:[#allocation104_spill] sm:$0xff] }
 0x406   : > { %v11005_v60 = vmax.f32 %v11003_v39, %v11004_v40 }
 0x407   : > { %v5957_v8 = vmax.f32 %v5859_v19, 0.0  ;;  %v5860_v35 = vadd.f32 %v10235_v34, %v5755_v28  ;;  %v11006_v28 = vld [vmem:[#allocation105_spill] sm:$0xff] }
 0x408   : > { %v4463_v58 = vpop.f32.mrb[80].mxu0  ;;  %v5379_v14 = vpop.f32.mrb[80].mxu1 }
 0x409   : > { %6055 = vst [vmem:[%s9858_s22 + $0x220] sm:$0xff] %v5957_v8  ;;  %v5958_v62 = vmax.f32 %v5860_v35, 0.0  ;;  %v5658_v20 = vmax.f32 %v4463_v58, %v5379_v14  ;;  %v7629_v26 = vpop.f32.mrb[81].mxu0  ;;  %v7835_v41 = vpop.f32.mrb[81].mxu1  ;;  %v11007_v8 = vld [vmem:[#allocation106_spill] sm:$0xff] }
 0x40a   : > { %v4466_v42 = vpop.f32.mrb[82].mxu0  ;;  %v5382_v31 = vpop.f32.mrb[82].mxu1  ;;  %v11008_v35 = vmax.f32 %v11006_v28, %v11007_v8 }
 0x40b   : > { %6056 = vst [vmem:[%s9858_s22 + $0x228] sm:$0xff] %v5958_v62  ;;  %v5756_v48 = vmax.f32 %v10993_v51, %v5658_v20  ;;  %v5659_v49 = vmax.f32 %v4466_v42, %v5382_v31  ;;  %v7630_v63 = vpop.f32.mrb[83].mxu0  ;;  %v7836_v0 = vpop.f32.mrb[83].mxu1 }
 0x40d   : > { %v5861_v32 = vadd.f32 %v10235_v34, %v5756_v48  ;;  %v5757_v2 = vmax.f32 %v10996_v10, %v5659_v49  ;;  %v11009_v48 = vld [vmem:[#allocation107_spill] sm:$0xff]  ;;  %v11010_v49 = vld [vmem:[#allocation108_spill] sm:$0xff] }
 0x40e   : > { %v11011_v63 = vmax.f32 %v11009_v48, %v11010_v49 }
 0x40f   : > { %v5959_v52 = vmax.f32 %v5861_v32, 0.0  ;;  %v5862_v5 = vadd.f32 %v10235_v34, %v5757_v2  ;;  %v11012_v2 = vld [vmem:[#allocation109_spill] sm:$0xff] }
 0x410   : > { %v4471_v55 = vpop.f32.mrb[84].mxu0  ;;  %v5387_v50 = vpop.f32.mrb[84].mxu1 }
 0x411   : > { %6057 = vst [vmem:[%s9858_s22 + $0x230] sm:$0xff] %v5959_v52  ;;  %v5960_v15 = vmax.f32 %v5862_v5, 0.0  ;;  %v5660_v16 = vmax.f32 %v4471_v55, %v5387_v50  ;;  %v7633_v7 = vpop.f32.mrb[85].mxu0  ;;  %v7839_v38 = vpop.f32.mrb[85].mxu1  ;;  %v11013_v52 = vld [vmem:[#allocation110_spill] sm:$0xff] }
 0x412   : > { %v4474_v29 = vpop.f32.mrb[86].mxu0  ;;  %v5390_v30 = vpop.f32.mrb[86].mxu1  ;;  %v11014_v5 = vmax.f32 %v11012_v2, %v11013_v52 }
 0x413   : > { %6058 = vst [vmem:[%s9858_s22 + $0x238] sm:$0xff] %v5960_v15  ;;  %v5758_v37 = vmax.f32 %v10999_v36, %v5660_v16  ;;  %v5661_v11 = vmax.f32 %v4474_v29, %v5390_v30  ;;  %v7634_v21 = vpop.f32.mrb[87].mxu0  ;;  %v7840_v56 = vpop.f32.mrb[87].mxu1 }
 0x415   : > { %v5863_v22 = vadd.f32 %v10235_v34, %v5758_v37  ;;  %v5759_v57 = vmax.f32 %v11002_v3, %v5661_v11  ;;  %v11015_v37 = vld [vmem:[#allocation111_spill] sm:$0xff]  ;;  %v11016_v11 = vld [vmem:[#allocation112_spill] sm:$0xff] }
 0x416   : > { %v11017_v21 = vmax.f32 %v11015_v37, %v11016_v11 }
 0x417   : > { %v5961_v45 = vmax.f32 %v5863_v22, 0.0  ;;  %v5864_v46 = vadd.f32 %v10235_v34, %v5759_v57  ;;  %v11018_v57 = vld [vmem:[#allocation113_spill] sm:$0xff] }
 0x418   : > { %v4479_v12 = vpop.f32.mrb[88].mxu0  ;;  %v5395_v13 = vpop.f32.mrb[88].mxu1 }
 0x419   : > { %6059 = vst [vmem:[%s9858_s22 + $0x240] sm:$0xff] %v5961_v45  ;;  %v5962_v53 = vmax.f32 %v5864_v46, 0.0  ;;  %v5662_v54 = vmax.f32 %v4479_v12, %v5395_v13  ;;  %v7637_v23 = vpop.f32.mrb[89].mxu0  ;;  %v7843_v27 = vpop.f32.mrb[89].mxu1  ;;  %v11019_v45 = vld [vmem:[#allocation114_spill] sm:$0xff] }
 0x41a   : > { %v4482_v24 = vpop.f32.mrb[90].mxu0  ;;  %v5398_v25 = vpop.f32.mrb[90].mxu1  ;;  %v11020_v46 = vmax.f32 %v11018_v57, %v11019_v45 }
 0x41b   : > { %6060 = vst [vmem:[%s9858_s22 + $0x248] sm:$0xff] %v5962_v53  ;;  %v5760_v61 = vmax.f32 %v11005_v60, %v5662_v54  ;;  %v5663_v19 = vmax.f32 %v4482_v24, %v5398_v25  ;;  %v7638_v44 = vpop.f32.mrb[91].mxu0  ;;  %v7844_v59 = vpop.f32.mrb[91].mxu1 }
 0x41d   : > { %v5865_v9 = vadd.f32 %v10235_v34, %v5760_v61  ;;  %v5761_v58 = vmax.f32 %v11008_v35, %v5663_v19  ;;  %v11021_v61 = vld [vmem:[#allocation115_spill] sm:$0xff]  ;;  %v11022_v19 = vld [vmem:[#allocation116_spill] sm:$0xff] }
 0x41e   : > { %v11023_v44 = vmax.f32 %v11021_v61, %v11022_v19 }
 0x41f   : > { %v5963_v14 = vmax.f32 %v5865_v9, 0.0  ;;  %v5866_v62 = vadd.f32 %v10235_v34, %v5761_v58  ;;  %v11024_v58 = vld [vmem:[#allocation117_spill] sm:$0xff] }
 0x420   : > { %v4487_v20 = vpop.f32.mrb[92].mxu0  ;;  %v5403_v26 = vpop.f32.mrb[92].mxu1 }
 0x421   : > { %6061 = vst [vmem:[%s9858_s22 + $0x250] sm:$0xff] %v5963_v14  ;;  %v5964_v41 = vmax.f32 %v5866_v62, 0.0  ;;  %v5664_v42 = vmax.f32 %v4487_v20, %v5403_v26  ;;  %v7641_v31 = vpop.f32.mrb[93].mxu0  ;;  %v7847_v43 = vpop.f32.mrb[93].mxu1  ;;  %v11025_v14 = vld [vmem:[#allocation118_spill] sm:$0xff] }
 0x422   : > { %v4490_v47 = vpop.f32.mrb[94].mxu0  ;;  %v5406_v51 = vpop.f32.mrb[94].mxu1  ;;  %v11026_v62 = vmax.f32 %v11024_v58, %v11025_v14 }
 0x423   : > { %6062 = vst [vmem:[%s9858_s22 + $0x258] sm:$0xff] %v5964_v41  ;;  %v5762_v0 = vmax.f32 %v11011_v63, %v5664_v42  ;;  %v5665_v32 = vmax.f32 %v4490_v47, %v5406_v51  ;;  %v7642_v33 = vpop.f32.mrb[95].mxu0  ;;  %v7848_v1 = vpop.f32.mrb[95].mxu1 }
 0x425   : > { %v5867_v10 = vadd.f32 %v10235_v34, %v5762_v0  ;;  %v5763_v55 = vmax.f32 %v11014_v5, %v5665_v32  ;;  %v11027_v0 = vld [vmem:[#allocation119_spill] sm:$0xff]  ;;  %v11028_v32 = vld [vmem:[#allocation120_spill] sm:$0xff] }
 0x426   : > { %v11029_v33 = vmax.f32 %v11027_v0, %v11028_v32 }
 0x427   : > { %v5965_v50 = vmax.f32 %v5867_v10, 0.0  ;;  %v5868_v15 = vadd.f32 %v10235_v34, %v5763_v55  ;;  %v11030_v55 = vld [vmem:[#allocation121_spill] sm:$0xff] }
 0x428   : > { %v4495_v16 = vpop.f32.mrb[96].mxu0  ;;  %v5411_v7 = vpop.f32.mrb[96].mxu1 }
 0x429   : > { %6063 = vst [vmem:[%s9858_s22 + $0x260] sm:$0xff] %v5965_v50  ;;  %v5966_v38 = vmax.f32 %v5868_v15, 0.0  ;;  %v5666_v29 = vmax.f32 %v4495_v16, %v5411_v7  ;;  %v7645_v30 = vpop.f32.mrb[97].mxu0  ;;  %v7851_v4 = vpop.f32.mrb[97].mxu1  ;;  %v11031_v50 = vld [vmem:[#allocation122_spill] sm:$0xff] }
 0x42a   : > { %v4498_v6 = vpop.f32.mrb[98].mxu0  ;;  %v5414_v36 = vpop.f32.mrb[98].mxu1  ;;  %v11032_v15 = vmax.f32 %v11030_v55, %v11031_v50 }
 0x42b   : > { %6064 = vst [vmem:[%s9858_s22 + $0x268] sm:$0xff] %v5966_v38  ;;  %v5764_v56 = vmax.f32 %v11017_v21, %v5666_v29  ;;  %v5667_v22 = vmax.f32 %v4498_v6, %v5414_v36  ;;  %v7646_v17 = vpop.f32.mrb[99].mxu0  ;;  %v7852_v18 = vpop.f32.mrb[99].mxu1 }
 0x42d   : > { %v5869_v3 = vadd.f32 %v10235_v34, %v5764_v56  ;;  %v5765_v12 = vmax.f32 %v11020_v46, %v5667_v22  ;;  %v11033_v56 = vld [vmem:[#allocation123_spill] sm:$0xff]  ;;  %v11034_v22 = vld [vmem:[#allocation124_spill] sm:$0xff] }
 0x42e   : > { %v11035_v17 = vmax.f32 %v11033_v56, %v11034_v22 }
 0x42f   : > { %v5967_v13 = vmax.f32 %v5869_v3, 0.0  ;;  %v5870_v53 = vadd.f32 %v10235_v34, %v5765_v12  ;;  %v11036_v12 = vld [vmem:[#allocation125_spill] sm:$0xff] }
 0x430   : > { %v4503_v54 = vpop.f32.mrb[100].mxu0  ;;  %v5419_v23 = vpop.f32.mrb[100].mxu1 }
 0x431   : > { %6065 = vst [vmem:[%s9858_s22 + $0x270] sm:$0xff] %v5967_v13  ;;  %v5968_v27 = vmax.f32 %v5870_v53, 0.0  ;;  %v5668_v24 = vmax.f32 %v4503_v54, %v5419_v23  ;;  %v7649_v25 = vpop.f32.mrb[101].mxu0  ;;  %v7855_v39 = vpop.f32.mrb[101].mxu1  ;;  %v11037_v13 = vld [vmem:[#allocation126_spill] sm:$0xff] }
 0x432   : > { %v4506_v40 = vpop.f32.mrb[102].mxu0  ;;  %v5422_v60 = vpop.f32.mrb[102].mxu1  ;;  %v11038_v53 = vmax.f32 %v11036_v12, %v11037_v13 }
 0x433   : > { %6066 = vst [vmem:[%s9858_s22 + $0x278] sm:$0xff] %v5968_v27  ;;  %v5766_v59 = vmax.f32 %v11023_v44, %v5668_v24  ;;  %v5669_v9 = vmax.f32 %v4506_v40, %v5422_v60  ;;  %v7650_v28 = vpop.f32.mrb[103].mxu0  ;;  %v7856_v8 = vpop.f32.mrb[103].mxu1 }
 0x435   : > { %v5871_v35 = vadd.f32 %v10235_v34, %v5766_v59  ;;  %v5767_v20 = vmax.f32 %v11026_v62, %v5669_v9  ;;  %v11039_v59 = vld [vmem:[#allocation127_spill] sm:$0xff]  ;;  %v11040_v9 = vld [vmem:[#allocation128_spill] sm:$0xff] }
 0x436   : > { %v11041_v28 = vmax.f32 %v11039_v59, %v11040_v9 }
 0x437   : > { %v5969_v26 = vmax.f32 %v5871_v35, 0.0  ;;  %v5872_v41 = vadd.f32 %v10235_v34, %v5767_v20  ;;  %v11042_v20 = vld [vmem:[#allocation129_spill] sm:$0xff] }
 0x438   : > { %v4511_v42 = vpop.f32.mrb[104].mxu0  ;;  %v5427_v31 = vpop.f32.mrb[104].mxu1 }
 0x439   : > { %6067 = vst [vmem:[%s9858_s22 + $0x280] sm:$0xff] %v5969_v26  ;;  %v5970_v43 = vmax.f32 %v5872_v41, 0.0  ;;  %v5670_v47 = vmax.f32 %v4511_v42, %v5427_v31  ;;  %v7653_v51 = vpop.f32.mrb[105].mxu0  ;;  %v7859_v48 = vpop.f32.mrb[105].mxu1  ;;  %v11043_v26 = vld [vmem:[#allocation130_spill] sm:$0xff] }
 0x43a   : > { %v4514_v49 = vpop.f32.mrb[106].mxu0  ;;  %v5430_v63 = vpop.f32.mrb[106].mxu1  ;;  %v11044_v41 = vmax.f32 %v11042_v20, %v11043_v26 }
 0x43b   : > { %6068 = vst [vmem:[%s9858_s22 + $0x288] sm:$0xff] %v5970_v43  ;;  %v5768_v1 = vmax.f32 %v11029_v33, %v5670_v47  ;;  %v5671_v10 = vmax.f32 %v4514_v49, %v5430_v63  ;;  %v7654_v2 = vpop.f32.mrb[107].mxu0  ;;  %v7860_v52 = vpop.f32.mrb[107].mxu1 }
 0x43d   : > { %v5873_v5 = vadd.f32 %v10235_v34, %v5768_v1  ;;  %v5769_v16 = vmax.f32 %v11032_v15, %v5671_v10  ;;  %v11045_v1 = vld [vmem:[#allocation131_spill] sm:$0xff]  ;;  %v11046_v10 = vld [vmem:[#allocation132_spill] sm:$0xff] }
 0x43e   : > { %v11047_v2 = vmax.f32 %v11045_v1, %v11046_v10 }
 0x43f   : > { %v5971_v7 = vmax.f32 %v5873_v5, 0.0  ;;  %v5874_v38 = vadd.f32 %v10235_v34, %v5769_v16  ;;  %v11048_v16 = vld [vmem:[#allocation133_spill] sm:$0xff] }
 0x440   : > { %v4519_v29 = vpop.f32.mrb[108].mxu0  ;;  %v5435_v30 = vpop.f32.mrb[108].mxu1 }
 0x441   : > { %6069 = vst [vmem:[%s9858_s22 + $0x290] sm:$0xff] %v5971_v7  ;;  %v5972_v4 = vmax.f32 %v5874_v38, 0.0  ;;  %v5672_v6 = vmax.f32 %v4519_v29, %v5435_v30  ;;  %v7657_v36 = vpop.f32.mrb[109].mxu0  ;;  %v7863_v37 = vpop.f32.mrb[109].mxu1  ;;  %v11049_v7 = vld [vmem:[#allocation134_spill] sm:$0xff] }
 0x442   : > { %v4522_v11 = vpop.f32.mrb[110].mxu0  ;;  %v5438_v21 = vpop.f32.mrb[110].mxu1  ;;  %v11050_v38 = vmax.f32 %v11048_v16, %v11049_v7 }
 0x443   : > { %6070 = vst [vmem:[%s9858_s22 + $0x298] sm:$0xff] %v5972_v4  ;;  %v5770_v18 = vmax.f32 %v11035_v17, %v5672_v6  ;;  %v5673_v3 = vmax.f32 %v4522_v11, %v5438_v21  ;;  %v7658_v57 = vpop.f32.mrb[111].mxu0  ;;  %v7864_v45 = vpop.f32.mrb[111].mxu1 }
 0x445   : > { %v5875_v46 = vadd.f32 %v10235_v34, %v5770_v18  ;;  %v5771_v54 = vmax.f32 %v11038_v53, %v5673_v3  ;;  %v11051_v18 = vld [vmem:[#allocation135_spill] sm:$0xff]  ;;  %v11052_v3 = vld [vmem:[#allocation136_spill] sm:$0xff] }
 0x446   : > { %v11053_v57 = vmax.f32 %v11051_v18, %v11052_v3 }
 0x447   : > { %v5973_v23 = vmax.f32 %v5875_v46, 0.0  ;;  %v5876_v27 = vadd.f32 %v10235_v34, %v5771_v54  ;;  %v11054_v54 = vld [vmem:[#allocation137_spill] sm:$0xff] }
 0x448   : > { %v4527_v24 = vpop.f32.mrb[112].mxu0  ;;  %v5443_v25 = vpop.f32.mrb[112].mxu1 }
 0x449   : > { %6071 = vst [vmem:[%s9858_s22 + $0x2a0] sm:$0xff] %v5973_v23  ;;  %v5974_v39 = vmax.f32 %v5876_v27, 0.0  ;;  %v5674_v40 = vmax.f32 %v4527_v24, %v5443_v25  ;;  %v7661_v60 = vpop.f32.mrb[113].mxu0  ;;  %v7867_v61 = vpop.f32.mrb[113].mxu1  ;;  %v11055_v23 = vld [vmem:[#allocation138_spill] sm:$0xff] }
 0x44a   : > { %v4530_v19 = vpop.f32.mrb[114].mxu0  ;;  %v5446_v44 = vpop.f32.mrb[114].mxu1  ;;  %v11056_v27 = vmax.f32 %v11054_v54, %v11055_v23 }
 0x44b   : > { %6072 = vst [vmem:[%s9858_s22 + $0x2a8] sm:$0xff] %v5974_v39  ;;  %v5772_v8 = vmax.f32 %v11041_v28, %v5674_v40  ;;  %v5675_v35 = vmax.f32 %v4530_v19, %v5446_v44  ;;  %v7662_v58 = vpop.f32.mrb[115].mxu0  ;;  %v7868_v14 = vpop.f32.mrb[115].mxu1 }
 0x44d   : > { %v5877_v62 = vadd.f32 %v10235_v34, %v5772_v8  ;;  %v5773_v42 = vmax.f32 %v11044_v41, %v5675_v35  ;;  %v11057_v8 = vld [vmem:[#allocation139_spill] sm:$0xff]  ;;  %v11058_v35 = vld [vmem:[#allocation140_spill] sm:$0xff] }
 0x44e   : > { %v11059_v58 = vmax.f32 %v11057_v8, %v11058_v35 }
 0x44f   : > { %v5975_v31 = vmax.f32 %v5877_v62, 0.0  ;;  %v5878_v43 = vadd.f32 %v10235_v34, %v5773_v42  ;;  %v11060_v42 = vld [vmem:[#allocation141_spill] sm:$0xff] }
 0x450   : > { %v4535_v47 = vpop.f32.mrb[116].mxu0  ;;  %v5451_v51 = vpop.f32.mrb[116].mxu1 }
 0x451   : > { %6073 = vst [vmem:[%s9858_s22 + $0x2b0] sm:$0xff] %v5975_v31  ;;  %v5976_v48 = vmax.f32 %v5878_v43, 0.0  ;;  %v5676_v49 = vmax.f32 %v4535_v47, %v5451_v51  ;;  %v7665_v63 = vpop.f32.mrb[117].mxu0  ;;  %v7871_v0 = vpop.f32.mrb[117].mxu1  ;;  %v11061_v31 = vld [vmem:[#allocation142_spill] sm:$0xff] }
 0x452   : > { %v4538_v32 = vpop.f32.mrb[118].mxu0  ;;  %v5454_v33 = vpop.f32.mrb[118].mxu1  ;;  %v11062_v43 = vmax.f32 %v11060_v42, %v11061_v31 }
 0x453   : > { %6074 = vst [vmem:[%s9858_s22 + $0x2b8] sm:$0xff] %v5976_v48  ;;  %v5774_v52 = vmax.f32 %v11047_v2, %v5676_v49  ;;  %v5677_v5 = vmax.f32 %v4538_v32, %v5454_v33  ;;  %v7666_v55 = vpop.f32.mrb[119].mxu0  ;;  %v7872_v50 = vpop.f32.mrb[119].mxu1 }
 0x455   : > { %v5879_v15 = vadd.f32 %v10235_v34, %v5774_v52  ;;  %v5775_v29 = vmax.f32 %v11050_v38, %v5677_v5  ;;  %v11063_v52 = vld [vmem:[#allocation143_spill] sm:$0xff]  ;;  %v11064_v5 = vld [vmem:[#allocation144_spill] sm:$0xff] }
 0x456   : > { %v11065_v55 = vmax.f32 %v11063_v52, %v11064_v5 }
 0x457   : > { %v5977_v30 = vmax.f32 %v5879_v15, 0.0  ;;  %v5880_v4 = vadd.f32 %v10235_v34, %v5775_v29  ;;  %v11066_v29 = vld [vmem:[#allocation145_spill] sm:$0xff] }
 0x458   : > { %v4543_v6 = vpop.f32.mrb[120].mxu0  ;;  %v5459_v36 = vpop.f32.mrb[120].mxu1 }
 0x459   : > { %6075 = vst [vmem:[%s9858_s22 + $0x2c0] sm:$0xff] %v5977_v30  ;;  %v5978_v37 = vmax.f32 %v5880_v4, 0.0  ;;  %v5678_v11 = vmax.f32 %v4543_v6, %v5459_v36  ;;  %v7669_v21 = vpop.f32.mrb[121].mxu0  ;;  %v7875_v56 = vpop.f32.mrb[121].mxu1  ;;  %v11067_v30 = vld [vmem:[#allocation146_spill] sm:$0xff] }
 0x45a   : > { %v4546_v22 = vpop.f32.mrb[122].mxu0  ;;  %v5462_v17 = vpop.f32.mrb[122].mxu1  ;;  %v11068_v4 = vmax.f32 %v11066_v29, %v11067_v30 }
 0x45b   : > { %6076 = vst [vmem:[%s9858_s22 + $0x2c8] sm:$0xff] %v5978_v37  ;;  %v5776_v45 = vmax.f32 %v11053_v57, %v5678_v11  ;;  %v5679_v46 = vmax.f32 %v4546_v22, %v5462_v17  ;;  %v7670_v12 = vpop.f32.mrb[123].mxu0  ;;  %v7876_v13 = vpop.f32.mrb[123].mxu1 }
 0x45d   : > { %v5881_v53 = vadd.f32 %v10235_v34, %v5776_v45  ;;  %v5777_v24 = vmax.f32 %v11056_v27, %v5679_v46  ;;  %v11069_v45 = vld [vmem:[#allocation147_spill] sm:$0xff]  ;;  %v11070_v46 = vld [vmem:[#allocation148_spill] sm:$0xff] }
 0x45e   : > { %v11071_v12 = vmax.f32 %v11069_v45, %v11070_v46 }
 0x45f   : > { %v5979_v25 = vmax.f32 %v5881_v53, 0.0  ;;  %v5882_v39 = vadd.f32 %v10235_v34, %v5777_v24  ;;  %v11072_v24 = vld [vmem:[#allocation149_spill] sm:$0xff] }
 0x460   : > { %v4551_v40 = vpop.f32.mrb[124].mxu0  ;;  %v5467_v60 = vpop.f32.mrb[124].mxu1 }
 0x461   : > { %6077 = vst [vmem:[%s9858_s22 + $0x2d0] sm:$0xff] %v5979_v25  ;;  %v5980_v61 = vmax.f32 %v5882_v39, 0.0  ;;  %v5680_v19 = vmax.f32 %v4551_v40, %v5467_v60  ;;  %v7673_v44 = vpop.f32.mrb[125].mxu0  ;;  %v7879_v59 = vpop.f32.mrb[125].mxu1  ;;  %v11073_v25 = vld [vmem:[#allocation150_spill] sm:$0xff] }
 0x462   : > { %v4554_v9 = vpop.f32.mrb[126].mxu0  ;;  %v5470_v28 = vpop.f32.mrb[126].mxu1  ;;  %v11074_v39 = vmax.f32 %v11072_v24, %v11073_v25 }
 0x463   : > { %6078 = vst [vmem:[%s9858_s22 + $0x2d8] sm:$0xff] %v5980_v61  ;;  %v5778_v14 = vmax.f32 %v11059_v58, %v5680_v19  ;;  %v5681_v62 = vmax.f32 %v4554_v9, %v5470_v28  ;;  %v7674_v20 = vpop.f32.mrb[127].mxu0  ;;  %v7880_v26 = vpop.f32.mrb[127].mxu1 }
 0x465   : > { %v5883_v41 = vadd.f32 %v10235_v34, %v5778_v14  ;;  %v5779_v47 = vmax.f32 %v11062_v43, %v5681_v62 }
 0x467   : > { %v5981_v51 = vmax.f32 %v5883_v41, 0.0  ;;  %v5884_v48 = vadd.f32 %v10235_v34, %v5779_v47 }
 0x468   : > { %v4559_v49 = vpop.f32.mrb[128].mxu0  ;;  %v5475_v63 = vpop.f32.mrb[128].mxu1 }
 0x469   : > { %6079 = vst [vmem:[%s9858_s22 + $0x2e0] sm:$0xff] %v5981_v51  ;;  %v5982_v0 = vmax.f32 %v5884_v48, 0.0  ;;  %v5682_v32 = vmax.f32 %v4559_v49, %v5475_v63  ;;  %v7677_v33 = vpop.f32.mrb[129].mxu0  ;;  %v7883_v1 = vpop.f32.mrb[129].mxu1 }
 0x46a   : > { %v4562_v10 = vpop.f32.mrb[130].mxu0  ;;  %v5478_v2 = vpop.f32.mrb[130].mxu1 }
 0x46b   : > { %6080 = vst [vmem:[%s9858_s22 + $0x2e8] sm:$0xff] %v5982_v0  ;;  %v5780_v50 = vmax.f32 %v11065_v55, %v5682_v32  ;;  %v5683_v15 = vmax.f32 %v4562_v10, %v5478_v2  ;;  %v7678_v16 = vpop.f32.mrb[131].mxu0  ;;  %v7884_v7 = vpop.f32.mrb[131].mxu1 }
 0x46d   : > { %v5885_v38 = vadd.f32 %v10235_v34, %v5780_v50  ;;  %v5781_v6 = vmax.f32 %v11068_v4, %v5683_v15 }
 0x46f   : > { %v5983_v36 = vmax.f32 %v5885_v38, 0.0  ;;  %v5886_v37 = vadd.f32 %v10235_v34, %v5781_v6 }
 0x470   : > { %v4567_v11 = vpop.f32.mrb[132].mxu0  ;;  %v5483_v21 = vpop.f32.mrb[132].mxu1 }
 0x471   : > { %6081 = vst [vmem:[%s9858_s22 + $0x2f0] sm:$0xff] %v5983_v36  ;;  %v5984_v56 = vmax.f32 %v5886_v37, 0.0  ;;  %v5684_v22 = vmax.f32 %v4567_v11, %v5483_v21  ;;  %v7681_v17 = vpop.f32.mrb[133].mxu0  ;;  %v7887_v18 = vpop.f32.mrb[133].mxu1 }
 0x472   : > { %v4570_v3 = vpop.f32.mrb[134].mxu0  ;;  %v5486_v57 = vpop.f32.mrb[134].mxu1 }
 0x473   : > { %6082 = vst [vmem:[%s9858_s22 + $0x2f8] sm:$0xff] %v5984_v56  ;;  %v5782_v13 = vmax.f32 %v11071_v12, %v5684_v22  ;;  %v5685_v53 = vmax.f32 %v4570_v3, %v5486_v57  ;;  %v7682_v54 = vpop.f32.mrb[135].mxu0  ;;  %v7888_v23 = vpop.f32.mrb[135].mxu1 }
 0x475   : > { %v5887_v27 = vadd.f32 %v10235_v34, %v5782_v13  ;;  %v5783_v40 = vmax.f32 %v11074_v39, %v5685_v53 }
 0x477   : > { %v5985_v60 = vmax.f32 %v5887_v27, 0.0  ;;  %v5888_v61 = vadd.f32 %v10235_v34, %v5783_v40 }
 0x479   : > { %6083 = vst [vmem:[%s9858_s22 + $0x300] sm:$0xff] %v5985_v60  ;;  %v5986_v19 = vmax.f32 %v5888_v61, 0.0 }
 0x47b   : > { %6084 = vst [vmem:[%s9858_s22 + $0x308] sm:$0xff] %v5986_v19 }
 0x47c PF: > { %p10_p9 = scmp.ge.s32.totalorder %s8184_s16, 4   ;;  %s11075_s12 = smov %s8138_s13 }
 0x47d   : > { %s11076_s13 = smov %s8193_s19  ;;  %s11077_s14 = smov %s8184_s16 }
 0x47e   :  { %12 = sbr.rel (!%p10_p9) target bundleno = 2 (0x2), region = 111 }

// kernel: net_forward.5
= control target key start
LH: loop header
LB: loop body
LE: loop exit
PB: predicated region body
PF: predicated region fallthrough
CT: control target
= control target key end

     0   :  { %s2400_s12 = smov 0   ;;  %s2402_s13 = smov 0   ;;  %s3057_s0 = inlined_call_operand.vmem [shape: bf16[4,288,250], index: 0, kind: input, shape index: {}]   ;;  %s3058_s1 = inlined_call_operand.vmem [shape: bf16[250,128], index: 1, kind: input, shape index: {}]   ;;  %s3059_s2 = inlined_call_operand.vmem [shape: f32[1,128], index: 2, kind: input, shape index: {}]   ;;  %s3060_s3 = inlined_call_operand.vmem [shape: f32[288,128], index: 3, kind: output, shape index: {}]  }
   0x1   :  { %s2404_s14 = smov 0  }
   0x2 LB: > { %s1730_s15 = sadd.s32 4294967295, %s2378_s14   ;;  %s2417_s16 = sadd.s32 1, %s2378_s14   ;;  %s2378_s14 = sphi %s2404_s14, %s3068_s14   ;;  %s2374_s13 = sphi %s2402_s13, %s3067_s13   ;;  %s2370_s12 = sphi %s2400_s12, %s3066_s12  }
   0x3   : > { %s17_s17 = ssub.s32 %s2378_s14, %s2417_s16  ;;  %s20_s18 = sadd.s32 1, %s2374_s13 }
   0x4   : > { %p18_p0 = scmp.eq.s32.totalorder %s17_s17, 0  ;;  %p27_p1 = scmp.ne.s32.totalorder %s2374_s13, %s2370_s12 }
   0x5   : > { %p28_p2 = scmp.eq.s32.totalorder %s2378_s14, 0  ;;  %p1733_p4 = scmp.ge.s32.totalorder %s2378_s14, 2 }
   0x6   : > { %s2426_s19 = scalar_select %p18_p0, %s2374_s13, %s20_s18  }
   0x7   : > { %p29_p3 = por %p28_p2, %p27_p1  ;;  %127 = sbr.rel (%p1733_p4) target bundleno = 55 (0x37), region = 24 }
   0xe   : > { %130 = sbr.rel (!%p29_p3) target bundleno = 55 (0x37), region = 28  ;;  %s132_s20 = sand.u32 (%p29_p3), 1, %s2374_s13  }
   0xf   : > { %s1921_s21 = smul.u32 (%p29_p3), 144, %s2378_s14 }
  0x10   : > { %s2206_s22 = smul.u32 (%p29_p3), 576, %s132_s20 }
  0x11   : > { %s2434_s25 = scalar_lea.vmem (%p29_p3), %s3057_s0, %s1921_s21 }
  0x12   : > { %v308_v0 = vld [vmem:[%s2434_s25] sm:$0xff] (%p29_p3)  ;;  %v310_v1 = vld [vmem:[%s2434_s25 + $0x8] sm:$0xff] (%p29_p3)  ;;  %v312_v2 = vld [vmem:[%s2434_s25 + $0x10] sm:$0xff] (%p29_p3)  ;;  %s2439_s26 = scalar_lea.vmem (%p29_p3), [#allocation2], %s2206_s22 }
  0x13   : > { %309 = vst [vmem:[%s2439_s26] sm:$0xff] (%p29_p3), %v308_v0  ;;  %311 = vst [vmem:[%s2439_s26 + $0x8] sm:$0xff] (%p29_p3), %v310_v1  ;;  %v314_v3 = vld [vmem:[%s2434_s25 + $0x18] sm:$0xff] (%p29_p3)  ;;  %v316_v4 = vld [vmem:[%s2434_s25 + $0x20] sm:$0xff] (%p29_p3) }
  0x14   : > { %313 = vst [vmem:[%s2439_s26 + $0x10] sm:$0xff] (%p29_p3), %v312_v2  ;;  %v318_v5 = vld [vmem:[%s2434_s25 + $0x28] sm:$0xff] (%p29_p3)  ;;  %315 = vst [vmem:[%s2439_s26 + $0x18] sm:$0xff] (%p29_p3), %v314_v3  ;;  %v320_v6 = vld [vmem:[%s2434_s25 + $0x30] sm:$0xff] (%p29_p3) }
  0x15   : > { %317 = vst [vmem:[%s2439_s26 + $0x20] sm:$0xff] %v316_v4  ;;  %319 = vst [vmem:[%s2439_s26 + $0x28] sm:$0xff] %v318_v5  ;;  %v322_v7 = vld [vmem:[%s2434_s25 + $0x38] sm:$0xff]  ;;  %v324_v8 = vld [vmem:[%s2434_s25 + $0x40] sm:$0xff] }
  0x16   : > { %321 = vst [vmem:[%s2439_s26 + $0x30] sm:$0xff] %v320_v6  ;;  %323 = vst [vmem:[%s2439_s26 + $0x38] sm:$0xff] %v322_v7  ;;  %v326_v9 = vld [vmem:[%s2434_s25 + $0x48] sm:$0xff]  ;;  %v328_v10 = vld [vmem:[%s2434_s25 + $0x50] sm:$0xff] }
  0x17   : > { %325 = vst [vmem:[%s2439_s26 + $0x40] sm:$0xff] %v324_v8  ;;  %v330_v11 = vld [vmem:[%s2434_s25 + $0x58] sm:$0xff]  ;;  %327 = vst [vmem:[%s2439_s26 + $0x48] sm:$0xff] %v326_v9  ;;  %v332_v12 = vld [vmem:[%s2434_s25 + $0x60] sm:$0xff] }
  0x18   : > { %329 = vst [vmem:[%s2439_s26 + $0x50] sm:$0xff] %v328_v10  ;;  %331 = vst [vmem:[%s2439_s26 + $0x58] sm:$0xff] %v330_v11  ;;  %v334_v13 = vld [vmem:[%s2434_s25 + $0x68] sm:$0xff]  ;;  %v336_v14 = vld [vmem:[%s2434_s25 + $0x70] sm:$0xff] }
  0x19   : > { %333 = vst [vmem:[%s2439_s26 + $0x60] sm:$0xff] %v332_v12  ;;  %335 = vst [vmem:[%s2439_s26 + $0x68] sm:$0xff] %v334_v13  ;;  %v338_v15 = vld [vmem:[%s2434_s25 + $0x78] sm:$0xff]  ;;  %v340_v16 = vld [vmem:[%s2434_s25 + $0x80] sm:$0xff] }
  0x1a   : > { %337 = vst [vmem:[%s2439_s26 + $0x70] sm:$0xff] %v336_v14  ;;  %v342_v17 = vld [vmem:[%s2434_s25 + $0x88] sm:$0xff]  ;;  %339 = vst [vmem:[%s2439_s26 + $0x78] sm:$0xff] %v338_v15  ;;  %v344_v18 = vld [vmem:[%s2434_s25 + $0x120] sm:$0xff] }
  0x1b   : > { %341 = vst [vmem:[%s2439_s26 + $0x80] sm:$0xff] %v340_v16  ;;  %343 = vst [vmem:[%s2439_s26 + $0x88] sm:$0xff] %v342_v17  ;;  %v346_v19 = vld [vmem:[%s2434_s25 + $0x128] sm:$0xff]  ;;  %v348_v20 = vld [vmem:[%s2434_s25 + $0x130] sm:$0xff] }
  0x1c   : > { %345 = vst [vmem:[%s2439_s26 + $0x90] sm:$0xff] %v344_v18  ;;  %347 = vst [vmem:[%s2439_s26 + $0x98] sm:$0xff] %v346_v19  ;;  %v350_v21 = vld [vmem:[%s2434_s25 + $0x138] sm:$0xff]  ;;  %v352_v22 = vld [vmem:[%s2434_s25 + $0x140] sm:$0xff] }
  0x1d   : > { %349 = vst [vmem:[%s2439_s26 + $0xa0] sm:$0xff] %v348_v20  ;;  %v354_v23 = vld [vmem:[%s2434_s25 + $0x148] sm:$0xff]  ;;  %351 = vst [vmem:[%s2439_s26 + $0xa8] sm:$0xff] %v350_v21  ;;  %v356_v24 = vld [vmem:[%s2434_s25 + $0x150] sm:$0xff] }
  0x1e   : > { %353 = vst [vmem:[%s2439_s26 + $0xb0] sm:$0xff] %v352_v22  ;;  %355 = vst [vmem:[%s2439_s26 + $0xb8] sm:$0xff] %v354_v23  ;;  %v358_v25 = vld [vmem:[%s2434_s25 + $0x158] sm:$0xff]  ;;  %v360_v26 = vld [vmem:[%s2434_s25 + $0x160] sm:$0xff] }
  0x1f   : > { %357 = vst [vmem:[%s2439_s26 + $0xc0] sm:$0xff] %v356_v24  ;;  %359 = vst [vmem:[%s2439_s26 + $0xc8] sm:$0xff] %v358_v25  ;;  %v362_v27 = vld [vmem:[%s2434_s25 + $0x168] sm:$0xff]  ;;  %v364_v28 = vld [vmem:[%s2434_s25 + $0x170] sm:$0xff] }
  0x20   : > { %361 = vst [vmem:[%s2439_s26 + $0xd0] sm:$0xff] %v360_v26  ;;  %v366_v29 = vld [vmem:[%s2434_s25 + $0x178] sm:$0xff]  ;;  %363 = vst [vmem:[%s2439_s26 + $0xd8] sm:$0xff] %v362_v27  ;;  %v368_v30 = vld [vmem:[%s2434_s25 + $0x180] sm:$0xff] }
  0x21   : > { %365 = vst [vmem:[%s2439_s26 + $0xe0] sm:$0xff] %v364_v28  ;;  %367 = vst [vmem:[%s2439_s26 + $0xe8] sm:$0xff] %v366_v29  ;;  %v370_v31 = vld [vmem:[%s2434_s25 + $0x188] sm:$0xff]  ;;  %v372_v32 = vld [vmem:[%s2434_s25 + $0x190] sm:$0xff] }
  0x22   : > { %369 = vst [vmem:[%s2439_s26 + $0xf0] sm:$0xff] %v368_v30  ;;  %371 = vst [vmem:[%s2439_s26 + $0xf8] sm:$0xff] %v370_v31  ;;  %v374_v33 = vld [vmem:[%s2434_s25 + $0x198] sm:$0xff]  ;;  %v376_v34 = vld [vmem:[%s2434_s25 + $0x1a0] sm:$0xff] }
  0x23   : > { %373 = vst [vmem:[%s2439_s26 + $0x100] sm:$0xff] %v372_v32  ;;  %v378_v35 = vld [vmem:[%s2434_s25 + $0x1a8] sm:$0xff]  ;;  %375 = vst [vmem:[%s2439_s26 + $0x108] sm:$0xff] %v374_v33  ;;  %v380_v36 = vld [vmem:[%s2434_s25 + $0x240] sm:$0xff] }
  0x24   : > { %377 = vst [vmem:[%s2439_s26 + $0x110] sm:$0xff] %v376_v34  ;;  %379 = vst [vmem:[%s2439_s26 + $0x118] sm:$0xff] %v378_v35  ;;  %v382_v37 = vld [vmem:[%s2434_s25 + $0x248] sm:$0xff]  ;;  %v384_v38 = vld [vmem:[%s2434_s25 + $0x250] sm:$0xff] }
  0x25   : > { %381 = vst [vmem:[%s2439_s26 + $0x120] sm:$0xff] %v380_v36  ;;  %383 = vst [vmem:[%s2439_s26 + $0x128] sm:$0xff] %v382_v37  ;;  %v386_v39 = vld [vmem:[%s2434_s25 + $0x258] sm:$0xff]  ;;  %v388_v40 = vld [vmem:[%s2434_s25 + $0x260] sm:$0xff] }
  0x26   : > { %385 = vst [vmem:[%s2439_s26 + $0x130] sm:$0xff] %v384_v38  ;;  %v390_v41 = vld [vmem:[%s2434_s25 + $0x268] sm:$0xff]  ;;  %387 = vst [vmem:[%s2439_s26 + $0x138] sm:$0xff] %v386_v39  ;;  %v392_v42 = vld [vmem:[%s2434_s25 + $0x270] sm:$0xff] }
  0x27   : > { %389 = vst [vmem:[%s2439_s26 + $0x140] sm:$0xff] %v388_v40  ;;  %391 = vst [vmem:[%s2439_s26 + $0x148] sm:$0xff] %v390_v41  ;;  %v394_v43 = vld [vmem:[%s2434_s25 + $0x278] sm:$0xff]  ;;  %v396_v44 = vld [vmem:[%s2434_s25 + $0x280] sm:$0xff] }
  0x28   : > { %393 = vst [vmem:[%s2439_s26 + $0x150] sm:$0xff] %v392_v42  ;;  %395 = vst [vmem:[%s2439_s26 + $0x158] sm:$0xff] %v394_v43  ;;  %v398_v45 = vld [vmem:[%s2434_s25 + $0x288] sm:$0xff]  ;;  %v400_v46 = vld [vmem:[%s2434_s25 + $0x290] sm:$0xff] }
  0x29   : > { %397 = vst [vmem:[%s2439_s26 + $0x160] sm:$0xff] %v396_v44  ;;  %v402_v47 = vld [vmem:[%s2434_s25 + $0x298] sm:$0xff]  ;;  %399 = vst [vmem:[%s2439_s26 + $0x168] sm:$0xff] %v398_v45  ;;  %v404_v48 = vld [vmem:[%s2434_s25 + $0x2a0] sm:$0xff] }
  0x2a   : > { %401 = vst [vmem:[%s2439_s26 + $0x170] sm:$0xff] %v400_v46  ;;  %403 = vst [vmem:[%s2439_s26 + $0x178] sm:$0xff] %v402_v47  ;;  %v406_v49 = vld [vmem:[%s2434_s25 + $0x2a8] sm:$0xff]  ;;  %v408_v50 = vld [vmem:[%s2434_s25 + $0x2b0] sm:$0xff] }
  0x2b   : > { %405 = vst [vmem:[%s2439_s26 + $0x180] sm:$0xff] %v404_v48  ;;  %407 = vst [vmem:[%s2439_s26 + $0x188] sm:$0xff] %v406_v49  ;;  %v410_v51 = vld [vmem:[%s2434_s25 + $0x2b8] sm:$0xff]  ;;  %v412_v52 = vld [vmem:[%s2434_s25 + $0x2c0] sm:$0xff] }
  0x2c   : > { %409 = vst [vmem:[%s2439_s26 + $0x190] sm:$0xff] %v408_v50  ;;  %v414_v53 = vld [vmem:[%s2434_s25 + $0x2c8] sm:$0xff]  ;;  %411 = vst [vmem:[%s2439_s26 + $0x198] sm:$0xff] %v410_v51  ;;  %v416_v54 = vld [vmem:[%s2434_s25 + $0x360] sm:$0xff] }
  0x2d   : > { %413 = vst [vmem:[%s2439_s26 + $0x1a0] sm:$0xff] %v412_v52  ;;  %415 = vst [vmem:[%s2439_s26 + $0x1a8] sm:$0xff] %v414_v53  ;;  %v418_v55 = vld [vmem:[%s2434_s25 + $0x368] sm:$0xff]  ;;  %v420_v56 = vld [vmem:[%s2434_s25 + $0x370] sm:$0xff] }
  0x2e   : > { %417 = vst [vmem:[%s2439_s26 + $0x1b0] sm:$0xff] %v416_v54  ;;  %419 = vst [vmem:[%s2439_s26 + $0x1b8] sm:$0xff] %v418_v55  ;;  %v422_v57 = vld [vmem:[%s2434_s25 + $0x378] sm:$0xff]  ;;  %v424_v58 = vld [vmem:[%s2434_s25 + $0x380] sm:$0xff] }
  0x2f   : > { %421 = vst [vmem:[%s2439_s26 + $0x1c0] sm:$0xff] %v420_v56  ;;  %v426_v59 = vld [vmem:[%s2434_s25 + $0x388] sm:$0xff]  ;;  %423 = vst [vmem:[%s2439_s26 + $0x1c8] sm:$0xff] %v422_v57  ;;  %v428_v60 = vld [vmem:[%s2434_s25 + $0x390] sm:$0xff] }
  0x30   : > { %425 = vst [vmem:[%s2439_s26 + $0x1d0] sm:$0xff] %v424_v58  ;;  %427 = vst [vmem:[%s2439_s26 + $0x1d8] sm:$0xff] %v426_v59  ;;  %v430_v61 = vld [vmem:[%s2434_s25 + $0x398] sm:$0xff]  ;;  %v432_v62 = vld [vmem:[%s2434_s25 + $0x3a0] sm:$0xff] }
  0x31   : > { %429 = vst [vmem:[%s2439_s26 + $0x1e0] sm:$0xff] %v428_v60  ;;  %431 = vst [vmem:[%s2439_s26 + $0x1e8] sm:$0xff] %v430_v61  ;;  %v434_v63 = vld [vmem:[%s2434_s25 + $0x3a8] sm:$0xff]  ;;  %v436_v0 = vld [vmem:[%s2434_s25 + $0x3b0] sm:$0xff] }
  0x32   : > { %433 = vst [vmem:[%s2439_s26 + $0x1f0] sm:$0xff] %v432_v62  ;;  %v438_v1 = vld [vmem:[%s2434_s25 + $0x3b8] sm:$0xff]  ;;  %435 = vst [vmem:[%s2439_s26 + $0x1f8] sm:$0xff] %v434_v63  ;;  %v440_v2 = vld [vmem:[%s2434_s25 + $0x3c0] sm:$0xff] }
  0x33   : > { %437 = vst [vmem:[%s2439_s26 + $0x200] sm:$0xff] %v436_v0  ;;  %439 = vst [vmem:[%s2439_s26 + $0x208] sm:$0xff] %v438_v1  ;;  %v442_v3 = vld [vmem:[%s2434_s25 + $0x3c8] sm:$0xff]  ;;  %v444_v4 = vld [vmem:[%s2434_s25 + $0x3d0] sm:$0xff] }
  0x34   : > { %441 = vst [vmem:[%s2439_s26 + $0x210] sm:$0xff] %v440_v2  ;;  %443 = vst [vmem:[%s2439_s26 + $0x218] sm:$0xff] %v442_v3  ;;  %v446_v5 = vld [vmem:[%s2434_s25 + $0x3d8] sm:$0xff]  ;;  %v448_v6 = vld [vmem:[%s2434_s25 + $0x3e0] sm:$0xff] }
  0x35   : > { %445 = vst [vmem:[%s2439_s26 + $0x220] sm:$0xff] %v444_v4  ;;  %v450_v7 = vld [vmem:[%s2434_s25 + $0x3e8] sm:$0xff]  ;;  %447 = vst [vmem:[%s2439_s26 + $0x228] sm:$0xff] %v446_v5 }
  0x36   : > { %449 = vst [vmem:[%s2439_s26 + $0x230] sm:$0xff] %v448_v6  ;;  %451 = vst [vmem:[%s2439_s26 + $0x238] sm:$0xff] %v450_v7 }
  0x37 PF: > { %p1736_p5 = scmp.ge.s32.totalorder %s2378_s14, 1  ;;  %p456_p6 = scmp.lt.s32.totalorder %s2378_s14, 3 }
  0x39   : > { %p457_p7 = pnand %p1736_p5, %p456_p6 }
  0x3a   : > { %v2232_v8 = vld [vmem:[%s3058_s1 + $0x40] sm:$0xff] (!%p457_p7)   ;;  %v2595_v10 = vld [vmem:[%s3058_s1 + $0x48] sm:$0xff] (!%p457_p7)   ;;  %v2609_v12 = vld [vmem:[%s3058_s1 + $0x50] sm:$0xff] (!%p457_p7)   ;;  %s463_s17 = sand.u32 (!%p457_p7), 1, %s2370_s12   ;;  %vm720_vm0 = vcmask (!%p457_p7), 998400   ;;  %vm748_vm1 = vcmask (!%p457_p7), 1044480  }
  0x3b   : > { %460 = sbr.rel (%p457_p7) target bundleno = 453 (0x1c5), region = 66  ;;  %v2590_v9 = vld [vmem:[%s3058_s1] sm:$0xff] (!%p457_p7)   ;;  %1922 = vmatprep.subr.bf16.mxu0 (!%p457_p7), %v2232_v8  ;;  %1992 = vmatprep.subr.bf16.mxu1 (!%p457_p7), %v2232_v8  ;;  %v2602_v11 = vld [vmem:[%s3058_s1 + $0x8] sm:$0xff] (!%p457_p7)   ;;  %v2616_v13 = vld [vmem:[%s3058_s1 + $0x10] sm:$0xff] (!%p457_p7)  }
  0x3c   : > { %1923 = vmatpush3.bf16.msra.mxu0 (!%p457_p7), %v2590_v9  ;;  %1993 = vmatpush3.bf16.msra.mxu1 (!%p457_p7), %v2590_v9  ;;  %v2624_v14 = vld [vmem:[%s3058_s1 + $0x58] sm:$0xff] (!%p457_p7)   ;;  %s2207_s21 = smul.u32 (!%p457_p7), 576, %s463_s17  ;;  %v2638_v16 = vld [vmem:[%s3058_s1 + $0x60] sm:$0xff] (!%p457_p7)   ;;  %v2652_v18 = vld [vmem:[%s3058_s1 + $0x68] sm:$0xff] (!%p457_p7)  }
  0x3d   : > { %1924 = vmatprep.subr.bf16.mxu0 (!%p457_p7), %v2595_v10  ;;  %1994 = vmatprep.subr.bf16.mxu1 (!%p457_p7), %v2595_v10  ;;  %v2631_v15 = vld [vmem:[%s3058_s1 + $0x18] sm:$0xff] (!%p457_p7)   ;;  %v2645_v17 = vld [vmem:[%s3058_s1 + $0x20] sm:$0xff] (!%p457_p7)   ;;  %v2663_v21 = vld [vmem:[%s3058_s1 + $0x28] sm:$0xff] (!%p457_p7)   ;;  %s487_s18 = smul.u32 (!%p457_p7), 18, %s1730_s15 }
  0x3e   : > { %s2654_s29 = scalar_lea.vmem (!%p457_p7), [#allocation2], %s2207_s21  ;;  %v2670_v22 = vld [vmem:[%s3058_s1 + $0x70] sm:$0xff] (!%p457_p7)   ;;  %v2686_v24 = vld [vmem:[%s3058_s1 + $0x78] sm:$0x1f] (!%p457_p7)  }
  0x3f   : > { %v2250_v19 = vld [vmem:[%s2654_s29 + $0x4] ss:$8 sps:$4 sm:$0xff] (!%p457_p7)   ;;  %v2253_v20 = vld [vmem:[%s2654_s29 + $0x94] ss:$8 sps:$4 sm:$0xff] (!%p457_p7)   ;;  %v2248_v26 = vld [vmem:[%s2654_s29] ss:$8 sps:$4 sm:$0xff] (!%p457_p7)  }
  0x40   : > { %1925 = vmatpush3.bf16.msra.mxu0 (!%p457_p7), %v2602_v11  ;;  %1995 = vmatpush3.bf16.msra.mxu1 (!%p457_p7), %v2602_v11  ;;  %v2679_v23 = vld [vmem:[%s3058_s1 + $0x30] sm:$0xff] (!%p457_p7)   ;;  %v2693_v25 = vld [vmem:[%s3058_s1 + $0x38] sm:$0xff] (!%p457_p7)   ;;  %v2256_v29 = vld [vmem:[%s2654_s29 + $0xa4] ss:$8 sps:$4 sm:$0xff] (!%p457_p7)   ;;  %p488_p8 = scmp.lt.s32.totalorder (!%p457_p7), %s487_s18, 35 }
  0x41   : > { %1926 = vmatprep.subr.bf16.mxu0 (!%p457_p7), %v2609_v12  ;;  %1996 = vmatprep.subr.bf16.mxu1 (!%p457_p7), %v2609_v12  ;;  %v2251_v27 = vld [vmem:[%s2654_s29 + $0x90] ss:$8 sps:$4 sm:$0xff] (!%p457_p7)   ;;  %v2254_v28 = vld [vmem:[%s2654_s29 + $0x14] ss:$8 sps:$4 sm:$0xff] (!%p457_p7)   ;;  %v2259_v31 = vld [vmem:[%s2654_s29 + $0xa0] ss:$8 sps:$4 sm:$0xff] (!%p457_p7)  }
  0x42   : > { %1772 = vmatprep.mubr.msk.bf16.mxu0 %vm720_vm0, %v2250_v19  ;;  %1817 = vmatprep.mubr.msk.bf16.mxu1 %vm720_vm0, %v2253_v20  ;;  %v2258_v30 = vld [vmem:[%s2654_s29 + $0x10] ss:$8 sps:$4 sm:$0xff]   ;;  %v2260_v32 = vld [vmem:[%s2654_s29 + $0x24] ss:$8 sps:$4 sm:$0xff]   ;;  %v2262_v33 = vld [vmem:[%s2654_s29 + $0xb4] ss:$8 sps:$4 sm:$0xff]  }
  0x43   : > { %v2264_v34 = vld [vmem:[%s2654_s29 + $0x20] ss:$8 sps:$4 sm:$0xff]   ;;  %v2265_v35 = vld [vmem:[%s2654_s29 + $0xb0] ss:$8 sps:$4 sm:$0xff]   ;;  %v2266_v36 = vld [vmem:[%s2654_s29 + $0x34] ss:$8 sps:$4 sm:$0xff]  }
  0x44   : > { %1927 = vmatpush3.bf16.msra.mxu0 %v2616_v13  ;;  %1997 = vmatpush3.bf16.msra.mxu1 %v2616_v13  ;;  %v2268_v37 = vld [vmem:[%s2654_s29 + $0xc4] ss:$8 sps:$4 sm:$0xff]   ;;  %v2270_v38 = vld [vmem:[%s2654_s29 + $0x30] ss:$8 sps:$4 sm:$0xff]   ;;  %v2271_v39 = vld [vmem:[%s2654_s29 + $0xc0] ss:$8 sps:$4 sm:$0xff]  }
  0x45   : > { %1928 = vmatprep.subr.bf16.mxu0 %v2624_v14  ;;  %1998 = vmatprep.subr.bf16.mxu1 %v2624_v14  ;;  %v2272_v40 = vld [vmem:[%s2654_s29 + $0x44] ss:$8 sps:$4 sm:$0xff]   ;;  %v2274_v41 = vld [vmem:[%s2654_s29 + $0xd4] ss:$8 sps:$4 sm:$0xff]   ;;  %v2276_v42 = vld [vmem:[%s2654_s29 + $0x40] ss:$8 sps:$4 sm:$0xff]  }
  0x46   : > { %v2277_v43 = vld [vmem:[%s2654_s29 + $0xd0] ss:$8 sps:$4 sm:$0xff]   ;;  %v2278_v44 = vld [vmem:[%s2654_s29 + $0x54] ss:$8 sps:$4 sm:$0xff]   ;;  %v2280_v45 = vld [vmem:[%s2654_s29 + $0xe4] ss:$8 sps:$4 sm:$0xff]  }
  0x47   : > { %v2282_v46 = vld [vmem:[%s2654_s29 + $0x50] ss:$8 sps:$4 sm:$0xff]   ;;  %v2283_v47 = vld [vmem:[%s2654_s29 + $0xe0] ss:$8 sps:$4 sm:$0xff]   ;;  %v2284_v48 = vld [vmem:[%s2654_s29 + $0x64] ss:$8 sps:$4 sm:$0xff]  }
  0x48   : > { %1929 = vmatpush3.bf16.msra.mxu0 %v2631_v15  ;;  %1999 = vmatpush3.bf16.msra.mxu1 %v2631_v15  ;;  %v2286_v49 = vld [vmem:[%s2654_s29 + $0xf4] ss:$8 sps:$4 sm:$0xff]   ;;  %v2288_v50 = vld [vmem:[%s2654_s29 + $0x60] ss:$8 sps:$4 sm:$0xff]   ;;  %v2289_v51 = vld [vmem:[%s2654_s29 + $0xf0] ss:$8 sps:$4 sm:$0xff]  }
  0x49   : > { %1930 = vmatprep.subr.bf16.mxu0 %v2638_v16  ;;  %2000 = vmatprep.subr.bf16.mxu1 %v2638_v16  ;;  %v2290_v52 = vld [vmem:[%s2654_s29 + $0x74] ss:$8 sps:$4 sm:$0xff]   ;;  %v2292_v53 = vld [vmem:[%s2654_s29 + $0x104] ss:$8 sps:$4 sm:$0xff]   ;;  %v2294_v54 = vld [vmem:[%s2654_s29 + $0x70] ss:$8 sps:$4 sm:$0xff]  }
  0x4a   : > { %v2295_v55 = vld [vmem:[%s2654_s29 + $0x100] ss:$8 sps:$4 sm:$0xff]   ;;  %v2296_v56 = vld [vmem:[%s2654_s29 + $0x84] ss:$8 sps:$4 sm:$0xff]   ;;  %v2298_v57 = vld [vmem:[%s2654_s29 + $0x114] ss:$8 sps:$4 sm:$0xff]  }
  0x4b   : > { %v2300_v58 = vld [vmem:[%s2654_s29 + $0x80] ss:$8 sps:$4 sm:$0xff]   ;;  %v2301_v59 = vld [vmem:[%s2654_s29 + $0x110] ss:$8 sps:$4 sm:$0xff]   ;;  %v2304_v60 = vld [vmem:[%s2654_s29 + $0x124] ss:$8 sps:$4 sm:$0xff]  }
  0x4c   : > { %1931 = vmatpush3.bf16.msra.mxu0 %v2645_v17  ;;  %2001 = vmatpush3.bf16.msra.mxu1 %v2645_v17  ;;  %v2307_v61 = vld [vmem:[%s2654_s29 + $0x1b4] ss:$8 sps:$4 sm:$0xff]   ;;  %v2302_v62 = vld [vmem:[%s2654_s29 + $0x120] ss:$8 sps:$4 sm:$0xff]   ;;  %v2305_v63 = vld [vmem:[%s2654_s29 + $0x1b0] ss:$8 sps:$4 sm:$0xff]  }
  0x4d   : > { %1932 = vmatprep.subr.bf16.mxu0 %v2652_v18  ;;  %2002 = vmatprep.subr.bf16.mxu1 %v2652_v18  ;;  %v2308_v0 = vld [vmem:[%s2654_s29 + $0x134] ss:$8 sps:$4 sm:$0xff]   ;;  %v2310_v1 = vld [vmem:[%s2654_s29 + $0x1c4] ss:$8 sps:$4 sm:$0xff]   ;;  %v2312_v2 = vld [vmem:[%s2654_s29 + $0x130] ss:$8 sps:$4 sm:$0xff]  }
  0x4e   : > { %v2313_v3 = vld [vmem:[%s2654_s29 + $0x1c0] ss:$8 sps:$4 sm:$0xff]   ;;  %v2314_v4 = vld [vmem:[%s2654_s29 + $0x144] ss:$8 sps:$4 sm:$0xff]   ;;  %v2316_v5 = vld [vmem:[%s2654_s29 + $0x1d4] ss:$8 sps:$4 sm:$0xff]  }
  0x4f   : > { %v2318_v6 = vld [vmem:[%s2654_s29 + $0x140] ss:$8 sps:$4 sm:$0xff]   ;;  %v2319_v7 = vld [vmem:[%s2654_s29 + $0x1d0] ss:$8 sps:$4 sm:$0xff]   ;;  %v2338_v20 = vld [vmem:[%s2654_s29 + $0x184] ss:$8 sps:$4 sm:$0xff]  }
  0x50   : > { %1933 = vmatpush3.bf16.msra.mxu0 %v2663_v21  ;;  %2003 = vmatpush3.bf16.msra.mxu1 %v2663_v21  ;;  %v2337_v19 = vld [vmem:[%s2654_s29 + $0x200] ss:$8 sps:$4 sm:$0xff]   ;;  %s3070_s18 = smov (!%p488_p8, %s487_s18), 35 }
  0x51   : > { %1934 = vmatprep.subr.bf16.mxu0 %v2670_v22  ;;  %2004 = vmatprep.subr.bf16.mxu1 %v2670_v22  ;;  %s1737_s20 = sshll.u32 %s3070_s18, 3 }
  0x52   : > { %s2962_s23 = scalar_lea.vmem %s3060_s3, %s1737_s20 }
  0x54   : > { %1935 = vmatpush3.bf16.msra.mxu0 %v2679_v23  ;;  %2005 = vmatpush3.bf16.msra.mxu1 %v2679_v23 }
  0x55   : > { %2202 = vmatprep.subr.msk.bf16.mxu0 %vm748_vm1, %v2686_v24  ;;  %2203 = vmatprep.subr.msk.bf16.mxu1 %vm748_vm1, %v2686_v24 }
  0x58   : > { %1937 = vmatpush3.bf16.msra.mxu0 %v2693_v25  ;;  %2007 = vmatpush3.bf16.msra.mxu1 %v2693_v25 }
  0x59   : > { %2062 = vmatprep.subr.bf16.mxu0 %v2232_v8  ;;  %2132 = vmatprep.subr.bf16.mxu1 %v2232_v8  ;;  %v2320_v8 = vld [vmem:[%s2654_s29 + $0x154] ss:$8 sps:$4 sm:$0xff]  }
  0x5b   : > { %785 = vmatmul.mubr.bf16.vlgmr.msra.gmra.mrb[0].mxu0 %v2248_v26  ;;  %1017 = vmatmul.mubr.bf16.vlgmr.msra.gmra.mrb[0].mxu1 %v2251_v27  ;;  %v2348_v26 = vld [vmem:[%s2654_s29 + $0x190] ss:$8 sps:$4 sm:$0xff]   ;;  %v2349_v27 = vld [vmem:[%s2654_s29 + $0x220] ss:$8 sps:$4 sm:$0xff]  }
  0x5c   : > { %2063 = vmatpush3.bf16.msra.mxu0 %v2590_v9  ;;  %2133 = vmatpush3.bf16.msra.mxu1 %v2590_v9  ;;  %v2322_v9 = vld [vmem:[%s2654_s29 + $0x1e4] ss:$8 sps:$4 sm:$0xff]  }
  0x5d   : > { %1773 = vmatprep.mubr.msk.bf16.mxu0 %vm720_vm0, %v2254_v28  ;;  %1818 = vmatprep.mubr.msk.bf16.mxu1 %vm720_vm0, %v2256_v29  ;;  %v2350_v28 = vld [vmem:[%s2654_s29 + $0x1a4] ss:$8 sps:$4 sm:$0xff]   ;;  %v2352_v29 = vld [vmem:[%s2654_s29 + $0x234] ss:$8 sps:$4 sm:$0xff]  }
  0x5e   : > { %2064 = vmatprep.subr.bf16.mxu0 %v2595_v10  ;;  %2134 = vmatprep.subr.bf16.mxu1 %v2595_v10  ;;  %v2324_v10 = vld [vmem:[%s2654_s29 + $0x150] ss:$8 sps:$4 sm:$0xff]  }
  0x60   : > { %2065 = vmatpush3.bf16.msra.mxu0 %v2602_v11  ;;  %2135 = vmatpush3.bf16.msra.mxu1 %v2602_v11  ;;  %v2325_v11 = vld [vmem:[%s2654_s29 + $0x1e0] ss:$8 sps:$4 sm:$0xff]  }
  0x61   : > { %2066 = vmatprep.subr.bf16.mxu0 %v2609_v12  ;;  %2136 = vmatprep.subr.bf16.mxu1 %v2609_v12  ;;  %v2326_v12 = vld [vmem:[%s2654_s29 + $0x164] ss:$8 sps:$4 sm:$0xff]  }
  0x63   : > { %793 = vmatmul.mubr.bf16.gmra.mrb[4].mxu0 %v2258_v30  ;;  %1025 = vmatmul.mubr.bf16.gmra.mrb[4].mxu1 %v2259_v31  ;;  %v2354_v30 = vld [vmem:[%s2654_s29 + $0x1a0] ss:$8 sps:$4 sm:$0xff]   ;;  %v2355_v31 = vld [vmem:[%s2654_s29 + $0x230] ss:$8 sps:$4 sm:$0xff]  }
  0x64   : > { %1774 = vmatprep.mubr.msk.bf16.mxu0 %vm720_vm0, %v2260_v32  ;;  %1819 = vmatprep.mubr.msk.bf16.mxu1 %vm720_vm0, %v2262_v33 }
  0x65   : > { %2067 = vmatpush3.bf16.msra.mxu0 %v2616_v13  ;;  %2137 = vmatpush3.bf16.msra.mxu1 %v2616_v13  ;;  %v2328_v13 = vld [vmem:[%s2654_s29 + $0x1f4] ss:$8 sps:$4 sm:$0xff]  }
  0x66   : > { %2068 = vmatprep.subr.bf16.mxu0 %v2624_v14  ;;  %2138 = vmatprep.subr.bf16.mxu1 %v2624_v14  ;;  %v2330_v14 = vld [vmem:[%s2654_s29 + $0x160] ss:$8 sps:$4 sm:$0xff]  }
  0x69   : > { %2069 = vmatpush3.bf16.msra.mxu0 %v2631_v15  ;;  %2139 = vmatpush3.bf16.msra.mxu1 %v2631_v15  ;;  %v2331_v15 = vld [vmem:[%s2654_s29 + $0x1f0] ss:$8 sps:$4 sm:$0xff]  }
  0x6a   : > { %2070 = vmatprep.subr.bf16.mxu0 %v2638_v16  ;;  %2140 = vmatprep.subr.bf16.mxu1 %v2638_v16  ;;  %v2332_v16 = vld [vmem:[%s2654_s29 + $0x174] ss:$8 sps:$4 sm:$0xff]  }
  0x6b   : > { %801 = vmatmul.mubr.bf16.gmra.mrb[8].mxu0 %v2264_v34  ;;  %1033 = vmatmul.mubr.bf16.gmra.mrb[8].mxu1 %v2265_v35 }
  0x6c   : > { %1775 = vmatprep.mubr.msk.bf16.mxu0 %vm720_vm0, %v2266_v36  ;;  %1820 = vmatprep.mubr.msk.bf16.mxu1 %vm720_vm0, %v2268_v37 }
  0x6d   : > { %2071 = vmatpush3.bf16.msra.mxu0 %v2645_v17  ;;  %2141 = vmatpush3.bf16.msra.mxu1 %v2645_v17  ;;  %v2334_v17 = vld [vmem:[%s2654_s29 + $0x204] ss:$8 sps:$4 sm:$0xff]  }
  0x6e   : > { %2072 = vmatprep.subr.bf16.mxu0 %v2652_v18  ;;  %2142 = vmatprep.subr.bf16.mxu1 %v2652_v18  ;;  %v2336_v18 = vld [vmem:[%s2654_s29 + $0x170] ss:$8 sps:$4 sm:$0xff]  }
  0x71   : > { %2073 = vmatpush3.bf16.msra.mxu0 %v2663_v21  ;;  %2143 = vmatpush3.bf16.msra.mxu1 %v2663_v21  ;;  %v2340_v21 = vld [vmem:[%s2654_s29 + $0x214] ss:$8 sps:$4 sm:$0xff]  }
  0x72   : > { %2074 = vmatprep.subr.bf16.mxu0 %v2670_v22  ;;  %2144 = vmatprep.subr.bf16.mxu1 %v2670_v22  ;;  %v2342_v22 = vld [vmem:[%s2654_s29 + $0x180] ss:$8 sps:$4 sm:$0xff]  }
  0x73   : > { %809 = vmatmul.mubr.bf16.gmra.mrb[12].mxu0 %v2270_v38  ;;  %1041 = vmatmul.mubr.bf16.gmra.mrb[12].mxu1 %v2271_v39 }
  0x74   : > { %1776 = vmatprep.mubr.msk.bf16.mxu0 %vm720_vm0, %v2272_v40  ;;  %1821 = vmatprep.mubr.msk.bf16.mxu1 %vm720_vm0, %v2274_v41 }
  0x75   : > { %2075 = vmatpush3.bf16.msra.mxu0 %v2679_v23  ;;  %2145 = vmatpush3.bf16.msra.mxu1 %v2679_v23  ;;  %v2343_v23 = vld [vmem:[%s2654_s29 + $0x210] ss:$8 sps:$4 sm:$0xff]  }
  0x76   : > { %2204 = vmatprep.subr.msk.bf16.mxu0 %vm748_vm1, %v2686_v24  ;;  %2205 = vmatprep.subr.msk.bf16.mxu1 %vm748_vm1, %v2686_v24  ;;  %v2344_v24 = vld [vmem:[%s2654_s29 + $0x194] ss:$8 sps:$4 sm:$0xff]  }
  0x79   : > { %2077 = vmatpush3.bf16.msra.mxu0 %v2693_v25  ;;  %2147 = vmatpush3.bf16.msra.mxu1 %v2693_v25  ;;  %v2346_v25 = vld [vmem:[%s2654_s29 + $0x224] ss:$8 sps:$4 sm:$0xff]  }
  0x7b   : > { %817 = vmatmul.mubr.bf16.gmra.mrb[16].mxu0 %v2276_v42  ;;  %1049 = vmatmul.mubr.bf16.gmra.mrb[16].mxu1 %v2277_v43 }
  0x7c   : > { %1777 = vmatprep.mubr.msk.bf16.mxu0 %vm720_vm0, %v2278_v44  ;;  %1822 = vmatprep.mubr.msk.bf16.mxu1 %vm720_vm0, %v2280_v45 }
  0x83   : > { %825 = vmatmul.mubr.bf16.gmra.mrb[20].mxu0 %v2282_v46  ;;  %1057 = vmatmul.mubr.bf16.gmra.mrb[20].mxu1 %v2283_v47 }
  0x84   : > { %1778 = vmatprep.mubr.msk.bf16.mxu0 %vm720_vm0, %v2284_v48  ;;  %1823 = vmatprep.mubr.msk.bf16.mxu1 %vm720_vm0, %v2286_v49 }
  0x8b   : > { %833 = vmatmul.mubr.bf16.gmra.mrb[24].mxu0 %v2288_v50  ;;  %1065 = vmatmul.mubr.bf16.gmra.mrb[24].mxu1 %v2289_v51 }
  0x8c   : > { %1779 = vmatprep.mubr.msk.bf16.mxu0 %vm720_vm0, %v2290_v52  ;;  %1824 = vmatprep.mubr.msk.bf16.mxu1 %vm720_vm0, %v2292_v53 }
  0x93   : > { %841 = vmatmul.mubr.bf16.gmra.mrb[28].mxu0 %v2294_v54  ;;  %1073 = vmatmul.mubr.bf16.gmra.mrb[28].mxu1 %v2295_v55 }
  0x94   : > { %1780 = vmatprep.mubr.msk.bf16.mxu0 %vm720_vm0, %v2296_v56  ;;  %1825 = vmatprep.mubr.msk.bf16.mxu1 %vm720_vm0, %v2298_v57 }
  0x9b   : > { %849 = vmatmul.mubr.bf16.gmra.mrb[32].mxu0 %v2300_v58  ;;  %1081 = vmatmul.mubr.bf16.gmra.mrb[32].mxu1 %v2301_v59 }
  0x9c   : > { %1862 = vmatprep.mubr.msk.bf16.mxu0 %vm720_vm0, %v2304_v60  ;;  %1907 = vmatprep.mubr.msk.bf16.mxu1 %vm720_vm0, %v2307_v61 }
  0xa3   : > { %1249 = vmatmul.mubr.bf16.vlgmr.msra.gmra.mrb[36].mxu0 %v2302_v62  ;;  %1481 = vmatmul.mubr.bf16.vlgmr.msra.gmra.mrb[36].mxu1 %v2305_v63 }
  0xa4   : > { %1863 = vmatprep.mubr.msk.bf16.mxu0 %vm720_vm0, %v2308_v0  ;;  %1908 = vmatprep.mubr.msk.bf16.mxu1 %vm720_vm0, %v2310_v1 }
  0xab   : > { %1257 = vmatmul.mubr.bf16.gmra.mrb[40].mxu0 %v2312_v2  ;;  %1489 = vmatmul.mubr.bf16.gmra.mrb[40].mxu1 %v2313_v3 }
  0xac   : > { %1864 = vmatprep.mubr.msk.bf16.mxu0 %vm720_vm0, %v2314_v4  ;;  %1909 = vmatprep.mubr.msk.bf16.mxu1 %vm720_vm0, %v2316_v5 }
  0xb3   : > { %1265 = vmatmul.mubr.bf16.gmra.mrb[44].mxu0 %v2318_v6  ;;  %1497 = vmatmul.mubr.bf16.gmra.mrb[44].mxu1 %v2319_v7 }
  0xb4   : > { %1865 = vmatprep.mubr.msk.bf16.mxu0 %vm720_vm0, %v2320_v8  ;;  %1910 = vmatprep.mubr.msk.bf16.mxu1 %vm720_vm0, %v2322_v9 }
  0xbb   : > { %1273 = vmatmul.mubr.bf16.gmra.mrb[48].mxu0 %v2324_v10  ;;  %1505 = vmatmul.mubr.bf16.gmra.mrb[48].mxu1 %v2325_v11 }
  0xbc   : > { %1866 = vmatprep.mubr.msk.bf16.mxu0 %vm720_vm0, %v2326_v12  ;;  %1911 = vmatprep.mubr.msk.bf16.mxu1 %vm720_vm0, %v2328_v13 }
  0xc3   : > { %1281 = vmatmul.mubr.bf16.gmra.mrb[52].mxu0 %v2330_v14  ;;  %1513 = vmatmul.mubr.bf16.gmra.mrb[52].mxu1 %v2331_v15 }
  0xc4   : > { %1867 = vmatprep.mubr.msk.bf16.mxu0 %vm720_vm0, %v2332_v16  ;;  %1912 = vmatprep.mubr.msk.bf16.mxu1 %vm720_vm0, %v2334_v17 }
  0xcb   : > { %1289 = vmatmul.mubr.bf16.gmra.mrb[56].mxu0 %v2336_v18  ;;  %1521 = vmatmul.mubr.bf16.gmra.mrb[56].mxu1 %v2337_v19 }
  0xcc   : > { %1868 = vmatprep.mubr.msk.bf16.mxu0 %vm720_vm0, %v2338_v20  ;;  %1913 = vmatprep.mubr.msk.bf16.mxu1 %vm720_vm0, %v2340_v21 }
  0xd3   : > { %1297 = vmatmul.mubr.bf16.gmra.mrb[60].mxu0 %v2342_v22  ;;  %1529 = vmatmul.mubr.bf16.gmra.mrb[60].mxu1 %v2343_v23 }
  0xd4   : > { %1869 = vmatprep.mubr.msk.bf16.mxu0 %vm720_vm0, %v2344_v24  ;;  %1914 = vmatprep.mubr.msk.bf16.mxu1 %vm720_vm0, %v2346_v25 }
  0xdb   : > { %1305 = vmatmul.mubr.bf16.gmra.mrb[64].mxu0 %v2348_v26  ;;  %1537 = vmatmul.mubr.bf16.gmra.mrb[64].mxu1 %v2349_v27 }
  0xdc   : > { %1870 = vmatprep.mubr.msk.bf16.mxu0 %vm720_vm0, %v2350_v28  ;;  %1915 = vmatprep.mubr.msk.bf16.mxu1 %vm720_vm0, %v2352_v29 }
  0xe3   : > { %1313 = vmatmul.mubr.bf16.gmra.mrb[68].mxu0 %v2354_v30  ;;  %1545 = vmatmul.mubr.bf16.gmra.mrb[68].mxu1 %v2355_v31 }
 0x12e   : > { %v1938_v32 = vpop.f32.mrb[0].mxu0  ;;  %v2008_v33 = vpop.f32.mrb[0].mxu1 }
 0x12f   : > { %v1939_v34 = vpop.f32.mrb[1].mxu0  ;;  %v2009_v35 = vpop.f32.mrb[1].mxu1 }
 0x130   : > { %v2837_v36 = vadd.f32 %v1939_v34, %v1938_v32  ;;  %v2839_v37 = vadd.f32 %v2009_v35, %v2008_v33  ;;  %v1941_v38 = vpop.f32.mrb[2].mxu0  ;;  %v2011_v39 = vpop.f32.mrb[2].mxu1 }
 0x131   : > { %v1942_v40 = vpop.f32.mrb[3].mxu0  ;;  %v2012_v41 = vpop.f32.mrb[3].mxu1 }
 0x132   : > { %v1553_v42 = vmax.f32 %v2837_v36, %v2839_v37  ;;  %v2843_v43 = vadd.f32 %v1942_v40, %v1941_v38  ;;  %v2845_v44 = vadd.f32 %v2012_v41, %v2011_v39 }
 0x134   : > { %v1554_v45 = vmax.f32 %v2843_v43, %v2845_v44 }
 0x136   : > { %v1944_v46 = vpop.f32.mrb[4].mxu0  ;;  %v2014_v47 = vpop.f32.mrb[4].mxu1 }
 0x137   : > { %v1945_v48 = vpop.f32.mrb[5].mxu0  ;;  %v2015_v49 = vpop.f32.mrb[5].mxu1 }
 0x138   : > { %v2849_v50 = vadd.f32 %v1945_v48, %v1944_v46  ;;  %v2851_v51 = vadd.f32 %v2015_v49, %v2014_v47  ;;  %v1947_v52 = vpop.f32.mrb[6].mxu0  ;;  %v2017_v53 = vpop.f32.mrb[6].mxu1 }
 0x139   : > { %v1948_v54 = vpop.f32.mrb[7].mxu0  ;;  %v2018_v55 = vpop.f32.mrb[7].mxu1 }
 0x13a   : > { %v1555_v56 = vmax.f32 %v2849_v50, %v2851_v51  ;;  %v2855_v57 = vadd.f32 %v1948_v54, %v1947_v52  ;;  %v2857_v58 = vadd.f32 %v2018_v55, %v2017_v53 }
 0x13c   : > { %v1556_v59 = vmax.f32 %v2855_v57, %v2857_v58 }
 0x13e   : > { %v1950_v60 = vpop.f32.mrb[8].mxu0  ;;  %v2020_v61 = vpop.f32.mrb[8].mxu1 }
 0x13f   : > { %v1951_v62 = vpop.f32.mrb[9].mxu0  ;;  %v2021_v63 = vpop.f32.mrb[9].mxu1 }
 0x140   : > { %v2861_v0 = vadd.f32 %v1951_v62, %v1950_v60  ;;  %v2863_v1 = vadd.f32 %v2021_v63, %v2020_v61  ;;  %v1953_v2 = vpop.f32.mrb[10].mxu0  ;;  %v2023_v3 = vpop.f32.mrb[10].mxu1 }
 0x141   : > { %v1954_v4 = vpop.f32.mrb[11].mxu0  ;;  %v2024_v5 = vpop.f32.mrb[11].mxu1 }
 0x142   : > { %v1557_v6 = vmax.f32 %v2861_v0, %v2863_v1  ;;  %v2867_v7 = vadd.f32 %v1954_v4, %v1953_v2  ;;  %v2869_v8 = vadd.f32 %v2024_v5, %v2023_v3 }
 0x144   : > { %v1558_v9 = vmax.f32 %v2867_v7, %v2869_v8 }
 0x146   : > { %v1956_v10 = vpop.f32.mrb[12].mxu0  ;;  %v2026_v11 = vpop.f32.mrb[12].mxu1 }
 0x147   : > { %v1957_v12 = vpop.f32.mrb[13].mxu0  ;;  %v2027_v13 = vpop.f32.mrb[13].mxu1 }
 0x148   : > { %v2873_v14 = vadd.f32 %v1957_v12, %v1956_v10  ;;  %v2875_v15 = vadd.f32 %v2027_v13, %v2026_v11  ;;  %v1959_v16 = vpop.f32.mrb[14].mxu0  ;;  %v2029_v17 = vpop.f32.mrb[14].mxu1 }
 0x149   : > { %v1960_v18 = vpop.f32.mrb[15].mxu0  ;;  %v2030_v19 = vpop.f32.mrb[15].mxu1 }
 0x14a   : > { %v1559_v20 = vmax.f32 %v2873_v14, %v2875_v15  ;;  %v2879_v21 = vadd.f32 %v1960_v18, %v1959_v16  ;;  %v2881_v22 = vadd.f32 %v2030_v19, %v2029_v17 }
 0x14c   : > { %v1560_v23 = vmax.f32 %v2879_v21, %v2881_v22 }
 0x14e   : > { %v1962_v24 = vpop.f32.mrb[16].mxu0  ;;  %v2032_v25 = vpop.f32.mrb[16].mxu1 }
 0x14f   : > { %v1963_v26 = vpop.f32.mrb[17].mxu0  ;;  %v2033_v27 = vpop.f32.mrb[17].mxu1 }
 0x150   : > { %v2885_v28 = vadd.f32 %v1963_v26, %v1962_v24  ;;  %v2887_v29 = vadd.f32 %v2033_v27, %v2032_v25  ;;  %v1965_v30 = vpop.f32.mrb[18].mxu0  ;;  %v2035_v31 = vpop.f32.mrb[18].mxu1 }
 0x151   : > { %v1966_v32 = vpop.f32.mrb[19].mxu0  ;;  %v2036_v33 = vpop.f32.mrb[19].mxu1 }
 0x152   : > { %v1561_v34 = vmax.f32 %v2885_v28, %v2887_v29  ;;  %v2891_v35 = vadd.f32 %v1966_v32, %v1965_v30  ;;  %v2893_v38 = vadd.f32 %v2036_v33, %v2035_v31 }
 0x154   : > { %v1562_v39 = vmax.f32 %v2891_v35, %v2893_v38 }
 0x156   : > { %v1968_v40 = vpop.f32.mrb[20].mxu0  ;;  %v2038_v41 = vpop.f32.mrb[20].mxu1 }
 0x157   : > { %v1969_v46 = vpop.f32.mrb[21].mxu0  ;;  %v2039_v47 = vpop.f32.mrb[21].mxu1 }
 0x158   : > { %v2897_v48 = vadd.f32 %v1969_v46, %v1968_v40  ;;  %v2899_v49 = vadd.f32 %v2039_v47, %v2038_v41  ;;  %v1971_v52 = vpop.f32.mrb[22].mxu0  ;;  %v2041_v53 = vpop.f32.mrb[22].mxu1 }
 0x159   : > { %v1972_v54 = vpop.f32.mrb[23].mxu0  ;;  %v2042_v55 = vpop.f32.mrb[23].mxu1 }
 0x15a   : > { %v1563_v60 = vmax.f32 %v2897_v48, %v2899_v49  ;;  %v2903_v61 = vadd.f32 %v1972_v54, %v1971_v52  ;;  %v2905_v62 = vadd.f32 %v2042_v55, %v2041_v53 }
 0x15c   : > { %v1564_v63 = vmax.f32 %v2903_v61, %v2905_v62 }
 0x15e   : > { %v1974_v2 = vpop.f32.mrb[24].mxu0  ;;  %v2044_v3 = vpop.f32.mrb[24].mxu1 }
 0x15f   : > { %v1975_v4 = vpop.f32.mrb[25].mxu0  ;;  %v2045_v5 = vpop.f32.mrb[25].mxu1 }
 0x160   : > { %v2909_v10 = vadd.f32 %v1975_v4, %v1974_v2  ;;  %v2911_v11 = vadd.f32 %v2045_v5, %v2044_v3  ;;  %v1977_v12 = vpop.f32.mrb[26].mxu0  ;;  %v2047_v13 = vpop.f32.mrb[26].mxu1 }
 0x161   : > { %v1978_v16 = vpop.f32.mrb[27].mxu0  ;;  %v2048_v17 = vpop.f32.mrb[27].mxu1 }
 0x162   : > { %v2915_v19 = vadd.f32 %v1978_v16, %v1977_v12  ;;  %v2917_v24 = vadd.f32 %v2048_v17, %v2047_v13  ;;  %v3061_v62 = vmax.f32 %v2909_v10, %v2911_v11 }
 0x166   : > { %v1980_v26 = vpop.f32.mrb[28].mxu0  ;;  %v2050_v27 = vpop.f32.mrb[28].mxu1 }
 0x167   : > { %v1981_v30 = vpop.f32.mrb[29].mxu0  ;;  %v2051_v31 = vpop.f32.mrb[29].mxu1 }
 0x168   : > { %v2921_v32 = vadd.f32 %v1981_v30, %v1980_v26  ;;  %v2923_v33 = vadd.f32 %v2051_v31, %v2050_v27  ;;  %v1983_v40 = vpop.f32.mrb[30].mxu0  ;;  %v2053_v41 = vpop.f32.mrb[30].mxu1 }
 0x169   : > { %v1984_v46 = vpop.f32.mrb[31].mxu0  ;;  %v2054_v47 = vpop.f32.mrb[31].mxu1 }
 0x16a   : > { %v2927_v53 = vadd.f32 %v1984_v46, %v1983_v40  ;;  %v2929_v54 = vadd.f32 %v2054_v47, %v2053_v41 }
 0x16e   : > { %v1986_v2 = vpop.f32.mrb[32].mxu0  ;;  %v2056_v3 = vpop.f32.mrb[32].mxu1 }
 0x16f   : > { %v1987_v4 = vpop.f32.mrb[33].mxu0  ;;  %v2057_v5 = vpop.f32.mrb[33].mxu1 }
 0x170   : > { %v2933_v12 = vadd.f32 %v1987_v4, %v1986_v2  ;;  %v2935_v13 = vadd.f32 %v2057_v5, %v2056_v3  ;;  %v1989_v16 = vpop.f32.mrb[34].mxu0  ;;  %v2059_v17 = vpop.f32.mrb[34].mxu1 }
 0x171   : > { %v1990_v26 = vpop.f32.mrb[35].mxu0  ;;  %v2060_v27 = vpop.f32.mrb[35].mxu1 }
 0x172   : > { %v2941_v31 = vadd.f32 %v1990_v26, %v1989_v16  ;;  %v2943_v40 = vadd.f32 %v2060_v27, %v2059_v17  ;;  %v2950_v17 = vld [vmem:[%s3059_s2] ss:$0 sm:$0xff] }
 0x174   : > { %v1570_v41 = vmax.f32 %v2941_v31, %v2943_v40 }
 0x176   : > { %v2078_v46 = vpop.f32.mrb[36].mxu0  ;;  %v2148_v47 = vpop.f32.mrb[36].mxu1 }
 0x177   : > { %v2079_v2 = vpop.f32.mrb[37].mxu0  ;;  %v2149_v3 = vpop.f32.mrb[37].mxu1 }
 0x178   : > { %v2080_v4 = vadd.f32 %v2079_v2, %v2078_v46  ;;  %v2150_v5 = vadd.f32 %v2149_v3, %v2148_v47  ;;  %v2081_v55 = vpop.f32.mrb[38].mxu0  ;;  %v2151_v52 = vpop.f32.mrb[38].mxu1 }
 0x179   : > { %v2082_v25 = vpop.f32.mrb[39].mxu0  ;;  %v2152_v18 = vpop.f32.mrb[39].mxu1 }
 0x17a   : > { %v1571_v30 = vmax.f32 %v2080_v4, %v2150_v5  ;;  %v2083_v16 = vadd.f32 %v2082_v25, %v2081_v55  ;;  %v2153_v26 = vadd.f32 %v2152_v18, %v2151_v52 }
 0x17c   : > { %v1589_v27 = vmax.f32 %v1553_v42, %v1571_v30  ;;  %v1572_v46 = vmax.f32 %v2083_v16, %v2153_v26 }
 0x17e   : > { %v1614_v47 = vadd.f32 %v2950_v17, %v1589_v27  ;;  %v1590_v2 = vmax.f32 %v1554_v45, %v1572_v46  ;;  %v2084_v3 = vpop.f32.mrb[40].mxu0  ;;  %v2154_v25 = vpop.f32.mrb[40].mxu1 }
 0x17f   : > { %v2085_v18 = vpop.f32.mrb[41].mxu0  ;;  %v2155_v52 = vpop.f32.mrb[41].mxu1 }
 0x180   : > { %v1632_v36 = vmax.f32 %v1614_v47, 0.0  ;;  %v1615_v37 = vadd.f32 %v2950_v17, %v1590_v2  ;;  %v2086_v42 = vadd.f32 %v2085_v18, %v2084_v3  ;;  %v2156_v55 = vadd.f32 %v2155_v52, %v2154_v25  ;;  %v2087_v30 = vpop.f32.mrb[42].mxu0  ;;  %v2157_v4 = vpop.f32.mrb[42].mxu1 }
 0x181   : > { %v2088_v43 = vpop.f32.mrb[43].mxu0  ;;  %v2158_v44 = vpop.f32.mrb[43].mxu1 }
 0x182   : > { %1650 = vst [vmem:[%s2962_s23] sm:$0xff] %v1632_v36  ;;  %v1633_v45 = vmax.f32 %v1615_v37, 0.0  ;;  %v1573_v5 = vmax.f32 %v2086_v42, %v2156_v55  ;;  %v2089_v16 = vadd.f32 %v2088_v43, %v2087_v30  ;;  %v2159_v26 = vadd.f32 %v2158_v44, %v2157_v4 }
 0x184   : > { %1651 = vst [vmem:[%s2962_s23 + $0x8] sm:$0xff] %v1633_v45  ;;  %v1591_v27 = vmax.f32 %v1555_v56, %v1573_v5  ;;  %v1574_v46 = vmax.f32 %v2089_v16, %v2159_v26 }
 0x186   : > { %v1616_v47 = vadd.f32 %v2950_v17, %v1591_v27  ;;  %v1592_v2 = vmax.f32 %v1556_v59, %v1574_v46  ;;  %v2090_v3 = vpop.f32.mrb[44].mxu0  ;;  %v2160_v25 = vpop.f32.mrb[44].mxu1 }
 0x187   : > { %v2091_v18 = vpop.f32.mrb[45].mxu0  ;;  %v2161_v52 = vpop.f32.mrb[45].mxu1 }
 0x188   : > { %v1634_v36 = vmax.f32 %v1616_v47, 0.0  ;;  %v1617_v37 = vadd.f32 %v2950_v17, %v1592_v2  ;;  %v2092_v42 = vadd.f32 %v2091_v18, %v2090_v3  ;;  %v2162_v55 = vadd.f32 %v2161_v52, %v2160_v25  ;;  %v2093_v50 = vpop.f32.mrb[46].mxu0  ;;  %v2163_v51 = vpop.f32.mrb[46].mxu1 }
 0x189   : > { %v2094_v56 = vpop.f32.mrb[47].mxu0  ;;  %v2164_v30 = vpop.f32.mrb[47].mxu1 }
 0x18a   : > { %1652 = vst [vmem:[%s2962_s23 + $0x10] sm:$0xff] %v1634_v36  ;;  %v1635_v4 = vmax.f32 %v1617_v37, 0.0  ;;  %v1575_v43 = vmax.f32 %v2092_v42, %v2162_v55  ;;  %v2095_v44 = vadd.f32 %v2094_v56, %v2093_v50  ;;  %v2165_v57 = vadd.f32 %v2164_v30, %v2163_v51 }
 0x18c   : > { %1653 = vst [vmem:[%s2962_s23 + $0x18] sm:$0xff] %v1635_v4  ;;  %v1593_v58 = vmax.f32 %v1557_v6, %v1575_v43  ;;  %v1576_v59 = vmax.f32 %v2095_v44, %v2165_v57 }
 0x18e   : > { %v1618_v45 = vadd.f32 %v2950_v17, %v1593_v58  ;;  %v1594_v5 = vmax.f32 %v1558_v9, %v1576_v59  ;;  %v2096_v16 = vpop.f32.mrb[48].mxu0  ;;  %v2166_v26 = vpop.f32.mrb[48].mxu1 }
 0x18f   : > { %v2097_v27 = vpop.f32.mrb[49].mxu0  ;;  %v2167_v46 = vpop.f32.mrb[49].mxu1 }
 0x190   : > { %v1636_v47 = vmax.f32 %v1618_v45, 0.0  ;;  %v1619_v2 = vadd.f32 %v2950_v17, %v1594_v5  ;;  %v2098_v3 = vadd.f32 %v2097_v27, %v2096_v16  ;;  %v2168_v25 = vadd.f32 %v2167_v46, %v2166_v26  ;;  %v2099_v0 = vpop.f32.mrb[50].mxu0  ;;  %v2169_v1 = vpop.f32.mrb[50].mxu1 }
 0x191   : > { %v2100_v6 = vpop.f32.mrb[51].mxu0  ;;  %v2170_v18 = vpop.f32.mrb[51].mxu1 }
 0x192   : > { %1654 = vst [vmem:[%s2962_s23 + $0x20] sm:$0xff] %v1636_v47  ;;  %v1637_v52 = vmax.f32 %v1619_v2, 0.0  ;;  %v1577_v36 = vmax.f32 %v2098_v3, %v2168_v25  ;;  %v2101_v37 = vadd.f32 %v2100_v6, %v2099_v0  ;;  %v2171_v7 = vadd.f32 %v2170_v18, %v2169_v1 }
 0x194   : > { %1655 = vst [vmem:[%s2962_s23 + $0x28] sm:$0xff] %v1637_v52  ;;  %v1595_v8 = vmax.f32 %v1559_v20, %v1577_v36  ;;  %v1578_v9 = vmax.f32 %v2101_v37, %v2171_v7 }
 0x196   : > { %v1620_v42 = vadd.f32 %v2950_v17, %v1595_v8  ;;  %v1596_v55 = vmax.f32 %v1560_v23, %v1578_v9  ;;  %v2102_v50 = vpop.f32.mrb[52].mxu0  ;;  %v2172_v51 = vpop.f32.mrb[52].mxu1 }
 0x197   : > { %v2103_v56 = vpop.f32.mrb[53].mxu0  ;;  %v2173_v30 = vpop.f32.mrb[53].mxu1 }
 0x198   : > { %v1638_v4 = vmax.f32 %v1620_v42, 0.0  ;;  %v1621_v43 = vadd.f32 %v2950_v17, %v1596_v55  ;;  %v2104_v44 = vadd.f32 %v2103_v56, %v2102_v50  ;;  %v2174_v57 = vadd.f32 %v2173_v30, %v2172_v51  ;;  %v2105_v14 = vpop.f32.mrb[54].mxu0  ;;  %v2175_v15 = vpop.f32.mrb[54].mxu1 }
 0x199   : > { %v2106_v20 = vpop.f32.mrb[55].mxu0  ;;  %v2176_v58 = vpop.f32.mrb[55].mxu1 }
 0x19a   : > { %1656 = vst [vmem:[%s2962_s23 + $0x30] sm:$0xff] %v1638_v4  ;;  %v1639_v59 = vmax.f32 %v1621_v43, 0.0  ;;  %v1579_v45 = vmax.f32 %v2104_v44, %v2174_v57  ;;  %v2107_v5 = vadd.f32 %v2106_v20, %v2105_v14  ;;  %v2177_v21 = vadd.f32 %v2176_v58, %v2175_v15 }
 0x19b   : > { %v3062_v20 = vmax.f32 %v2915_v19, %v2917_v24  ;;  %v3063_v24 = vmax.f32 %v2921_v32, %v2923_v33 }
 0x19c   : > { %1657 = vst [vmem:[%s2962_s23 + $0x38] sm:$0xff] %v1639_v59  ;;  %v1597_v22 = vmax.f32 %v1561_v34, %v1579_v45  ;;  %v1580_v23 = vmax.f32 %v2107_v5, %v2177_v21 }
 0x19e   : > { %v1622_v16 = vadd.f32 %v2950_v17, %v1597_v22  ;;  %v1598_v26 = vmax.f32 %v1562_v39, %v1580_v23  ;;  %v2108_v27 = vpop.f32.mrb[56].mxu0  ;;  %v2178_v46 = vpop.f32.mrb[56].mxu1 }
 0x19f   : > { %v2109_v47 = vpop.f32.mrb[57].mxu0  ;;  %v2179_v2 = vpop.f32.mrb[57].mxu1 }
 0x1a0   : > { %v1640_v3 = vmax.f32 %v1622_v16, 0.0  ;;  %v1623_v25 = vadd.f32 %v2950_v17, %v1598_v26  ;;  %v2110_v0 = vadd.f32 %v2109_v47, %v2108_v27  ;;  %v2180_v1 = vadd.f32 %v2179_v2, %v2178_v46  ;;  %v2111_v28 = vpop.f32.mrb[58].mxu0  ;;  %v2181_v29 = vpop.f32.mrb[58].mxu1 }
 0x1a1   : > { %v2112_v34 = vpop.f32.mrb[59].mxu0  ;;  %v2182_v6 = vpop.f32.mrb[59].mxu1 }
 0x1a2   : > { %1658 = vst [vmem:[%s2962_s23 + $0x40] sm:$0xff] %v1640_v3  ;;  %v1641_v18 = vmax.f32 %v1623_v25, 0.0  ;;  %v1581_v52 = vmax.f32 %v2110_v0, %v2180_v1  ;;  %v2113_v36 = vadd.f32 %v2112_v34, %v2111_v28  ;;  %v2183_v35 = vadd.f32 %v2182_v6, %v2181_v29 }
 0x1a3   : > { %v3064_v28 = vmax.f32 %v2927_v53, %v2929_v54 }
 0x1a4   : > { %1659 = vst [vmem:[%s2962_s23 + $0x48] sm:$0xff] %v1641_v18  ;;  %v1599_v38 = vmax.f32 %v1563_v60, %v1581_v52  ;;  %v1582_v39 = vmax.f32 %v2113_v36, %v2183_v35 }
 0x1a6   : > { %v1624_v37 = vadd.f32 %v2950_v17, %v1599_v38  ;;  %v1600_v7 = vmax.f32 %v1564_v63, %v1582_v39  ;;  %v2114_v8 = vpop.f32.mrb[60].mxu0  ;;  %v2184_v9 = vpop.f32.mrb[60].mxu1 }
 0x1a7   : > { %v2115_v42 = vpop.f32.mrb[61].mxu0  ;;  %v2185_v55 = vpop.f32.mrb[61].mxu1 }
 0x1a8   : > { %v1642_v50 = vmax.f32 %v1624_v37, 0.0  ;;  %v1625_v51 = vadd.f32 %v2950_v17, %v1600_v7  ;;  %v2116_v56 = vadd.f32 %v2115_v42, %v2114_v8  ;;  %v2186_v30 = vadd.f32 %v2185_v55, %v2184_v9  ;;  %v2117_v48 = vpop.f32.mrb[62].mxu0  ;;  %v2187_v49 = vpop.f32.mrb[62].mxu1 }
 0x1a9   : > { %v2118_v60 = vpop.f32.mrb[63].mxu0  ;;  %v2188_v4 = vpop.f32.mrb[63].mxu1  ;;  %v3065_v42 = vmax.f32 %v2933_v12, %v2935_v13 }
 0x1aa   : > { %1660 = vst [vmem:[%s2962_s23 + $0x50] sm:$0xff] %v1642_v50  ;;  %v1643_v43 = vmax.f32 %v1625_v51, 0.0  ;;  %v1583_v44 = vmax.f32 %v2116_v56, %v2186_v30  ;;  %v2119_v57 = vadd.f32 %v2118_v60, %v2117_v48  ;;  %v2189_v61 = vadd.f32 %v2188_v4, %v2187_v49 }
 0x1ac   : > { %1661 = vst [vmem:[%s2962_s23 + $0x58] sm:$0xff] %v1643_v43  ;;  %v1601_v63 = vmax.f32 %v3061_v62, %v1583_v44  ;;  %v1584_v14 = vmax.f32 %v2119_v57, %v2189_v61 }
 0x1ae   : > { %v1626_v15 = vadd.f32 %v2950_v17, %v1601_v63  ;;  %v1602_v58 = vmax.f32 %v3062_v20, %v1584_v14  ;;  %v2120_v59 = vpop.f32.mrb[64].mxu0  ;;  %v2190_v45 = vpop.f32.mrb[64].mxu1 }
 0x1af   : > { %v2121_v5 = vpop.f32.mrb[65].mxu0  ;;  %v2191_v21 = vpop.f32.mrb[65].mxu1 }
 0x1b0   : > { %v1644_v22 = vmax.f32 %v1626_v15, 0.0  ;;  %v1627_v23 = vadd.f32 %v2950_v17, %v1602_v58  ;;  %v2122_v16 = vadd.f32 %v2121_v5, %v2120_v59  ;;  %v2192_v26 = vadd.f32 %v2191_v21, %v2190_v45  ;;  %v2123_v10 = vpop.f32.mrb[66].mxu0  ;;  %v2193_v11 = vpop.f32.mrb[66].mxu1 }
 0x1b1   : > { %v2124_v27 = vpop.f32.mrb[67].mxu0  ;;  %v2194_v46 = vpop.f32.mrb[67].mxu1 }
 0x1b2   : > { %1662 = vst [vmem:[%s2962_s23 + $0x60] sm:$0xff] %v1644_v22  ;;  %v1645_v47 = vmax.f32 %v1627_v23, 0.0  ;;  %v1585_v2 = vmax.f32 %v2122_v16, %v2192_v26  ;;  %v2125_v3 = vadd.f32 %v2124_v27, %v2123_v10  ;;  %v2195_v19 = vadd.f32 %v2194_v46, %v2193_v11 }
 0x1b4   : > { %1663 = vst [vmem:[%s2962_s23 + $0x68] sm:$0xff] %v1645_v47  ;;  %v1603_v25 = vmax.f32 %v3063_v24, %v1585_v2  ;;  %v1586_v0 = vmax.f32 %v2125_v3, %v2195_v19 }
 0x1b6   : > { %v1628_v1 = vadd.f32 %v2950_v17, %v1603_v25  ;;  %v1604_v29 = vmax.f32 %v3064_v28, %v1586_v0  ;;  %v2126_v34 = vpop.f32.mrb[68].mxu0  ;;  %v2196_v6 = vpop.f32.mrb[68].mxu1 }
 0x1b7   : > { %v2127_v18 = vpop.f32.mrb[69].mxu0  ;;  %v2197_v52 = vpop.f32.mrb[69].mxu1 }
 0x1b8   : > { %v1646_v36 = vmax.f32 %v1628_v1, 0.0  ;;  %v1629_v35 = vadd.f32 %v2950_v17, %v1604_v29  ;;  %v2128_v38 = vadd.f32 %v2127_v18, %v2126_v34  ;;  %v2198_v39 = vadd.f32 %v2197_v52, %v2196_v6  ;;  %v2129_v32 = vpop.f32.mrb[70].mxu0  ;;  %v2199_v33 = vpop.f32.mrb[70].mxu1 }
 0x1b9   : > { %v2130_v37 = vpop.f32.mrb[71].mxu0  ;;  %v2200_v7 = vpop.f32.mrb[71].mxu1 }
 0x1ba   : > { %1664 = vst [vmem:[%s2962_s23 + $0x70] sm:$0xff] %v1646_v36  ;;  %v1647_v8 = vmax.f32 %v1629_v35, 0.0  ;;  %v1587_v53 = vmax.f32 %v2128_v38, %v2198_v39  ;;  %v2131_v54 = vadd.f32 %v2130_v37, %v2129_v32  ;;  %v2201_v9 = vadd.f32 %v2200_v7, %v2199_v33 }
 0x1bc   : > { %1665 = vst [vmem:[%s2962_s23 + $0x78] sm:$0xff] %v1647_v8  ;;  %v1605_v55 = vmax.f32 %v3065_v42, %v1587_v53  ;;  %v1588_v50 = vmax.f32 %v2131_v54, %v2201_v9 }
 0x1be   : > { %v1630_v51 = vadd.f32 %v2950_v17, %v1605_v55  ;;  %v1606_v56 = vmax.f32 %v1570_v41, %v1588_v50 }
 0x1c0   : > { %v1648_v30 = vmax.f32 %v1630_v51, 0.0  ;;  %v1631_v48 = vadd.f32 %v2950_v17, %v1606_v56 }
 0x1c2   : > { %1666 = vst [vmem:[%s2962_s23 + $0x80] sm:$0xff] %v1648_v30  ;;  %v1649_v49 = vmax.f32 %v1631_v48, 0.0 }
 0x1c4   : > { %1667 = vst [vmem:[%s2962_s23 + $0x88] sm:$0xff] %v1649_v49 }
 0x1c5 PF: > { %p10_p9 = scmp.ge.s32.totalorder %s2417_s16, 4   ;;  %s3066_s12 = smov %s2374_s13 }
 0x1c6   : > { %s3067_s13 = smov %s2426_s19  ;;  %s3068_s14 = smov %s2417_s16 }
 0x1c7   :  { %12 = sbr.rel (!%p10_p9) target bundleno = 2 (0x2), region = 108 }

// kernel: net_forward.6
= control target key start
LH: loop header
LB: loop body
LE: loop exit
PB: predicated region body
PF: predicated region fallthrough
CT: control target
= control target key end

     0   :  { %vm320_vm0 = vcmask 1041408   ;;  %vm313_vm1 = vcmask 949248   ;;  %s1782_s1 = inlined_call_operand.vmem [shape: bf16[500,128], index: 1, kind: input, shape index: {}]   ;;  %s1783_s0 = inlined_call_operand.vmem [shape: bf16[4,32,500], index: 0, kind: input, shape index: {}]   ;;  %s1784_s2 = inlined_call_operand.vmem [shape: f32[1,128], index: 2, kind: input, shape index: {}]   ;;  %s1785_s3 = inlined_call_operand.vmem [shape: f32[32,128], index: 3, kind: output, shape index: {}]  }
   0x1   :  { %v1338_v0 = vld [vmem:[%s1782_s1 + $0x40] sm:$0xff]   ;;  %v1361_v4 = vld [vmem:[%s1782_s1 + $0x48] sm:$0xff]   ;;  %v1385_v8 = vld [vmem:[%s1782_s1 + $0x50] sm:$0xff]  }
   0x2   :  { %v1343_v1 = vld [vmem:[%s1782_s1 + $0xc0] sm:$0xff]   ;;  %1007 = vmatprep.subr.bf16.mxu0 %v1338_v0  ;;  %v1367_v5 = vld [vmem:[%s1782_s1 + $0xc8] sm:$0xff]   ;;  %v1391_v9 = vld [vmem:[%s1782_s1 + $0xd0] sm:$0xff]  }
   0x3   :  { %v1349_v2 = vld [vmem:[%s1782_s1] sm:$0xff]   ;;  %1035 = vmatprep.subr.bf16.mxu1 %v1343_v1  ;;  %v1373_v6 = vld [vmem:[%s1782_s1 + $0x8] sm:$0xff]   ;;  %v1397_v10 = vld [vmem:[%s1782_s1 + $0x10] sm:$0xff]  }
   0x4   :  { %v1355_v3 = vld [vmem:[%s1782_s1 + $0x80] sm:$0xff]   ;;  %1008 = vmatpush3.bf16.msra.mxu0 %v1349_v2  ;;  %v1379_v7 = vld [vmem:[%s1782_s1 + $0x88] sm:$0xff]   ;;  %v1403_v11 = vld [vmem:[%s1782_s1 + $0x90] sm:$0xff]  }
   0x5   :  { %1036 = vmatpush3.bf16.msra.mxu1 %v1355_v3  ;;  %1009 = vmatprep.subr.bf16.mxu0 %v1361_v4  ;;  %v1409_v12 = vld [vmem:[%s1782_s1 + $0x58] sm:$0xff]   ;;  %v1433_v16 = vld [vmem:[%s1782_s1 + $0x60] sm:$0xff]   ;;  %v1457_v20 = vld [vmem:[%s1782_s1 + $0x68] sm:$0xff]  }
   0x6   :  { %1037 = vmatprep.subr.bf16.mxu1 %v1367_v5  ;;  %v1415_v13 = vld [vmem:[%s1782_s1 + $0xd8] sm:$0xff]   ;;  %v1439_v17 = vld [vmem:[%s1782_s1 + $0xe0] sm:$0xff]   ;;  %v1463_v21 = vld [vmem:[%s1782_s1 + $0xe8] sm:$0xff]  }
   0x7   :  { %v1421_v14 = vld [vmem:[%s1782_s1 + $0x18] sm:$0xff]   ;;  %v1445_v18 = vld [vmem:[%s1782_s1 + $0x20] sm:$0xff]   ;;  %v1469_v22 = vld [vmem:[%s1782_s1 + $0x28] sm:$0xff]  }
   0x8   :  { %1010 = vmatpush3.bf16.msra.mxu0 %v1373_v6  ;;  %v1427_v15 = vld [vmem:[%s1782_s1 + $0x98] sm:$0xff]   ;;  %v1451_v19 = vld [vmem:[%s1782_s1 + $0xa0] sm:$0xff]   ;;  %v1475_v23 = vld [vmem:[%s1782_s1 + $0xa8] sm:$0xff]  }
   0x9   :  { %1038 = vmatpush3.bf16.msra.mxu1 %v1379_v7  ;;  %1011 = vmatprep.subr.bf16.mxu0 %v1385_v8  ;;  %v1481_v24 = vld [vmem:[%s1782_s1 + $0x70] sm:$0xff]   ;;  %v1505_v28 = vld [vmem:[%s1782_s1 + $0x78] sm:$0xff]  }
   0xa   :  { %1039 = vmatprep.subr.bf16.mxu1 %v1391_v9  ;;  %v1487_v25 = vld [vmem:[%s1782_s1 + $0xf0] sm:$0xff]   ;;  %v1511_v29 = vld [vmem:[%s1782_s1 + $0xf8] ss:$0 sps:$4 sm:$0x33]   ;;  %v1272_v35 = vld [vmem:[%s1783_s0 + $0xc] ss:$16 sps:$4 sm:$0xff]  }
   0xb   :  { %v1493_v26 = vld [vmem:[%s1782_s1 + $0x30] sm:$0xff]   ;;  %v1516_v30 = vld [vmem:[%s1782_s1 + $0x38] sm:$0xff]   ;;  %950 = vmatprep.mubr.msk.bf16.mxu1 %vm313_vm1, %v1272_v35 }
   0xc   :  { %1012 = vmatpush3.bf16.msra.mxu0 %v1397_v10  ;;  %v1499_v27 = vld [vmem:[%s1782_s1 + $0xb0] sm:$0xff]   ;;  %v1524_v31 = vld [vmem:[%s1782_s1 + $0xb8] sm:$0xff]  }
   0xd   :  { %1040 = vmatpush3.bf16.msra.mxu1 %v1403_v11  ;;  %1013 = vmatprep.subr.bf16.mxu0 %v1409_v12  ;;  %v1267_v32 = vld [vmem:[%s1783_s0] ss:$16 sps:$4 sm:$0xff]   ;;  %v1269_v33 = vld [vmem:[%s1783_s0 + $0x4] ss:$16 sps:$4 sm:$0xff]   ;;  %v1270_v34 = vld [vmem:[%s1783_s0 + $0x8] ss:$16 sps:$4 sm:$0xff]  }
   0xe   :  { %1041 = vmatprep.subr.bf16.mxu1 %v1415_v13  ;;  %356 = vmatprep.mubr.bf16.mxu0 %v1269_v33  ;;  %v1273_v36 = vld [vmem:[%s1783_s0 + $0x24] ss:$16 sps:$4 sm:$0xff]   ;;  %v1275_v37 = vld [vmem:[%s1783_s0 + $0x2c] ss:$16 sps:$4 sm:$0xff]   ;;  %v1277_v38 = vld [vmem:[%s1783_s0 + $0x20] ss:$16 sps:$4 sm:$0xff]  }
   0xf   :  { %v1281_v39 = vld [vmem:[%s1783_s0 + $0x44] ss:$16 sps:$4 sm:$0xff]   ;;  %v1278_v40 = vld [vmem:[%s1783_s0 + $0x28] ss:$16 sps:$4 sm:$0xff]   ;;  %v1284_v41 = vld [vmem:[%s1783_s0 + $0x4c] ss:$16 sps:$4 sm:$0xff]  }
  0x10   :  { %1014 = vmatpush3.bf16.msra.mxu0 %v1421_v14  ;;  %v1279_v42 = vld [vmem:[%s1783_s0 + $0x40] ss:$16 sps:$4 sm:$0xff]   ;;  %v1285_v43 = vld [vmem:[%s1783_s0 + $0x64] ss:$16 sps:$4 sm:$0xff]   ;;  %v1282_v44 = vld [vmem:[%s1783_s0 + $0x48] ss:$16 sps:$4 sm:$0xff]  }
  0x11   :  { %1042 = vmatpush3.bf16.msra.mxu1 %v1427_v15  ;;  %1015 = vmatprep.subr.bf16.mxu0 %v1433_v16  ;;  %v1287_v45 = vld [vmem:[%s1783_s0 + $0x6c] ss:$16 sps:$4 sm:$0xff]   ;;  %v1289_v46 = vld [vmem:[%s1783_s0 + $0x60] ss:$16 sps:$4 sm:$0xff]   ;;  %v1293_v47 = vld [vmem:[%s1783_s0 + $0x84] ss:$16 sps:$4 sm:$0xff]  }
  0x12   :  { %1043 = vmatprep.subr.bf16.mxu1 %v1439_v17  ;;  %v1290_v48 = vld [vmem:[%s1783_s0 + $0x68] ss:$16 sps:$4 sm:$0xff]   ;;  %v1296_v49 = vld [vmem:[%s1783_s0 + $0x8c] ss:$16 sps:$4 sm:$0xff]   ;;  %v1291_v50 = vld [vmem:[%s1783_s0 + $0x80] ss:$16 sps:$4 sm:$0xff]  }
  0x13   :  { %v1297_v51 = vld [vmem:[%s1783_s0 + $0xa4] ss:$16 sps:$4 sm:$0xff]   ;;  %v1294_v52 = vld [vmem:[%s1783_s0 + $0x88] ss:$16 sps:$4 sm:$0xff]   ;;  %v1299_v53 = vld [vmem:[%s1783_s0 + $0xac] ss:$16 sps:$4 sm:$0xff]  }
  0x14   :  { %1016 = vmatpush3.bf16.msra.mxu0 %v1445_v18  ;;  %v1301_v54 = vld [vmem:[%s1783_s0 + $0xa0] ss:$16 sps:$4 sm:$0xff]   ;;  %v1305_v55 = vld [vmem:[%s1783_s0 + $0xc4] ss:$16 sps:$4 sm:$0xff]   ;;  %v1302_v56 = vld [vmem:[%s1783_s0 + $0xa8] ss:$16 sps:$4 sm:$0xff]  }
  0x15   :  { %1044 = vmatpush3.bf16.msra.mxu1 %v1451_v19  ;;  %1017 = vmatprep.subr.bf16.mxu0 %v1457_v20  ;;  %v1308_v57 = vld [vmem:[%s1783_s0 + $0xcc] ss:$16 sps:$4 sm:$0xff]   ;;  %v1303_v58 = vld [vmem:[%s1783_s0 + $0xc0] ss:$16 sps:$4 sm:$0xff]   ;;  %v1309_v59 = vld [vmem:[%s1783_s0 + $0xe4] ss:$16 sps:$4 sm:$0xff]  }
  0x16   :  { %1045 = vmatprep.subr.bf16.mxu1 %v1463_v21  ;;  %v1306_v60 = vld [vmem:[%s1783_s0 + $0xc8] ss:$16 sps:$4 sm:$0xff]   ;;  %v1311_v61 = vld [vmem:[%s1783_s0 + $0xec] ss:$16 sps:$4 sm:$0xff]   ;;  %v1313_v62 = vld [vmem:[%s1783_s0 + $0xe0] ss:$16 sps:$4 sm:$0xff]  }
  0x17   :  { %v1314_v63 = vld [vmem:[%s1783_s0 + $0xe8] ss:$16 sps:$4 sm:$0xff]  }
  0x18   :  { %1018 = vmatpush3.bf16.msra.mxu0 %v1469_v22 }
  0x19   :  { %1046 = vmatpush3.bf16.msra.mxu1 %v1475_v23  ;;  %1019 = vmatprep.subr.bf16.mxu0 %v1481_v24 }
  0x1a   :  { %1047 = vmatprep.subr.bf16.mxu1 %v1487_v25 }
  0x1c   :  { %1020 = vmatpush3.bf16.msra.mxu0 %v1493_v26 }
  0x1d   :  { %1048 = vmatpush3.bf16.msra.mxu1 %v1499_v27  ;;  %1021 = vmatprep.subr.bf16.mxu0 %v1505_v28 }
  0x1e   :  { %1231 = vmatprep.subr.msk.bf16.mxu1 %vm320_vm0, %v1511_v29 }
  0x20   :  { %1022 = vmatpush3.bf16.msra.mxu0 %v1516_v30 }
  0x21   :  { %1050 = vmatpush3.bf16.msra.mxu1 %v1524_v31  ;;  %1063 = vmatprep.subr.bf16.mxu0 %v1338_v0 }
  0x22   :  { %1091 = vmatprep.subr.bf16.mxu1 %v1343_v1 }
  0x23   :  { %357 = vmatmul.mubr.bf16.vlgmr.msra.gmra.mrb[0].mxu0 %v1267_v32 }
  0x24   :  { %1064 = vmatpush3.bf16.msra.mxu0 %v1349_v2  ;;  %406 = vmatmul.mubr.bf16.vlgmr.msra.gmra.mrb[0].mxu1 %v1270_v34 }
  0x25   :  { %1065 = vmatprep.subr.bf16.mxu0 %v1361_v4  ;;  %1092 = vmatpush3.bf16.msra.mxu1 %v1355_v3 }
  0x26   :  { %364 = vmatprep.mubr.bf16.mxu0 %v1273_v36  ;;  %1093 = vmatprep.subr.bf16.mxu1 %v1367_v5 }
  0x27   :  { %951 = vmatprep.mubr.msk.bf16.mxu1 %vm313_vm1, %v1275_v37 }
  0x28   :  { %1066 = vmatpush3.bf16.msra.mxu0 %v1373_v6 }
  0x29   :  { %1067 = vmatprep.subr.bf16.mxu0 %v1385_v8  ;;  %1094 = vmatpush3.bf16.msra.mxu1 %v1379_v7 }
  0x2a   :  { %1095 = vmatprep.subr.bf16.mxu1 %v1391_v9 }
  0x2b   :  { %365 = vmatmul.mubr.bf16.gmra.mrb[4].mxu0 %v1277_v38 }
  0x2c   :  { %1068 = vmatpush3.bf16.msra.mxu0 %v1397_v10  ;;  %507 = vmatprep.mubr.bf16.mxu0 %v1281_v39 }
  0x2d   :  { %1069 = vmatprep.subr.bf16.mxu0 %v1409_v12  ;;  %414 = vmatmul.mubr.bf16.gmra.mrb[4].mxu1 %v1278_v40 }
  0x2e   :  { %1096 = vmatpush3.bf16.msra.mxu1 %v1403_v11  ;;  %968 = vmatprep.mubr.msk.bf16.mxu1 %vm313_vm1, %v1284_v41 }
  0x2f   :  { %1097 = vmatprep.subr.bf16.mxu1 %v1415_v13 }
  0x30   :  { %1070 = vmatpush3.bf16.msra.mxu0 %v1421_v14 }
  0x31   :  { %1071 = vmatprep.subr.bf16.mxu0 %v1433_v16 }
  0x32   :  { %1098 = vmatpush3.bf16.msra.mxu1 %v1427_v15 }
  0x33   :  { %1099 = vmatprep.subr.bf16.mxu1 %v1439_v17 }
  0x34   :  { %1072 = vmatpush3.bf16.msra.mxu0 %v1445_v18 }
  0x35   :  { %1073 = vmatprep.subr.bf16.mxu0 %v1457_v20 }
  0x36   :  { %1100 = vmatpush3.bf16.msra.mxu1 %v1451_v19 }
  0x37   :  { %1101 = vmatprep.subr.bf16.mxu1 %v1463_v21 }
  0x38   :  { %1074 = vmatpush3.bf16.msra.mxu0 %v1469_v22 }
  0x39   :  { %1075 = vmatprep.subr.bf16.mxu0 %v1481_v24 }
  0x3a   :  { %1102 = vmatpush3.bf16.msra.mxu1 %v1475_v23 }
  0x3b   :  { %1103 = vmatprep.subr.bf16.mxu1 %v1487_v25 }
  0x3c   :  { %1076 = vmatpush3.bf16.msra.mxu0 %v1493_v26 }
  0x3d   :  { %1077 = vmatprep.subr.bf16.mxu0 %v1505_v28 }
  0x3e   :  { %1104 = vmatpush3.bf16.msra.mxu1 %v1499_v27 }
  0x3f   :  { %1232 = vmatprep.subr.msk.bf16.mxu1 %vm320_vm0, %v1511_v29 }
  0x40   :  { %1078 = vmatpush3.bf16.msra.mxu0 %v1516_v30 }
  0x41   :  { %1119 = vmatprep.subr.bf16.mxu0 %v1338_v0 }
  0x42   :  { %1106 = vmatpush3.bf16.msra.mxu1 %v1524_v31 }
  0x43   :  { %508 = vmatmul.mubr.bf16.vlgmr.msra.gmra.mrb[8].mxu0 %v1279_v42  ;;  %1147 = vmatprep.subr.bf16.mxu1 %v1343_v1 }
  0x44   :  { %1120 = vmatpush3.bf16.msra.mxu0 %v1349_v2  ;;  %515 = vmatprep.mubr.bf16.mxu0 %v1285_v43 }
  0x45   :  { %557 = vmatmul.mubr.bf16.vlgmr.msra.gmra.mrb[8].mxu1 %v1282_v44  ;;  %1121 = vmatprep.subr.bf16.mxu0 %v1361_v4 }
  0x46   :  { %1148 = vmatpush3.bf16.msra.mxu1 %v1355_v3  ;;  %969 = vmatprep.mubr.msk.bf16.mxu1 %vm313_vm1, %v1287_v45 }
  0x47   :  { %1149 = vmatprep.subr.bf16.mxu1 %v1367_v5 }
  0x48   :  { %1122 = vmatpush3.bf16.msra.mxu0 %v1373_v6 }
  0x49   :  { %1123 = vmatprep.subr.bf16.mxu0 %v1385_v8 }
  0x4a   :  { %1150 = vmatpush3.bf16.msra.mxu1 %v1379_v7 }
  0x4b   :  { %516 = vmatmul.mubr.bf16.gmra.mrb[12].mxu0 %v1289_v46  ;;  %1151 = vmatprep.subr.bf16.mxu1 %v1391_v9 }
  0x4c   :  { %1124 = vmatpush3.bf16.msra.mxu0 %v1397_v10  ;;  %658 = vmatprep.mubr.bf16.mxu0 %v1293_v47 }
  0x4d   :  { %565 = vmatmul.mubr.bf16.gmra.mrb[12].mxu1 %v1290_v48  ;;  %1125 = vmatprep.subr.bf16.mxu0 %v1409_v12 }
  0x4e   :  { %1152 = vmatpush3.bf16.msra.mxu1 %v1403_v11  ;;  %986 = vmatprep.mubr.msk.bf16.mxu1 %vm313_vm1, %v1296_v49 }
  0x4f   :  { %1153 = vmatprep.subr.bf16.mxu1 %v1415_v13 }
  0x50   :  { %1126 = vmatpush3.bf16.msra.mxu0 %v1421_v14 }
  0x51   :  { %1127 = vmatprep.subr.bf16.mxu0 %v1433_v16 }
  0x52   :  { %1154 = vmatpush3.bf16.msra.mxu1 %v1427_v15 }
  0x53   :  { %1155 = vmatprep.subr.bf16.mxu1 %v1439_v17 }
  0x54   :  { %1128 = vmatpush3.bf16.msra.mxu0 %v1445_v18 }
  0x55   :  { %1129 = vmatprep.subr.bf16.mxu0 %v1457_v20 }
  0x56   :  { %1156 = vmatpush3.bf16.msra.mxu1 %v1451_v19 }
  0x57   :  { %1157 = vmatprep.subr.bf16.mxu1 %v1463_v21 }
  0x58   :  { %1130 = vmatpush3.bf16.msra.mxu0 %v1469_v22 }
  0x59   :  { %1131 = vmatprep.subr.bf16.mxu0 %v1481_v24 }
  0x5a   :  { %1158 = vmatpush3.bf16.msra.mxu1 %v1475_v23 }
  0x5b   :  { %1159 = vmatprep.subr.bf16.mxu1 %v1487_v25 }
  0x5c   :  { %1132 = vmatpush3.bf16.msra.mxu0 %v1493_v26 }
  0x5d   :  { %1133 = vmatprep.subr.bf16.mxu0 %v1505_v28 }
  0x5e   :  { %1160 = vmatpush3.bf16.msra.mxu1 %v1499_v27 }
  0x5f   :  { %1233 = vmatprep.subr.msk.bf16.mxu1 %vm320_vm0, %v1511_v29 }
  0x60   :  { %1134 = vmatpush3.bf16.msra.mxu0 %v1516_v30 }
  0x61   :  { %1175 = vmatprep.subr.bf16.mxu0 %v1338_v0 }
  0x62   :  { %1162 = vmatpush3.bf16.msra.mxu1 %v1524_v31 }
  0x63   :  { %659 = vmatmul.mubr.bf16.vlgmr.msra.gmra.mrb[16].mxu0 %v1291_v50  ;;  %1203 = vmatprep.subr.bf16.mxu1 %v1343_v1 }
  0x64   :  { %1176 = vmatpush3.bf16.msra.mxu0 %v1349_v2  ;;  %666 = vmatprep.mubr.bf16.mxu0 %v1297_v51 }
  0x65   :  { %708 = vmatmul.mubr.bf16.vlgmr.msra.gmra.mrb[16].mxu1 %v1294_v52  ;;  %1177 = vmatprep.subr.bf16.mxu0 %v1361_v4 }
  0x66   :  { %1204 = vmatpush3.bf16.msra.mxu1 %v1355_v3  ;;  %987 = vmatprep.mubr.msk.bf16.mxu1 %vm313_vm1, %v1299_v53 }
  0x67   :  { %1205 = vmatprep.subr.bf16.mxu1 %v1367_v5 }
  0x68   :  { %1178 = vmatpush3.bf16.msra.mxu0 %v1373_v6 }
  0x69   :  { %1179 = vmatprep.subr.bf16.mxu0 %v1385_v8 }
  0x6a   :  { %1206 = vmatpush3.bf16.msra.mxu1 %v1379_v7 }
  0x6b   :  { %1207 = vmatprep.subr.bf16.mxu1 %v1391_v9  ;;  %667 = vmatmul.mubr.bf16.gmra.mrb[20].mxu0 %v1301_v54 }
  0x6c   :  { %1180 = vmatpush3.bf16.msra.mxu0 %v1397_v10  ;;  %809 = vmatprep.mubr.bf16.mxu0 %v1305_v55 }
  0x6d   :  { %1181 = vmatprep.subr.bf16.mxu0 %v1409_v12  ;;  %716 = vmatmul.mubr.bf16.gmra.mrb[20].mxu1 %v1302_v56 }
  0x6e   :  { %1208 = vmatpush3.bf16.msra.mxu1 %v1403_v11  ;;  %1004 = vmatprep.mubr.msk.bf16.mxu1 %vm313_vm1, %v1308_v57 }
  0x6f   :  { %1209 = vmatprep.subr.bf16.mxu1 %v1415_v13 }
  0x70   :  { %1182 = vmatpush3.bf16.msra.mxu0 %v1421_v14 }
  0x71   :  { %1183 = vmatprep.subr.bf16.mxu0 %v1433_v16 }
  0x72   :  { %1210 = vmatpush3.bf16.msra.mxu1 %v1427_v15 }
  0x73   :  { %1211 = vmatprep.subr.bf16.mxu1 %v1439_v17 }
  0x74   :  { %1184 = vmatpush3.bf16.msra.mxu0 %v1445_v18 }
  0x75   :  { %1185 = vmatprep.subr.bf16.mxu0 %v1457_v20 }
  0x76   :  { %1212 = vmatpush3.bf16.msra.mxu1 %v1451_v19 }
  0x77   :  { %1213 = vmatprep.subr.bf16.mxu1 %v1463_v21 }
  0x78   :  { %1186 = vmatpush3.bf16.msra.mxu0 %v1469_v22 }
  0x79   :  { %1187 = vmatprep.subr.bf16.mxu0 %v1481_v24 }
  0x7a   :  { %1214 = vmatpush3.bf16.msra.mxu1 %v1475_v23 }
  0x7b   :  { %1215 = vmatprep.subr.bf16.mxu1 %v1487_v25 }
  0x7c   :  { %1188 = vmatpush3.bf16.msra.mxu0 %v1493_v26 }
  0x7d   :  { %1189 = vmatprep.subr.bf16.mxu0 %v1505_v28 }
  0x7e   :  { %1216 = vmatpush3.bf16.msra.mxu1 %v1499_v27 }
  0x7f   :  { %1234 = vmatprep.subr.msk.bf16.mxu1 %vm320_vm0, %v1511_v29 }
  0x80   :  { %1190 = vmatpush3.bf16.msra.mxu0 %v1516_v30 }
  0x82   :  { %1218 = vmatpush3.bf16.msra.mxu1 %v1524_v31 }
  0x83   :  { %810 = vmatmul.mubr.bf16.vlgmr.msra.gmra.mrb[24].mxu0 %v1303_v58 }
  0x84   :  { %817 = vmatprep.mubr.bf16.mxu0 %v1309_v59 }
  0x85   :  { %859 = vmatmul.mubr.bf16.vlgmr.msra.gmra.mrb[24].mxu1 %v1306_v60 }
  0x86   :  { %1005 = vmatprep.mubr.msk.bf16.mxu1 %vm313_vm1, %v1311_v61 }
  0x8b   :  { %818 = vmatmul.mubr.bf16.gmra.mrb[28].mxu0 %v1313_v62 }
  0x8d   :  { %867 = vmatmul.mubr.bf16.gmra.mrb[28].mxu1 %v1314_v63 }
  0xf6   :  { %v1023_v0 = vpop.f32.mrb[0].mxu0 }
  0xf7   :  { %v1024_v1 = vpop.f32.mrb[1].mxu0  ;;  %v1051_v2 = vpop.f32.mrb[0].mxu1 }
  0xf8   :  { %v1025_v3 = vadd.f32 %v1024_v1, %v1023_v0  ;;  %v1026_v4 = vpop.f32.mrb[2].mxu0  ;;  %v1052_v5 = vpop.f32.mrb[1].mxu1 }
  0xf9   :  { %v1027_v6 = vpop.f32.mrb[3].mxu0  ;;  %v1053_v7 = vadd.f32 %v1052_v5, %v1051_v2  ;;  %v1054_v8 = vpop.f32.mrb[2].mxu1 }
  0xfa   :  { %v1028_v9 = vadd.f32 %v1027_v6, %v1026_v4  ;;  %v1055_v10 = vpop.f32.mrb[3].mxu1 }
  0xfb   :  { %v1731_v11 = vadd.f32 %v1053_v7, %v1025_v3  ;;  %v1056_v12 = vadd.f32 %v1055_v10, %v1054_v8 }
  0xfd   :  { %v1733_v13 = vadd.f32 %v1056_v12, %v1028_v9 }
  0xfe   :  { %v1029_v14 = vpop.f32.mrb[4].mxu0 }
  0xff   :  { %v1030_v15 = vpop.f32.mrb[5].mxu0 }
 0x100   :  { %v1057_v16 = vpop.f32.mrb[4].mxu1  ;;  %v1031_v17 = vadd.f32 %v1030_v15, %v1029_v14  ;;  %v1032_v18 = vpop.f32.mrb[6].mxu0 }
 0x101   :  { %v1058_v19 = vpop.f32.mrb[5].mxu1  ;;  %v1033_v20 = vpop.f32.mrb[7].mxu0 }
 0x102   :  { %v1059_v21 = vadd.f32 %v1058_v19, %v1057_v16  ;;  %v1060_v22 = vpop.f32.mrb[6].mxu1  ;;  %v1034_v23 = vadd.f32 %v1033_v20, %v1032_v18 }
 0x103   :  { %v1061_v24 = vpop.f32.mrb[7].mxu1 }
 0x104   :  { %v1735_v25 = vadd.f32 %v1059_v21, %v1031_v17  ;;  %v1062_v26 = vadd.f32 %v1061_v24, %v1060_v22 }
 0x106   :  { %v1737_v27 = vadd.f32 %v1062_v26, %v1034_v23 }
 0x116   :  { %v1079_v28 = vpop.f32.mrb[8].mxu0 }
 0x117   :  { %v1080_v29 = vpop.f32.mrb[9].mxu0 }
 0x118   :  { %v1107_v30 = vpop.f32.mrb[8].mxu1  ;;  %v1081_v31 = vadd.f32 %v1080_v29, %v1079_v28  ;;  %v1082_v32 = vpop.f32.mrb[10].mxu0 }
 0x119   :  { %v1108_v33 = vpop.f32.mrb[9].mxu1  ;;  %v1083_v34 = vpop.f32.mrb[11].mxu0 }
 0x11a   :  { %v1109_v35 = vadd.f32 %v1108_v33, %v1107_v30  ;;  %v1110_v36 = vpop.f32.mrb[10].mxu1  ;;  %v1084_v37 = vadd.f32 %v1083_v34, %v1082_v32 }
 0x11b   :  { %v1111_v38 = vpop.f32.mrb[11].mxu1 }
 0x11c   :  { %v1739_v39 = vadd.f32 %v1109_v35, %v1081_v31  ;;  %v1112_v40 = vadd.f32 %v1111_v38, %v1110_v36 }
 0x11e   :  { %v875_v41 = vmax.f32 %v1731_v11, %v1739_v39  ;;  %v1743_v42 = vadd.f32 %v1112_v40, %v1084_v37  ;;  %v1085_v43 = vpop.f32.mrb[12].mxu0 }
 0x11f   :  { %v1086_v44 = vpop.f32.mrb[13].mxu0 }
 0x120   :  { %v876_v45 = vmax.f32 %v1733_v13, %v1743_v42  ;;  %v1113_v46 = vpop.f32.mrb[12].mxu1  ;;  %v1087_v47 = vadd.f32 %v1086_v44, %v1085_v43  ;;  %v1088_v48 = vpop.f32.mrb[14].mxu0 }
 0x121   :  { %v1114_v49 = vpop.f32.mrb[13].mxu1  ;;  %v1089_v50 = vpop.f32.mrb[15].mxu0 }
 0x122   :  { %v1115_v51 = vadd.f32 %v1114_v49, %v1113_v46  ;;  %v1116_v52 = vpop.f32.mrb[14].mxu1  ;;  %v1090_v53 = vadd.f32 %v1089_v50, %v1088_v48  ;;  %v1006_v48 = vld [vmem:[%s1784_s2] ss:$0 sm:$0xff] }
 0x123   :  { %v1117_v54 = vpop.f32.mrb[15].mxu1 }
 0x124   :  { %v1747_v55 = vadd.f32 %v1115_v51, %v1087_v47  ;;  %v1118_v56 = vadd.f32 %v1117_v54, %v1116_v52 }
 0x126   :  { %v877_v57 = vmax.f32 %v1735_v25, %v1747_v55  ;;  %v1751_v58 = vadd.f32 %v1118_v56, %v1090_v53 }
 0x128   :  { %v878_v59 = vmax.f32 %v1737_v27, %v1751_v58 }
 0x136   :  { %v1135_v60 = vpop.f32.mrb[16].mxu0 }
 0x137   :  { %v1136_v61 = vpop.f32.mrb[17].mxu0 }
 0x138   :  { %v1163_v62 = vpop.f32.mrb[16].mxu1  ;;  %v1137_v63 = vadd.f32 %v1136_v61, %v1135_v60  ;;  %v1138_v0 = vpop.f32.mrb[18].mxu0 }
 0x139   :  { %v1164_v1 = vpop.f32.mrb[17].mxu1  ;;  %v1139_v2 = vpop.f32.mrb[19].mxu0 }
 0x13a   :  { %v1165_v3 = vadd.f32 %v1164_v1, %v1163_v62  ;;  %v1166_v4 = vpop.f32.mrb[18].mxu1  ;;  %v1140_v5 = vadd.f32 %v1139_v2, %v1138_v0 }
 0x13b   :  { %v1167_v6 = vpop.f32.mrb[19].mxu1 }
 0x13c   :  { %v710_v7 = vadd.f32 %v1165_v3, %v1137_v63  ;;  %v1168_v8 = vadd.f32 %v1167_v6, %v1166_v4 }
 0x13e   :  { %v713_v9 = vadd.f32 %v1168_v8, %v1140_v5  ;;  %v1141_v10 = vpop.f32.mrb[20].mxu0 }
 0x13f   :  { %v1142_v12 = vpop.f32.mrb[21].mxu0 }
 0x140   :  { %v1169_v14 = vpop.f32.mrb[20].mxu1  ;;  %v1143_v15 = vadd.f32 %v1142_v12, %v1141_v10  ;;  %v1144_v16 = vpop.f32.mrb[22].mxu0 }
 0x141   :  { %v1170_v17 = vpop.f32.mrb[21].mxu1  ;;  %v1145_v18 = vpop.f32.mrb[23].mxu0 }
 0x142   :  { %v1171_v19 = vadd.f32 %v1170_v17, %v1169_v14  ;;  %v1172_v20 = vpop.f32.mrb[22].mxu1  ;;  %v1146_v21 = vadd.f32 %v1145_v18, %v1144_v16 }
 0x143   :  { %v1173_v22 = vpop.f32.mrb[23].mxu1 }
 0x144   :  { %v718_v23 = vadd.f32 %v1171_v19, %v1143_v15  ;;  %v1174_v24 = vadd.f32 %v1173_v22, %v1172_v20 }
 0x146   :  { %v721_v26 = vadd.f32 %v1174_v24, %v1146_v21 }
 0x156   :  { %v1191_v28 = vpop.f32.mrb[24].mxu0 }
 0x157   :  { %v1192_v29 = vpop.f32.mrb[25].mxu0 }
 0x158   :  { %v1219_v30 = vpop.f32.mrb[24].mxu1  ;;  %v1193_v31 = vadd.f32 %v1192_v29, %v1191_v28  ;;  %v1194_v32 = vpop.f32.mrb[26].mxu0 }
 0x159   :  { %v1220_v33 = vpop.f32.mrb[25].mxu1  ;;  %v1195_v34 = vpop.f32.mrb[27].mxu0 }
 0x15a   :  { %v1221_v35 = vadd.f32 %v1220_v33, %v1219_v30  ;;  %v1222_v36 = vpop.f32.mrb[26].mxu1  ;;  %v1196_v37 = vadd.f32 %v1195_v34, %v1194_v32 }
 0x15b   :  { %v1223_v38 = vpop.f32.mrb[27].mxu1 }
 0x15c   :  { %v861_v40 = vadd.f32 %v1221_v35, %v1193_v31  ;;  %v1224_v43 = vadd.f32 %v1223_v38, %v1222_v36 }
 0x15e   :  { %v879_v44 = vmax.f32 %v710_v7, %v861_v40  ;;  %v864_v46 = vadd.f32 %v1224_v43, %v1196_v37  ;;  %v1197_v47 = vpop.f32.mrb[28].mxu0 }
 0x15f   :  { %v1198_v49 = vpop.f32.mrb[29].mxu0 }
 0x160   :  { %v883_v50 = vmax.f32 %v875_v41, %v879_v44  ;;  %v880_v51 = vmax.f32 %v713_v9, %v864_v46  ;;  %v1225_v52 = vpop.f32.mrb[28].mxu1  ;;  %v1199_v53 = vadd.f32 %v1198_v49, %v1197_v47  ;;  %v1200_v54 = vpop.f32.mrb[30].mxu0 }
 0x161   :  { %v1226_v56 = vpop.f32.mrb[29].mxu1  ;;  %v1201_v60 = vpop.f32.mrb[31].mxu0 }
 0x162   :  { %v894_v61 = vadd.f32 %v1006_v48, %v883_v50  ;;  %v884_v62 = vmax.f32 %v876_v45, %v880_v51  ;;  %v1227_v63 = vadd.f32 %v1226_v56, %v1225_v52  ;;  %v1228_v0 = vpop.f32.mrb[30].mxu1  ;;  %v1202_v1 = vadd.f32 %v1201_v60, %v1200_v54 }
 0x163   :  { %v1229_v2 = vpop.f32.mrb[31].mxu1 }
 0x164   :  { %v898_v3 = vmax.f32 %v894_v61, 0.0  ;;  %v895_v4 = vadd.f32 %v1006_v48, %v884_v62  ;;  %v869_v5 = vadd.f32 %v1227_v63, %v1199_v53  ;;  %v1230_v11 = vadd.f32 %v1229_v2, %v1228_v0 }
 0x166   :  { %902 = vst [vmem:[%s1785_s3] sm:$0xff] %v898_v3  ;;  %v899_v39 = vmax.f32 %v895_v4, 0.0  ;;  %v881_v41 = vmax.f32 %v718_v23, %v869_v5  ;;  %v872_v6 = vadd.f32 %v1230_v11, %v1202_v1 }
 0x168   :  { %903 = vst [vmem:[%s1785_s3 + $0x8] sm:$0xff] %v899_v39  ;;  %v885_v13 = vmax.f32 %v877_v57, %v881_v41  ;;  %v882_v42 = vmax.f32 %v721_v26, %v872_v6 }
 0x16a   :  { %v896_v45 = vadd.f32 %v1006_v48, %v885_v13  ;;  %v886_v7 = vmax.f32 %v878_v59, %v882_v42 }
 0x16c   :  { %v900_v8 = vmax.f32 %v896_v45, 0.0  ;;  %v897_v9 = vadd.f32 %v1006_v48, %v886_v7 }
 0x16e   :  { %904 = vst [vmem:[%s1785_s3 + $0x10] sm:$0xff] %v900_v8  ;;  %v901_v10 = vmax.f32 %v897_v9, 0.0 }
 0x170   :  { %905 = vst [vmem:[%s1785_s3 + $0x18] sm:$0xff] %v901_v10 }

// kernel: net_forward.7
= control target key start
LH: loop header
LB: loop body
LE: loop exit
PB: predicated region body
PF: predicated region fallthrough
CT: control target
= control target key end

     0   :  { %v760_v1 = vmov 0.0   ;;  %vm761_vm0 = vmmov 0   ;;  %vm200_vm1 = vcmask 523264   ;;  %v762_v57 = vmov 0   ;;  %s973_s1 = inlined_call_operand.vmem [shape: bf16[320,128], index: 1, kind: input, shape index: {}]   ;;  %s974_s0 = inlined_call_operand.vmem [shape: bf16[8,320], index: 0, kind: input, shape index: {}]   ;;  %s975_s3 = inlined_call_operand.vmem [shape: bf16[128,512], index: 3, kind: input, shape index: {}]   ;;  %s976_s2 = inlined_call_operand.vmem [shape: f32[1,128], index: 2, kind: input, shape index: {}]   ;;  %s977_s4 = inlined_call_operand.vmem [shape: f32[1,512], index: 4, kind: input, shape index: {}]   ;;  %s978_s5 = inlined_call_operand.vmem [shape: f32[8,512], index: 5, kind: output, shape index: {}]  }
   0x1   :  { %v689_v0 = vld [vmem:[%s973_s1 + $0x40] sm:$0xff]   ;;  %674 = vmatprep.subr.bf16.mxu1 %v760_v1  ;;  %682 = vmatprep.mubr.msk.bf16.mxu1 %vm761_vm0, %v760_v1  ;;  %v691_v3 = vld [vmem:[%s973_s1 + $0x48] sm:$0xff]   ;;  %v693_v5 = vld [vmem:[%s973_s1 + $0x50] sm:$0xff]  }
   0x2   :  { %v690_v2 = vld [vmem:[%s973_s1] sm:$0xff]   ;;  %647 = vmatprep.subr.bf16.mxu0 %v689_v0  ;;  %v692_v4 = vld [vmem:[%s973_s1 + $0x8] sm:$0xff]   ;;  %v694_v6 = vld [vmem:[%s973_s1 + $0x10] sm:$0xff]  }
   0x3   :  { %648 = vmatpush3.bf16.msra.mxu0 %v690_v2  ;;  %v695_v7 = vld [vmem:[%s973_s1 + $0x58] sm:$0xff]   ;;  %v699_v8 = vld [vmem:[%s973_s1 + $0x80] sm:$0xff]   ;;  %v702_v11 = vld [vmem:[%s973_s1 + $0x88] sm:$0xff]  }
   0x4   :  { %649 = vmatprep.subr.bf16.mxu0 %v691_v3  ;;  %v696_v9 = vld [vmem:[%s973_s1 + $0x18] sm:$0xff]   ;;  %v697_v10 = vld [vmem:[%s973_s1 + $0x60] sm:$0xff]   ;;  %675 = vmatpush3.bf16.msra.mxu1 %v699_v8  ;;  %v700_v13 = vld [vmem:[%s973_s1 + $0x68] sm:$0xff]   ;;  %v320_v8 = vlaneseq }
   0x5   :  { %676 = vmatprep.subr.bf16.mxu1 %v760_v1  ;;  %v698_v12 = vld [vmem:[%s973_s1 + $0x20] sm:$0xff]   ;;  %v705_v14 = vld [vmem:[%s973_s1 + $0x90] sm:$0xff]   ;;  %v701_v15 = vld [vmem:[%s973_s1 + $0x28] sm:$0xff]  }
   0x6   :  { %v703_v16 = vld [vmem:[%s973_s1 + $0x70] sm:$0xff]   ;;  %v21_v17 = vld [vmem:[%s974_s0] sm:$0xff]  ;;  %v711_v19 = vld [vmem:[%s973_s1 + $0x98] sm:$0xff]  }
   0x7   :  { %650 = vmatpush3.bf16.msra.mxu0 %v692_v4  ;;  %v592_v18 = vcombine.high %v21_v17, %v21_v17  ;;  %v714_v20 = vld [vmem:[%s975_s3 + $0x4] ss:$16 sps:$4 sm:$0xff]   ;;  %v710_v22 = vld [vmem:[%s974_s0 + $0x8] ss:$0 sps:$4 sm:$0xff]   ;;  %v706_v23 = vld [vmem:[%s973_s1 + $0x78] sm:$0xff]   ;;  %v591_v30 = vcombine.low %v21_v17, %v21_v17 }
   0x8   :  { %651 = vmatprep.subr.bf16.mxu0 %v693_v5  ;;  %677 = vmatpush3.bf16.msra.mxu1 %v702_v11  ;;  %v704_v21 = vld [vmem:[%s973_s1 + $0x30] sm:$0xff]   ;;  %v707_v26 = vld [vmem:[%s973_s1 + $0x38] sm:$0xff]   ;;  %v590_v0 = vld [vmem:[%s976_s2] ss:$0 sm:$0xff] }
   0x9   :  { %678 = vmatprep.subr.bf16.mxu1 %v760_v1  ;;  %236 = vmatprep.mubr.bf16.mxu0 %v592_v18  ;;  %v712_v24 = vld [vmem:[%s975_s3] ss:$16 sps:$4 sm:$0xff]   ;;  %v720_v25 = vld [vmem:[%s975_s3 + $0x24] ss:$16 sps:$4 sm:$0xff]   ;;  %v717_v27 = vld [vmem:[%s975_s3 + $0xc] ss:$16 sps:$4 sm:$0xff]  }
   0xa   :  { %v718_v28 = vld [vmem:[%s975_s3 + $0x20] ss:$16 sps:$4 sm:$0xff]   ;;  %v726_v29 = vld [vmem:[%s975_s3 + $0x44] ss:$16 sps:$4 sm:$0xff]   ;;  %v715_v31 = vld [vmem:[%s975_s3 + $0x8] ss:$16 sps:$4 sm:$0xff]  }
   0xb   :  { %652 = vmatpush3.bf16.msra.mxu0 %v694_v6  ;;  %v723_v32 = vld [vmem:[%s975_s3 + $0x2c] ss:$16 sps:$4 sm:$0xff]   ;;  %v724_v33 = vld [vmem:[%s975_s3 + $0x40] ss:$16 sps:$4 sm:$0xff]   ;;  %v721_v34 = vld [vmem:[%s975_s3 + $0x28] ss:$16 sps:$4 sm:$0xff]  }
   0xc   :  { %653 = vmatprep.subr.bf16.mxu0 %v695_v7  ;;  %679 = vmatpush3.bf16.msra.mxu1 %v705_v14  ;;  %v732_v35 = vld [vmem:[%s975_s3 + $0x64] ss:$16 sps:$4 sm:$0xff]   ;;  %v729_v36 = vld [vmem:[%s975_s3 + $0x4c] ss:$16 sps:$4 sm:$0xff]   ;;  %v730_v37 = vld [vmem:[%s975_s3 + $0x60] ss:$16 sps:$4 sm:$0xff]  }
   0xd   :  { %680 = vmatprep.subr.bf16.mxu1 %v760_v1  ;;  %v738_v38 = vld [vmem:[%s975_s3 + $0x84] ss:$16 sps:$4 sm:$0xff]   ;;  %v727_v39 = vld [vmem:[%s975_s3 + $0x48] ss:$16 sps:$4 sm:$0xff]   ;;  %v735_v40 = vld [vmem:[%s975_s3 + $0x6c] ss:$16 sps:$4 sm:$0xff]  }
   0xe   :  { %v736_v41 = vld [vmem:[%s975_s3 + $0x80] ss:$16 sps:$4 sm:$0xff]   ;;  %v733_v42 = vld [vmem:[%s975_s3 + $0x68] ss:$16 sps:$4 sm:$0xff]   ;;  %v741_v43 = vld [vmem:[%s975_s3 + $0x8c] ss:$16 sps:$4 sm:$0xff]  }
   0xf   :  { %654 = vmatpush3.bf16.msra.mxu0 %v696_v9  ;;  %v739_v44 = vld [vmem:[%s975_s3 + $0x88] ss:$16 sps:$4 sm:$0xff]   ;;  %v744_v45 = vld [vmem:[%s975_s3 + $0xa4] ss:$16 sps:$4 sm:$0xff]   ;;  %v747_v46 = vld [vmem:[%s975_s3 + $0xac] ss:$16 sps:$4 sm:$0xff]  }
  0x10   :  { %655 = vmatprep.subr.bf16.mxu0 %v697_v10  ;;  %681 = vmatpush3.bf16.msra.mxu1 %v711_v19  ;;  %v742_v47 = vld [vmem:[%s975_s3 + $0xa0] ss:$16 sps:$4 sm:$0xff]   ;;  %v745_v48 = vld [vmem:[%s975_s3 + $0xa8] ss:$16 sps:$4 sm:$0xff]   ;;  %v750_v49 = vld [vmem:[%s975_s3 + $0xc4] ss:$16 sps:$4 sm:$0xff]  }
  0x11   :  { %500 = vmatprep.subr.bf16.mxu1 %v714_v20  ;;  %v753_v50 = vld [vmem:[%s975_s3 + $0xcc] ss:$16 sps:$4 sm:$0xff]   ;;  %v748_v51 = vld [vmem:[%s975_s3 + $0xc0] ss:$16 sps:$4 sm:$0xff]   ;;  %v751_v52 = vld [vmem:[%s975_s3 + $0xc8] ss:$16 sps:$4 sm:$0xff]  }
  0x12   :  { %v756_v53 = vld [vmem:[%s975_s3 + $0xe4] ss:$16 sps:$4 sm:$0xff]   ;;  %v759_v54 = vld [vmem:[%s975_s3 + $0xec] ss:$16 sps:$4 sm:$0xff]   ;;  %v754_v55 = vld [vmem:[%s975_s3 + $0xe0] ss:$16 sps:$4 sm:$0xff]  }
  0x13   :  { %656 = vmatpush3.bf16.msra.mxu0 %v698_v12  ;;  %683 = vmatmul.mubr.msk.bf16.vlgmr.msra.gmra.mrb[0].mxu1 %vm200_vm1, %v710_v22  ;;  %v757_v56 = vld [vmem:[%s975_s3 + $0xe8] ss:$16 sps:$4 sm:$0xff]   ;;  %v321_v9 = vshrl.u32 %v320_v8, 7  ;;  %v318_v12 = vld [vmem:[%s977_s4] sm:$0xf] }
  0x14   :  { %657 = vmatprep.subr.bf16.mxu0 %v700_v13  ;;  %501 = vmatpush1.bf16.msra.mxu1 %v712_v24 }
  0x15   :  { %502 = vmatprep.subr.bf16.mxu1 %v720_v25  ;;  %532 = vmatprep.mubr.bf16.mxu1 %v762_v57  ;;  %v322_v10 = vsub.s32 0, %v321_v9  ;;  %v330_v11 = vsub.s32 2, %v321_v9  ;;  %v326_v13 = vsub.s32 1, %v321_v9  ;;  %v334_v14 = vsub.s32 3, %v321_v9 }
  0x17   :  { %658 = vmatpush3.bf16.msra.mxu0 %v701_v15  ;;  %v323_v15 = vrot.slane %v318_v12, %v322_v10  ;;  %v327_v17 = vrot.slane %v318_v12, %v326_v13  ;;  %v335_v18 = vrot.slane %v318_v12, %v334_v14 }
  0x18   :  { %659 = vmatprep.subr.bf16.mxu0 %v703_v16  ;;  %503 = vmatpush1.bf16.msra.mxu1 %v718_v28  ;;  %v331_v16 = vrot.slane %v318_v12, %v330_v11 }
  0x19   :  { %504 = vmatprep.subr.bf16.mxu1 %v726_v29 }
  0x1b   :  { %660 = vmatpush3.bf16.msra.mxu0 %v704_v21 }
  0x1c   :  { %661 = vmatprep.subr.bf16.mxu0 %v706_v23  ;;  %505 = vmatpush1.bf16.msra.mxu1 %v724_v33 }
  0x1d   :  { %506 = vmatprep.subr.bf16.mxu1 %v732_v35 }
  0x1f   :  { %662 = vmatpush3.bf16.msra.mxu0 %v707_v26 }
  0x20   :  { %541 = vmatprep.subr.bf16.mxu0 %v717_v27  ;;  %507 = vmatpush1.bf16.msra.mxu1 %v730_v37 }
  0x21   :  { %508 = vmatprep.subr.bf16.mxu1 %v738_v38 }
  0x22   :  { %237 = vmatmul.mubr.bf16.vlgmr.msra.gmra.mrb[0].mxu0 %v591_v30 }
  0x23   :  { %542 = vmatpush1.bf16.msra.mxu0 %v715_v31  ;;  %573 = vmatprep.mubr.bf16.mxu0 %v762_v57 }
  0x24   :  { %543 = vmatprep.subr.bf16.mxu0 %v723_v32  ;;  %509 = vmatpush1.bf16.msra.mxu1 %v736_v41 }
  0x25   :  { %510 = vmatprep.subr.bf16.mxu1 %v744_v45 }
  0x27   :  { %544 = vmatpush1.bf16.msra.mxu0 %v721_v34 }
  0x28   :  { %545 = vmatprep.subr.bf16.mxu0 %v729_v36  ;;  %511 = vmatpush1.bf16.msra.mxu1 %v742_v47 }
  0x29   :  { %512 = vmatprep.subr.bf16.mxu1 %v750_v49 }
  0x2b   :  { %546 = vmatpush1.bf16.msra.mxu0 %v727_v39 }
  0x2c   :  { %547 = vmatprep.subr.bf16.mxu0 %v735_v40  ;;  %513 = vmatpush1.bf16.msra.mxu1 %v748_v51 }
  0x2d   :  { %514 = vmatprep.subr.bf16.mxu1 %v756_v53 }
  0x2f   :  { %548 = vmatpush1.bf16.msra.mxu0 %v733_v42 }
  0x30   :  { %549 = vmatprep.subr.bf16.mxu0 %v741_v43  ;;  %515 = vmatpush1.bf16.msra.mxu1 %v754_v55 }
  0x33   :  { %550 = vmatpush1.bf16.msra.mxu0 %v739_v44 }
  0x34   :  { %551 = vmatprep.subr.bf16.mxu0 %v747_v46 }
  0x37   :  { %552 = vmatpush1.bf16.msra.mxu0 %v745_v48 }
  0x38   :  { %553 = vmatprep.subr.bf16.mxu0 %v753_v50 }
  0x3b   :  { %554 = vmatpush1.bf16.msra.mxu0 %v751_v52 }
  0x3c   :  { %555 = vmatprep.subr.bf16.mxu0 %v759_v54 }
  0x3f   :  { %556 = vmatpush1.bf16.msra.mxu0 %v757_v56 }
  0xe6   :  { %v278_v58 = vpop.f32.mrb[0].mxu1 }
  0xe7   :  { %v684_v59 = vpop.f32.mrb[1].mxu1 }
  0xe8   :  { %v281_v60 = vpop.f32.mrb[2].mxu1 }
  0xe9   :  { %v685_v61 = vpop.f32.mrb[3].mxu1 }
  0xf5   :  { %v663_v62 = vpop.f32.mrb[0].mxu0 }
  0xf6   :  { %v664_v63 = vpop.f32.mrb[1].mxu0 }
  0xf7   :  { %v665_v1 = vadd.f32 %v664_v63, %v663_v62  ;;  %v666_v2 = vpop.f32.mrb[2].mxu0 }
  0xf8   :  { %v667_v3 = vpop.f32.mrb[3].mxu0 }
  0xf9   :  { %v239_v4 = vadd.f32 %v665_v1, %v590_v0 }
  0xfb   :  { %v279_v5 = vadd.f32 %v278_v58, %v239_v4 }
  0xfd   :  { %v284_v6 = vmax.f32 %v279_v5, 0.0 }
  0xff   :  { %v285_v7 = vpack.c.bf16 %v284_v6, %v284_v6 }
 0x101   :  { %533 = vmatmul.mubr.bf16.vlgmr.msra.gmra.mrb[4].mxu1 %v285_v7  ;;  %574 = vmatmul.mubr.bf16.vlgmr.msra.gmra.mrb[4].mxu0 %v285_v7 }
 0x1d4   :  { %v534_v19 = vpop.f32.mrb[4].mxu1  ;;  %v575_v20 = vpop.f32.mrb[4].mxu0 }
 0x1d5   :  { %v535_v21 = vadd.f32 %v534_v19, %v323_v15  ;;  %v576_v22 = vadd.f32 %v575_v20, %v331_v16  ;;  %v536_v23 = vpop.f32.mrb[5].mxu1  ;;  %v577_v24 = vpop.f32.mrb[5].mxu0 }
 0x1d6   :  { %v537_v25 = vadd.f32 %v536_v23, %v327_v17  ;;  %v578_v26 = vadd.f32 %v577_v24, %v335_v18  ;;  %v538_v27 = vpop.f32.mrb[6].mxu1  ;;  %v579_v28 = vpop.f32.mrb[6].mxu0 }
 0x1d7   :  { %582 = vst [vmem:[%s978_s5] sm:$0xff] %v535_v21  ;;  %584 = vst [vmem:[%s978_s5 + $0x10] sm:$0xff] %v576_v22  ;;  %v539_v29 = vpop.f32.mrb[7].mxu1  ;;  %v580_v30 = vpop.f32.mrb[7].mxu0 }
 0x1d8   :  { %583 = vst [vmem:[%s978_s5 + $0x8] sm:$0xff] %v537_v25  ;;  %585 = vst [vmem:[%s978_s5 + $0x18] sm:$0xff] %v578_v26 }

</bundles_post_ra>
